<compile_context>
chip_gen: v7x
topology: tpu7x:2x2x1
jax: 0.10.0
libtpu: 0.0.40
codegen_flags: <defaults>
</compile_context>

<pallas_src>
import jax
import jax.numpy as jnp
from jax.experimental import pallas as pl
from jax.experimental.pallas import tpu as pltpu

BN_EPS = 1e-5
# Set to jnp.bfloat16 on v6e/v7x for ~2x MXU throughput (accumulation stays f32,
# BN / ReLU / stats math stays f32, which also keeps v5e's non-bf16 VPU happy).
MATMUL_DTYPE = jnp.float32

_COMPILER_PARAMS = pltpu.CompilerParams(
    dimension_semantics=("parallel",),
    vmem_limit_bytes=32 * 1024 * 1024,
)


# ----------------------------------------------------------------------------
# helpers (in-kernel)
# ----------------------------------------------------------------------------
def _zero_halo(pad_ref, Ho, Wo, C):
    """Zero only the 1-pixel halo border of a (Ho+2, Wo+2, C) scratch slab."""
    pad_ref[0:1, :, :] = jnp.zeros((1, Wo + 2, C), jnp.float32)
    pad_ref[Ho + 1:Ho + 2, :, :] = jnp.zeros((1, Wo + 2, C), jnp.float32)
    pad_ref[:, 0:1, :] = jnp.zeros((Ho + 2, 1, C), jnp.float32)
    pad_ref[:, Wo + 1:Wo + 2, :] = jnp.zeros((Ho + 2, 1, C), jnp.float32)


# ----------------------------------------------------------------------------
# K0: ConvTranspose2d(k=2, s=2) -> one wide tap matmul.
#   x:(1,H,W,Cin)  w:(Cin,4*Ch)  b:(1,4*Ch)  ->  o:(1,H*W,4*Ch)
#   column layout of o: (ki, kj, co) so a later reshape/transpose interleaves taps.
# ----------------------------------------------------------------------------
def _up_taps_kernel(x_ref, w_ref, b_ref, o_ref):
    _, H, W, Cin = x_ref.shape
    xm = x_ref[0].reshape(H * W, Cin)
    y = jnp.dot(xm.astype(MATMUL_DTYPE), w_ref[...].astype(MATMUL_DTYPE),
                preferred_element_type=jnp.float32)
    o_ref[0] = y + b_ref[...]


# ----------------------------------------------------------------------------
# K1: 3x3 conv over the *virtual* concat [x_copy, up] (K-split, no HBM concat),
#     zero-halo built in VMEM scratch, plus per-batch BN1 partial statistics
#     packed as stats[0]=sum, stats[1]=sum(x^2).
# ----------------------------------------------------------------------------
def _conv1_stats_kernel(xc_ref, u_ref, wc_ref, wu_ref,
                        z_ref, stat_ref, xc_pad, u_pad):
    _, Ho, Wo, Ch = xc_ref.shape
    C1 = z_ref.shape[3]
    # only the halo border needs zeroing; the interior is fully overwritten below
    _zero_halo(xc_pad, Ho, Wo, Ch)
    _zero_halo(u_pad, Ho, Wo, Ch)
    xc_pad[1:Ho + 1, 1:Wo + 1, :] = xc_ref[0]
    u_pad[1:Ho + 1, 1:Wo + 1, :] = u_ref[0]

    wc = wc_ref[...].astype(MATMUL_DTYPE)
    wu = wu_ref[...].astype(MATMUL_DTYPE)
    acc = jnp.zeros((Ho * Wo, C1), jnp.float32)
    for dy in range(3):
        for dx in range(3):
            a = xc_pad[dy:dy + Ho, dx:dx + Wo, :].reshape(Ho * Wo, Ch)
            b = u_pad[dy:dy + Ho, dx:dx + Wo, :].reshape(Ho * Wo, Ch)
            acc = acc + jnp.dot(a.astype(MATMUL_DTYPE), wc[dy, dx],
                                preferred_element_type=jnp.float32)
            acc = acc + jnp.dot(b.astype(MATMUL_DTYPE), wu[dy, dx],
                                preferred_element_type=jnp.float32)

    z_ref[0] = acc.reshape(Ho, Wo, C1)                           # pre-BN activation
    stat_ref[0, 0:1, :] = jnp.sum(acc, axis=0, keepdims=True)    # per-batch sum
    stat_ref[0, 1:2, :] = jnp.sum(acc * acc, axis=0, keepdims=True)  # sum(x^2)


# ----------------------------------------------------------------------------
# K2: apply BN1 (precomputed scale/shift) + ReLU fused into the 3x3 conv2,
#     plus packed per-batch BN2 partial statistics.
# ----------------------------------------------------------------------------
def _bn_relu_conv2_stats_kernel(z1_ref, sc_ref, sh_ref, w_ref,
                                z_ref, stat_ref, a_pad):
    _, Ho, Wo, C1 = z1_ref.shape
    C2 = z_ref.shape[3]
    act = jnp.maximum(z1_ref[0].reshape(Ho * Wo, C1) * sc_ref[...] + sh_ref[...], 0.0)

    _zero_halo(a_pad, Ho, Wo, C1)
    a_pad[1:Ho + 1, 1:Wo + 1, :] = act.reshape(Ho, Wo, C1)

    w = w_ref[...].astype(MATMUL_DTYPE)
    acc = jnp.zeros((Ho * Wo, C2), jnp.float32)
    for dy in range(3):
        for dx in range(3):
            v = a_pad[dy:dy + Ho, dx:dx + Wo, :].reshape(Ho * Wo, C1)
            acc = acc + jnp.dot(v.astype(MATMUL_DTYPE), w[dy, dx],
                                preferred_element_type=jnp.float32)

    z_ref[0] = acc.reshape(Ho, Wo, C2)
    stat_ref[0, 0:1, :] = jnp.sum(acc, axis=0, keepdims=True)
    stat_ref[0, 1:2, :] = jnp.sum(acc * acc, axis=0, keepdims=True)


# ----------------------------------------------------------------------------
# K3: final BN2-apply + ReLU (elementwise).
# ----------------------------------------------------------------------------
def _bn_relu_kernel(z_ref, sc_ref, sh_ref, o_ref):
    _, Ho, Wo, C = z_ref.shape
    y = jnp.maximum(z_ref[0].reshape(Ho * Wo, C) * sc_ref[...] + sh_ref[...], 0.0)
    o_ref[0] = y.reshape(Ho, Wo, C)


# ----------------------------------------------------------------------------
# wrapper-side helpers (tiny (C,)-sized XLA glue)
# ----------------------------------------------------------------------------
def _bn_scale_shift(stats, count, gamma, beta):
    """Combine packed per-batch partials into training-mode (biased) BN scale/shift."""
    s = jnp.sum(stats[:, 0, :], axis=0)
    q = jnp.sum(stats[:, 1, :], axis=0)
    mean = s / count
    var = jnp.maximum(q / count - mean * mean, 0.0)
    scale = gamma * jax.lax.rsqrt(var + BN_EPS)
    shift = beta - mean * scale
    c = gamma.shape[0]
    return scale.reshape(1, c), shift.reshape(1, c)


# ----------------------------------------------------------------------------
# decoder.forward  (NCHW in / NCHW out, matching PyTorch)
# ----------------------------------------------------------------------------
def decoder_forward(x_copy_nchw, x_nchw, params):
    x_copy = jnp.transpose(x_copy_nchw, (0, 2, 3, 1))   # NCHW -> NHWC
    x = jnp.transpose(x_nchw, (0, 2, 3, 1))
    N, H, W, Cin = x.shape
    Ch = Cin // 2
    Ho, Wo = 2 * H, 2 * W
    C1 = params["g1"].shape[0]
    C2 = params["g2"].shape[0]

    if x_copy.shape[1:3] != (Ho, Wo):
        # TODO(synk): bilinear F.interpolate(align_corners=True) / F.pad branch not
        # implemented; unused when the skip tensor is exactly 2x spatial.
        raise NotImplementedError("spatial-mismatch branch not implemented")

    # ---- K0: ConvTranspose2d as a single wide tap matmul ----------------------
    taps = pl.pallas_call(
        _up_taps_kernel,
        out_shape=jax.ShapeDtypeStruct((N, H * W, 4 * Ch), jnp.float32),
        grid=(N,),
        in_specs=[
            pl.BlockSpec((1, H, W, Cin), lambda n: (n, 0, 0, 0)),
            pl.BlockSpec((Cin, 4 * Ch), lambda n: (0, 0)),
            pl.BlockSpec((1, 4 * Ch), lambda n: (0, 0)),
        ],
        out_specs=pl.BlockSpec((1, H * W, 4 * Ch), lambda n: (n, 0, 0)),
        compiler_params=_COMPILER_PARAMS,
    )(x, params["up_w"], params["up_b"])
    # Tap interleave: one fused XLA shuffle on the small (Ch-wide) pre-conv tensor.
    # TODO(synk): fold this interleave into K1 so the upsample never touches HBM.
    up = taps.reshape(N, H, W, 2, 2, Ch).transpose(0, 1, 3, 2, 4, 5).reshape(N, Ho, Wo, Ch)

    # ---- K1: conv1 over the virtual concat + BN1 partial stats ----------------
    z1, st1 = pl.pallas_call(
        _conv1_stats_kernel,
        out_shape=(
            jax.ShapeDtypeStruct((N, Ho, Wo, C1), jnp.float32),
            jax.ShapeDtypeStruct((N, 2, C1), jnp.float32),
        ),
        grid=(N,),
        in_specs=[
            pl.BlockSpec((1, Ho, Wo, Ch), lambda n: (n, 0, 0, 0)),
            pl.BlockSpec((1, Ho, Wo, Ch), lambda n: (n, 0, 0, 0)),
            pl.BlockSpec((3, 3, Ch, C1), lambda n: (0, 0, 0, 0)),
            pl.BlockSpec((3, 3, Ch, C1), lambda n: (0, 0, 0, 0)),
        ],
        out_specs=(
            pl.BlockSpec((1, Ho, Wo, C1), lambda n: (n, 0, 0, 0)),
            pl.BlockSpec((1, 2, C1), lambda n: (n, 0, 0)),
        ),
        scratch_shapes=[
            pltpu.VMEM((Ho + 2, Wo + 2, Ch), jnp.float32),
            pltpu.VMEM((Ho + 2, Wo + 2, Ch), jnp.float32),
        ],
        compiler_params=_COMPILER_PARAMS,
    )(x_copy, up, params["w1_copy"], params["w1_up"])
    scale1, shift1 = _bn_scale_shift(st1, N * Ho * Wo, params["g1"], params["b1"])

    # ---- K2: BN1-apply + ReLU fused into conv2, plus BN2 partial stats --------
    z2, st2 = pl.pallas_call(
        _bn_relu_conv2_stats_kernel,
        out_shape=(
            jax.ShapeDtypeStruct((N, Ho, Wo, C2), jnp.float32),
            jax.ShapeDtypeStruct((N, 2, C2), jnp.float32),
        ),
        grid=(N,),
        in_specs=[
            pl.BlockSpec((1, Ho, Wo, C1), lambda n: (n, 0, 0, 0)),
            pl.BlockSpec((1, C1), lambda n: (0, 0)),
            pl.BlockSpec((1, C1), lambda n: (0, 0)),
            pl.BlockSpec((3, 3, C1, C2), lambda n: (0, 0, 0, 0)),
        ],
        out_specs=(
            pl.BlockSpec((1, Ho, Wo, C2), lambda n: (n, 0, 0, 0)),
            pl.BlockSpec((1, 2, C2), lambda n: (n, 0, 0)),
        ),
        scratch_shapes=[pltpu.VMEM((Ho + 2, Wo + 2, C1), jnp.float32)],
        compiler_params=_COMPILER_PARAMS,
    )(z1, scale1, shift1, params["w2"])
    scale2, shift2 = _bn_scale_shift(st2, N * Ho * Wo, params["g2"], params["b2"])

    # ---- K3: final BN2-apply + ReLU -------------------------------------------
    y = pl.pallas_call(
        _bn_relu_kernel,
        out_shape=jax.ShapeDtypeStruct((N, Ho, Wo, C2), jnp.float32),
        grid=(N,),
        in_specs=[
            pl.BlockSpec((1, Ho, Wo, C2), lambda n: (n, 0, 0, 0)),
            pl.BlockSpec((1, C2), lambda n: (0, 0)),
            pl.BlockSpec((1, C2), lambda n: (0, 0)),
        ],
        out_specs=pl.BlockSpec((1, Ho, Wo, C2), lambda n: (n, 0, 0, 0)),
        compiler_params=_COMPILER_PARAMS,
    )(z2, scale2, shift2)

    return jnp.transpose(y, (0, 3, 1, 2))   # NHWC -> NCHW


# ----------------------------------------------------------------------------
# parameter construction (PyTorch layouts converted once at init time)
# ----------------------------------------------------------------------------
def init_params(key, in_channels, out_channels):
    half = in_channels // 2          # ConvTranspose output channels
    inner = out_channels // 2        # x2conv inner channels
    k = jax.random.split(key, 4)

    # ConvTranspose2d weight, PyTorch layout (Cin, Cout, kH, kW).
    # Pack all four (kH,kW) taps along the output lane dim: (Cin, 4*Cout).
    up_w_pt = jax.random.normal(k[0], (in_channels, half, 2, 2), jnp.float32) * 0.1
    up_w = jnp.transpose(up_w_pt, (0, 2, 3, 1)).reshape(in_channels, 4 * half)
    up_b_pt = jax.random.normal(k[1], (half,), jnp.float32) * 0.1
    up_b = jnp.tile(up_b_pt, 4).reshape(1, 4 * half)

    # Conv2d weights, PyTorch layout (Cout, Cin, kH, kW) -> (kH, kW, Cin, Cout).
    # w1 is split along its input-channel (K) axis so the channel concat never
    # has to be materialized: first half sees x_copy, second half the upsample.
    w1_pt = jax.random.normal(k[2], (inner, in_channels, 3, 3), jnp.float32) * 0.1
    w1 = jnp.transpose(w1_pt, (2, 3, 1, 0))
    w2_pt = jax.random.normal(k[3], (out_channels, inner, 3, 3), jnp.float32) * 0.1
    w2 = jnp.transpose(w2_pt, (2, 3, 1, 0))

    return dict(
        up_w=up_w, up_b=up_b,
        w1_copy=w1[:, :, :half, :], w1_up=w1[:, :, half:, :],
        w2=w2,
        g1=jnp.ones((inner,), jnp.float32), b1=jnp.zeros((inner,), jnp.float32),
        g2=jnp.ones((out_channels,), jnp.float32), b2=jnp.zeros((out_channels,), jnp.float32),
    )


if __name__ == "__main__":
    in_channels, out_channels = 8, 8
    N, H, W = 2, 8, 8   # x: (N, Cin, H, W); x_copy: (N, Cin//2, 2H, 2W)

    key = jax.random.PRNGKey(0)
    kx, kc, kp = jax.random.split(key, 3)
    x = jax.random.normal(kx, (N, in_channels, H, W), jnp.float32)
    x_copy = jax.random.normal(kc, (N, in_channels // 2, 2 * H, 2 * W), jnp.float32)
    params = init_params(kp, in_channels, out_channels)

    fwd = jax.jit(decoder_forward)
    out = jax.block_until_ready(fwd(x_copy, x, params))

    assert out.shape == (N, out_channels, 2 * H, 2 * W), out.shape
    assert bool(jnp.all(jnp.isfinite(out)))
    print("KERNEL_OK")
</pallas_src>

<mosaic_0001>
module attributes {stable_mosaic.version = 11 : i64} {
  func.func @_up_taps_kernel(%arg0: i32, %arg1: memref<1x8x8x8xf32, #tpu.memory_space<vmem>>, %arg2: memref<8x16xf32, #tpu.memory_space<vmem>>, %arg3: memref<1x16xf32, #tpu.memory_space<vmem>>, %arg4: memref<1x64x16xf32, #tpu.memory_space<vmem>>) attributes {dimension_semantics = [#tpu.dimension_semantics<parallel>], iteration_bounds = array<i64: 2>, scalar_prefetch = 0 : i64, scratch_operands = 0 : i64, tpu.core_type = #tpu.core_type<tc>, window_params = [{transform_indices = @transform_0, window_bounds = array<i64: 1, 8, 8, 8>}, {pipeline_mode = #tpu.pipeline_mode<synchronous>, transform_indices = @transform_1, window_bounds = array<i64: 8, 16>}, {pipeline_mode = #tpu.pipeline_mode<synchronous>, transform_indices = @transform_2, window_bounds = array<i64: 1, 16>}, {transform_indices = @transform_3, window_bounds = array<i64: 1, 64, 16>}]} {
    %c0 = arith.constant 0 : index
    %c0_0 = arith.constant 0 : index
    %c0_1 = arith.constant 0 : index
    %c0_2 = arith.constant 0 : index
    %0 = vector.load %arg1[%c0, %c0_0, %c0_1, %c0_2] : memref<1x8x8x8xf32, #tpu.memory_space<vmem>>, vector<1x8x8x8xf32>
    %1 = vector.shape_cast %0 : vector<1x8x8x8xf32> to vector<8x8x8xf32>
    %2 = vector.shape_cast %1 : vector<8x8x8xf32> to vector<64x8xf32>
    %c0_3 = arith.constant 0 : index
    %c0_4 = arith.constant 0 : index
    %3 = vector.load %arg2[%c0_3, %c0_4] : memref<8x16xf32, #tpu.memory_space<vmem>>, vector<8x16xf32>
    %cst = arith.constant dense<0.000000e+00> : vector<64x16xf32>
    %4 = tpu.matmul %2, %3, %cst {dimension_numbers = #tpu.dot_dimension_numbers<[1], [0], [0], [1], [0, 0, 1, 1], [], []>} : vector<64x8xf32>, vector<8x16xf32>, vector<64x16xf32> -> vector<64x16xf32>
    %c0_5 = arith.constant 0 : index
    %c0_6 = arith.constant 0 : index
    %5 = vector.load %arg3[%c0_5, %c0_6] : memref<1x16xf32, #tpu.memory_space<vmem>>, vector<1x16xf32>
    %6 = vector.broadcast %5 : vector<1x16xf32> to vector<64x16xf32>
    %7 = arith.addf %4, %6 : vector<64x16xf32>
    %c0_7 = arith.constant 0 : index
    %c0_8 = arith.constant 0 : index
    %c0_9 = arith.constant 0 : index
    %8 = vector.load %arg4[%c0_7, %c0_8, %c0_9] : memref<1x64x16xf32, #tpu.memory_space<vmem>>, vector<1x64x16xf32>
    %9 = vector.shape_cast %8 : vector<1x64x16xf32> to vector<64x16xf32>
    %10 = vector.shape_cast %7 : vector<64x16xf32> to vector<1x64x16xf32>
    tpu.vector_store %arg4[%c0_7, %c0_8, %c0_9], %10 {strides = array<i32>} : memref<1x64x16xf32, #tpu.memory_space<vmem>>, vector<1x64x16xf32>,
    return
  }
  func.func @transform_0(%arg0: i32) -> (i32, i32, i32, i32) {
    %c0_i32 = arith.constant 0 : i32
    %c0_i32_0 = arith.constant 0 : i32
    %c0_i32_1 = arith.constant 0 : i32
    %c0_i32_2 = arith.constant 0 : i32
    return %arg0, %c0_i32, %c0_i32_0, %c0_i32_1 : i32, i32, i32, i32
  }
  func.func @transform_1(%arg0: i32) -> (i32, i32) {
    %c0_i32 = arith.constant 0 : i32
    %c0_i32_0 = arith.constant 0 : i32
    %c0_i32_1 = arith.constant 0 : i32
    return %c0_i32, %c0_i32_0 : i32, i32
  }
  func.func @transform_2(%arg0: i32) -> (i32, i32) {
    %c0_i32 = arith.constant 0 : i32
    %c0_i32_0 = arith.constant 0 : i32
    %c0_i32_1 = arith.constant 0 : i32
    return %c0_i32, %c0_i32_0 : i32, i32
  }
  func.func @transform_3(%arg0: i32) -> (i32, i32, i32) {
    %c0_i32 = arith.constant 0 : i32
    %c0_i32_0 = arith.constant 0 : i32
    %c0_i32_1 = arith.constant 0 : i32
    return %arg0, %c0_i32, %c0_i32_0 : i32, i32, i32
  }
}

module attributes {stable_mosaic.version = 11 : i64} {
  func.func @_conv1_stats_kernel(%arg0: i32, %arg1: memref<1x16x16x4xf32, #tpu.memory_space<vmem>>, %arg2: memref<1x16x16x4xf32, #tpu.memory_space<vmem>>, %arg3: memref<3x3x4x4xf32, #tpu.memory_space<vmem>>, %arg4: memref<3x3x4x4xf32, #tpu.memory_space<vmem>>, %arg5: memref<1x16x16x4xf32, #tpu.memory_space<vmem>>, %arg6: memref<1x2x4xf32, #tpu.memory_space<vmem>>, %arg7: memref<18x18x4xf32, #tpu.memory_space<vmem>>, %arg8: memref<18x18x4xf32, #tpu.memory_space<vmem>>) attributes {dimension_semantics = [#tpu.dimension_semantics<parallel>], iteration_bounds = array<i64: 2>, scalar_prefetch = 0 : i64, scratch_operands = 2 : i64, tpu.core_type = #tpu.core_type<tc>, window_params = [{transform_indices = @transform_0, window_bounds = array<i64: 1, 16, 16, 4>}, {transform_indices = @transform_1, window_bounds = array<i64: 1, 16, 16, 4>}, {pipeline_mode = #tpu.pipeline_mode<synchronous>, transform_indices = @transform_2, window_bounds = array<i64: 3, 3, 4, 4>}, {pipeline_mode = #tpu.pipeline_mode<synchronous>, transform_indices = @transform_3, window_bounds = array<i64: 3, 3, 4, 4>}, {transform_indices = @transform_4, window_bounds = array<i64: 1, 16, 16, 4>}, {transform_indices = @transform_5, window_bounds = array<i64: 1, 2, 4>}]} {
    %cst = arith.constant 0.000000e+00 : f32
    %0 = vector.broadcast %cst : f32 to vector<1x18x4xf32>
    %c0 = arith.constant 0 : index
    %c0_0 = arith.constant 0 : index
    %c0_1 = arith.constant 0 : index
    %1 = vector.load %arg7[%c0, %c0_0, %c0_1] : memref<18x18x4xf32, #tpu.memory_space<vmem>>, vector<1x18x4xf32>
    tpu.vector_store %arg7[%c0, %c0_0, %c0_1], %0 {strides = array<i32>} : memref<18x18x4xf32, #tpu.memory_space<vmem>>, vector<1x18x4xf32>,
    %cst_2 = arith.constant 0.000000e+00 : f32
    %2 = vector.broadcast %cst_2 : f32 to vector<1x18x4xf32>
    %c17 = arith.constant 17 : index
    %c0_3 = arith.constant 0 : index
    %c0_4 = arith.constant 0 : index
    %3 = vector.load %arg7[%c17, %c0_3, %c0_4] : memref<18x18x4xf32, #tpu.memory_space<vmem>>, vector<1x18x4xf32>
    tpu.vector_store %arg7[%c17, %c0_3, %c0_4], %2 {strides = array<i32>} : memref<18x18x4xf32, #tpu.memory_space<vmem>>, vector<1x18x4xf32>,
    %cst_5 = arith.constant 0.000000e+00 : f32
    %4 = vector.broadcast %cst_5 : f32 to vector<18x1x4xf32>
    %c0_6 = arith.constant 0 : index
    %c0_7 = arith.constant 0 : index
    %c0_8 = arith.constant 0 : index
    %5 = vector.load %arg7[%c0_6, %c0_7, %c0_8] : memref<18x18x4xf32, #tpu.memory_space<vmem>>, vector<18x1x4xf32>
    tpu.vector_store %arg7[%c0_6, %c0_7, %c0_8], %4 {strides = array<i32>} : memref<18x18x4xf32, #tpu.memory_space<vmem>>, vector<18x1x4xf32>,
    %cst_9 = arith.constant 0.000000e+00 : f32
    %6 = vector.broadcast %cst_9 : f32 to vector<18x1x4xf32>
    %c0_10 = arith.constant 0 : index
    %c17_11 = arith.constant 17 : index
    %c0_12 = arith.constant 0 : index
    %7 = vector.load %arg7[%c0_10, %c17_11, %c0_12] : memref<18x18x4xf32, #tpu.memory_space<vmem>>, vector<18x1x4xf32>
    tpu.vector_store %arg7[%c0_10, %c17_11, %c0_12], %6 {strides = array<i32>} : memref<18x18x4xf32, #tpu.memory_space<vmem>>, vector<18x1x4xf32>,
    %cst_13 = arith.constant 0.000000e+00 : f32
    %8 = vector.broadcast %cst_13 : f32 to vector<1x18x4xf32>
    %c0_14 = arith.constant 0 : index
    %c0_15 = arith.constant 0 : index
    %c0_16 = arith.constant 0 : index
    %9 = vector.load %arg8[%c0_14, %c0_15, %c0_16] : memref<18x18x4xf32, #tpu.memory_space<vmem>>, vector<1x18x4xf32>
    tpu.vector_store %arg8[%c0_14, %c0_15, %c0_16], %8 {strides = array<i32>} : memref<18x18x4xf32, #tpu.memory_space<vmem>>, vector<1x18x4xf32>,
    %cst_17 = arith.constant 0.000000e+00 : f32
    %10 = vector.broadcast %cst_17 : f32 to vector<1x18x4xf32>
    %c17_18 = arith.constant 17 : index
    %c0_19 = arith.constant 0 : index
    %c0_20 = arith.constant 0 : index
    %11 = vector.load %arg8[%c17_18, %c0_19, %c0_20] : memref<18x18x4xf32, #tpu.memory_space<vmem>>, vector<1x18x4xf32>
    tpu.vector_store %arg8[%c17_18, %c0_19, %c0_20], %10 {strides = array<i32>} : memref<18x18x4xf32, #tpu.memory_space<vmem>>, vector<1x18x4xf32>,
    %cst_21 = arith.constant 0.000000e+00 : f32
    %12 = vector.broadcast %cst_21 : f32 to vector<18x1x4xf32>
    %c0_22 = arith.constant 0 : index
    %c0_23 = arith.constant 0 : index
    %c0_24 = arith.constant 0 : index
    %13 = vector.load %arg8[%c0_22, %c0_23, %c0_24] : memref<18x18x4xf32, #tpu.memory_space<vmem>>, vector<18x1x4xf32>
    tpu.vector_store %arg8[%c0_22, %c0_23, %c0_24], %12 {strides = array<i32>} : memref<18x18x4xf32, #tpu.memory_space<vmem>>, vector<18x1x4xf32>,
    %cst_25 = arith.constant 0.000000e+00 : f32
    %14 = vector.broadcast %cst_25 : f32 to vector<18x1x4xf32>
    %c0_26 = arith.constant 0 : index
    %c17_27 = arith.constant 17 : index
    %c0_28 = arith.constant 0 : index
    %15 = vector.load %arg8[%c0_26, %c17_27, %c0_28] : memref<18x18x4xf32, #tpu.memory_space<vmem>>, vector<18x1x4xf32>
    tpu.vector_store %arg8[%c0_26, %c17_27, %c0_28], %14 {strides = array<i32>} : memref<18x18x4xf32, #tpu.memory_space<vmem>>, vector<18x1x4xf32>,
    %c0_29 = arith.constant 0 : index
    %c0_30 = arith.constant 0 : index
    %c0_31 = arith.constant 0 : index
    %c0_32 = arith.constant 0 : index
    %16 = vector.load %arg1[%c0_29, %c0_30, %c0_31, %c0_32] : memref<1x16x16x4xf32, #tpu.memory_space<vmem>>, vector<1x16x16x4xf32>
    %17 = vector.shape_cast %16 : vector<1x16x16x4xf32> to vector<16x16x4xf32>
    %c1 = arith.constant 1 : index
    %c1_33 = arith.constant 1 : index
    %c0_34 = arith.constant 0 : index
    %18 = vector.load %arg7[%c1, %c1_33, %c0_34] : memref<18x18x4xf32, #tpu.memory_space<vmem>>, vector<16x16x4xf32>
    tpu.vector_store %arg7[%c1, %c1_33, %c0_34], %17 {strides = array<i32>} : memref<18x18x4xf32, #tpu.memory_space<vmem>>, vector<16x16x4xf32>,
    %c0_35 = arith.constant 0 : index
    %c0_36 = arith.constant 0 : index
    %c0_37 = arith.constant 0 : index
    %c0_38 = arith.constant 0 : index
    %19 = vector.load %arg2[%c0_35, %c0_36, %c0_37, %c0_38] : memref<1x16x16x4xf32, #tpu.memory_space<vmem>>, vector<1x16x16x4xf32>
    %20 = vector.shape_cast %19 : vector<1x16x16x4xf32> to vector<16x16x4xf32>
    %c1_39 = arith.constant 1 : index
    %c1_40 = arith.constant 1 : index
    %c0_41 = arith.constant 0 : index
    %21 = vector.load %arg8[%c1_39, %c1_40, %c0_41] : memref<18x18x4xf32, #tpu.memory_space<vmem>>, vector<16x16x4xf32>
    tpu.vector_store %arg8[%c1_39, %c1_40, %c0_41], %20 {strides = array<i32>} : memref<18x18x4xf32, #tpu.memory_space<vmem>>, vector<16x16x4xf32>,
    %c0_42 = arith.constant 0 : index
    %c0_43 = arith.constant 0 : index
    %c0_44 = arith.constant 0 : index
    %c0_45 = arith.constant 0 : index
    %22 = vector.load %arg3[%c0_42, %c0_43, %c0_44, %c0_45] : memref<3x3x4x4xf32, #tpu.memory_space<vmem>>, vector<3x3x4x4xf32>
    %c0_46 = arith.constant 0 : index
    %c0_47 = arith.constant 0 : index
    %c0_48 = arith.constant 0 : index
    %c0_49 = arith.constant 0 : index
    %23 = vector.load %arg4[%c0_46, %c0_47, %c0_48, %c0_49] : memref<3x3x4x4xf32, #tpu.memory_space<vmem>>, vector<3x3x4x4xf32>
    %cst_50 = arith.constant 0.000000e+00 : f32
    %24 = vector.broadcast %cst_50 : f32 to vector<256x4xf32>
    %c0_51 = arith.constant 0 : index
    %c0_52 = arith.constant 0 : index
    %c0_53 = arith.constant 0 : index
    %25 = vector.load %arg7[%c0_51, %c0_52, %c0_53] : memref<18x18x4xf32, #tpu.memory_space<vmem>>, vector<16x16x4xf32>
    %26 = vector.shape_cast %25 : vector<16x16x4xf32> to vector<256x4xf32>
    %c0_54 = arith.constant 0 : index
    %c0_55 = arith.constant 0 : index
    %c0_56 = arith.constant 0 : index
    %27 = vector.load %arg8[%c0_54, %c0_55, %c0_56] : memref<18x18x4xf32, #tpu.memory_space<vmem>>, vector<16x16x4xf32>
    %28 = vector.shape_cast %27 : vector<16x16x4xf32> to vector<256x4xf32>
    %29 = vector.extract_strided_slice %22 {offsets = [0, 0, 0, 0], sizes = [1, 1, 4, 4], strides = [1, 1, 1, 1]} : vector<3x3x4x4xf32> to vector<1x1x4x4xf32>
    %30 = vector.shape_cast %29 : vector<1x1x4x4xf32> to vector<4x4xf32>
    %cst_57 = arith.constant dense<0.000000e+00> : vector<256x4xf32>
    %31 = tpu.matmul %26, %30, %cst_57 {dimension_numbers = #tpu.dot_dimension_numbers<[1], [0], [0], [1], [0, 0, 1, 1], [], []>} : vector<256x4xf32>, vector<4x4xf32>, vector<256x4xf32> -> vector<256x4xf32>
    %32 = arith.addf %24, %31 : vector<256x4xf32>
    %33 = vector.extract_strided_slice %23 {offsets = [0, 0, 0, 0], sizes = [1, 1, 4, 4], strides = [1, 1, 1, 1]} : vector<3x3x4x4xf32> to vector<1x1x4x4xf32>
    %34 = vector.shape_cast %33 : vector<1x1x4x4xf32> to vector<4x4xf32>
    %cst_58 = arith.constant dense<0.000000e+00> : vector<256x4xf32>
    %35 = tpu.matmul %28, %34, %cst_58 {dimension_numbers = #tpu.dot_dimension_numbers<[1], [0], [0], [1], [0, 0, 1, 1], [], []>} : vector<256x4xf32>, vector<4x4xf32>, vector<256x4xf32> -> vector<256x4xf32>
    %36 = arith.addf %32, %35 : vector<256x4xf32>
    %c0_59 = arith.constant 0 : index
    %c1_60 = arith.constant 1 : index
    %c0_61 = arith.constant 0 : index
    %37 = vector.load %arg7[%c0_59, %c1_60, %c0_61] : memref<18x18x4xf32, #tpu.memory_space<vmem>>, vector<16x16x4xf32>
    %38 = vector.shape_cast %37 : vector<16x16x4xf32> to vector<256x4xf32>
    %c0_62 = arith.constant 0 : index
    %c1_63 = arith.constant 1 : index
    %c0_64 = arith.constant 0 : index
    %39 = vector.load %arg8[%c0_62, %c1_63, %c0_64] : memref<18x18x4xf32, #tpu.memory_space<vmem>>, vector<16x16x4xf32>
    %40 = vector.shape_cast %39 : vector<16x16x4xf32> to vector<256x4xf32>
    %41 = vector.extract_strided_slice %22 {offsets = [0, 1, 0, 0], sizes = [1, 1, 4, 4], strides = [1, 1, 1, 1]} : vector<3x3x4x4xf32> to vector<1x1x4x4xf32>
    %42 = vector.shape_cast %41 : vector<1x1x4x4xf32> to vector<4x4xf32>
    %cst_65 = arith.constant dense<0.000000e+00> : vector<256x4xf32>
    %43 = tpu.matmul %38, %42, %cst_65 {dimension_numbers = #tpu.dot_dimension_numbers<[1], [0], [0], [1], [0, 0, 1, 1], [], []>} : vector<256x4xf32>, vector<4x4xf32>, vector<256x4xf32> -> vector<256x4xf32>
    %44 = arith.addf %36, %43 : vector<256x4xf32>
    %45 = vector.extract_strided_slice %23 {offsets = [0, 1, 0, 0], sizes = [1, 1, 4, 4], strides = [1, 1, 1, 1]} : vector<3x3x4x4xf32> to vector<1x1x4x4xf32>
    %46 = vector.shape_cast %45 : vector<1x1x4x4xf32> to vector<4x4xf32>
    %cst_66 = arith.constant dense<0.000000e+00> : vector<256x4xf32>
    %47 = tpu.matmul %40, %46, %cst_66 {dimension_numbers = #tpu.dot_dimension_numbers<[1], [0], [0], [1], [0, 0, 1, 1], [], []>} : vector<256x4xf32>, vector<4x4xf32>, vector<256x4xf32> -> vector<256x4xf32>
    %48 = arith.addf %44, %47 : vector<256x4xf32>
    %c0_67 = arith.constant 0 : index
    %c2 = arith.constant 2 : index
    %c0_68 = arith.constant 0 : index
    %49 = vector.load %arg7[%c0_67, %c2, %c0_68] : memref<18x18x4xf32, #tpu.memory_space<vmem>>, vector<16x16x4xf32>
    %50 = vector.shape_cast %49 : vector<16x16x4xf32> to vector<256x4xf32>
    %c0_69 = arith.constant 0 : index
    %c2_70 = arith.constant 2 : index
    %c0_71 = arith.constant 0 : index
    %51 = vector.load %arg8[%c0_69, %c2_70, %c0_71] : memref<18x18x4xf32, #tpu.memory_space<vmem>>, vector<16x16x4xf32>
    %52 = vector.shape_cast %51 : vector<16x16x4xf32> to vector<256x4xf32>
    %53 = vector.extract_strided_slice %22 {offsets = [0, 2, 0, 0], sizes = [1, 1, 4, 4], strides = [1, 1, 1, 1]} : vector<3x3x4x4xf32> to vector<1x1x4x4xf32>
    %54 = vector.shape_cast %53 : vector<1x1x4x4xf32> to vector<4x4xf32>
    %cst_72 = arith.constant dense<0.000000e+00> : vector<256x4xf32>
    %55 = tpu.matmul %50, %54, %cst_72 {dimension_numbers = #tpu.dot_dimension_numbers<[1], [0], [0], [1], [0, 0, 1, 1], [], []>} : vector<256x4xf32>, vector<4x4xf32>, vector<256x4xf32> -> vector<256x4xf32>
    %56 = arith.addf %48, %55 : vector<256x4xf32>
    %57 = vector.extract_strided_slice %23 {offsets = [0, 2, 0, 0], sizes = [1, 1, 4, 4], strides = [1, 1, 1, 1]} : vector<3x3x4x4xf32> to vector<1x1x4x4xf32>
    %58 = vector.shape_cast %57 : vector<1x1x4x4xf32> to vector<4x4xf32>
    %cst_73 = arith.constant dense<0.000000e+00> : vector<256x4xf32>
    %59 = tpu.matmul %52, %58, %cst_73 {dimension_numbers = #tpu.dot_dimension_numbers<[1], [0], [0], [1], [0, 0, 1, 1], [], []>} : vector<256x4xf32>, vector<4x4xf32>, vector<256x4xf32> -> vector<256x4xf32>
    %60 = arith.addf %56, %59 : vector<256x4xf32>
    %c1_74 = arith.constant 1 : index
    %c0_75 = arith.constant 0 : index
    %c0_76 = arith.constant 0 : index
    %61 = vector.load %arg7[%c1_74, %c0_75, %c0_76] : memref<18x18x4xf32, #tpu.memory_space<vmem>>, vector<16x16x4xf32>
    %62 = vector.shape_cast %61 : vector<16x16x4xf32> to vector<256x4xf32>
    %c1_77 = arith.constant 1 : index
    %c0_78 = arith.constant 0 : index
    %c0_79 = arith.constant 0 : index
    %63 = vector.load %arg8[%c1_77, %c0_78, %c0_79] : memref<18x18x4xf32, #tpu.memory_space<vmem>>, vector<16x16x4xf32>
    %64 = vector.shape_cast %63 : vector<16x16x4xf32> to vector<256x4xf32>
    %65 = vector.extract_strided_slice %22 {offsets = [1, 0, 0, 0], sizes = [1, 1, 4, 4], strides = [1, 1, 1, 1]} : vector<3x3x4x4xf32> to vector<1x1x4x4xf32>
    %66 = vector.shape_cast %65 : vector<1x1x4x4xf32> to vector<4x4xf32>
    %cst_80 = arith.constant dense<0.000000e+00> : vector<256x4xf32>
    %67 = tpu.matmul %62, %66, %cst_80 {dimension_numbers = #tpu.dot_dimension_numbers<[1], [0], [0], [1], [0, 0, 1, 1], [], []>} : vector<256x4xf32>, vector<4x4xf32>, vector<256x4xf32> -> vector<256x4xf32>
    %68 = arith.addf %60, %67 : vector<256x4xf32>
    %69 = vector.extract_strided_slice %23 {offsets = [1, 0, 0, 0], sizes = [1, 1, 4, 4], strides = [1, 1, 1, 1]} : vector<3x3x4x4xf32> to vector<1x1x4x4xf32>
    %70 = vector.shape_cast %69 : vector<1x1x4x4xf32> to vector<4x4xf32>
    %cst_81 = arith.constant dense<0.000000e+00> : vector<256x4xf32>
    %71 = tpu.matmul %64, %70, %cst_81 {dimension_numbers = #tpu.dot_dimension_numbers<[1], [0], [0], [1], [0, 0, 1, 1], [], []>} : vector<256x4xf32>, vector<4x4xf32>, vector<256x4xf32> -> vector<256x4xf32>
    %72 = arith.addf %68, %71 : vector<256x4xf32>
    %c1_82 = arith.constant 1 : index
    %c1_83 = arith.constant 1 : index
    %c0_84 = arith.constant 0 : index
    %73 = vector.load %arg7[%c1_82, %c1_83, %c0_84] : memref<18x18x4xf32, #tpu.memory_space<vmem>>, vector<16x16x4xf32>
    %74 = vector.shape_cast %73 : vector<16x16x4xf32> to vector<256x4xf32>
    %c1_85 = arith.constant 1 : index
    %c1_86 = arith.constant 1 : index
    %c0_87 = arith.constant 0 : index
    %75 = vector.load %arg8[%c1_85, %c1_86, %c0_87] : memref<18x18x4xf32, #tpu.memory_space<vmem>>, vector<16x16x4xf32>
    %76 = vector.shape_cast %75 : vector<16x16x4xf32> to vector<256x4xf32>
    %77 = vector.extract_strided_slice %22 {offsets = [1, 1, 0, 0], sizes = [1, 1, 4, 4], strides = [1, 1, 1, 1]} : vector<3x3x4x4xf32> to vector<1x1x4x4xf32>
    %78 = vector.shape_cast %77 : vector<1x1x4x4xf32> to vector<4x4xf32>
    %cst_88 = arith.constant dense<0.000000e+00> : vector<256x4xf32>
    %79 = tpu.matmul %74, %78, %cst_88 {dimension_numbers = #tpu.dot_dimension_numbers<[1], [0], [0], [1], [0, 0, 1, 1], [], []>} : vector<256x4xf32>, vector<4x4xf32>, vector<256x4xf32> -> vector<256x4xf32>
    %80 = arith.addf %72, %79 : vector<256x4xf32>
    %81 = vector.extract_strided_slice %23 {offsets = [1, 1, 0, 0], sizes = [1, 1, 4, 4], strides = [1, 1, 1, 1]} : vector<3x3x4x4xf32> to vector<1x1x4x4xf32>
    %82 = vector.shape_cast %81 : vector<1x1x4x4xf32> to vector<4x4xf32>
    %cst_89 = arith.constant dense<0.000000e+00> : vector<256x4xf32>
    %83 = tpu.matmul %76, %82, %cst_89 {dimension_numbers = #tpu.dot_dimension_numbers<[1], [0], [0], [1], [0, 0, 1, 1], [], []>} : vector<256x4xf32>, vector<4x4xf32>, vector<256x4xf32> -> vector<256x4xf32>
    %84 = arith.addf %80, %83 : vector<256x4xf32>
    %c1_90 = arith.constant 1 : index
    %c2_91 = arith.constant 2 : index
    %c0_92 = arith.constant 0 : index
    %85 = vector.load %arg7[%c1_90, %c2_91, %c0_92] : memref<18x18x4xf32, #tpu.memory_space<vmem>>, vector<16x16x4xf32>
    %86 = vector.shape_cast %85 : vector<16x16x4xf32> to vector<256x4xf32>
    %c1_93 = arith.constant 1 : index
    %c2_94 = arith.constant 2 : index
    %c0_95 = arith.constant 0 : index
    %87 = vector.load %arg8[%c1_93, %c2_94, %c0_95] : memref<18x18x4xf32, #tpu.memory_space<vmem>>, vector<16x16x4xf32>
    %88 = vector.shape_cast %87 : vector<16x16x4xf32> to vector<256x4xf32>
    %89 = vector.extract_strided_slice %22 {offsets = [1, 2, 0, 0], sizes = [1, 1, 4, 4], strides = [1, 1, 1, 1]} : vector<3x3x4x4xf32> to vector<1x1x4x4xf32>
    %90 = vector.shape_cast %89 : vector<1x1x4x4xf32> to vector<4x4xf32>
    %cst_96 = arith.constant dense<0.000000e+00> : vector<256x4xf32>
    %91 = tpu.matmul %86, %90, %cst_96 {dimension_numbers = #tpu.dot_dimension_numbers<[1], [0], [0], [1], [0, 0, 1, 1], [], []>} : vector<256x4xf32>, vector<4x4xf32>, vector<256x4xf32> -> vector<256x4xf32>
    %92 = arith.addf %84, %91 : vector<256x4xf32>
    %93 = vector.extract_strided_slice %23 {offsets = [1, 2, 0, 0], sizes = [1, 1, 4, 4], strides = [1, 1, 1, 1]} : vector<3x3x4x4xf32> to vector<1x1x4x4xf32>
    %94 = vector.shape_cast %93 : vector<1x1x4x4xf32> to vector<4x4xf32>
    %cst_97 = arith.constant dense<0.000000e+00> : vector<256x4xf32>
    %95 = tpu.matmul %88, %94, %cst_97 {dimension_numbers = #tpu.dot_dimension_numbers<[1], [0], [0], [1], [0, 0, 1, 1], [], []>} : vector<256x4xf32>, vector<4x4xf32>, vector<256x4xf32> -> vector<256x4xf32>
    %96 = arith.addf %92, %95 : vector<256x4xf32>
    %c2_98 = arith.constant 2 : index
    %c0_99 = arith.constant 0 : index
    %c0_100 = arith.constant 0 : index
    %97 = vector.load %arg7[%c2_98, %c0_99, %c0_100] : memref<18x18x4xf32, #tpu.memory_space<vmem>>, vector<16x16x4xf32>
    %98 = vector.shape_cast %97 : vector<16x16x4xf32> to vector<256x4xf32>
    %c2_101 = arith.constant 2 : index
    %c0_102 = arith.constant 0 : index
    %c0_103 = arith.constant 0 : index
    %99 = vector.load %arg8[%c2_101, %c0_102, %c0_103] : memref<18x18x4xf32, #tpu.memory_space<vmem>>, vector<16x16x4xf32>
    %100 = vector.shape_cast %99 : vector<16x16x4xf32> to vector<256x4xf32>
    %101 = vector.extract_strided_slice %22 {offsets = [2, 0, 0, 0], sizes = [1, 1, 4, 4], strides = [1, 1, 1, 1]} : vector<3x3x4x4xf32> to vector<1x1x4x4xf32>
    %102 = vector.shape_cast %101 : vector<1x1x4x4xf32> to vector<4x4xf32>
    %cst_104 = arith.constant dense<0.000000e+00> : vector<256x4xf32>
    %103 = tpu.matmul %98, %102, %cst_104 {dimension_numbers = #tpu.dot_dimension_numbers<[1], [0], [0], [1], [0, 0, 1, 1], [], []>} : vector<256x4xf32>, vector<4x4xf32>, vector<256x4xf32> -> vector<256x4xf32>
    %104 = arith.addf %96, %103 : vector<256x4xf32>
    %105 = vector.extract_strided_slice %23 {offsets = [2, 0, 0, 0], sizes = [1, 1, 4, 4], strides = [1, 1, 1, 1]} : vector<3x3x4x4xf32> to vector<1x1x4x4xf32>
    %106 = vector.shape_cast %105 : vector<1x1x4x4xf32> to vector<4x4xf32>
    %cst_105 = arith.constant dense<0.000000e+00> : vector<256x4xf32>
    %107 = tpu.matmul %100, %106, %cst_105 {dimension_numbers = #tpu.dot_dimension_numbers<[1], [0], [0], [1], [0, 0, 1, 1], [], []>} : vector<256x4xf32>, vector<4x4xf32>, vector<256x4xf32> -> vector<256x4xf32>
    %108 = arith.addf %104, %107 : vector<256x4xf32>
    %c2_106 = arith.constant 2 : index
    %c1_107 = arith.constant 1 : index
    %c0_108 = arith.constant 0 : index
    %109 = vector.load %arg7[%c2_106, %c1_107, %c0_108] : memref<18x18x4xf32, #tpu.memory_space<vmem>>, vector<16x16x4xf32>
    %110 = vector.shape_cast %109 : vector<16x16x4xf32> to vector<256x4xf32>
    %c2_109 = arith.constant 2 : index
    %c1_110 = arith.constant 1 : index
    %c0_111 = arith.constant 0 : index
    %111 = vector.load %arg8[%c2_109, %c1_110, %c0_111] : memref<18x18x4xf32, #tpu.memory_space<vmem>>, vector<16x16x4xf32>
    %112 = vector.shape_cast %111 : vector<16x16x4xf32> to vector<256x4xf32>
    %113 = vector.extract_strided_slice %22 {offsets = [2, 1, 0, 0], sizes = [1, 1, 4, 4], strides = [1, 1, 1, 1]} : vector<3x3x4x4xf32> to vector<1x1x4x4xf32>
    %114 = vector.shape_cast %113 : vector<1x1x4x4xf32> to vector<4x4xf32>
    %cst_112 = arith.constant dense<0.000000e+00> : vector<256x4xf32>
    %115 = tpu.matmul %110, %114, %cst_112 {dimension_numbers = #tpu.dot_dimension_numbers<[1], [0], [0], [1], [0, 0, 1, 1], [], []>} : vector<256x4xf32>, vector<4x4xf32>, vector<256x4xf32> -> vector<256x4xf32>
    %116 = arith.addf %108, %115 : vector<256x4xf32>
    %117 = vector.extract_strided_slice %23 {offsets = [2, 1, 0, 0], sizes = [1, 1, 4, 4], strides = [1, 1, 1, 1]} : vector<3x3x4x4xf32> to vector<1x1x4x4xf32>
    %118 = vector.shape_cast %117 : vector<1x1x4x4xf32> to vector<4x4xf32>
    %cst_113 = arith.constant dense<0.000000e+00> : vector<256x4xf32>
    %119 = tpu.matmul %112, %118, %cst_113 {dimension_numbers = #tpu.dot_dimension_numbers<[1], [0], [0], [1], [0, 0, 1, 1], [], []>} : vector<256x4xf32>, vector<4x4xf32>, vector<256x4xf32> -> vector<256x4xf32>
    %120 = arith.addf %116, %119 : vector<256x4xf32>
    %c2_114 = arith.constant 2 : index
    %c2_115 = arith.constant 2 : index
    %c0_116 = arith.constant 0 : index
    %121 = vector.load %arg7[%c2_114, %c2_115, %c0_116] : memref<18x18x4xf32, #tpu.memory_space<vmem>>, vector<16x16x4xf32>
    %122 = vector.shape_cast %121 : vector<16x16x4xf32> to vector<256x4xf32>
    %c2_117 = arith.constant 2 : index
    %c2_118 = arith.constant 2 : index
    %c0_119 = arith.constant 0 : index
    %123 = vector.load %arg8[%c2_117, %c2_118, %c0_119] : memref<18x18x4xf32, #tpu.memory_space<vmem>>, vector<16x16x4xf32>
    %124 = vector.shape_cast %123 : vector<16x16x4xf32> to vector<256x4xf32>
    %125 = vector.extract_strided_slice %22 {offsets = [2, 2, 0, 0], sizes = [1, 1, 4, 4], strides = [1, 1, 1, 1]} : vector<3x3x4x4xf32> to vector<1x1x4x4xf32>
    %126 = vector.shape_cast %125 : vector<1x1x4x4xf32> to vector<4x4xf32>
    %cst_120 = arith.constant dense<0.000000e+00> : vector<256x4xf32>
    %127 = tpu.matmul %122, %126, %cst_120 {dimension_numbers = #tpu.dot_dimension_numbers<[1], [0], [0], [1], [0, 0, 1, 1], [], []>} : vector<256x4xf32>, vector<4x4xf32>, vector<256x4xf32> -> vector<256x4xf32>
    %128 = arith.addf %120, %127 : vector<256x4xf32>
    %129 = vector.extract_strided_slice %23 {offsets = [2, 2, 0, 0], sizes = [1, 1, 4, 4], strides = [1, 1, 1, 1]} : vector<3x3x4x4xf32> to vector<1x1x4x4xf32>
    %130 = vector.shape_cast %129 : vector<1x1x4x4xf32> to vector<4x4xf32>
    %cst_121 = arith.constant dense<0.000000e+00> : vector<256x4xf32>
    %131 = tpu.matmul %124, %130, %cst_121 {dimension_numbers = #tpu.dot_dimension_numbers<[1], [0], [0], [1], [0, 0, 1, 1], [], []>} : vector<256x4xf32>, vector<4x4xf32>, vector<256x4xf32> -> vector<256x4xf32>
    %132 = arith.addf %128, %131 : vector<256x4xf32>
    %133 = vector.shape_cast %132 : vector<256x4xf32> to vector<16x16x4xf32>
    %c0_122 = arith.constant 0 : index
    %c0_123 = arith.constant 0 : index
    %c0_124 = arith.constant 0 : index
    %c0_125 = arith.constant 0 : index
    %134 = vector.load %arg5[%c0_122, %c0_123, %c0_124, %c0_125] : memref<1x16x16x4xf32, #tpu.memory_space<vmem>>, vector<1x16x16x4xf32>
    %135 = vector.shape_cast %134 : vector<1x16x16x4xf32> to vector<16x16x4xf32>
    %136 = vector.shape_cast %133 : vector<16x16x4xf32> to vector<1x16x16x4xf32>
    tpu.vector_store %arg5[%c0_122, %c0_123, %c0_124, %c0_125], %136 {strides = array<i32>} : memref<1x16x16x4xf32, #tpu.memory_space<vmem>>, vector<1x16x16x4xf32>,
    %cst_126 = arith.constant dense<0.000000e+00> : vector<4xf32>
    %137 = vector.multi_reduction <add>, %132, %cst_126 [0] : vector<256x4xf32> to vector<4xf32>
    %138 = vector.shape_cast %137 : vector<4xf32> to vector<1x4xf32>
    %c0_127 = arith.constant 0 : index
    %c0_128 = arith.constant 0 : index
    %c0_129 = arith.constant 0 : index
    %139 = vector.load %arg6[%c0_127, %c0_128, %c0_129] : memref<1x2x4xf32, #tpu.memory_space<vmem>>, vector<1x1x4xf32>
    %140 = vector.shape_cast %139 : vector<1x1x4xf32> to vector<1x4xf32>
    %141 = vector.shape_cast %138 : vector<1x4xf32> to vector<1x1x4xf32>
    tpu.vector_store %arg6[%c0_127, %c0_128, %c0_129], %141 {strides = array<i32>} : memref<1x2x4xf32, #tpu.memory_space<vmem>>, vector<1x1x4xf32>,
    %142 = arith.mulf %132, %132 : vector<256x4xf32>
    %cst_130 = arith.constant dense<0.000000e+00> : vector<4xf32>
    %143 = vector.multi_reduction <add>, %142, %cst_130 [0] : vector<256x4xf32> to vector<4xf32>
    %144 = vector.shape_cast %143 : vector<4xf32> to vector<1x4xf32>
    %c0_131 = arith.constant 0 : index
    %c1_132 = arith.constant 1 : index
    %c0_133 = arith.constant 0 : index
    %145 = vector.load %arg6[%c0_131, %c1_132, %c0_133] : memref<1x2x4xf32, #tpu.memory_space<vmem>>, vector<1x1x4xf32>
    %146 = vector.shape_cast %145 : vector<1x1x4xf32> to vector<1x4xf32>
    %147 = vector.shape_cast %144 : vector<1x4xf32> to vector<1x1x4xf32>
    tpu.vector_store %arg6[%c0_131, %c1_132, %c0_133], %147 {strides = array<i32>} : memref<1x2x4xf32, #tpu.memory_space<vmem>>, vector<1x1x4xf32>,
    return
  }
  func.func @transform_0(%arg0: i32) -> (i32, i32, i32, i32) {
    %c0_i32 = arith.constant 0 : i32
    %c0_i32_0 = arith.constant 0 : i32
    %c0_i32_1 = arith.constant 0 : i32
    %c0_i32_2 = arith.constant 0 : i32
    return %arg0, %c0_i32, %c0_i32_0, %c0_i32_1 : i32, i32, i32, i32
  }
  func.func @transform_1(%arg0: i32) -> (i32, i32, i32, i32) {
    %c0_i32 = arith.constant 0 : i32
    %c0_i32_0 = arith.constant 0 : i32
    %c0_i32_1 = arith.constant 0 : i32
    %c0_i32_2 = arith.constant 0 : i32
    return %arg0, %c0_i32, %c0_i32_0, %c0_i32_1 : i32, i32, i32, i32
  }
  func.func @transform_2(%arg0: i32) -> (i32, i32, i32, i32) {
    %c0_i32 = arith.constant 0 : i32
    %c0_i32_0 = arith.constant 0 : i32
    %c0_i32_1 = arith.constant 0 : i32
    %c0_i32_2 = arith.constant 0 : i32
    %c0_i32_3 = arith.constant 0 : i32
    return %c0_i32, %c0_i32_0, %c0_i32_1, %c0_i32_2 : i32, i32, i32, i32
  }
  func.func @transform_3(%arg0: i32) -> (i32, i32, i32, i32) {
    %c0_i32 = arith.constant 0 : i32
    %c0_i32_0 = arith.constant 0 : i32
    %c0_i32_1 = arith.constant 0 : i32
    %c0_i32_2 = arith.constant 0 : i32
    %c0_i32_3 = arith.constant 0 : i32
    return %c0_i32, %c0_i32_0, %c0_i32_1, %c0_i32_2 : i32, i32, i32, i32
  }
  func.func @transform_4(%arg0: i32) -> (i32, i32, i32, i32) {
    %c0_i32 = arith.constant 0 : i32
    %c0_i32_0 = arith.constant 0 : i32
    %c0_i32_1 = arith.constant 0 : i32
    %c0_i32_2 = arith.constant 0 : i32
    return %arg0, %c0_i32, %c0_i32_0, %c0_i32_1 : i32, i32, i32, i32
  }
  func.func @transform_5(%arg0: i32) -> (i32, i32, i32) {
    %c0_i32 = arith.constant 0 : i32
    %c0_i32_0 = arith.constant 0 : i32
    %c0_i32_1 = arith.constant 0 : i32
    return %arg0, %c0_i32, %c0_i32_0 : i32, i32, i32
  }
}

module attributes {stable_mosaic.version = 11 : i64} {
  func.func @_bn_relu_conv2_stats_kernel(%arg0: i32, %arg1: memref<1x16x16x4xf32, #tpu.memory_space<vmem>>, %arg2: memref<1x4xf32, #tpu.memory_space<vmem>>, %arg3: memref<1x4xf32, #tpu.memory_space<vmem>>, %arg4: memref<3x3x4x8xf32, #tpu.memory_space<vmem>>, %arg5: memref<1x16x16x8xf32, #tpu.memory_space<vmem>>, %arg6: memref<1x2x8xf32, #tpu.memory_space<vmem>>, %arg7: memref<18x18x4xf32, #tpu.memory_space<vmem>>) attributes {dimension_semantics = [#tpu.dimension_semantics<parallel>], iteration_bounds = array<i64: 2>, scalar_prefetch = 0 : i64, scratch_operands = 1 : i64, tpu.core_type = #tpu.core_type<tc>, window_params = [{transform_indices = @transform_0, window_bounds = array<i64: 1, 16, 16, 4>}, {pipeline_mode = #tpu.pipeline_mode<synchronous>, transform_indices = @transform_1, window_bounds = array<i64: 1, 4>}, {pipeline_mode = #tpu.pipeline_mode<synchronous>, transform_indices = @transform_2, window_bounds = array<i64: 1, 4>}, {pipeline_mode = #tpu.pipeline_mode<synchronous>, transform_indices = @transform_3, window_bounds = array<i64: 3, 3, 4, 8>}, {transform_indices = @transform_4, window_bounds = array<i64: 1, 16, 16, 8>}, {transform_indices = @transform_5, window_bounds = array<i64: 1, 2, 8>}]} {
    %c0 = arith.constant 0 : index
    %c0_0 = arith.constant 0 : index
    %c0_1 = arith.constant 0 : index
    %c0_2 = arith.constant 0 : index
    %0 = vector.load %arg1[%c0, %c0_0, %c0_1, %c0_2] : memref<1x16x16x4xf32, #tpu.memory_space<vmem>>, vector<1x16x16x4xf32>
    %1 = vector.shape_cast %0 : vector<1x16x16x4xf32> to vector<16x16x4xf32>
    %2 = vector.shape_cast %1 : vector<16x16x4xf32> to vector<256x4xf32>
    %c0_3 = arith.constant 0 : index
    %c0_4 = arith.constant 0 : index
    %3 = vector.load %arg2[%c0_3, %c0_4] : memref<1x4xf32, #tpu.memory_space<vmem>>, vector<1x4xf32>
    %4 = vector.broadcast %3 : vector<1x4xf32> to vector<256x4xf32>
    %5 = arith.mulf %2, %4 : vector<256x4xf32>
    %c0_5 = arith.constant 0 : index
    %c0_6 = arith.constant 0 : index
    %6 = vector.load %arg3[%c0_5, %c0_6] : memref<1x4xf32, #tpu.memory_space<vmem>>, vector<1x4xf32>
    %7 = vector.broadcast %6 : vector<1x4xf32> to vector<256x4xf32>
    %8 = arith.addf %5, %7 : vector<256x4xf32>
    %cst = arith.constant 0.000000e+00 : f32
    %9 = vector.broadcast %cst : f32 to vector<256x4xf32>
    %10 = arith.maximumf %8, %9 : vector<256x4xf32>
    %cst_7 = arith.constant 0.000000e+00 : f32
    %11 = vector.broadcast %cst_7 : f32 to vector<1x18x4xf32>
    %c0_8 = arith.constant 0 : index
    %c0_9 = arith.constant 0 : index
    %c0_10 = arith.constant 0 : index
    %12 = vector.load %arg7[%c0_8, %c0_9, %c0_10] : memref<18x18x4xf32, #tpu.memory_space<vmem>>, vector<1x18x4xf32>
    tpu.vector_store %arg7[%c0_8, %c0_9, %c0_10], %11 {strides = array<i32>} : memref<18x18x4xf32, #tpu.memory_space<vmem>>, vector<1x18x4xf32>,
    %cst_11 = arith.constant 0.000000e+00 : f32
    %13 = vector.broadcast %cst_11 : f32 to vector<1x18x4xf32>
    %c17 = arith.constant 17 : index
    %c0_12 = arith.constant 0 : index
    %c0_13 = arith.constant 0 : index
    %14 = vector.load %arg7[%c17, %c0_12, %c0_13] : memref<18x18x4xf32, #tpu.memory_space<vmem>>, vector<1x18x4xf32>
    tpu.vector_store %arg7[%c17, %c0_12, %c0_13], %13 {strides = array<i32>} : memref<18x18x4xf32, #tpu.memory_space<vmem>>, vector<1x18x4xf32>,
    %cst_14 = arith.constant 0.000000e+00 : f32
    %15 = vector.broadcast %cst_14 : f32 to vector<18x1x4xf32>
    %c0_15 = arith.constant 0 : index
    %c0_16 = arith.constant 0 : index
    %c0_17 = arith.constant 0 : index
    %16 = vector.load %arg7[%c0_15, %c0_16, %c0_17] : memref<18x18x4xf32, #tpu.memory_space<vmem>>, vector<18x1x4xf32>
    tpu.vector_store %arg7[%c0_15, %c0_16, %c0_17], %15 {strides = array<i32>} : memref<18x18x4xf32, #tpu.memory_space<vmem>>, vector<18x1x4xf32>,
    %cst_18 = arith.constant 0.000000e+00 : f32
    %17 = vector.broadcast %cst_18 : f32 to vector<18x1x4xf32>
    %c0_19 = arith.constant 0 : index
    %c17_20 = arith.constant 17 : index
    %c0_21 = arith.constant 0 : index
    %18 = vector.load %arg7[%c0_19, %c17_20, %c0_21] : memref<18x18x4xf32, #tpu.memory_space<vmem>>, vector<18x1x4xf32>
    tpu.vector_store %arg7[%c0_19, %c17_20, %c0_21], %17 {strides = array<i32>} : memref<18x18x4xf32, #tpu.memory_space<vmem>>, vector<18x1x4xf32>,
    %19 = vector.shape_cast %10 : vector<256x4xf32> to vector<16x16x4xf32>
    %c1 = arith.constant 1 : index
    %c1_22 = arith.constant 1 : index
    %c0_23 = arith.constant 0 : index
    %20 = vector.load %arg7[%c1, %c1_22, %c0_23] : memref<18x18x4xf32, #tpu.memory_space<vmem>>, vector<16x16x4xf32>
    tpu.vector_store %arg7[%c1, %c1_22, %c0_23], %19 {strides = array<i32>} : memref<18x18x4xf32, #tpu.memory_space<vmem>>, vector<16x16x4xf32>,
    %c0_24 = arith.constant 0 : index
    %c0_25 = arith.constant 0 : index
    %c0_26 = arith.constant 0 : index
    %c0_27 = arith.constant 0 : index
    %21 = vector.load %arg4[%c0_24, %c0_25, %c0_26, %c0_27] : memref<3x3x4x8xf32, #tpu.memory_space<vmem>>, vector<3x3x4x8xf32>
    %cst_28 = arith.constant 0.000000e+00 : f32
    %22 = vector.broadcast %cst_28 : f32 to vector<256x8xf32>
    %c0_29 = arith.constant 0 : index
    %c0_30 = arith.constant 0 : index
    %c0_31 = arith.constant 0 : index
    %23 = vector.load %arg7[%c0_29, %c0_30, %c0_31] : memref<18x18x4xf32, #tpu.memory_space<vmem>>, vector<16x16x4xf32>
    %24 = vector.shape_cast %23 : vector<16x16x4xf32> to vector<256x4xf32>
    %25 = vector.extract_strided_slice %21 {offsets = [0, 0, 0, 0], sizes = [1, 1, 4, 8], strides = [1, 1, 1, 1]} : vector<3x3x4x8xf32> to vector<1x1x4x8xf32>
    %26 = vector.shape_cast %25 : vector<1x1x4x8xf32> to vector<4x8xf32>
    %cst_32 = arith.constant dense<0.000000e+00> : vector<256x8xf32>
    %27 = tpu.matmul %24, %26, %cst_32 {dimension_numbers = #tpu.dot_dimension_numbers<[1], [0], [0], [1], [0, 0, 1, 1], [], []>} : vector<256x4xf32>, vector<4x8xf32>, vector<256x8xf32> -> vector<256x8xf32>
    %28 = arith.addf %22, %27 : vector<256x8xf32>
    %c0_33 = arith.constant 0 : index
    %c1_34 = arith.constant 1 : index
    %c0_35 = arith.constant 0 : index
    %29 = vector.load %arg7[%c0_33, %c1_34, %c0_35] : memref<18x18x4xf32, #tpu.memory_space<vmem>>, vector<16x16x4xf32>
    %30 = vector.shape_cast %29 : vector<16x16x4xf32> to vector<256x4xf32>
    %31 = vector.extract_strided_slice %21 {offsets = [0, 1, 0, 0], sizes = [1, 1, 4, 8], strides = [1, 1, 1, 1]} : vector<3x3x4x8xf32> to vector<1x1x4x8xf32>
    %32 = vector.shape_cast %31 : vector<1x1x4x8xf32> to vector<4x8xf32>
    %cst_36 = arith.constant dense<0.000000e+00> : vector<256x8xf32>
    %33 = tpu.matmul %30, %32, %cst_36 {dimension_numbers = #tpu.dot_dimension_numbers<[1], [0], [0], [1], [0, 0, 1, 1], [], []>} : vector<256x4xf32>, vector<4x8xf32>, vector<256x8xf32> -> vector<256x8xf32>
    %34 = arith.addf %28, %33 : vector<256x8xf32>
    %c0_37 = arith.constant 0 : index
    %c2 = arith.constant 2 : index
    %c0_38 = arith.constant 0 : index
    %35 = vector.load %arg7[%c0_37, %c2, %c0_38] : memref<18x18x4xf32, #tpu.memory_space<vmem>>, vector<16x16x4xf32>
    %36 = vector.shape_cast %35 : vector<16x16x4xf32> to vector<256x4xf32>
    %37 = vector.extract_strided_slice %21 {offsets = [0, 2, 0, 0], sizes = [1, 1, 4, 8], strides = [1, 1, 1, 1]} : vector<3x3x4x8xf32> to vector<1x1x4x8xf32>
    %38 = vector.shape_cast %37 : vector<1x1x4x8xf32> to vector<4x8xf32>
    %cst_39 = arith.constant dense<0.000000e+00> : vector<256x8xf32>
    %39 = tpu.matmul %36, %38, %cst_39 {dimension_numbers = #tpu.dot_dimension_numbers<[1], [0], [0], [1], [0, 0, 1, 1], [], []>} : vector<256x4xf32>, vector<4x8xf32>, vector<256x8xf32> -> vector<256x8xf32>
    %40 = arith.addf %34, %39 : vector<256x8xf32>
    %c1_40 = arith.constant 1 : index
    %c0_41 = arith.constant 0 : index
    %c0_42 = arith.constant 0 : index
    %41 = vector.load %arg7[%c1_40, %c0_41, %c0_42] : memref<18x18x4xf32, #tpu.memory_space<vmem>>, vector<16x16x4xf32>
    %42 = vector.shape_cast %41 : vector<16x16x4xf32> to vector<256x4xf32>
    %43 = vector.extract_strided_slice %21 {offsets = [1, 0, 0, 0], sizes = [1, 1, 4, 8], strides = [1, 1, 1, 1]} : vector<3x3x4x8xf32> to vector<1x1x4x8xf32>
    %44 = vector.shape_cast %43 : vector<1x1x4x8xf32> to vector<4x8xf32>
    %cst_43 = arith.constant dense<0.000000e+00> : vector<256x8xf32>
    %45 = tpu.matmul %42, %44, %cst_43 {dimension_numbers = #tpu.dot_dimension_numbers<[1], [0], [0], [1], [0, 0, 1, 1], [], []>} : vector<256x4xf32>, vector<4x8xf32>, vector<256x8xf32> -> vector<256x8xf32>
    %46 = arith.addf %40, %45 : vector<256x8xf32>
    %c1_44 = arith.constant 1 : index
    %c1_45 = arith.constant 1 : index
    %c0_46 = arith.constant 0 : index
    %47 = vector.load %arg7[%c1_44, %c1_45, %c0_46] : memref<18x18x4xf32, #tpu.memory_space<vmem>>, vector<16x16x4xf32>
    %48 = vector.shape_cast %47 : vector<16x16x4xf32> to vector<256x4xf32>
    %49 = vector.extract_strided_slice %21 {offsets = [1, 1, 0, 0], sizes = [1, 1, 4, 8], strides = [1, 1, 1, 1]} : vector<3x3x4x8xf32> to vector<1x1x4x8xf32>
    %50 = vector.shape_cast %49 : vector<1x1x4x8xf32> to vector<4x8xf32>
    %cst_47 = arith.constant dense<0.000000e+00> : vector<256x8xf32>
    %51 = tpu.matmul %48, %50, %cst_47 {dimension_numbers = #tpu.dot_dimension_numbers<[1], [0], [0], [1], [0, 0, 1, 1], [], []>} : vector<256x4xf32>, vector<4x8xf32>, vector<256x8xf32> -> vector<256x8xf32>
    %52 = arith.addf %46, %51 : vector<256x8xf32>
    %c1_48 = arith.constant 1 : index
    %c2_49 = arith.constant 2 : index
    %c0_50 = arith.constant 0 : index
    %53 = vector.load %arg7[%c1_48, %c2_49, %c0_50] : memref<18x18x4xf32, #tpu.memory_space<vmem>>, vector<16x16x4xf32>
    %54 = vector.shape_cast %53 : vector<16x16x4xf32> to vector<256x4xf32>
    %55 = vector.extract_strided_slice %21 {offsets = [1, 2, 0, 0], sizes = [1, 1, 4, 8], strides = [1, 1, 1, 1]} : vector<3x3x4x8xf32> to vector<1x1x4x8xf32>
    %56 = vector.shape_cast %55 : vector<1x1x4x8xf32> to vector<4x8xf32>
    %cst_51 = arith.constant dense<0.000000e+00> : vector<256x8xf32>
    %57 = tpu.matmul %54, %56, %cst_51 {dimension_numbers = #tpu.dot_dimension_numbers<[1], [0], [0], [1], [0, 0, 1, 1], [], []>} : vector<256x4xf32>, vector<4x8xf32>, vector<256x8xf32> -> vector<256x8xf32>
    %58 = arith.addf %52, %57 : vector<256x8xf32>
    %c2_52 = arith.constant 2 : index
    %c0_53 = arith.constant 0 : index
    %c0_54 = arith.constant 0 : index
    %59 = vector.load %arg7[%c2_52, %c0_53, %c0_54] : memref<18x18x4xf32, #tpu.memory_space<vmem>>, vector<16x16x4xf32>
    %60 = vector.shape_cast %59 : vector<16x16x4xf32> to vector<256x4xf32>
    %61 = vector.extract_strided_slice %21 {offsets = [2, 0, 0, 0], sizes = [1, 1, 4, 8], strides = [1, 1, 1, 1]} : vector<3x3x4x8xf32> to vector<1x1x4x8xf32>
    %62 = vector.shape_cast %61 : vector<1x1x4x8xf32> to vector<4x8xf32>
    %cst_55 = arith.constant dense<0.000000e+00> : vector<256x8xf32>
    %63 = tpu.matmul %60, %62, %cst_55 {dimension_numbers = #tpu.dot_dimension_numbers<[1], [0], [0], [1], [0, 0, 1, 1], [], []>} : vector<256x4xf32>, vector<4x8xf32>, vector<256x8xf32> -> vector<256x8xf32>
    %64 = arith.addf %58, %63 : vector<256x8xf32>
    %c2_56 = arith.constant 2 : index
    %c1_57 = arith.constant 1 : index
    %c0_58 = arith.constant 0 : index
    %65 = vector.load %arg7[%c2_56, %c1_57, %c0_58] : memref<18x18x4xf32, #tpu.memory_space<vmem>>, vector<16x16x4xf32>
    %66 = vector.shape_cast %65 : vector<16x16x4xf32> to vector<256x4xf32>
    %67 = vector.extract_strided_slice %21 {offsets = [2, 1, 0, 0], sizes = [1, 1, 4, 8], strides = [1, 1, 1, 1]} : vector<3x3x4x8xf32> to vector<1x1x4x8xf32>
    %68 = vector.shape_cast %67 : vector<1x1x4x8xf32> to vector<4x8xf32>
    %cst_59 = arith.constant dense<0.000000e+00> : vector<256x8xf32>
    %69 = tpu.matmul %66, %68, %cst_59 {dimension_numbers = #tpu.dot_dimension_numbers<[1], [0], [0], [1], [0, 0, 1, 1], [], []>} : vector<256x4xf32>, vector<4x8xf32>, vector<256x8xf32> -> vector<256x8xf32>
    %70 = arith.addf %64, %69 : vector<256x8xf32>
    %c2_60 = arith.constant 2 : index
    %c2_61 = arith.constant 2 : index
    %c0_62 = arith.constant 0 : index
    %71 = vector.load %arg7[%c2_60, %c2_61, %c0_62] : memref<18x18x4xf32, #tpu.memory_space<vmem>>, vector<16x16x4xf32>
    %72 = vector.shape_cast %71 : vector<16x16x4xf32> to vector<256x4xf32>
    %73 = vector.extract_strided_slice %21 {offsets = [2, 2, 0, 0], sizes = [1, 1, 4, 8], strides = [1, 1, 1, 1]} : vector<3x3x4x8xf32> to vector<1x1x4x8xf32>
    %74 = vector.shape_cast %73 : vector<1x1x4x8xf32> to vector<4x8xf32>
    %cst_63 = arith.constant dense<0.000000e+00> : vector<256x8xf32>
    %75 = tpu.matmul %72, %74, %cst_63 {dimension_numbers = #tpu.dot_dimension_numbers<[1], [0], [0], [1], [0, 0, 1, 1], [], []>} : vector<256x4xf32>, vector<4x8xf32>, vector<256x8xf32> -> vector<256x8xf32>
    %76 = arith.addf %70, %75 : vector<256x8xf32>
    %77 = vector.shape_cast %76 : vector<256x8xf32> to vector<16x16x8xf32>
    %c0_64 = arith.constant 0 : index
    %c0_65 = arith.constant 0 : index
    %c0_66 = arith.constant 0 : index
    %c0_67 = arith.constant 0 : index
    %78 = vector.load %arg5[%c0_64, %c0_65, %c0_66, %c0_67] : memref<1x16x16x8xf32, #tpu.memory_space<vmem>>, vector<1x16x16x8xf32>
    %79 = vector.shape_cast %78 : vector<1x16x16x8xf32> to vector<16x16x8xf32>
    %80 = vector.shape_cast %77 : vector<16x16x8xf32> to vector<1x16x16x8xf32>
    tpu.vector_store %arg5[%c0_64, %c0_65, %c0_66, %c0_67], %80 {strides = array<i32>} : memref<1x16x16x8xf32, #tpu.memory_space<vmem>>, vector<1x16x16x8xf32>,
    %cst_68 = arith.constant dense<0.000000e+00> : vector<8xf32>
    %81 = vector.multi_reduction <add>, %76, %cst_68 [0] : vector<256x8xf32> to vector<8xf32>
    %82 = vector.shape_cast %81 : vector<8xf32> to vector<1x8xf32>
    %c0_69 = arith.constant 0 : index
    %c0_70 = arith.constant 0 : index
    %c0_71 = arith.constant 0 : index
    %83 = vector.load %arg6[%c0_69, %c0_70, %c0_71] : memref<1x2x8xf32, #tpu.memory_space<vmem>>, vector<1x1x8xf32>
    %84 = vector.shape_cast %83 : vector<1x1x8xf32> to vector<1x8xf32>
    %85 = vector.shape_cast %82 : vector<1x8xf32> to vector<1x1x8xf32>
    tpu.vector_store %arg6[%c0_69, %c0_70, %c0_71], %85 {strides = array<i32>} : memref<1x2x8xf32, #tpu.memory_space<vmem>>, vector<1x1x8xf32>,
    %86 = arith.mulf %76, %76 : vector<256x8xf32>
    %cst_72 = arith.constant dense<0.000000e+00> : vector<8xf32>
    %87 = vector.multi_reduction <add>, %86, %cst_72 [0] : vector<256x8xf32> to vector<8xf32>
    %88 = vector.shape_cast %87 : vector<8xf32> to vector<1x8xf32>
    %c0_73 = arith.constant 0 : index
    %c1_74 = arith.constant 1 : index
    %c0_75 = arith.constant 0 : index
    %89 = vector.load %arg6[%c0_73, %c1_74, %c0_75] : memref<1x2x8xf32, #tpu.memory_space<vmem>>, vector<1x1x8xf32>
    %90 = vector.shape_cast %89 : vector<1x1x8xf32> to vector<1x8xf32>
    %91 = vector.shape_cast %88 : vector<1x8xf32> to vector<1x1x8xf32>
    tpu.vector_store %arg6[%c0_73, %c1_74, %c0_75], %91 {strides = array<i32>} : memref<1x2x8xf32, #tpu.memory_space<vmem>>, vector<1x1x8xf32>,
    return
  }
  func.func @transform_0(%arg0: i32) -> (i32, i32, i32, i32) {
    %c0_i32 = arith.constant 0 : i32
    %c0_i32_0 = arith.constant 0 : i32
    %c0_i32_1 = arith.constant 0 : i32
    %c0_i32_2 = arith.constant 0 : i32
    return %arg0, %c0_i32, %c0_i32_0, %c0_i32_1 : i32, i32, i32, i32
  }
  func.func @transform_1(%arg0: i32) -> (i32, i32) {
    %c0_i32 = arith.constant 0 : i32
    %c0_i32_0 = arith.constant 0 : i32
    %c0_i32_1 = arith.constant 0 : i32
    return %c0_i32, %c0_i32_0 : i32, i32
  }
  func.func @transform_2(%arg0: i32) -> (i32, i32) {
    %c0_i32 = arith.constant 0 : i32
    %c0_i32_0 = arith.constant 0 : i32
    %c0_i32_1 = arith.constant 0 : i32
    return %c0_i32, %c0_i32_0 : i32, i32
  }
  func.func @transform_3(%arg0: i32) -> (i32, i32, i32, i32) {
    %c0_i32 = arith.constant 0 : i32
    %c0_i32_0 = arith.constant 0 : i32
    %c0_i32_1 = arith.constant 0 : i32
    %c0_i32_2 = arith.constant 0 : i32
    %c0_i32_3 = arith.constant 0 : i32
    return %c0_i32, %c0_i32_0, %c0_i32_1, %c0_i32_2 : i32, i32, i32, i32
  }
  func.func @transform_4(%arg0: i32) -> (i32, i32, i32, i32) {
    %c0_i32 = arith.constant 0 : i32
    %c0_i32_0 = arith.constant 0 : i32
    %c0_i32_1 = arith.constant 0 : i32
    %c0_i32_2 = arith.constant 0 : i32
    return %arg0, %c0_i32, %c0_i32_0, %c0_i32_1 : i32, i32, i32, i32
  }
  func.func @transform_5(%arg0: i32) -> (i32, i32, i32) {
    %c0_i32 = arith.constant 0 : i32
    %c0_i32_0 = arith.constant 0 : i32
    %c0_i32_1 = arith.constant 0 : i32
    return %arg0, %c0_i32, %c0_i32_0 : i32, i32, i32
  }
}

module attributes {stable_mosaic.version = 11 : i64} {
  func.func @_bn_relu_kernel(%arg0: i32, %arg1: memref<1x16x16x8xf32, #tpu.memory_space<vmem>>, %arg2: memref<1x8xf32, #tpu.memory_space<vmem>>, %arg3: memref<1x8xf32, #tpu.memory_space<vmem>>, %arg4: memref<1x16x16x8xf32, #tpu.memory_space<vmem>>) attributes {dimension_semantics = [#tpu.dimension_semantics<parallel>], iteration_bounds = array<i64: 2>, scalar_prefetch = 0 : i64, scratch_operands = 0 : i64, tpu.core_type = #tpu.core_type<tc>, window_params = [{transform_indices = @transform_0, window_bounds = array<i64: 1, 16, 16, 8>}, {pipeline_mode = #tpu.pipeline_mode<synchronous>, transform_indices = @transform_1, window_bounds = array<i64: 1, 8>}, {pipeline_mode = #tpu.pipeline_mode<synchronous>, transform_indices = @transform_2, window_bounds = array<i64: 1, 8>}, {transform_indices = @transform_3, window_bounds = array<i64: 1, 16, 16, 8>}]} {
    %c0 = arith.constant 0 : index
    %c0_0 = arith.constant 0 : index
    %c0_1 = arith.constant 0 : index
    %c0_2 = arith.constant 0 : index
    %0 = vector.load %arg1[%c0, %c0_0, %c0_1, %c0_2] : memref<1x16x16x8xf32, #tpu.memory_space<vmem>>, vector<1x16x16x8xf32>
    %1 = vector.shape_cast %0 : vector<1x16x16x8xf32> to vector<16x16x8xf32>
    %2 = vector.shape_cast %1 : vector<16x16x8xf32> to vector<256x8xf32>
    %c0_3 = arith.constant 0 : index
    %c0_4 = arith.constant 0 : index
    %3 = vector.load %arg2[%c0_3, %c0_4] : memref<1x8xf32, #tpu.memory_space<vmem>>, vector<1x8xf32>
    %4 = vector.broadcast %3 : vector<1x8xf32> to vector<256x8xf32>
    %5 = arith.mulf %2, %4 : vector<256x8xf32>
    %c0_5 = arith.constant 0 : index
    %c0_6 = arith.constant 0 : index
    %6 = vector.load %arg3[%c0_5, %c0_6] : memref<1x8xf32, #tpu.memory_space<vmem>>, vector<1x8xf32>
    %7 = vector.broadcast %6 : vector<1x8xf32> to vector<256x8xf32>
    %8 = arith.addf %5, %7 : vector<256x8xf32>
    %cst = arith.constant 0.000000e+00 : f32
    %9 = vector.broadcast %cst : f32 to vector<256x8xf32>
    %10 = arith.maximumf %8, %9 : vector<256x8xf32>
    %11 = vector.shape_cast %10 : vector<256x8xf32> to vector<16x16x8xf32>
    %c0_7 = arith.constant 0 : index
    %c0_8 = arith.constant 0 : index
    %c0_9 = arith.constant 0 : index
    %c0_10 = arith.constant 0 : index
    %12 = vector.load %arg4[%c0_7, %c0_8, %c0_9, %c0_10] : memref<1x16x16x8xf32, #tpu.memory_space<vmem>>, vector<1x16x16x8xf32>
    %13 = vector.shape_cast %12 : vector<1x16x16x8xf32> to vector<16x16x8xf32>
    %14 = vector.shape_cast %11 : vector<16x16x8xf32> to vector<1x16x16x8xf32>
    tpu.vector_store %arg4[%c0_7, %c0_8, %c0_9, %c0_10], %14 {strides = array<i32>} : memref<1x16x16x8xf32, #tpu.memory_space<vmem>>, vector<1x16x16x8xf32>,
    return
  }
  func.func @transform_0(%arg0: i32) -> (i32, i32, i32, i32) {
    %c0_i32 = arith.constant 0 : i32
    %c0_i32_0 = arith.constant 0 : i32
    %c0_i32_1 = arith.constant 0 : i32
    %c0_i32_2 = arith.constant 0 : i32
    return %arg0, %c0_i32, %c0_i32_0, %c0_i32_1 : i32, i32, i32, i32
  }
  func.func @transform_1(%arg0: i32) -> (i32, i32) {
    %c0_i32 = arith.constant 0 : i32
    %c0_i32_0 = arith.constant 0 : i32
    %c0_i32_1 = arith.constant 0 : i32
    return %c0_i32, %c0_i32_0 : i32, i32
  }
  func.func @transform_2(%arg0: i32) -> (i32, i32) {
    %c0_i32 = arith.constant 0 : i32
    %c0_i32_0 = arith.constant 0 : i32
    %c0_i32_1 = arith.constant 0 : i32
    return %c0_i32, %c0_i32_0 : i32, i32
  }
  func.func @transform_3(%arg0: i32) -> (i32, i32, i32, i32) {
    %c0_i32 = arith.constant 0 : i32
    %c0_i32_0 = arith.constant 0 : i32
    %c0_i32_1 = arith.constant 0 : i32
    %c0_i32_2 = arith.constant 0 : i32
    return %arg0, %c0_i32, %c0_i32_0, %c0_i32_1 : i32, i32, i32, i32
  }
}

</mosaic_0001>

<bundles_post_ra>
// kernel: decoder_forward.4
= control target key start
LH: loop header
LB: loop body
LE: loop exit
PB: predicated region body
PF: predicated region fallthrough
CT: control target
= control target key end

     0   :  { %s464_s12 = smov 0   ;;  %s503_s0 = inlined_call_operand.vmem [shape: f32[2,8,8,8], index: 0, kind: input, shape index: {}]   ;;  %s504_s1 = inlined_call_operand.vmem [shape: f32[8,16], index: 1, kind: input, shape index: {}]   ;;  %s505_s2 = inlined_call_operand.vmem [shape: f32[1,16], index: 2, kind: input, shape index: {}]   ;;  %s506_s3 = inlined_call_operand.vmem [shape: f32[2,64,16], index: 3, kind: output, shape index: {}]  }
   0x1 LB: > { %s381_s13 = sadd.s32 4294967295, %s442_s12   ;;  %p385_p0 = scmp.ge.s32.totalorder %s442_s12, 1  ;;  %s442_s12 = sphi %s464_s12, %s13_s12  }
   0x2   : > { %p137_p1 = scmp.lt.s32.totalorder %s442_s12, 3 }
   0x4   : > { %p138_p2 = pnand %p385_p0, %p137_p1 }
   0x5   : > { %v179_v0 = vld [vmem:[%s504_s1] sm:$0xff] (!%p138_p2)  ;;  %p161_p3 = scmp.lt.s32.totalorder (!%p138_p2), %s381_s13, 1  ;;  %vm187_vm0 = vcmask (!%p138_p2), 64512   ;;  %vm317_vm1 = vcmask (!%p138_p2), 130048  }
   0x6   : > { %141 = sbr.rel (%p138_p2) target bundleno = 239 (0xef), region = 32  ;;  %412 = vmatprep.subr.mxu0 (!%p138_p2), %v179_v0  ;;  %426 = vmatprep.subr.mxu1 (!%p138_p2), %v179_v0  ;;  %v390_v9 = vld [vmem:[%s505_s2] ss:$0 sm:$0xff] (!%p138_p2) }
   0x7   : > { %413 = vmatpush3.msra.mxu0 (!%p138_p2), %v179_v0  ;;  %427 = vmatpush3.msra.mxu1 (!%p138_p2), %v179_v0 }
   0xd   : > { %s508_s13 = smov (!%p161_p3, %s381_s13), 1 }
   0xe   : > { %s401_s16 = sshll.u32 %s508_s13, 6 }
   0xf   : > { %s165_s19 = scalar_lea.vmem %s503_s0, %s401_s16  ;;  %s170_s24 = scalar_lea.vmem %s506_s3, %s401_s16 }
  0x10   : > { %v171_v1 = vld [vmem:[%s165_s19] sm:$0xff]  ;;  %v172_v3 = vld [vmem:[%s165_s19 + $0x8] sm:$0xff]  ;;  %v173_v5 = vld [vmem:[%s165_s19 + $0x10] sm:$0xff] }
  0x11   : > { %v175_v2 = vld [vmem:[%s165_s19 + $0x20] sm:$0xff]  ;;  %414 = vmatprep.mubr.msk.f32.mxu0 %vm187_vm0, %v171_v1  ;;  %v176_v4 = vld [vmem:[%s165_s19 + $0x28] sm:$0xff]  ;;  %v177_v6 = vld [vmem:[%s165_s19 + $0x30] sm:$0xff] }
  0x12   : > { %420 = vmatprep.mubr.msk.f32.mxu1 %vm187_vm0, %v175_v2  ;;  %415 = vmatmul.mubr.msk.f32.vlgmr.msra.gmra.mrb[0].mxu0 %vm187_vm0, %v172_v3  ;;  %v174_v7 = vld [vmem:[%s165_s19 + $0x18] sm:$0xff] }
  0x13   : > { %421 = vmatmul.mubr.msk.f32.vlgmr.msra.gmra.mrb[0].mxu1 %vm187_vm0, %v176_v4  ;;  %417 = vmatprep.mubr.msk.f32.mxu0 %vm187_vm0, %v173_v5  ;;  %v178_v8 = vld [vmem:[%s165_s19 + $0x38] sm:$0xff] }
  0x14   : > { %423 = vmatprep.mubr.msk.f32.mxu1 %vm187_vm0, %v177_v6 }
  0x16   : > { %418 = vmatmul.mubr.msk.f32.gmra.mrb[2].mxu0 %vm187_vm0, %v174_v7 }
  0x17   : > { %424 = vmatmul.mubr.msk.f32.gmra.mrb[2].mxu1 %vm187_vm0, %v178_v8 }
  0xe5   : > { %v416_v10 = vpop.f32.mrb[0].mxu0 }
  0xe6   : > { %v422_v11 = vpop.f32.mrb[0].mxu1  ;;  %v284_v12 = vadd.f32 %v416_v10, %v390_v9  ;;  %v278_v14 = vpop.f32.mrb[1].mxu0 }
  0xe7   : > { %v304_v13 = vadd.f32 %v422_v11, %v390_v9  ;;  %v298_v15 = vpop.f32.mrb[1].mxu1  ;;  %v279_v16 = vadd.f32 %v390_v9, %v278_v14 }
  0xe8   : > { %v299_v17 = vadd.f32 %v390_v9, %v298_v15  ;;  %319 = vst.msk [vmem:[%s170_s24 + $0x8] sm:$0xff] %vm317_vm1, %v284_v12 }
  0xe9   : > { %323 = vst.msk [vmem:[%s170_s24 + $0x28] sm:$0xff] %vm317_vm1, %v304_v13  ;;  %318 = vst.msk [vmem:[%s170_s24] sm:$0xff] %vm317_vm1, %v279_v16  ;;  %v419_v18 = vpop.f32.mrb[2].mxu0 }
  0xea   : > { %322 = vst.msk [vmem:[%s170_s24 + $0x20] sm:$0xff] %vm317_vm1, %v299_v17  ;;  %v425_v19 = vpop.f32.mrb[2].mxu1  ;;  %v294_v20 = vadd.f32 %v419_v18, %v390_v9  ;;  %v288_v22 = vpop.f32.mrb[3].mxu0 }
  0xeb   : > { %v314_v21 = vadd.f32 %v425_v19, %v390_v9  ;;  %v308_v23 = vpop.f32.mrb[3].mxu1  ;;  %v289_v24 = vadd.f32 %v390_v9, %v288_v22 }
  0xec   : > { %v309_v25 = vadd.f32 %v390_v9, %v308_v23  ;;  %321 = vst.msk [vmem:[%s170_s24 + $0x18] sm:$0xff] %vm317_vm1, %v294_v20 }
  0xed   : > { %325 = vst.msk [vmem:[%s170_s24 + $0x38] sm:$0xff] %vm317_vm1, %v314_v21  ;;  %320 = vst.msk [vmem:[%s170_s24 + $0x10] sm:$0xff] %vm317_vm1, %v289_v24 }
  0xee   : > { %324 = vst.msk [vmem:[%s170_s24 + $0x30] sm:$0xff] %vm317_vm1, %v309_v25 }
  0xef PF: > { %s13_s12 = sadd.s32 1, %s442_s12  }
  0xf0   : > { %p10_p4 = scmp.ge.s32.totalorder %s13_s12, 4  }
  0xf2   :  { %12 = sbr.rel (!%p10_p4) target bundleno = 1 (0x1), region = 62 }

// kernel: decoder_forward.7
= control target key start
LH: loop header
LB: loop body
LE: loop exit
PB: predicated region body
PF: predicated region fallthrough
CT: control target
= control target key end

     0   :  { %s452_s12 = smov 0   ;;  %s643_s0 = inlined_call_operand.vmem [shape: f32[2,16,16,8], index: 0, kind: input, shape index: {}]   ;;  %s644_s1 = inlined_call_operand.vmem [shape: f32[1,8], index: 1, kind: input, shape index: {}]   ;;  %s645_s2 = inlined_call_operand.vmem [shape: f32[1,8], index: 2, kind: input, shape index: {}]   ;;  %s646_s3 = inlined_call_operand.vmem [shape: f32[2,16,16,8], index: 3, kind: output, shape index: {}]  }
   0x1 LB: > { %s401_s13 = sadd.s32 4294967295, %s430_s12   ;;  %p405_p0 = scmp.ge.s32.totalorder %s430_s12, 1  ;;  %s430_s12 = sphi %s452_s12, %s13_s12  }
   0x2   : > { %p137_p1 = scmp.lt.s32.totalorder %s430_s12, 3 }
   0x4   : > { %p138_p2 = pnand %p405_p0, %p137_p1 }
   0x5   : > { %p161_p3 = scmp.lt.s32.totalorder (!%p138_p2), %s401_s13, 1  ;;  %v463_v0 = vld [vmem:[%s644_s1] ss:$0 sm:$0xff] (!%p138_p2)  ;;  %vm313_vm0 = vcmask (!%p138_p2), 64512  }
   0x6   : > { %141 = sbr.rel (%p138_p2) target bundleno = 46 (0x2e), region = 32  ;;  %v473_v1 = vld [vmem:[%s645_s2] ss:$0 sm:$0xff] (!%p138_p2) }
   0xd   : > { %s648_s13 = smov (!%p161_p3, %s401_s13), 1 }
   0xe   : > { %s414_s14 = sshll.u32 %s648_s13, 8 }
   0xf   : > { %s468_s19 = scalar_lea.vmem %s643_s0, %s414_s14  ;;  %s496_s24 = scalar_lea.vmem %s646_s3, %s414_s14 }
  0x10   : > { %v171_v2 = vld [vmem:[%s468_s19] sm:$0xff]  ;;  %v172_v3 = vld [vmem:[%s468_s19 + $0x8] sm:$0xff]  ;;  %v173_v4 = vld [vmem:[%s468_s19 + $0x10] sm:$0xff] }
  0x11   : > { %v210_v5 = vmul.f32 %v463_v0, %v171_v2  ;;  %v211_v6 = vmul.f32 %v463_v0, %v172_v3  ;;  %v212_v7 = vmul.f32 %v463_v0, %v173_v4  ;;  %v174_v8 = vld [vmem:[%s468_s19 + $0x18] sm:$0xff]  ;;  %v175_v9 = vld [vmem:[%s468_s19 + $0x20] sm:$0xff]  ;;  %v176_v10 = vld [vmem:[%s468_s19 + $0x28] sm:$0xff] }
  0x12   : > { %v213_v11 = vmul.f32 %v463_v0, %v174_v8  ;;  %v214_v12 = vmul.f32 %v463_v0, %v175_v9  ;;  %v215_v13 = vmul.f32 %v463_v0, %v176_v10  ;;  %v177_v14 = vld [vmem:[%s468_s19 + $0x30] sm:$0xff]  ;;  %v178_v15 = vld [vmem:[%s468_s19 + $0x38] sm:$0xff]  ;;  %v179_v24 = vld [vmem:[%s468_s19 + $0x40] sm:$0xff] }
  0x13   : > { %v249_v16 = vadd.f32 %v473_v1, %v210_v5  ;;  %v250_v17 = vadd.f32 %v473_v1, %v211_v6  ;;  %v251_v18 = vadd.f32 %v473_v1, %v212_v7  ;;  %v216_v19 = vmul.f32 %v463_v0, %v177_v14  ;;  %v180_v25 = vld [vmem:[%s468_s19 + $0x48] sm:$0xff]  ;;  %v181_v26 = vld [vmem:[%s468_s19 + $0x50] sm:$0xff]  ;;  %v182_v31 = vld [vmem:[%s468_s19 + $0x58] sm:$0xff] }
  0x14   : > { %v252_v20 = vadd.f32 %v473_v1, %v213_v11  ;;  %v253_v21 = vadd.f32 %v473_v1, %v214_v12  ;;  %v254_v22 = vadd.f32 %v473_v1, %v215_v13  ;;  %v217_v23 = vmul.f32 %v463_v0, %v178_v15  ;;  %v183_v32 = vld [vmem:[%s468_s19 + $0x60] sm:$0xff]  ;;  %v184_v33 = vld [vmem:[%s468_s19 + $0x68] sm:$0xff]  ;;  %v185_v38 = vld [vmem:[%s468_s19 + $0x70] sm:$0xff] }
  0x15   : > { %v281_v27 = vmax.f32 %v249_v16, 0.0  ;;  %v282_v28 = vmax.f32 %v250_v17, 0.0  ;;  %v283_v29 = vmax.f32 %v251_v18, 0.0  ;;  %v255_v30 = vadd.f32 %v473_v1, %v216_v19  ;;  %v186_v43 = vld [vmem:[%s468_s19 + $0x78] sm:$0xff]  ;;  %v187_v56 = vld [vmem:[%s468_s19 + $0x80] sm:$0xff]  ;;  %v188_v57 = vld [vmem:[%s468_s19 + $0x88] sm:$0xff] }
  0x16   : > { %v284_v34 = vmax.f32 %v252_v20, 0.0  ;;  %v285_v35 = vmax.f32 %v253_v21, 0.0  ;;  %v286_v36 = vmax.f32 %v254_v22, 0.0  ;;  %v256_v37 = vadd.f32 %v473_v1, %v217_v23  ;;  %v189_v58 = vld [vmem:[%s468_s19 + $0x90] sm:$0xff]  ;;  %v190_v63 = vld [vmem:[%s468_s19 + $0x98] sm:$0xff]  ;;  %v191_v2 = vld [vmem:[%s468_s19 + $0xa0] sm:$0xff] }
  0x17   : > { %314 = vst.msk [vmem:[%s496_s24] sm:$0xff] %vm313_vm0, %v281_v27  ;;  %315 = vst.msk [vmem:[%s496_s24 + $0x8] sm:$0xff] %vm313_vm0, %v282_v28  ;;  %v287_v39 = vmax.f32 %v255_v30, 0.0  ;;  %v218_v40 = vmul.f32 %v463_v0, %v179_v24  ;;  %v219_v41 = vmul.f32 %v463_v0, %v180_v25  ;;  %v220_v42 = vmul.f32 %v463_v0, %v181_v26  ;;  %v192_v3 = vld [vmem:[%s468_s19 + $0xa8] sm:$0xff]  ;;  %v193_v8 = vld [vmem:[%s468_s19 + $0xb0] sm:$0xff] }
  0x18   : > { %316 = vst.msk [vmem:[%s496_s24 + $0x10] sm:$0xff] %vm313_vm0, %v283_v29  ;;  %317 = vst.msk [vmem:[%s496_s24 + $0x18] sm:$0xff] %vm313_vm0, %v284_v34  ;;  %v288_v44 = vmax.f32 %v256_v37, 0.0  ;;  %v221_v45 = vmul.f32 %v463_v0, %v182_v31  ;;  %v222_v46 = vmul.f32 %v463_v0, %v183_v32  ;;  %v223_v47 = vmul.f32 %v463_v0, %v184_v33  ;;  %v194_v13 = vld [vmem:[%s468_s19 + $0xb8] sm:$0xff]  ;;  %v195_v26 = vld [vmem:[%s468_s19 + $0xc0] sm:$0xff] }
  0x19   : > { %318 = vst.msk [vmem:[%s496_s24 + $0x20] sm:$0xff] %vm313_vm0, %v285_v35  ;;  %319 = vst.msk [vmem:[%s496_s24 + $0x28] sm:$0xff] %vm313_vm0, %v286_v36  ;;  %v257_v48 = vadd.f32 %v473_v1, %v218_v40  ;;  %v258_v49 = vadd.f32 %v473_v1, %v219_v41  ;;  %v259_v50 = vadd.f32 %v473_v1, %v220_v42  ;;  %v196_v27 = vld [vmem:[%s468_s19 + $0xc8] sm:$0xff]  ;;  %v197_v28 = vld [vmem:[%s468_s19 + $0xd0] sm:$0xff] }
  0x1a   : > { %320 = vst.msk [vmem:[%s496_s24 + $0x30] sm:$0xff] %vm313_vm0, %v287_v39  ;;  %v224_v51 = vmul.f32 %v463_v0, %v185_v38  ;;  %321 = vst.msk [vmem:[%s496_s24 + $0x38] sm:$0xff] %vm313_vm0, %v288_v44  ;;  %v260_v52 = vadd.f32 %v473_v1, %v221_v45  ;;  %v261_v53 = vadd.f32 %v473_v1, %v222_v46  ;;  %v198_v33 = vld [vmem:[%s468_s19 + $0xd8] sm:$0xff]  ;;  %v199_v34 = vld [vmem:[%s468_s19 + $0xe0] sm:$0xff] }
  0x1b   : > { %v262_v54 = vadd.f32 %v473_v1, %v223_v47  ;;  %v225_v55 = vmul.f32 %v463_v0, %v186_v43  ;;  %v289_v59 = vmax.f32 %v257_v48, 0.0  ;;  %v290_v60 = vmax.f32 %v258_v49, 0.0  ;;  %v200_v35 = vld [vmem:[%s468_s19 + $0xe8] sm:$0xff]  ;;  %v201_v40 = vld [vmem:[%s468_s19 + $0xf0] sm:$0xff]  ;;  %v202_v45 = vld [vmem:[%s468_s19 + $0xf8] sm:$0xff] }
  0x1c   : > { %v291_v61 = vmax.f32 %v259_v50, 0.0  ;;  %v263_v62 = vadd.f32 %v473_v1, %v224_v51  ;;  %v292_v4 = vmax.f32 %v260_v52, 0.0  ;;  %v293_v5 = vmax.f32 %v261_v53, 0.0 }
  0x1d   : > { %v294_v6 = vmax.f32 %v262_v54, 0.0  ;;  %v264_v7 = vadd.f32 %v473_v1, %v225_v55  ;;  %322 = vst.msk [vmem:[%s496_s24 + $0x40] sm:$0xff] %vm313_vm0, %v289_v59  ;;  %323 = vst.msk [vmem:[%s496_s24 + $0x48] sm:$0xff] %vm313_vm0, %v290_v60  ;;  %v226_v10 = vmul.f32 %v463_v0, %v187_v56  ;;  %v227_v11 = vmul.f32 %v463_v0, %v188_v57 }
  0x1e   : > { %324 = vst.msk [vmem:[%s496_s24 + $0x50] sm:$0xff] %vm313_vm0, %v291_v61  ;;  %v295_v9 = vmax.f32 %v263_v62, 0.0  ;;  %v228_v12 = vmul.f32 %v463_v0, %v189_v58  ;;  %325 = vst.msk [vmem:[%s496_s24 + $0x58] sm:$0xff] %vm313_vm0, %v292_v4  ;;  %v229_v15 = vmul.f32 %v463_v0, %v190_v63  ;;  %v230_v16 = vmul.f32 %v463_v0, %v191_v2 }
  0x1f   : > { %326 = vst.msk [vmem:[%s496_s24 + $0x60] sm:$0xff] %vm313_vm0, %v293_v5  ;;  %327 = vst.msk [vmem:[%s496_s24 + $0x68] sm:$0xff] %vm313_vm0, %v294_v6  ;;  %v296_v14 = vmax.f32 %v264_v7, 0.0  ;;  %v231_v17 = vmul.f32 %v463_v0, %v192_v3  ;;  %v265_v18 = vadd.f32 %v473_v1, %v226_v10  ;;  %v266_v19 = vadd.f32 %v473_v1, %v227_v11 }
  0x20   : > { %328 = vst.msk [vmem:[%s496_s24 + $0x70] sm:$0xff] %vm313_vm0, %v295_v9  ;;  %v267_v20 = vadd.f32 %v473_v1, %v228_v12  ;;  %v232_v21 = vmul.f32 %v463_v0, %v193_v8  ;;  %v268_v22 = vadd.f32 %v473_v1, %v229_v15  ;;  %v269_v23 = vadd.f32 %v473_v1, %v230_v16 }
  0x21   : > { %329 = vst.msk [vmem:[%s496_s24 + $0x78] sm:$0xff] %vm313_vm0, %v296_v14  ;;  %v270_v24 = vadd.f32 %v473_v1, %v231_v17  ;;  %v233_v25 = vmul.f32 %v463_v0, %v194_v13  ;;  %v297_v29 = vmax.f32 %v265_v18, 0.0  ;;  %v298_v30 = vmax.f32 %v266_v19, 0.0 }
  0x22   : > { %v299_v31 = vmax.f32 %v267_v20, 0.0  ;;  %v271_v32 = vadd.f32 %v473_v1, %v232_v21  ;;  %v300_v36 = vmax.f32 %v268_v22, 0.0  ;;  %v301_v37 = vmax.f32 %v269_v23, 0.0 }
  0x23   : > { %v302_v38 = vmax.f32 %v270_v24, 0.0  ;;  %v272_v39 = vadd.f32 %v473_v1, %v233_v25  ;;  %330 = vst.msk [vmem:[%s496_s24 + $0x80] sm:$0xff] %vm313_vm0, %v297_v29  ;;  %331 = vst.msk [vmem:[%s496_s24 + $0x88] sm:$0xff] %vm313_vm0, %v298_v30  ;;  %v234_v42 = vmul.f32 %v463_v0, %v195_v26  ;;  %v235_v43 = vmul.f32 %v463_v0, %v196_v27 }
  0x24   : > { %332 = vst.msk [vmem:[%s496_s24 + $0x90] sm:$0xff] %vm313_vm0, %v299_v31  ;;  %v303_v41 = vmax.f32 %v271_v32, 0.0  ;;  %v236_v44 = vmul.f32 %v463_v0, %v197_v28  ;;  %333 = vst.msk [vmem:[%s496_s24 + $0x98] sm:$0xff] %vm313_vm0, %v300_v36  ;;  %v237_v47 = vmul.f32 %v463_v0, %v198_v33  ;;  %v238_v48 = vmul.f32 %v463_v0, %v199_v34 }
  0x25   : > { %334 = vst.msk [vmem:[%s496_s24 + $0xa0] sm:$0xff] %vm313_vm0, %v301_v37  ;;  %335 = vst.msk [vmem:[%s496_s24 + $0xa8] sm:$0xff] %vm313_vm0, %v302_v38  ;;  %v304_v46 = vmax.f32 %v272_v39, 0.0  ;;  %v239_v49 = vmul.f32 %v463_v0, %v200_v35  ;;  %v273_v50 = vadd.f32 %v473_v1, %v234_v42  ;;  %v274_v51 = vadd.f32 %v473_v1, %v235_v43 }
  0x26   : > { %336 = vst.msk [vmem:[%s496_s24 + $0xb0] sm:$0xff] %vm313_vm0, %v303_v41  ;;  %v275_v52 = vadd.f32 %v473_v1, %v236_v44  ;;  %v240_v53 = vmul.f32 %v463_v0, %v201_v40  ;;  %v276_v54 = vadd.f32 %v473_v1, %v237_v47  ;;  %v277_v55 = vadd.f32 %v473_v1, %v238_v48 }
  0x27   : > { %337 = vst.msk [vmem:[%s496_s24 + $0xb8] sm:$0xff] %vm313_vm0, %v304_v46  ;;  %v278_v56 = vadd.f32 %v473_v1, %v239_v49  ;;  %v241_v57 = vmul.f32 %v463_v0, %v202_v45  ;;  %v305_v58 = vmax.f32 %v273_v50, 0.0  ;;  %v306_v59 = vmax.f32 %v274_v51, 0.0 }
  0x28   : > { %v307_v60 = vmax.f32 %v275_v52, 0.0  ;;  %v279_v61 = vadd.f32 %v473_v1, %v240_v53  ;;  %v308_v62 = vmax.f32 %v276_v54, 0.0  ;;  %v309_v63 = vmax.f32 %v277_v55, 0.0 }
  0x29   : > { %v310_v2 = vmax.f32 %v278_v56, 0.0  ;;  %v280_v3 = vadd.f32 %v473_v1, %v241_v57  ;;  %338 = vst.msk [vmem:[%s496_s24 + $0xc0] sm:$0xff] %vm313_vm0, %v305_v58  ;;  %339 = vst.msk [vmem:[%s496_s24 + $0xc8] sm:$0xff] %vm313_vm0, %v306_v59 }
  0x2a   : > { %340 = vst.msk [vmem:[%s496_s24 + $0xd0] sm:$0xff] %vm313_vm0, %v307_v60  ;;  %v311_v4 = vmax.f32 %v279_v61, 0.0  ;;  %341 = vst.msk [vmem:[%s496_s24 + $0xd8] sm:$0xff] %vm313_vm0, %v308_v62 }
  0x2b   : > { %342 = vst.msk [vmem:[%s496_s24 + $0xe0] sm:$0xff] %vm313_vm0, %v309_v63  ;;  %343 = vst.msk [vmem:[%s496_s24 + $0xe8] sm:$0xff] %vm313_vm0, %v310_v2  ;;  %v312_v0 = vmax.f32 %v280_v3, 0.0 }
  0x2c   : > { %344 = vst.msk [vmem:[%s496_s24 + $0xf0] sm:$0xff] %vm313_vm0, %v311_v4 }
  0x2d   : > { %345 = vst.msk [vmem:[%s496_s24 + $0xf8] sm:$0xff] %vm313_vm0, %v312_v0 }
  0x2e PF: > { %s13_s12 = sadd.s32 1, %s430_s12  }
  0x2f   : > { %p10_p4 = scmp.ge.s32.totalorder %s13_s12, 4  }
  0x31   :  { %12 = sbr.rel (!%p10_p4) target bundleno = 1 (0x1), region = 62 }

// kernel: decoder_forward.6
= control target key start
LH: loop header
LB: loop body
LE: loop exit
PB: predicated region body
PF: predicated region fallthrough
CT: control target
= control target key end

     0   :  { %s5555_s18 = smov 0   ;;  %s6750_s0 = inlined_call_operand.vmem [shape: f32[2,16,16,4], index: 0, kind: input, shape index: {}]   ;;  %s6751_s1 = inlined_call_operand.vmem [shape: f32[1,4], index: 1, kind: input, shape index: {}]   ;;  %s6752_s2 = inlined_call_operand.vmem [shape: f32[1,4], index: 2, kind: input, shape index: {}]   ;;  %s6753_s3 = inlined_call_operand.vmem [shape: f32[3,3,4,8], index: 3, kind: input, shape index: {}]   ;;  %s6754_s4 = inlined_call_operand.vmem [shape: f32[2,16,16,8], index: 4, kind: output, shape index: {0}]   ;;  %s6755_s5 = inlined_call_operand.vmem [shape: f32[2,2,8], index: 5, kind: output, shape index: {1}]  }
   0x1 LB: > { %s4188_s19 = sadd.s32 4294967295, %s5522_s18   ;;  %p4192_p0 = scmp.ge.s32.totalorder %s5522_s18, 1  ;;  %s5522_s18 = sphi %s5555_s18, %s16_s18  }
   0x2   : > { %p190_p1 = scmp.lt.s32.totalorder %s5522_s18, 3 }
   0x4   : > { %p191_p2 = pnand %p4192_p0, %p190_p1 }
   0x6   : > { %194 = sbr.rel (%p191_p2) target bundleno = 563 (0x233), region = 36 }
   0xd   : > { %v458_v0 = vld [vmem:[%s6753_s3 + $0x4] sm:$0xf]  ;;  %vm626_vm0 = vcmask 1043456   ;;  %vm378_vm1 = vcmask 31744   ;;  %vm381_vm2 = vcmask 25600   ;;  %v5524_v1 = vmov 0.0  }
   0xe   : > { %4798 = vmatprep.subr.msk.mxu1 %vm626_vm0, %v458_v0  ;;  %379 = vst.msk [vmem:[#allocation2] sm:$0xff] %vm378_vm1, %v5524_v1  ;;  %380 = vst.msk [vmem:[#allocation2 + $0x8] sm:$0xff] %vm378_vm1, %v5524_v1  ;;  %vm387_vm3 = vcmask 24576   ;;  %v5574_v2 = vld [vmem:[%s6753_s3 + $0x10] sm:$0xf]  ;;  %p5578_p3 = scmp.lt.s32.totalorder %s4188_s19, 1 }
   0xf   : > { %384 = vst.msk [vmem:[#allocation2 + $0x198] sm:$0xff] %vm378_vm1, %v5524_v1  ;;  %385 = vst.msk [vmem:[#allocation2 + $0x1a0] sm:$0xff] %vm378_vm1, %v5524_v1  ;;  %4799 = vmatpush3.msk.msra.mxu1 %vm626_vm0, %v458_v0  ;;  %4998 = vmatprep.subr.msk.mxu0 %vm626_vm0, %v5574_v2  ;;  %v457_v3 = vld [vmem:[%s6753_s3] sm:$0xf]  ;;  %v5627_v4 = vld [vmem:[%s6753_s3 + $0x14] sm:$0xf] }
  0x10   : > { %382 = vst.msk [vmem:[#allocation2 + $0x10] sm:$0x3] %vm381_vm2, %v5524_v1  ;;  %386 = vst.msk [vmem:[#allocation2 + $0x1a8] sm:$0x3] %vm381_vm2, %v5524_v1  ;;  %4999 = vmatpush3.msk.msra.mxu0 %vm626_vm0, %v5574_v2  ;;  %s6862_s19 = smov (!%p5578_p3, %s4188_s19), 1  ;;  %4848 = vmatprep.subr.msk.mxu1 %vm626_vm0, %v457_v3  ;;  %vm3896_vm4 = vcmask 64512  }
  0x11   : > { %406 = vst.msk [vmem:[#allocation2 + $0x11] sm:$0x1] %vm387_vm3, %v5524_v1  ;;  %388 = vst.msk [vmem:[#allocation2] sm:$0x1] %vm387_vm3, %v5524_v1  ;;  %5048 = vmatprep.subr.msk.mxu0 %vm626_vm0, %v5627_v4  ;;  %s4499_s29 = sshll.u32 %s6862_s19, 8  ;;  %vm3998_vm5 = vcmask 57344  }
  0x12   : > { %389 = vst.msk [vmem:[#allocation2 + $0x18] sm:$0x1] %vm387_vm3, %v5524_v1  ;;  %390 = vst.msk [vmem:[#allocation2 + $0x30] sm:$0x1] %vm387_vm3, %v5524_v1  ;;  %v5644_v5 = vld [vmem:[%s6751_s1] ss:$0 sm:$0xff]  ;;  %s5651_s9 = scalar_lea.vmem %s6750_s0, %s4499_s29  ;;  %s6605_s28 = scalar_lea.vmem %s6754_s4, %s4499_s29 }
  0x13   : > { %391 = vst.msk [vmem:[#allocation2 + $0x48] sm:$0x1] %vm387_vm3, %v5524_v1  ;;  %392 = vst.msk [vmem:[#allocation2 + $0x60] sm:$0x1] %vm387_vm3, %v5524_v1  ;;  %v5656_v6 = vld [vmem:[%s6752_s2] ss:$0 sm:$0xff] }
  0x14   : > { %393 = vst.msk [vmem:[#allocation2 + $0x78] sm:$0x1] %vm387_vm3, %v5524_v1  ;;  %394 = vst.msk [vmem:[#allocation2 + $0x90] sm:$0x1] %vm387_vm3, %v5524_v1  ;;  %v236_v7 = vld [vmem:[%s5651_s9] sm:$0xff]  ;;  %v237_v8 = vld [vmem:[%s5651_s9 + $0x8] sm:$0xff] }
  0x15   : > { %395 = vst.msk [vmem:[#allocation2 + $0xa8] sm:$0x1] %vm387_vm3, %v5524_v1  ;;  %396 = vst.msk [vmem:[#allocation2 + $0xc0] sm:$0x1] %vm387_vm3, %v5524_v1  ;;  %v238_v9 = vld [vmem:[%s5651_s9 + $0x10] sm:$0xff]  ;;  %v498_v11 = vld [vmem:[#allocation2 + $0x1] sm:$0xff]  ;;  %v275_v13 = vmul.f32 %v5644_v5, %v236_v7  ;;  %v276_v14 = vmul.f32 %v5644_v5, %v237_v8 }
  0x16   : > { %397 = vst.msk [vmem:[#allocation2 + $0xd8] sm:$0x1] %vm387_vm3, %v5524_v1  ;;  %398 = vst.msk [vmem:[#allocation2 + $0xf0] sm:$0x1] %vm387_vm3, %v5524_v1  ;;  %v5664_v10 = vld [vmem:[%s6753_s3 + $0x8] sm:$0xf]  ;;  %v277_v15 = vmul.f32 %v5644_v5, %v238_v9  ;;  %4800 = vmatprep.mubr.msk.f32.mxu1 %vm378_vm1, %v498_v11 }
  0x17   : > { %399 = vst.msk [vmem:[#allocation2 + $0x108] sm:$0x1] %vm387_vm3, %v5524_v1  ;;  %400 = vst.msk [vmem:[#allocation2 + $0x120] sm:$0x1] %vm387_vm3, %v5524_v1  ;;  %v499_v12 = vld [vmem:[#allocation2 + $0x9] sm:$0xff]  ;;  %v239_v16 = vld [vmem:[%s5651_s9 + $0x18] sm:$0xff]  ;;  %v314_v21 = vadd.f32 %v5656_v6, %v275_v13  ;;  %v315_v22 = vadd.f32 %v5656_v6, %v276_v14 }
  0x18   : > { %401 = vst.msk [vmem:[#allocation2 + $0x138] sm:$0x1] %vm387_vm3, %v5524_v1  ;;  %402 = vst.msk [vmem:[#allocation2 + $0x150] sm:$0x1] %vm387_vm3, %v5524_v1  ;;  %v278_v17 = vmul.f32 %v5644_v5, %v239_v16  ;;  %v240_v18 = vld [vmem:[%s5651_s9 + $0x20] sm:$0xff]  ;;  %v241_v19 = vld [vmem:[%s5651_s9 + $0x28] sm:$0xff]  ;;  %4801 = vmatmul.mubr.msk.f32.vlgmr.msra.gmra.mrb[0].mxu1 %vm378_vm1, %v499_v12  ;;  %v316_v23 = vadd.f32 %v5656_v6, %v277_v15 }
  0x19   : > { %403 = vst.msk [vmem:[#allocation2 + $0x168] sm:$0x1] %vm387_vm3, %v5524_v1  ;;  %404 = vst.msk [vmem:[#allocation2 + $0x180] sm:$0x1] %vm387_vm3, %v5524_v1  ;;  %v242_v20 = vld [vmem:[%s5651_s9 + $0x30] sm:$0xff]  ;;  %v279_v24 = vmul.f32 %v5644_v5, %v240_v18  ;;  %v243_v25 = vld [vmem:[%s5651_s9 + $0x38] sm:$0xff]  ;;  %4849 = vmatpush3.msk.msra.mxu1 %vm626_vm0, %v457_v3  ;;  %v280_v27 = vmul.f32 %v5644_v5, %v241_v19 }
  0x1a   : > { %405 = vst.msk [vmem:[#allocation2 + $0x198] sm:$0x1] %vm387_vm3, %v5524_v1  ;;  %407 = vst.msk [vmem:[#allocation2 + $0x29] sm:$0x1] %vm387_vm3, %v5524_v1  ;;  %v317_v26 = vadd.f32 %v5656_v6, %v278_v17  ;;  %v281_v28 = vmul.f32 %v5644_v5, %v242_v20  ;;  %v282_v29 = vmul.f32 %v5644_v5, %v243_v25  ;;  %v244_v30 = vld [vmem:[%s5651_s9 + $0x40] sm:$0xff]  ;;  %v245_v31 = vld [vmem:[%s5651_s9 + $0x48] sm:$0xff]  ;;  %4898 = vmatprep.subr.msk.mxu1 %vm626_vm0, %v5664_v10 }
  0x1b   : > { %408 = vst.msk [vmem:[#allocation2 + $0x41] sm:$0x1] %vm387_vm3, %v5524_v1  ;;  %409 = vst.msk [vmem:[#allocation2 + $0x59] sm:$0x1] %vm387_vm3, %v5524_v1  ;;  %v246_v32 = vld [vmem:[%s5651_s9 + $0x50] sm:$0xff]  ;;  %v346_v33 = vmax.f32 %v314_v21, 0.0  ;;  %v318_v36 = vadd.f32 %v5656_v6, %v279_v24  ;;  %v319_v39 = vadd.f32 %v5656_v6, %v280_v27  ;;  %v283_v44 = vmul.f32 %v5644_v5, %v244_v30 }
  0x1c   : > { %410 = vst.msk [vmem:[#allocation2 + $0x71] sm:$0x1] %vm387_vm3, %v5524_v1  ;;  %411 = vst.msk [vmem:[#allocation2 + $0x89] sm:$0x1] %vm387_vm3, %v5524_v1  ;;  %v347_v34 = vmax.f32 %v315_v22, 0.0  ;;  %v348_v35 = vmax.f32 %v316_v23, 0.0  ;;  %v320_v40 = vadd.f32 %v5656_v6, %v281_v28  ;;  %v321_v41 = vadd.f32 %v5656_v6, %v282_v29 }
  0x1d   : > { %412 = vst.msk [vmem:[#allocation2 + $0xa1] sm:$0x1] %vm387_vm3, %v5524_v1  ;;  %413 = vst.msk [vmem:[#allocation2 + $0xb9] sm:$0x1] %vm387_vm3, %v5524_v1  ;;  %v247_v37 = vld [vmem:[%s5651_s9 + $0x58] sm:$0xff]  ;;  %v349_v38 = vmax.f32 %v317_v26, 0.0  ;;  %v284_v45 = vmul.f32 %v5644_v5, %v245_v31  ;;  %v285_v46 = vmul.f32 %v5644_v5, %v246_v32  ;;  %v322_v54 = vadd.f32 %v5656_v6, %v283_v44 }
  0x1e   : > { %414 = vst.msk [vmem:[#allocation2 + $0xd1] sm:$0x1] %vm387_vm3, %v5524_v1  ;;  %415 = vst.msk [vmem:[#allocation2 + $0xe9] sm:$0x1] %vm387_vm3, %v5524_v1  ;;  %v248_v42 = vld [vmem:[%s5651_s9 + $0x60] sm:$0xff]  ;;  %v350_v43 = vmax.f32 %v318_v36, 0.0  ;;  %v286_v53 = vmul.f32 %v5644_v5, %v247_v37 }
  0x1f   : > { %416 = vst.msk [vmem:[#allocation2 + $0x101] sm:$0x1] %vm387_vm3, %v5524_v1  ;;  %417 = vst.msk [vmem:[#allocation2 + $0x119] sm:$0x1] %vm387_vm3, %v5524_v1  ;;  %v249_v47 = vld [vmem:[%s5651_s9 + $0x68] sm:$0xff]  ;;  %v250_v48 = vld [vmem:[%s5651_s9 + $0x70] sm:$0xff]  ;;  %v323_v55 = vadd.f32 %v5656_v6, %v284_v45  ;;  %v324_v56 = vadd.f32 %v5656_v6, %v285_v46  ;;  %v287_v57 = vmul.f32 %v5644_v5, %v248_v42 }
  0x20   : > { %418 = vst.msk [vmem:[#allocation2 + $0x131] sm:$0x1] %vm387_vm3, %v5524_v1  ;;  %419 = vst.msk [vmem:[#allocation2 + $0x149] sm:$0x1] %vm387_vm3, %v5524_v1  ;;  %v251_v49 = vld [vmem:[%s5651_s9 + $0x78] sm:$0xff]  ;;  %v351_v50 = vmax.f32 %v319_v39, 0.0  ;;  %v325_v58 = vadd.f32 %v5656_v6, %v286_v53  ;;  %v288_v59 = vmul.f32 %v5644_v5, %v249_v47  ;;  %v289_v60 = vmul.f32 %v5644_v5, %v250_v48 }
  0x21   : > { %420 = vst.msk [vmem:[#allocation2 + $0x161] sm:$0x1] %vm387_vm3, %v5524_v1  ;;  %421 = vst.msk [vmem:[#allocation2 + $0x179] sm:$0x1] %vm387_vm3, %v5524_v1  ;;  %v352_v51 = vmax.f32 %v320_v40, 0.0  ;;  %v353_v52 = vmax.f32 %v321_v41, 0.0  ;;  %v290_v61 = vmul.f32 %v5644_v5, %v251_v49  ;;  %v326_v8 = vadd.f32 %v5656_v6, %v287_v57 }
  0x22   : > { %422 = vst.msk [vmem:[#allocation2 + $0x191] sm:$0x1] %vm387_vm3, %v5524_v1  ;;  %423 = vst.msk [vmem:[#allocation2 + $0x1a9] sm:$0x1] %vm387_vm3, %v5524_v1  ;;  %v252_v62 = vld [vmem:[%s5651_s9 + $0x80] sm:$0xff]  ;;  %v253_v63 = vld [vmem:[%s5651_s9 + $0x88] sm:$0xff]  ;;  %v327_v12 = vadd.f32 %v5656_v6, %v288_v59  ;;  %v328_v13 = vadd.f32 %v5656_v6, %v289_v60 }
  0x23   : > { %425 = vst.msk [vmem:[#allocation2 + $0x19] sm:$0xff] %vm378_vm1, %v346_v33  ;;  %426 = vst.msk [vmem:[#allocation2 + $0x21] sm:$0xff] %vm378_vm1, %v347_v34  ;;  %v254_v0 = vld [vmem:[%s5651_s9 + $0x90] sm:$0xff]  ;;  %v354_v1 = vmax.f32 %v322_v54, 0.0  ;;  %v355_v3 = vmax.f32 %v323_v55, 0.0  ;;  %v356_v7 = vmax.f32 %v324_v56, 0.0  ;;  %v329_v14 = vadd.f32 %v5656_v6, %v290_v61 }
  0x24   : > { %427 = vst.msk [vmem:[#allocation2 + $0x31] sm:$0xff] %vm378_vm1, %v348_v35  ;;  %428 = vst.msk [vmem:[#allocation2 + $0x39] sm:$0xff] %vm378_vm1, %v349_v38  ;;  %v255_v9 = vld [vmem:[%s5651_s9 + $0x98] sm:$0xff]  ;;  %v357_v11 = vmax.f32 %v325_v58, 0.0  ;;  %v358_v15 = vmax.f32 %v326_v8, 0.0  ;;  %v291_v16 = vmul.f32 %v5644_v5, %v252_v62  ;;  %v292_v17 = vmul.f32 %v5644_v5, %v253_v63  ;;  %v256_v19 = vld [vmem:[%s5651_s9 + $0xa0] sm:$0xff] }
  0x25   : > { %429 = vst.msk [vmem:[#allocation2 + $0x49] sm:$0xff] %vm378_vm1, %v350_v43  ;;  %430 = vst.msk [vmem:[#allocation2 + $0x51] sm:$0xff] %vm378_vm1, %v351_v50  ;;  %v293_v18 = vmul.f32 %v5644_v5, %v254_v0  ;;  %v257_v20 = vld [vmem:[%s5651_s9 + $0xa8] sm:$0xff]  ;;  %v258_v21 = vld [vmem:[%s5651_s9 + $0xb0] sm:$0xff]  ;;  %v359_v25 = vmax.f32 %v327_v12, 0.0  ;;  %v360_v26 = vmax.f32 %v328_v13, 0.0  ;;  %v294_v28 = vmul.f32 %v5644_v5, %v255_v9 }
  0x26   : > { %431 = vst.msk [vmem:[#allocation2 + $0x61] sm:$0xff] %vm378_vm1, %v352_v51  ;;  %432 = vst.msk [vmem:[#allocation2 + $0x69] sm:$0xff] %vm378_vm1, %v353_v52  ;;  %v361_v27 = vmax.f32 %v329_v14, 0.0  ;;  %v330_v29 = vadd.f32 %v5656_v6, %v291_v16  ;;  %v5748_v30 = vld [vmem:[%s6753_s3 + $0x18] sm:$0xf]  ;;  %v331_v31 = vadd.f32 %v5656_v6, %v292_v17  ;;  %v295_v35 = vmul.f32 %v5644_v5, %v256_v19  ;;  %v260_v37 = vld [vmem:[%s5651_s9 + $0xc0] sm:$0xff] }
  0x27   : > { %433 = vst.msk [vmem:[#allocation2 + $0x79] sm:$0xff] %vm378_vm1, %v354_v1  ;;  %434 = vst.msk [vmem:[#allocation2 + $0x81] sm:$0xff] %vm378_vm1, %v355_v3  ;;  %v332_v32 = vadd.f32 %v5656_v6, %v293_v18  ;;  %v259_v33 = vld [vmem:[%s5651_s9 + $0xb8] sm:$0xff]  ;;  %v333_v34 = vadd.f32 %v5656_v6, %v294_v28  ;;  %v296_v36 = vmul.f32 %v5644_v5, %v257_v20  ;;  %v261_v38 = vld [vmem:[%s5651_s9 + $0xc8] sm:$0xff]  ;;  %s4197_s29 = sshll.u32 %s6862_s19, 1 }
  0x28   : > { %435 = vst.msk [vmem:[#allocation2 + $0x91] sm:$0xff] %vm378_vm1, %v356_v7  ;;  %436 = vst.msk [vmem:[#allocation2 + $0x99] sm:$0xff] %vm378_vm1, %v357_v11  ;;  %v262_v39 = vld [vmem:[%s5651_s9 + $0xd0] sm:$0xff]  ;;  %v362_v41 = vmax.f32 %v330_v29, 0.0  ;;  %v363_v42 = vmax.f32 %v331_v31, 0.0  ;;  %v297_v44 = vmul.f32 %v5644_v5, %v258_v21  ;;  %v263_v45 = vld [vmem:[%s5651_s9 + $0xd8] sm:$0xff]  ;;  %v334_v47 = vadd.f32 %v5656_v6, %v295_v35  ;;  %s235_s7 = scalar_lea.vmem %s6755_s5, %s4197_s29 }
  0x29   : > { %437 = vst.msk [vmem:[#allocation2 + $0xa9] sm:$0xff] %vm378_vm1, %v358_v15  ;;  %438 = vst.msk [vmem:[#allocation2 + $0xb1] sm:$0xff] %vm378_vm1, %v359_v25  ;;  %v364_v43 = vmax.f32 %v332_v32, 0.0  ;;  %v335_v48 = vadd.f32 %v5656_v6, %v296_v36  ;;  %v298_v49 = vmul.f32 %v5644_v5, %v259_v33  ;;  %v299_v51 = vmul.f32 %v5644_v5, %v260_v37  ;;  %v264_v54 = vld [vmem:[%s5651_s9 + $0xe0] sm:$0xff]  ;;  %v265_v55 = vld [vmem:[%s5651_s9 + $0xe8] sm:$0xff] }
  0x2a   : > { %v500_v22 = vld [vmem:[#allocation2 + $0x19] sm:$0xff]  ;;  %v501_v23 = vld [vmem:[#allocation2 + $0x21] sm:$0xff]  ;;  %439 = vst.msk [vmem:[#allocation2 + $0xc1] sm:$0xff] %vm378_vm1, %v360_v26  ;;  %440 = vst.msk [vmem:[#allocation2 + $0xc9] sm:$0xff] %vm378_vm1, %v361_v27  ;;  %v336_v50 = vadd.f32 %v5656_v6, %v297_v44  ;;  %v300_v52 = vmul.f32 %v5644_v5, %v261_v38  ;;  %v301_v53 = vmul.f32 %v5644_v5, %v262_v39  ;;  %v366_v56 = vmax.f32 %v334_v47, 0.0 }
  0x2b   : > { %v5737_v24 = vld [vmem:[#allocation2 + $0x31] sm:$0xff]  ;;  %4803 = vmatprep.mubr.msk.f32.mxu1 %vm378_vm1, %v500_v22  ;;  %5000 = vmatprep.mubr.msk.f32.mxu0 %vm378_vm1, %v500_v22  ;;  %v5768_v40 = vld [vmem:[#allocation2 + $0x39] sm:$0xff]  ;;  %441 = vst.msk [vmem:[#allocation2 + $0xd9] sm:$0xff] %vm378_vm1, %v362_v41  ;;  %442 = vst.msk [vmem:[#allocation2 + $0xe1] sm:$0xff] %vm378_vm1, %v363_v42  ;;  %v367_v57 = vmax.f32 %v335_v48, 0.0  ;;  %v337_v58 = vadd.f32 %v5656_v6, %v298_v49  ;;  %v302_v59 = vmul.f32 %v5644_v5, %v263_v45 }
  0x2c   : > { %4804 = vmatmul.mubr.msk.f32.gmra.mrb[2].mxu1 %vm378_vm1, %v501_v23  ;;  %5001 = vmatmul.mubr.msk.f32.vlgmr.msra.gmra.mrb[0].mxu0 %vm378_vm1, %v501_v23  ;;  %v5774_v46 = vld [vmem:[#allocation2 + $0x49] sm:$0xff]  ;;  %443 = vst.msk [vmem:[#allocation2 + $0xf1] sm:$0xff] %vm378_vm1, %v364_v43  ;;  %v5802_v61 = vld [vmem:[#allocation2 + $0x51] sm:$0xff]  ;;  %v368_v62 = vmax.f32 %v336_v50, 0.0  ;;  %v338_v63 = vadd.f32 %v5656_v6, %v299_v51  ;;  %v339_v0 = vadd.f32 %v5656_v6, %v300_v52  ;;  %445 = vst.msk [vmem:[#allocation2 + $0x109] sm:$0xff] %vm378_vm1, %v366_v56 }
  0x2d   : > { %5049 = vmatpush3.msk.msra.mxu0 %vm626_vm0, %v5627_v4  ;;  %4806 = vmatprep.mubr.msk.f32.mxu1 %vm378_vm1, %v5737_v24  ;;  %v365_v4 = vmax.f32 %v333_v34, 0.0  ;;  %v266_v60 = vld [vmem:[%s5651_s9 + $0xf0] sm:$0xff]  ;;  %v340_v1 = vadd.f32 %v5656_v6, %v301_v53  ;;  %v267_v3 = vld [vmem:[%s5651_s9 + $0xf8] sm:$0xff]  ;;  %v5808_v7 = vld [vmem:[#allocation2 + $0x61] sm:$0xff]  ;;  %446 = vst.msk [vmem:[#allocation2 + $0x111] sm:$0xff] %vm378_vm1, %v367_v57  ;;  %v369_v8 = vmax.f32 %v337_v58, 0.0  ;;  %v341_v9 = vadd.f32 %v5656_v6, %v302_v59 }
  0x2e   : > { %5003 = vmatprep.mubr.msk.f32.mxu0 %vm378_vm1, %v5737_v24  ;;  %5098 = vmatprep.subr.msk.mxu0 %vm626_vm0, %v5748_v30  ;;  %v303_v11 = vmul.f32 %v5644_v5, %v264_v54  ;;  %v304_v12 = vmul.f32 %v5644_v5, %v265_v55  ;;  %447 = vst.msk [vmem:[#allocation2 + $0x121] sm:$0xff] %vm378_vm1, %v368_v62  ;;  %v370_v13 = vmax.f32 %v338_v63, 0.0  ;;  %v371_v14 = vmax.f32 %v339_v0, 0.0  ;;  %v5829_v21 = vld [vmem:[#allocation2 + $0x69] sm:$0xff]  ;;  %v5835_v23 = vld [vmem:[#allocation2 + $0x79] sm:$0xff]  ;;  %v5849_v29 = vld [vmem:[#allocation2 + $0x81] sm:$0xff] }
  0x2f   : > { %444 = vst.msk [vmem:[#allocation2 + $0xf9] sm:$0xff] %vm378_vm1, %v365_v4  ;;  %v372_v15 = vmax.f32 %v340_v1, 0.0  ;;  %v305_v16 = vmul.f32 %v5644_v5, %v266_v60  ;;  %448 = vst.msk [vmem:[#allocation2 + $0x129] sm:$0xff] %vm378_vm1, %v369_v8  ;;  %v373_v17 = vmax.f32 %v341_v9, 0.0  ;;  %v306_v20 = vmul.f32 %v5644_v5, %v267_v3  ;;  %v5863_v31 = vld [vmem:[#allocation2 + $0x99] sm:$0xff]  ;;  %v5903_v39 = vld [vmem:[#allocation2 + $0x22] sm:$0xff] }
  0x30   : > { %4807 = vmatmul.mubr.msk.f32.gmra.mrb[4].mxu1 %vm378_vm1, %v5768_v40  ;;  %5004 = vmatmul.mubr.msk.f32.gmra.mrb[2].mxu0 %vm378_vm1, %v5768_v40  ;;  %v342_v18 = vadd.f32 %v5656_v6, %v303_v11  ;;  %v343_v19 = vadd.f32 %v5656_v6, %v304_v12  ;;  %449 = vst.msk [vmem:[#allocation2 + $0x139] sm:$0xff] %vm378_vm1, %v370_v13  ;;  %450 = vst.msk [vmem:[#allocation2 + $0x141] sm:$0xff] %vm378_vm1, %v371_v14  ;;  %v5865_v32 = vld [vmem:[#allocation2 + $0xa9] sm:$0xff]  ;;  %v5875_v33 = vld [vmem:[#allocation2 + $0xb1] sm:$0xff] }
  0x31   : > { %4809 = vmatprep.mubr.msk.f32.mxu1 %vm378_vm1, %v5774_v46  ;;  %5006 = vmatprep.mubr.msk.f32.mxu0 %vm378_vm1, %v5774_v46  ;;  %451 = vst.msk [vmem:[#allocation2 + $0x151] sm:$0xff] %vm378_vm1, %v372_v15  ;;  %v344_v22 = vadd.f32 %v5656_v6, %v305_v16  ;;  %452 = vst.msk [vmem:[#allocation2 + $0x159] sm:$0xff] %vm378_vm1, %v373_v17  ;;  %v345_v26 = vadd.f32 %v5656_v6, %v306_v20  ;;  %v5852_v6 = vld [vmem:[#allocation2 + $0x91] sm:$0xff]  ;;  %v5877_v34 = vld [vmem:[#allocation2 + $0xc1] sm:$0xff] }
  0x32   : > { %v374_v5 = vmax.f32 %v342_v18, 0.0  ;;  %v375_v25 = vmax.f32 %v343_v19, 0.0  ;;  %v5887_v35 = vld [vmem:[#allocation2 + $0xc9] sm:$0xff]  ;;  %v5889_v36 = vld [vmem:[#allocation2 + $0xd9] sm:$0xff]  ;;  %v5901_v38 = vld [vmem:[#allocation2 + $0xe1] sm:$0xff] }
  0x33   : > { %v376_v27 = vmax.f32 %v344_v22, 0.0  ;;  %v377_v28 = vmax.f32 %v345_v26, 0.0  ;;  %6799 = vst [vmem:[#allocation3_spill] sm:$0xff] %v5887_v35  ;;  %6800 = vst [vmem:[#allocation4_spill] sm:$0xff] %v5889_v36  ;;  %v5891_v37 = vld [vmem:[#allocation2 + $0x1a] sm:$0xff]  ;;  %v5905_v41 = vld [vmem:[#allocation2 + $0xf1] sm:$0xff] }
  0x34   : > { %4810 = vmatmul.mubr.msk.f32.gmra.mrb[6].mxu1 %vm378_vm1, %v5802_v61  ;;  %5007 = vmatmul.mubr.msk.f32.gmra.mrb[4].mxu0 %vm378_vm1, %v5802_v61  ;;  %453 = vst.msk [vmem:[#allocation2 + $0x169] sm:$0xff] %vm378_vm1, %v374_v5  ;;  %454 = vst.msk [vmem:[#allocation2 + $0x171] sm:$0xff] %vm378_vm1, %v375_v25  ;;  %v5907_v42 = vld [vmem:[#allocation2 + $0x32] sm:$0xff]  ;;  %v5912_v43 = vld [vmem:[%s6753_s3 + $0x1c] sm:$0xf] }
  0x35   : > { %4812 = vmatprep.mubr.msk.f32.mxu1 %vm378_vm1, %v5808_v7  ;;  %5009 = vmatprep.mubr.msk.f32.mxu0 %vm378_vm1, %v5808_v7  ;;  %455 = vst.msk [vmem:[#allocation2 + $0x181] sm:$0xff] %vm378_vm1, %v376_v27  ;;  %456 = vst.msk [vmem:[#allocation2 + $0x189] sm:$0xff] %vm378_vm1, %v377_v28  ;;  %v5924_v45 = vld [vmem:[#allocation2 + $0x3a] sm:$0xff]  ;;  %v5928_v4 = vld [vmem:[#allocation2 + $0x109] sm:$0xff] }
  0x36   : > { %6801 = vst [vmem:[#allocation5_spill] sm:$0xff] %v5901_v38  ;;  %6802 = vst [vmem:[#allocation6_spill] sm:$0xff] %v5905_v41  ;;  %v5922_v44 = vld [vmem:[#allocation2 + $0xf9] sm:$0xff]  ;;  %v5930_v47 = vld [vmem:[#allocation2 + $0x4a] sm:$0xff] }
  0x37   : > { %6803 = vst [vmem:[#allocation7_spill] sm:$0xff] %v5922_v44  ;;  %6804 = vst [vmem:[#allocation8_spill] sm:$0xff] %v5928_v4  ;;  %v5944_v48 = vld [vmem:[#allocation2 + $0x52] sm:$0xff]  ;;  %v5946_v49 = vld [vmem:[#allocation2 + $0x121] sm:$0xff] }
  0x38   : > { %4813 = vmatmul.mubr.msk.f32.gmra.mrb[8].mxu1 %vm378_vm1, %v5829_v21  ;;  %5010 = vmatmul.mubr.msk.f32.gmra.mrb[6].mxu0 %vm378_vm1, %v5829_v21  ;;  %6806 = vst [vmem:[#allocation10_spill] sm:$0xff] %v5946_v49  ;;  %v5948_v50 = vld [vmem:[#allocation2 + $0x62] sm:$0xff]  ;;  %v5960_v52 = vld [vmem:[#allocation2 + $0x6a] sm:$0xff]  ;;  %v5962_v53 = vld [vmem:[#allocation2 + $0x139] sm:$0xff] }
  0x39   : > { %4815 = vmatprep.mubr.msk.f32.mxu1 %vm378_vm1, %v5835_v23  ;;  %5012 = vmatprep.mubr.msk.f32.mxu0 %vm378_vm1, %v5835_v23  ;;  %v5958_v51 = vld [vmem:[#allocation2 + $0x129] sm:$0xff]  ;;  %6808 = vst [vmem:[#allocation12_spill] sm:$0xff] %v5962_v53  ;;  %v5964_v54 = vld [vmem:[#allocation2 + $0x7a] sm:$0xff]  ;;  %v5978_v57 = vld [vmem:[#allocation2 + $0x151] sm:$0xff] }
  0x3a   : > { %6807 = vst [vmem:[#allocation11_spill] sm:$0xff] %v5958_v51  ;;  %v5974_v55 = vld [vmem:[#allocation2 + $0x141] sm:$0xff]  ;;  %6810 = vst [vmem:[#allocation14_spill] sm:$0xff] %v5978_v57  ;;  %v5980_v58 = vld [vmem:[#allocation2 + $0x92] sm:$0xff] }
  0x3b   : > { %6809 = vst [vmem:[#allocation13_spill] sm:$0xff] %v5974_v55  ;;  %v5976_v56 = vld [vmem:[#allocation2 + $0x82] sm:$0xff]  ;;  %v5990_v59 = vld [vmem:[#allocation2 + $0x159] sm:$0xff]  ;;  %v5996_v63 = vld [vmem:[#allocation2 + $0xaa] sm:$0xff] }
  0x3c   : > { %4816 = vmatmul.mubr.msk.f32.gmra.mrb[10].mxu1 %vm378_vm1, %v5849_v29  ;;  %5013 = vmatmul.mubr.msk.f32.gmra.mrb[8].mxu0 %vm378_vm1, %v5849_v29  ;;  %6811 = vst [vmem:[#allocation15_spill] sm:$0xff] %v5990_v59  ;;  %v5992_v60 = vld [vmem:[#allocation2 + $0x9a] sm:$0xff]  ;;  %v5994_v62 = vld [vmem:[#allocation2 + $0x169] sm:$0xff]  ;;  %v6006_v0 = vld [vmem:[#allocation2 + $0x171] sm:$0xff] }
  0x3d   : > { %4818 = vmatprep.mubr.msk.f32.mxu1 %vm378_vm1, %v5852_v6  ;;  %5015 = vmatprep.mubr.msk.f32.mxu0 %vm378_vm1, %v5852_v6  ;;  %6812 = vst [vmem:[#allocation16_spill] sm:$0xff] %v5994_v62  ;;  %6813 = vst [vmem:[#allocation17_spill] sm:$0xff] %v6006_v0  ;;  %v6008_v1 = vld [vmem:[#allocation2 + $0xb2] sm:$0xff]  ;;  %v466_v3 = vld [vmem:[#allocation2] sm:$0xff] }
  0x3e   : > { %v6010_v8 = vld [vmem:[#allocation2 + $0xc2] sm:$0xff]  ;;  %v6019_v11 = vld [vmem:[#allocation2 + $0xca] sm:$0xff]  ;;  %v6021_v12 = vld [vmem:[#allocation2 + $0x18] sm:$0xff] }
  0x3f   : > { %v467_v9 = vld [vmem:[#allocation2 + $0x8] sm:$0xff]  ;;  %6814 = vst [vmem:[#allocation18_spill] sm:$0xff] %v6021_v12  ;;  %v6023_v13 = vld [vmem:[#allocation2 + $0xda] sm:$0xff]  ;;  %v6043_v17 = vld [vmem:[#allocation2 + $0x30] sm:$0xff] }
  0x40   : > { %4819 = vmatmul.mubr.msk.f32.gmra.mrb[12].mxu1 %vm378_vm1, %v5863_v31  ;;  %5016 = vmatmul.mubr.msk.f32.gmra.mrb[10].mxu0 %vm378_vm1, %v5863_v31  ;;  %v6031_v14 = vld [vmem:[%s6753_s3 + $0xc] sm:$0xf]  ;;  %v6037_v15 = vld [vmem:[#allocation2 + $0x20] sm:$0xff]  ;;  %6816 = vst [vmem:[#allocation20_spill] sm:$0xff] %v6043_v17  ;;  %v6045_v18 = vld [vmem:[#allocation2 + $0xf2] sm:$0xff] }
  0x41   : > { %4821 = vmatprep.mubr.msk.f32.mxu1 %vm378_vm1, %v5865_v32  ;;  %5018 = vmatprep.mubr.msk.f32.mxu0 %vm378_vm1, %v5865_v32  ;;  %6815 = vst [vmem:[#allocation19_spill] sm:$0xff] %v6037_v15  ;;  %v6039_v16 = vld [vmem:[#allocation2 + $0xe2] sm:$0xff]  ;;  %v6059_v19 = vld [vmem:[#allocation2 + $0xfa] sm:$0xff]  ;;  %v6063_v22 = vld [vmem:[#allocation2 + $0x10a] sm:$0xff] }
  0x42   : > { %v6061_v20 = vld [vmem:[#allocation2 + $0x48] sm:$0xff]  ;;  %v6073_v5 = vld [vmem:[#allocation2 + $0x50] sm:$0xff]  ;;  %v6077_v26 = vld [vmem:[#allocation2 + $0x60] sm:$0xff] }
  0x43   : > { %6818 = vst [vmem:[#allocation22_spill] sm:$0xff] %v6061_v20  ;;  %6819 = vst [vmem:[#allocation23_spill] sm:$0xff] %v6073_v5  ;;  %v6075_v25 = vld [vmem:[#allocation2 + $0x112] sm:$0xff]  ;;  %v6079_v27 = vld [vmem:[#allocation2 + $0x122] sm:$0xff] }
  0x44   : > { %4822 = vmatmul.mubr.msk.f32.gmra.mrb[14].mxu1 %vm378_vm1, %v5875_v33  ;;  %5019 = vmatmul.mubr.msk.f32.gmra.mrb[12].mxu0 %vm378_vm1, %v5875_v33  ;;  %6820 = vst [vmem:[#allocation24_spill] sm:$0xff] %v6077_v26  ;;  %v6089_v28 = vld [vmem:[#allocation2 + $0x68] sm:$0xff] }
  0x45   : > { %4824 = vmatprep.mubr.msk.f32.mxu1 %vm378_vm1, %v5877_v34  ;;  %5021 = vmatprep.mubr.msk.f32.mxu0 %vm378_vm1, %v5877_v34  ;;  %6821 = vst [vmem:[#allocation25_spill] sm:$0xff] %v6089_v28 }
  0x48   : > { %4825 = vmatmul.mubr.msk.f32.gmra.mrb[16].mxu1 %vm378_vm1, %v5887_v35  ;;  %5022 = vmatmul.mubr.msk.f32.gmra.mrb[14].mxu0 %vm378_vm1, %v5887_v35  ;;  %v6167_v35 = vld [vmem:[#allocation2 + $0xe0] sm:$0xff] }
  0x49   : > { %4827 = vmatprep.mubr.msk.f32.mxu1 %vm378_vm1, %v5889_v36  ;;  %5050 = vmatprep.mubr.msk.f32.mxu0 %vm378_vm1, %v5891_v37  ;;  %v6155_v36 = vld [vmem:[#allocation2 + $0x18a] sm:$0xff] }
  0x4a   : > { %6829 = vst [vmem:[#allocation33_spill] sm:$0xff] %v6155_v36 }
  0x4c   : > { %4828 = vmatmul.mubr.msk.f32.gmra.mrb[18].mxu1 %vm378_vm1, %v5901_v38  ;;  %5051 = vmatmul.mubr.msk.f32.vlgmr.msra.gmra.mrb[0].mxu0 %vm378_vm1, %v5903_v39  ;;  %v6143_v38 = vld [vmem:[#allocation2 + $0x182] sm:$0xff] }
  0x4d   : > { %5099 = vmatpush3.msk.msra.mxu0 %vm626_vm0, %v5748_v30  ;;  %4830 = vmatprep.mubr.msk.f32.mxu1 %vm378_vm1, %v5905_v41  ;;  %v5942_v30 = vld [vmem:[#allocation2 + $0x111] sm:$0xff]  ;;  %v6141_v41 = vld [vmem:[#allocation2 + $0xc0] sm:$0xff]  ;;  %6828 = vst [vmem:[#allocation32_spill] sm:$0xff] %v6143_v38 }
  0x4e   : > { %5053 = vmatprep.mubr.msk.f32.mxu0 %vm378_vm1, %v5907_v42  ;;  %5148 = vmatprep.subr.msk.mxu0 %vm626_vm0, %v5912_v43  ;;  %6805 = vst [vmem:[#allocation9_spill] sm:$0xff] %v5942_v30 }
  0x50   : > { %4831 = vmatmul.mubr.msk.f32.gmra.mrb[20].mxu1 %vm378_vm1, %v5922_v44  ;;  %5054 = vmatmul.mubr.msk.f32.gmra.mrb[2].mxu0 %vm378_vm1, %v5924_v45  ;;  %v6139_v44 = vld [vmem:[#allocation2 + $0x172] sm:$0xff] }
  0x51   : > { %4833 = vmatprep.mubr.msk.f32.mxu1 %vm378_vm1, %v5928_v4  ;;  %5056 = vmatprep.mubr.msk.f32.mxu0 %vm378_vm1, %v5930_v47  ;;  %v6137_v4 = vld [vmem:[#allocation2 + $0xb0] sm:$0xff]  ;;  %6827 = vst [vmem:[#allocation31_spill] sm:$0xff] %v6139_v44 }
  0x52   : > { %6826 = vst [vmem:[#allocation30_spill] sm:$0xff] %v6137_v4 }
  0x54   : > { %4834 = vmatmul.mubr.msk.f32.gmra.mrb[22].mxu1 %vm378_vm1, %v5942_v30  ;;  %5057 = vmatmul.mubr.msk.f32.gmra.mrb[4].mxu0 %vm378_vm1, %v5944_v48  ;;  %v6127_v30 = vld [vmem:[#allocation2 + $0x16a] sm:$0xff] }
  0x55   : > { %4836 = vmatprep.mubr.msk.f32.mxu1 %vm378_vm1, %v5946_v49  ;;  %5059 = vmatprep.mubr.msk.f32.mxu0 %vm378_vm1, %v5948_v50  ;;  %v6125_v49 = vld [vmem:[#allocation2 + $0xa8] sm:$0xff] }
  0x58   : > { %4837 = vmatmul.mubr.msk.f32.gmra.mrb[24].mxu1 %vm378_vm1, %v5958_v51  ;;  %5060 = vmatmul.mubr.msk.f32.gmra.mrb[6].mxu0 %vm378_vm1, %v5960_v52  ;;  %v6123_v51 = vld [vmem:[#allocation2 + $0x15a] sm:$0xff] }
  0x59   : > { %4839 = vmatprep.mubr.msk.f32.mxu1 %vm378_vm1, %v5962_v53  ;;  %5062 = vmatprep.mubr.msk.f32.mxu0 %vm378_vm1, %v5964_v54  ;;  %v6121_v53 = vld [vmem:[#allocation2 + $0x98] sm:$0xff] }
  0x5a   : > { %6825 = vst [vmem:[#allocation29_spill] sm:$0xff] %v6121_v53 }
  0x5c   : > { %4840 = vmatmul.mubr.msk.f32.gmra.mrb[26].mxu1 %vm378_vm1, %v5974_v55  ;;  %5063 = vmatmul.mubr.msk.f32.gmra.mrb[8].mxu0 %vm378_vm1, %v5976_v56  ;;  %v6111_v55 = vld [vmem:[#allocation2 + $0x152] sm:$0xff] }
  0x5d   : > { %4842 = vmatprep.mubr.msk.f32.mxu1 %vm378_vm1, %v5978_v57  ;;  %5065 = vmatprep.mubr.msk.f32.mxu0 %vm378_vm1, %v5980_v58  ;;  %v6109_v57 = vld [vmem:[#allocation2 + $0x90] sm:$0xff] }
  0x5e   : > { %6824 = vst [vmem:[#allocation28_spill] sm:$0xff] %v6109_v57 }
  0x60   : > { %4843 = vmatmul.mubr.msk.f32.gmra.mrb[28].mxu1 %vm378_vm1, %v5990_v59  ;;  %5066 = vmatmul.mubr.msk.f32.gmra.mrb[10].mxu0 %vm378_vm1, %v5992_v60  ;;  %v6107_v59 = vld [vmem:[#allocation2 + $0x142] sm:$0xff] }
  0x61   : > { %4845 = vmatprep.mubr.msk.f32.mxu1 %vm378_vm1, %v5994_v62  ;;  %5068 = vmatprep.mubr.msk.f32.mxu0 %vm378_vm1, %v5996_v63  ;;  %v6105_v62 = vld [vmem:[#allocation2 + $0x80] sm:$0xff] }
  0x62   : > { %6823 = vst [vmem:[#allocation27_spill] sm:$0xff] %v6105_v62 }
  0x64   : > { %4846 = vmatmul.mubr.msk.f32.gmra.mrb[30].mxu1 %vm378_vm1, %v6006_v0  ;;  %5069 = vmatmul.mubr.msk.f32.gmra.mrb[12].mxu0 %vm378_vm1, %v6008_v1  ;;  %v6095_v0 = vld [vmem:[#allocation2 + $0x13a] sm:$0xff] }
  0x65   : > { %4850 = vmatprep.mubr.msk.f32.mxu1 %vm378_vm1, %v466_v3  ;;  %5071 = vmatprep.mubr.msk.f32.mxu0 %vm378_vm1, %v6010_v8  ;;  %v6091_v3 = vld [vmem:[#allocation2 + $0x12a] sm:$0xff] }
  0x68   : > { %4851 = vmatmul.mubr.msk.f32.vlgmr.msra.gmra.mrb[0].mxu1 %vm378_vm1, %v467_v9  ;;  %5072 = vmatmul.mubr.msk.f32.gmra.mrb[14].mxu0 %vm378_vm1, %v6019_v11  ;;  %v6093_v9 = vld [vmem:[#allocation2 + $0x78] sm:$0xff] }
  0x69   : > { %4853 = vmatprep.mubr.msk.f32.mxu1 %vm378_vm1, %v6021_v12  ;;  %5074 = vmatprep.mubr.msk.f32.mxu0 %vm378_vm1, %v6023_v13  ;;  %6822 = vst [vmem:[#allocation26_spill] sm:$0xff] %v6093_v9  ;;  %v6157_v12 = vld [vmem:[#allocation2 + $0xd8] sm:$0xff] }
  0x6a   : > { %4899 = vmatpush3.msk.msra.mxu1 %vm626_vm0, %v5664_v10  ;;  %v6057_v10 = vld [vmem:[#allocation2 + $0x38] sm:$0xff] }
  0x6b   : > { %4948 = vmatprep.subr.msk.mxu1 %vm626_vm0, %v6031_v14  ;;  %6817 = vst [vmem:[#allocation21_spill] sm:$0xff] %v6057_v10 }
  0x6c   : > { %4854 = vmatmul.mubr.msk.f32.gmra.mrb[2].mxu1 %vm378_vm1, %v6037_v15  ;;  %5075 = vmatmul.mubr.msk.f32.gmra.mrb[16].mxu0 %vm378_vm1, %v6039_v16  ;;  %v6153_v15 = vld [vmem:[#allocation2 + $0xc8] sm:$0xff] }
  0x6d   : > { %4856 = vmatprep.mubr.msk.f32.mxu1 %vm378_vm1, %v6043_v17  ;;  %5077 = vmatprep.mubr.msk.f32.mxu0 %vm378_vm1, %v6045_v18 }
  0x70   : > { %4857 = vmatmul.mubr.msk.f32.gmra.mrb[4].mxu1 %vm378_vm1, %v6057_v10  ;;  %5078 = vmatmul.mubr.msk.f32.gmra.mrb[18].mxu0 %vm378_vm1, %v6059_v19 }
  0x71   : > { %4859 = vmatprep.mubr.msk.f32.mxu1 %vm378_vm1, %v6061_v20  ;;  %5080 = vmatprep.mubr.msk.f32.mxu0 %vm378_vm1, %v6063_v22 }
  0x74   : > { %4860 = vmatmul.mubr.msk.f32.gmra.mrb[6].mxu1 %vm378_vm1, %v6073_v5  ;;  %5081 = vmatmul.mubr.msk.f32.gmra.mrb[20].mxu0 %vm378_vm1, %v6075_v25 }
  0x75   : > { %4862 = vmatprep.mubr.msk.f32.mxu1 %vm378_vm1, %v6077_v26  ;;  %5083 = vmatprep.mubr.msk.f32.mxu0 %vm378_vm1, %v6079_v27 }
  0x78   : > { %4863 = vmatmul.mubr.msk.f32.gmra.mrb[8].mxu1 %vm378_vm1, %v6089_v28  ;;  %5084 = vmatmul.mubr.msk.f32.gmra.mrb[22].mxu0 %vm378_vm1, %v6091_v3 }
  0x79   : > { %4865 = vmatprep.mubr.msk.f32.mxu1 %vm378_vm1, %v6093_v9  ;;  %5086 = vmatprep.mubr.msk.f32.mxu0 %vm378_vm1, %v6095_v0 }
  0x7c   : > { %4866 = vmatmul.mubr.msk.f32.gmra.mrb[10].mxu1 %vm378_vm1, %v6105_v62  ;;  %5087 = vmatmul.mubr.msk.f32.gmra.mrb[24].mxu0 %vm378_vm1, %v6107_v59 }
  0x7d   : > { %4868 = vmatprep.mubr.msk.f32.mxu1 %vm378_vm1, %v6109_v57  ;;  %5089 = vmatprep.mubr.msk.f32.mxu0 %vm378_vm1, %v6111_v55 }
  0x80   : > { %4869 = vmatmul.mubr.msk.f32.gmra.mrb[12].mxu1 %vm378_vm1, %v6121_v53  ;;  %5090 = vmatmul.mubr.msk.f32.gmra.mrb[26].mxu0 %vm378_vm1, %v6123_v51 }
  0x81   : > { %4871 = vmatprep.mubr.msk.f32.mxu1 %vm378_vm1, %v6125_v49  ;;  %5092 = vmatprep.mubr.msk.f32.mxu0 %vm378_vm1, %v6127_v30 }
  0x84   : > { %4872 = vmatmul.mubr.msk.f32.gmra.mrb[14].mxu1 %vm378_vm1, %v6137_v4  ;;  %5093 = vmatmul.mubr.msk.f32.gmra.mrb[28].mxu0 %vm378_vm1, %v6139_v44  ;;  %v6174_v44 = vld [vmem:[%s6753_s3 + $0x20] sm:$0xf] }
  0x85   : > { %4874 = vmatprep.mubr.msk.f32.mxu1 %vm378_vm1, %v6141_v41  ;;  %5095 = vmatprep.mubr.msk.f32.mxu0 %vm378_vm1, %v6143_v38  ;;  %v6169_v38 = vld [vmem:[#allocation2 + $0xf0] sm:$0xff] }
  0x88   : > { %4875 = vmatmul.mubr.msk.f32.gmra.mrb[16].mxu1 %vm378_vm1, %v6153_v15  ;;  %5096 = vmatmul.mubr.msk.f32.gmra.mrb[30].mxu0 %vm378_vm1, %v6155_v36  ;;  %v6184_v36 = vld [vmem:[#allocation2 + $0xf8] sm:$0xff] }
  0x89   : > { %4877 = vmatprep.mubr.msk.f32.mxu1 %vm378_vm1, %v6157_v12  ;;  %5100 = vmatprep.mubr.msk.f32.mxu0 %vm378_vm1, %v6043_v17  ;;  %v6188_v17 = vld [vmem:[#allocation2 + $0x108] sm:$0xff] }
  0x8c   : > { %4878 = vmatmul.mubr.msk.f32.gmra.mrb[18].mxu1 %vm378_vm1, %v6167_v35  ;;  %5101 = vmatmul.mubr.msk.f32.vlgmr.msra.gmra.mrb[0].mxu0 %vm378_vm1, %v6057_v10  ;;  %v6214_v10 = vld [vmem:[#allocation2 + $0x138] sm:$0xff] }
  0x8d   : > { %5149 = vmatpush3.msk.msra.mxu0 %vm626_vm0, %v5912_v43  ;;  %4880 = vmatprep.mubr.msk.f32.mxu1 %vm378_vm1, %v6169_v38  ;;  %v6200_v43 = vld [vmem:[#allocation2 + $0x110] sm:$0xff] }
  0x8e   : > { %5103 = vmatprep.mubr.msk.f32.mxu0 %vm378_vm1, %v6061_v20  ;;  %5198 = vmatprep.subr.msk.mxu0 %vm626_vm0, %v6174_v44  ;;  %v6202_v20 = vld [vmem:[#allocation2 + $0x120] sm:$0xff] }
  0x90   : > { %4881 = vmatmul.mubr.msk.f32.gmra.mrb[20].mxu1 %vm378_vm1, %v6184_v36  ;;  %5104 = vmatmul.mubr.msk.f32.gmra.mrb[2].mxu0 %vm378_vm1, %v6073_v5  ;;  %v6212_v5 = vld [vmem:[#allocation2 + $0x128] sm:$0xff] }
  0x91   : > { %4883 = vmatprep.mubr.msk.f32.mxu1 %vm378_vm1, %v6188_v17  ;;  %5106 = vmatprep.mubr.msk.f32.mxu0 %vm378_vm1, %v6077_v26  ;;  %v6226_v26 = vld [vmem:[#allocation2 + $0x150] sm:$0xff] }
  0x94   : > { %4884 = vmatmul.mubr.msk.f32.gmra.mrb[22].mxu1 %vm378_vm1, %v6200_v43  ;;  %5107 = vmatmul.mubr.msk.f32.gmra.mrb[4].mxu0 %vm378_vm1, %v6089_v28  ;;  %v6224_v28 = vld [vmem:[#allocation2 + $0x140] sm:$0xff] }
  0x95   : > { %4886 = vmatprep.mubr.msk.f32.mxu1 %vm378_vm1, %v6202_v20  ;;  %5109 = vmatprep.mubr.msk.f32.mxu0 %vm378_vm1, %v6093_v9  ;;  %v6238_v9 = vld [vmem:[#allocation2 + $0x168] sm:$0xff] }
  0x98   : > { %4887 = vmatmul.mubr.msk.f32.gmra.mrb[24].mxu1 %vm378_vm1, %v6212_v5  ;;  %5110 = vmatmul.mubr.msk.f32.gmra.mrb[6].mxu0 %vm378_vm1, %v6105_v62  ;;  %v6236_v62 = vld [vmem:[#allocation2 + $0x158] sm:$0xff] }
  0x99   : > { %4889 = vmatprep.mubr.msk.f32.mxu1 %vm378_vm1, %v6214_v10  ;;  %5112 = vmatprep.mubr.msk.f32.mxu0 %vm378_vm1, %v6109_v57  ;;  %v1179_v57 = vld [vmem:[#allocation2 + $0x2] sm:$0xff] }
  0x9c   : > { %4890 = vmatmul.mubr.msk.f32.gmra.mrb[26].mxu1 %vm378_vm1, %v6224_v28  ;;  %5113 = vmatmul.mubr.msk.f32.gmra.mrb[8].mxu0 %vm378_vm1, %v6121_v53  ;;  %v6248_v53 = vld [vmem:[#allocation2 + $0x170] sm:$0xff] }
  0x9d   : > { %4892 = vmatprep.mubr.msk.f32.mxu1 %vm378_vm1, %v6226_v26  ;;  %5115 = vmatprep.mubr.msk.f32.mxu0 %vm378_vm1, %v6125_v49 }
  0xa0   : > { %4893 = vmatmul.mubr.msk.f32.gmra.mrb[28].mxu1 %vm378_vm1, %v6236_v62  ;;  %5116 = vmatmul.mubr.msk.f32.gmra.mrb[10].mxu0 %vm378_vm1, %v6137_v4  ;;  %v1180_v4 = vld [vmem:[#allocation2 + $0xa] sm:$0xff] }
  0xa1   : > { %4895 = vmatprep.mubr.msk.f32.mxu1 %vm378_vm1, %v6238_v9  ;;  %5118 = vmatprep.mubr.msk.f32.mxu0 %vm378_vm1, %v6141_v41 }
  0xa4   : > { %4896 = vmatmul.mubr.msk.f32.gmra.mrb[30].mxu1 %vm378_vm1, %v6248_v53  ;;  %5119 = vmatmul.mubr.msk.f32.gmra.mrb[12].mxu0 %vm378_vm1, %v6153_v15 }
  0xa5   : > { %4900 = vmatprep.mubr.msk.f32.mxu1 %vm378_vm1, %v1179_v57  ;;  %5121 = vmatprep.mubr.msk.f32.mxu0 %vm378_vm1, %v6157_v12  ;;  %v6843_v57 = vld [vmem:[#allocation9_spill] sm:$0xff] }
  0xa8   : > { %4901 = vmatmul.mubr.msk.f32.vlgmr.msra.gmra.mrb[0].mxu1 %vm378_vm1, %v1180_v4  ;;  %5122 = vmatmul.mubr.msk.f32.gmra.mrb[14].mxu0 %vm378_vm1, %v6167_v35  ;;  %v2763_v4 = vld [vmem:[#allocation2 + $0x1a0] sm:$0xff] }
  0xa9   : > { %4903 = vmatprep.mubr.msk.f32.mxu1 %vm378_vm1, %v5891_v37  ;;  %5124 = vmatprep.mubr.msk.f32.mxu0 %vm378_vm1, %v6169_v38  ;;  %v6318_v37 = vld [vmem:[#allocation2 + $0x188] sm:$0xff] }
  0xaa   : > { %4949 = vmatpush3.msk.msra.mxu1 %vm626_vm0, %v6031_v14  ;;  %v6844_v14 = vld [vmem:[#allocation24_spill] sm:$0xff] }
  0xab   : > { %5248 = vmatprep.subr.msk.mxu1 %vm626_vm0, %v5574_v2  ;;  %v6308_v2 = vld [vmem:[#allocation2 + $0x180] sm:$0xff] }
  0xac   : > { %4904 = vmatmul.mubr.msk.f32.gmra.mrb[2].mxu1 %vm378_vm1, %v5903_v39  ;;  %5125 = vmatmul.mubr.msk.f32.gmra.mrb[16].mxu0 %vm378_vm1, %v6184_v36  ;;  %v2762_v39 = vld [vmem:[#allocation2 + $0x198] sm:$0xff] }
  0xad   : > { %4906 = vmatprep.mubr.msk.f32.mxu1 %vm378_vm1, %v5907_v42  ;;  %5127 = vmatprep.mubr.msk.f32.mxu0 %vm378_vm1, %v6188_v17 }
  0xb0   : > { %4907 = vmatmul.mubr.msk.f32.gmra.mrb[4].mxu1 %vm378_vm1, %v5924_v45  ;;  %5128 = vmatmul.mubr.msk.f32.gmra.mrb[18].mxu0 %vm378_vm1, %v6200_v43 }
  0xb1   : > { %4909 = vmatprep.mubr.msk.f32.mxu1 %vm378_vm1, %v5930_v47  ;;  %5130 = vmatprep.mubr.msk.f32.mxu0 %vm378_vm1, %v6202_v20 }
  0xb4   : > { %4910 = vmatmul.mubr.msk.f32.gmra.mrb[6].mxu1 %vm378_vm1, %v5944_v48  ;;  %5131 = vmatmul.mubr.msk.f32.gmra.mrb[20].mxu0 %vm378_vm1, %v6212_v5 }
  0xb5   : > { %4912 = vmatprep.mubr.msk.f32.mxu1 %vm378_vm1, %v5948_v50  ;;  %5133 = vmatprep.mubr.msk.f32.mxu0 %vm378_vm1, %v6214_v10 }
  0xb8   : > { %4913 = vmatmul.mubr.msk.f32.gmra.mrb[8].mxu1 %vm378_vm1, %v5960_v52  ;;  %5134 = vmatmul.mubr.msk.f32.gmra.mrb[22].mxu0 %vm378_vm1, %v6224_v28 }
  0xb9   : > { %4915 = vmatprep.mubr.msk.f32.mxu1 %vm378_vm1, %v5964_v54  ;;  %5136 = vmatprep.mubr.msk.f32.mxu0 %vm378_vm1, %v6226_v26 }
  0xbc   : > { %4916 = vmatmul.mubr.msk.f32.gmra.mrb[10].mxu1 %vm378_vm1, %v5976_v56  ;;  %5137 = vmatmul.mubr.msk.f32.gmra.mrb[24].mxu0 %vm378_vm1, %v6236_v62 }
  0xbd   : > { %4918 = vmatprep.mubr.msk.f32.mxu1 %vm378_vm1, %v5980_v58  ;;  %5139 = vmatprep.mubr.msk.f32.mxu0 %vm378_vm1, %v6238_v9 }
  0xc0   : > { %4919 = vmatmul.mubr.msk.f32.gmra.mrb[12].mxu1 %vm378_vm1, %v5992_v60  ;;  %5140 = vmatmul.mubr.msk.f32.gmra.mrb[26].mxu0 %vm378_vm1, %v6248_v53 }
  0xc1   : > { %4921 = vmatprep.mubr.msk.f32.mxu1 %vm378_vm1, %v5996_v63  ;;  %5142 = vmatprep.mubr.msk.f32.mxu0 %vm378_vm1, %v6308_v2 }
  0xc4   : > { %4922 = vmatmul.mubr.msk.f32.gmra.mrb[14].mxu1 %vm378_vm1, %v6008_v1  ;;  %5143 = vmatmul.mubr.msk.f32.gmra.mrb[28].mxu0 %vm378_vm1, %v6318_v37 }
  0xc5   : > { %4924 = vmatprep.mubr.msk.f32.mxu1 %vm378_vm1, %v6010_v8  ;;  %5145 = vmatprep.mubr.msk.f32.mxu0 %vm378_vm1, %v2762_v39  ;;  %v6845_v39 = vld [vmem:[#allocation10_spill] sm:$0xff] }
  0xc8   : > { %4925 = vmatmul.mubr.msk.f32.gmra.mrb[16].mxu1 %vm378_vm1, %v6019_v11  ;;  %5146 = vmatmul.mubr.msk.f32.gmra.mrb[30].mxu0 %vm378_vm1, %v2763_v4  ;;  %v6846_v4 = vld [vmem:[#allocation25_spill] sm:$0xff] }
  0xc9   : > { %4927 = vmatprep.mubr.msk.f32.mxu1 %vm378_vm1, %v6023_v13  ;;  %5150 = vmatprep.mubr.msk.f32.mxu0 %vm378_vm1, %v5737_v24  ;;  %v6830_v24 = vld [vmem:[#allocation31_spill] sm:$0xff] }
  0xcc   : > { %4928 = vmatmul.mubr.msk.f32.gmra.mrb[18].mxu1 %vm378_vm1, %v6039_v16  ;;  %5151 = vmatmul.mubr.msk.f32.vlgmr.msra.gmra.mrb[0].mxu0 %vm378_vm1, %v5768_v40  ;;  %v6831_v40 = vld [vmem:[#allocation3_spill] sm:$0xff] }
  0xcd   : > { %5199 = vmatpush3.msk.msra.mxu0 %vm626_vm0, %v6174_v44  ;;  %4930 = vmatprep.mubr.msk.f32.mxu1 %vm378_vm1, %v6045_v18  ;;  %v6842_v44 = vld [vmem:[#allocation23_spill] sm:$0xff] }
  0xce   : > { %5153 = vmatprep.mubr.msk.f32.mxu0 %vm378_vm1, %v5774_v46  ;;  %v6832_v46 = vld [vmem:[#allocation18_spill] sm:$0xff] }
  0xd0   : > { %4931 = vmatmul.mubr.msk.f32.gmra.mrb[20].mxu1 %vm378_vm1, %v6059_v19  ;;  %5154 = vmatmul.mubr.msk.f32.gmra.mrb[2].mxu0 %vm378_vm1, %v5802_v61  ;;  %v6833_v61 = vld [vmem:[#allocation4_spill] sm:$0xff] }
  0xd1   : > { %4933 = vmatprep.mubr.msk.f32.mxu1 %vm378_vm1, %v6063_v22  ;;  %5156 = vmatprep.mubr.msk.f32.mxu0 %vm378_vm1, %v5808_v7  ;;  %v6834_v7 = vld [vmem:[#allocation19_spill] sm:$0xff] }
  0xd4   : > { %4934 = vmatmul.mubr.msk.f32.gmra.mrb[22].mxu1 %vm378_vm1, %v6075_v25  ;;  %5157 = vmatmul.mubr.msk.f32.gmra.mrb[4].mxu0 %vm378_vm1, %v5829_v21  ;;  %v6835_v21 = vld [vmem:[#allocation5_spill] sm:$0xff] }
  0xd5   : > { %4936 = vmatprep.mubr.msk.f32.mxu1 %vm378_vm1, %v6079_v27  ;;  %5159 = vmatprep.mubr.msk.f32.mxu0 %vm378_vm1, %v5835_v23  ;;  %v6836_v23 = vld [vmem:[#allocation20_spill] sm:$0xff] }
  0xd8   : > { %4937 = vmatmul.mubr.msk.f32.gmra.mrb[24].mxu1 %vm378_vm1, %v6091_v3  ;;  %5160 = vmatmul.mubr.msk.f32.gmra.mrb[6].mxu0 %vm378_vm1, %v5849_v29  ;;  %v6837_v29 = vld [vmem:[#allocation6_spill] sm:$0xff] }
  0xd9   : > { %4939 = vmatprep.mubr.msk.f32.mxu1 %vm378_vm1, %v6095_v0  ;;  %5162 = vmatprep.mubr.msk.f32.mxu0 %vm378_vm1, %v5852_v6  ;;  %v5515_v6 = vld [vmem:[%s6753_s3 + $0x10] sm:$0xf] }
  0xdc   : > { %4940 = vmatmul.mubr.msk.f32.gmra.mrb[26].mxu1 %vm378_vm1, %v6107_v59  ;;  %5163 = vmatmul.mubr.msk.f32.gmra.mrb[8].mxu0 %vm378_vm1, %v5863_v31  ;;  %v6838_v31 = vld [vmem:[#allocation21_spill] sm:$0xff] }
  0xdd   : > { %4942 = vmatprep.mubr.msk.f32.mxu1 %vm378_vm1, %v6111_v55  ;;  %5165 = vmatprep.mubr.msk.f32.mxu0 %vm378_vm1, %v5865_v32  ;;  %v6839_v32 = vld [vmem:[#allocation7_spill] sm:$0xff] }
  0xe0   : > { %4943 = vmatmul.mubr.msk.f32.gmra.mrb[28].mxu1 %vm378_vm1, %v6123_v51  ;;  %5166 = vmatmul.mubr.msk.f32.gmra.mrb[10].mxu0 %vm378_vm1, %v5875_v33  ;;  %v6840_v33 = vld [vmem:[#allocation22_spill] sm:$0xff] }
  0xe1   : > { %4945 = vmatprep.mubr.msk.f32.mxu1 %vm378_vm1, %v6127_v30  ;;  %5168 = vmatprep.mubr.msk.f32.mxu0 %vm378_vm1, %v5877_v34  ;;  %v6841_v34 = vld [vmem:[#allocation8_spill] sm:$0xff] }
  0xe4   : > { %4946 = vmatmul.mubr.msk.f32.gmra.mrb[30].mxu1 %vm378_vm1, %v6830_v24  ;;  %5169 = vmatmul.mubr.msk.f32.gmra.mrb[12].mxu0 %vm378_vm1, %v6831_v40  ;;  %v6847_v40 = vld [vmem:[#allocation11_spill] sm:$0xff] }
  0xe5   : > { %4950 = vmatprep.mubr.msk.f32.mxu1 %vm378_vm1, %v6832_v46  ;;  %5171 = vmatprep.mubr.msk.f32.mxu0 %vm378_vm1, %v6833_v61  ;;  %v6848_v46 = vld [vmem:[#allocation26_spill] sm:$0xff]  ;;  %v6849_v61 = vld [vmem:[#allocation12_spill] sm:$0xff] }
  0xe8   : > { %4951 = vmatmul.mubr.msk.f32.vlgmr.msra.gmra.mrb[0].mxu1 %vm378_vm1, %v6834_v7  ;;  %5172 = vmatmul.mubr.msk.f32.gmra.mrb[14].mxu0 %vm378_vm1, %v6835_v21  ;;  %v6850_v7 = vld [vmem:[#allocation27_spill] sm:$0xff]  ;;  %v6851_v21 = vld [vmem:[#allocation13_spill] sm:$0xff] }
  0xe9   : > { %4953 = vmatprep.mubr.msk.f32.mxu1 %vm378_vm1, %v6836_v23  ;;  %5174 = vmatprep.mubr.msk.f32.mxu0 %vm378_vm1, %v6837_v29  ;;  %v6852_v23 = vld [vmem:[#allocation28_spill] sm:$0xff]  ;;  %v6853_v29 = vld [vmem:[#allocation14_spill] sm:$0xff] }
  0xea   : > { %5249 = vmatpush3.msk.msra.mxu1 %vm626_vm0, %v5515_v6  ;;  %v6854_v6 = vld [vmem:[#allocation29_spill] sm:$0xff] }
  0xec   : > { %4954 = vmatmul.mubr.msk.f32.gmra.mrb[2].mxu1 %vm378_vm1, %v6838_v31  ;;  %5175 = vmatmul.mubr.msk.f32.gmra.mrb[16].mxu0 %vm378_vm1, %v6839_v32  ;;  %v6855_v31 = vld [vmem:[#allocation15_spill] sm:$0xff]  ;;  %v6856_v32 = vld [vmem:[#allocation16_spill] sm:$0xff] }
  0xed   : > { %4956 = vmatprep.mubr.msk.f32.mxu1 %vm378_vm1, %v6840_v33  ;;  %5177 = vmatprep.mubr.msk.f32.mxu0 %vm378_vm1, %v6841_v34  ;;  %v6444_v33 = vld [vmem:[#allocation2 + $0x181] sm:$0xff] }
  0xf0   : > { %4957 = vmatmul.mubr.msk.f32.gmra.mrb[4].mxu1 %vm378_vm1, %v6842_v44  ;;  %5178 = vmatmul.mubr.msk.f32.gmra.mrb[18].mxu0 %vm378_vm1, %v6843_v57  ;;  %v6857_v44 = vld [vmem:[#allocation30_spill] sm:$0xff] }
  0xf1   : > { %4959 = vmatprep.mubr.msk.f32.mxu1 %vm378_vm1, %v6844_v14  ;;  %5180 = vmatprep.mubr.msk.f32.mxu0 %vm378_vm1, %v6845_v39  ;;  %v6858_v14 = vld [vmem:[#allocation17_spill] sm:$0xff] }
  0xf4   : > { %4960 = vmatmul.mubr.msk.f32.gmra.mrb[6].mxu1 %vm378_vm1, %v6846_v4  ;;  %5181 = vmatmul.mubr.msk.f32.gmra.mrb[20].mxu0 %vm378_vm1, %v6847_v40  ;;  %v6454_v4 = vld [vmem:[#allocation2 + $0x189] sm:$0xff] }
  0xf5   : > { %4962 = vmatprep.mubr.msk.f32.mxu1 %vm378_vm1, %v6848_v46  ;;  %5183 = vmatprep.mubr.msk.f32.mxu0 %vm378_vm1, %v6849_v61  ;;  %v3151_v46 = vld [vmem:[#allocation2 + $0x1a1] sm:$0xff] }
  0xf8   : > { %4963 = vmatmul.mubr.msk.f32.gmra.mrb[8].mxu1 %vm378_vm1, %v6850_v7  ;;  %5184 = vmatmul.mubr.msk.f32.gmra.mrb[22].mxu0 %vm378_vm1, %v6851_v21 }
  0xf9   : > { %4965 = vmatprep.mubr.msk.f32.mxu1 %vm378_vm1, %v6852_v23  ;;  %5186 = vmatprep.mubr.msk.f32.mxu0 %vm378_vm1, %v6853_v29 }
  0xfc   : > { %4966 = vmatmul.mubr.msk.f32.gmra.mrb[10].mxu1 %vm378_vm1, %v6854_v6  ;;  %5187 = vmatmul.mubr.msk.f32.gmra.mrb[24].mxu0 %vm378_vm1, %v6855_v31 }
  0xfd   : > { %4968 = vmatprep.mubr.msk.f32.mxu1 %vm378_vm1, %v6125_v49  ;;  %5189 = vmatprep.mubr.msk.f32.mxu0 %vm378_vm1, %v6856_v32  ;;  %v3150_v49 = vld [vmem:[#allocation2 + $0x199] sm:$0xff] }
 0x100   : > { %4969 = vmatmul.mubr.msk.f32.gmra.mrb[12].mxu1 %vm378_vm1, %v6857_v44  ;;  %5190 = vmatmul.mubr.msk.f32.gmra.mrb[26].mxu0 %vm378_vm1, %v6858_v14 }
 0x101   : > { %4971 = vmatprep.mubr.msk.f32.mxu1 %vm378_vm1, %v6141_v41  ;;  %5192 = vmatprep.mubr.msk.f32.mxu0 %vm378_vm1, %v6444_v33  ;;  %v1974_v41 = vld [vmem:[#allocation2 + $0xf9] sm:$0xff] }
 0x104   : > { %4972 = vmatmul.mubr.msk.f32.gmra.mrb[14].mxu1 %vm378_vm1, %v6153_v15  ;;  %5193 = vmatmul.mubr.msk.f32.gmra.mrb[28].mxu0 %vm378_vm1, %v6454_v4 }
 0x105   : > { %4974 = vmatprep.mubr.msk.f32.mxu1 %vm378_vm1, %v6157_v12  ;;  %5195 = vmatprep.mubr.msk.f32.mxu0 %vm378_vm1, %v3150_v49 }
 0x108   : > { %4975 = vmatmul.mubr.msk.f32.gmra.mrb[16].mxu1 %vm378_vm1, %v6167_v35  ;;  %5196 = vmatmul.mubr.msk.f32.gmra.mrb[30].mxu0 %vm378_vm1, %v3151_v46  ;;  %v1971_v35 = vld [vmem:[#allocation2 + $0xd9] sm:$0xff] }
 0x109   : > { %4977 = vmatprep.mubr.msk.f32.mxu1 %vm378_vm1, %v6169_v38  ;;  %5200 = vmatprep.mubr.msk.f32.mxu0 %vm378_vm1, %v5907_v42  ;;  %v1973_v38 = vld [vmem:[#allocation2 + $0xf1] sm:$0xff] }
 0x10a   : > { %v6859_v42 = vld [vmem:[#allocation32_spill] sm:$0xff] }
 0x10c   : > { %4978 = vmatmul.mubr.msk.f32.gmra.mrb[18].mxu1 %vm378_vm1, %v6184_v36  ;;  %5201 = vmatmul.mubr.msk.f32.vlgmr.msra.gmra.mrb[0].mxu0 %vm378_vm1, %v5924_v45  ;;  %v1972_v36 = vld [vmem:[#allocation2 + $0xe1] sm:$0xff] }
 0x10d   : > { %4980 = vmatprep.mubr.msk.f32.mxu1 %vm378_vm1, %v6188_v17  ;;  %5203 = vmatprep.mubr.msk.f32.mxu0 %vm378_vm1, %v5930_v47  ;;  %v3538_v45 = vld [vmem:[#allocation2 + $0x19a] sm:$0xff] }
 0x10e   : > { %v6860_v47 = vld [vmem:[#allocation33_spill] sm:$0xff] }
 0x110   : > { %4981 = vmatmul.mubr.msk.f32.gmra.mrb[20].mxu1 %vm378_vm1, %v6200_v43  ;;  %5204 = vmatmul.mubr.msk.f32.gmra.mrb[2].mxu0 %vm378_vm1, %v5944_v48 }
 0x111   : > { %4983 = vmatprep.mubr.msk.f32.mxu1 %vm378_vm1, %v6202_v20  ;;  %5206 = vmatprep.mubr.msk.f32.mxu0 %vm378_vm1, %v5948_v50 }
 0x114   : > { %4984 = vmatmul.mubr.msk.f32.gmra.mrb[22].mxu1 %vm378_vm1, %v6212_v5  ;;  %5207 = vmatmul.mubr.msk.f32.gmra.mrb[4].mxu0 %vm378_vm1, %v5960_v52 }
 0x115   : > { %4986 = vmatprep.mubr.msk.f32.mxu1 %vm378_vm1, %v6214_v10  ;;  %5209 = vmatprep.mubr.msk.f32.mxu0 %vm378_vm1, %v5964_v54 }
 0x118   : > { %4987 = vmatmul.mubr.msk.f32.gmra.mrb[24].mxu1 %vm378_vm1, %v6224_v28  ;;  %5210 = vmatmul.mubr.msk.f32.gmra.mrb[6].mxu0 %vm378_vm1, %v5976_v56 }
 0x119   : > { %4989 = vmatprep.mubr.msk.f32.mxu1 %vm378_vm1, %v6226_v26  ;;  %5212 = vmatprep.mubr.msk.f32.mxu0 %vm378_vm1, %v5980_v58 }
 0x11c   : > { %4990 = vmatmul.mubr.msk.f32.gmra.mrb[26].mxu1 %vm378_vm1, %v6236_v62  ;;  %5213 = vmatmul.mubr.msk.f32.gmra.mrb[8].mxu0 %vm378_vm1, %v5992_v60 }
 0x11d   : > { %4992 = vmatprep.mubr.msk.f32.mxu1 %vm378_vm1, %v6238_v9  ;;  %5215 = vmatprep.mubr.msk.f32.mxu0 %vm378_vm1, %v5996_v63 }
 0x120   : > { %4993 = vmatmul.mubr.msk.f32.gmra.mrb[28].mxu1 %vm378_vm1, %v6248_v53  ;;  %5216 = vmatmul.mubr.msk.f32.gmra.mrb[10].mxu0 %vm378_vm1, %v6008_v1 }
 0x121   : > { %4995 = vmatprep.mubr.msk.f32.mxu1 %vm378_vm1, %v6308_v2  ;;  %5218 = vmatprep.mubr.msk.f32.mxu0 %vm378_vm1, %v6010_v8 }
 0x124   : > { %4996 = vmatmul.mubr.msk.f32.gmra.mrb[30].mxu1 %vm378_vm1, %v6318_v37  ;;  %5219 = vmatmul.mubr.msk.f32.gmra.mrb[12].mxu0 %vm378_vm1, %v6019_v11 }
 0x125   : > { %5024 = vmatprep.mubr.msk.f32.mxu1 %vm378_vm1, %v1971_v35  ;;  %5221 = vmatprep.mubr.msk.f32.mxu0 %vm378_vm1, %v6023_v13 }
 0x128   : > { %5025 = vmatmul.mubr.msk.f32.vlgmr.msra.gmra.mrb[16].mxu1 %vm378_vm1, %v1972_v36  ;;  %5222 = vmatmul.mubr.msk.f32.gmra.mrb[14].mxu0 %vm378_vm1, %v6039_v16 }
 0x129   : > { %5027 = vmatprep.mubr.msk.f32.mxu1 %vm378_vm1, %v1973_v38  ;;  %5224 = vmatprep.mubr.msk.f32.mxu0 %vm378_vm1, %v6045_v18 }
 0x12c   : > { %5028 = vmatmul.mubr.msk.f32.gmra.mrb[18].mxu1 %vm378_vm1, %v1974_v41  ;;  %5225 = vmatmul.mubr.msk.f32.gmra.mrb[16].mxu0 %vm378_vm1, %v6059_v19 }
 0x12d   : > { %5030 = vmatprep.mubr.msk.f32.mxu1 %vm378_vm1, %v6841_v34  ;;  %5227 = vmatprep.mubr.msk.f32.mxu0 %vm378_vm1, %v6063_v22 }
 0x130   : > { %5031 = vmatmul.mubr.msk.f32.gmra.mrb[20].mxu1 %vm378_vm1, %v6843_v57  ;;  %5228 = vmatmul.mubr.msk.f32.gmra.mrb[18].mxu0 %vm378_vm1, %v6075_v25 }
 0x131   : > { %5033 = vmatprep.mubr.msk.f32.mxu1 %vm378_vm1, %v6845_v39  ;;  %5230 = vmatprep.mubr.msk.f32.mxu0 %vm378_vm1, %v6079_v27 }
 0x134   : > { %5034 = vmatmul.mubr.msk.f32.gmra.mrb[22].mxu1 %vm378_vm1, %v6847_v40  ;;  %5231 = vmatmul.mubr.msk.f32.gmra.mrb[20].mxu0 %vm378_vm1, %v6091_v3 }
 0x135   : > { %5036 = vmatprep.mubr.msk.f32.mxu1 %vm378_vm1, %v6849_v61  ;;  %5233 = vmatprep.mubr.msk.f32.mxu0 %vm378_vm1, %v6095_v0 }
 0x138   : > { %5037 = vmatmul.mubr.msk.f32.gmra.mrb[24].mxu1 %vm378_vm1, %v6851_v21  ;;  %5234 = vmatmul.mubr.msk.f32.gmra.mrb[22].mxu0 %vm378_vm1, %v6107_v59 }
 0x139   : > { %5039 = vmatprep.mubr.msk.f32.mxu1 %vm378_vm1, %v6853_v29  ;;  %5236 = vmatprep.mubr.msk.f32.mxu0 %vm378_vm1, %v6111_v55 }
 0x13c   : > { %5040 = vmatmul.mubr.msk.f32.gmra.mrb[26].mxu1 %vm378_vm1, %v6855_v31  ;;  %5237 = vmatmul.mubr.msk.f32.gmra.mrb[24].mxu0 %vm378_vm1, %v6123_v51 }
 0x13d   : > { %5042 = vmatprep.mubr.msk.f32.mxu1 %vm378_vm1, %v6856_v32  ;;  %5239 = vmatprep.mubr.msk.f32.mxu0 %vm378_vm1, %v6127_v30  ;;  %v3539_v30 = vld [vmem:[#allocation2 + $0x1a2] sm:$0xff] }
 0x140   : > { %5043 = vmatmul.mubr.msk.f32.gmra.mrb[28].mxu1 %vm378_vm1, %v6858_v14  ;;  %5240 = vmatmul.mubr.msk.f32.gmra.mrb[26].mxu0 %vm378_vm1, %v6830_v24 }
 0x141   : > { %5045 = vmatprep.mubr.msk.f32.mxu1 %vm378_vm1, %v6444_v33  ;;  %5242 = vmatprep.mubr.msk.f32.mxu0 %vm378_vm1, %v6859_v42 }
 0x144   : > { %5046 = vmatmul.mubr.msk.f32.gmra.mrb[30].mxu1 %vm378_vm1, %v6454_v4  ;;  %5243 = vmatmul.mubr.msk.f32.gmra.mrb[28].mxu0 %vm378_vm1, %v6860_v47 }
 0x145   : > { %5245 = vmatprep.mubr.msk.f32.mxu0 %vm378_vm1, %v3538_v45 }
 0x148   : > { %5246 = vmatmul.mubr.msk.f32.gmra.mrb[30].mxu0 %vm378_vm1, %v3539_v30 }
 0x1bb   : > { %v4952_v48 = vpop.f32.mrb[0].mxu1 }
 0x1bc   : > { %v1764_v50 = vpop.f32.mrb[1].mxu1 }
 0x1bf   : > { %v4955_v51 = vpop.f32.mrb[2].mxu1 }
 0x1c0   : > { %v1774_v52 = vpop.f32.mrb[3].mxu1 }
 0x1c3   : > { %v4958_v53 = vpop.f32.mrb[4].mxu1 }
 0x1c4   : > { %v1784_v54 = vpop.f32.mrb[5].mxu1 }
 0x1c7   : > { %v4961_v55 = vpop.f32.mrb[6].mxu1 }
 0x1c8   : > { %v1794_v56 = vpop.f32.mrb[7].mxu1 }
 0x1cb   : > { %v6584_v58 = vpop.f32.mrb[8].mxu1 }
 0x1cc   : > { %v6586_v59 = vpop.f32.mrb[9].mxu1 }
 0x1cf   : > { %v6588_v60 = vpop.f32.mrb[10].mxu1 }
 0x1d0   : > { %v6590_v62 = vpop.f32.mrb[11].mxu1 }
 0x1d3   : > { %v6592_v63 = vpop.f32.mrb[12].mxu1 }
 0x1d4   : > { %v6594_v0 = vpop.f32.mrb[13].mxu1 }
 0x1d7   : > { %v6596_v1 = vpop.f32.mrb[14].mxu1 }
 0x1d8   : > { %v6598_v8 = vpop.f32.mrb[15].mxu1 }
 0x1df   : > { %v5202_v11 = vpop.f32.mrb[0].mxu0 }
 0x1e0   : > { %v5250_v12 = vadd.f32 %v5202_v11, %v4952_v48  ;;  %v3705_v13 = vpop.f32.mrb[1].mxu0 }
 0x1e1   : > { %v5251_v15 = vadd.f32 %v3705_v13, %v1764_v50 }
 0x1e2   : > { %3898 = vst.msk [vmem:[%s6605_s28 + $0x8] sm:$0xff] %vm3896_vm4, %v5250_v12  ;;  %v3930_v16 = vsel %vm3896_vm4, %v5250_v12, 0.0  ;;  %v4001_v17 = vmul.f32 %v5250_v12, %v5250_v12 }
 0x1e3   : > { %3897 = vst.msk [vmem:[%s6605_s28] sm:$0xff] %vm3896_vm4, %v5251_v15  ;;  %v3929_v18 = vsel %vm3896_vm4, %v5251_v15, 0.0  ;;  %v4000_v10 = vmul.f32 %v5251_v15, %v5251_v15  ;;  %v5205_v19 = vpop.f32.mrb[2].mxu0 }
 0x1e4   : > { %v4033_v20 = vsel %vm3896_vm4, %v4001_v17, 0.0  ;;  %v3931_v22 = vadd.f32 %v3930_v16, %v3929_v18  ;;  %v5252_v5 = vadd.f32 %v5205_v19, %v4955_v51  ;;  %v3715_v25 = vpop.f32.mrb[3].mxu0 }
 0x1e5   : > { %v4032_v26 = vsel %vm3896_vm4, %v4000_v10, 0.0  ;;  %v5253_v27 = vadd.f32 %v3715_v25, %v1774_v52 }
 0x1e6   : > { %v4034_v28 = vadd.f32 %v4033_v20, %v4032_v26  ;;  %3900 = vst.msk [vmem:[%s6605_s28 + $0x18] sm:$0xff] %vm3896_vm4, %v5252_v5  ;;  %v4003_v3 = vmul.f32 %v5252_v5, %v5252_v5  ;;  %v3934_v57 = vsel %vm3896_vm4, %v5252_v5, 0.0 }
 0x1e7   : > { %3899 = vst.msk [vmem:[%s6605_s28 + $0x10] sm:$0xff] %vm3896_vm4, %v5253_v27  ;;  %v3932_v9 = vsel %vm3896_vm4, %v5253_v27, 0.0  ;;  %v4002_v43 = vmul.f32 %v5253_v27, %v5253_v27  ;;  %v5208_v2 = vpop.f32.mrb[4].mxu0 }
 0x1e8   : > { %v3933_v37 = vadd.f32 %v3932_v9, %v3931_v22  ;;  %v5254_v24 = vadd.f32 %v5208_v2, %v4958_v53  ;;  %v3725_v34 = vpop.f32.mrb[5].mxu0  ;;  %v4037_v21 = vsel %vm3896_vm4, %v4003_v3, 0.0 }
 0x1e9   : > { %v4035_v39 = vsel %vm3896_vm4, %v4002_v43, 0.0  ;;  %v5255_v40 = vadd.f32 %v3725_v34, %v1784_v54 }
 0x1ea   : > { %v4036_v61 = vadd.f32 %v4035_v39, %v4034_v28  ;;  %3902 = vst.msk [vmem:[%s6605_s28 + $0x28] sm:$0xff] %vm3896_vm4, %v5254_v24  ;;  %v3935_v7 = vadd.f32 %v3934_v57, %v3933_v37  ;;  %v4005_v23 = vmul.f32 %v5254_v24, %v5254_v24  ;;  %v3938_v4 = vsel %vm3896_vm4, %v5254_v24, 0.0 }
 0x1eb   : > { %3901 = vst.msk [vmem:[%s6605_s28 + $0x20] sm:$0xff] %vm3896_vm4, %v5255_v40  ;;  %v3936_v29 = vsel %vm3896_vm4, %v5255_v40, 0.0  ;;  %v4004_v6 = vmul.f32 %v5255_v40, %v5255_v40  ;;  %v5211_v31 = vpop.f32.mrb[6].mxu0 }
 0x1ec   : > { %v3937_v32 = vadd.f32 %v3936_v29, %v3935_v7  ;;  %v4038_v33 = vadd.f32 %v4037_v21, %v4036_v61  ;;  %v5256_v44 = vadd.f32 %v5211_v31, %v4961_v55  ;;  %v3735_v14 = vpop.f32.mrb[7].mxu0  ;;  %v4041_v38 = vsel %vm3896_vm4, %v4005_v23, 0.0 }
 0x1ed   : > { %v4039_v49 = vsel %vm3896_vm4, %v4004_v6, 0.0  ;;  %v5257_v46 = vadd.f32 %v3735_v14, %v1794_v56 }
 0x1ee   : > { %v4040_v35 = vadd.f32 %v4039_v49, %v4038_v33  ;;  %3904 = vst.msk [vmem:[%s6605_s28 + $0x38] sm:$0xff] %vm3896_vm4, %v5256_v44  ;;  %v3939_v36 = vadd.f32 %v3938_v4, %v3937_v32  ;;  %v4007_v41 = vmul.f32 %v5256_v44, %v5256_v44  ;;  %v3942_v52 = vsel %vm3896_vm4, %v5256_v44, 0.0 }
 0x1ef   : > { %3903 = vst.msk [vmem:[%s6605_s28 + $0x30] sm:$0xff] %vm3896_vm4, %v5257_v46  ;;  %v3940_v42 = vsel %vm3896_vm4, %v5257_v46, 0.0  ;;  %v4006_v45 = vmul.f32 %v5257_v46, %v5257_v46  ;;  %v5214_v47 = vpop.f32.mrb[8].mxu0 }
 0x1f0   : > { %v3941_v30 = vadd.f32 %v3940_v42, %v3939_v36  ;;  %v4042_v48 = vadd.f32 %v4041_v38, %v4040_v35  ;;  %v5258_v50 = vadd.f32 %v5214_v47, %v6584_v58  ;;  %v3745_v51 = vpop.f32.mrb[9].mxu0  ;;  %v4045_v11 = vsel %vm3896_vm4, %v4007_v41, 0.0 }
 0x1f1   : > { %v4043_v53 = vsel %vm3896_vm4, %v4006_v45, 0.0  ;;  %v5259_v54 = vadd.f32 %v3745_v51, %v6586_v59 }
 0x1f2   : > { %v4044_v55 = vadd.f32 %v4043_v53, %v4042_v48  ;;  %3906 = vst.msk [vmem:[%s6605_s28 + $0x48] sm:$0xff] %vm3896_vm4, %v5258_v50  ;;  %v3943_v56 = vadd.f32 %v3942_v52, %v3941_v30  ;;  %v4009_v12 = vmul.f32 %v5258_v50, %v5258_v50  ;;  %v3946_v10 = vsel %vm3896_vm4, %v5258_v50, 0.0 }
 0x1f3   : > { %3905 = vst.msk [vmem:[%s6605_s28 + $0x40] sm:$0xff] %vm3896_vm4, %v5259_v54  ;;  %v3944_v58 = vsel %vm3896_vm4, %v5259_v54, 0.0  ;;  %v4008_v13 = vmul.f32 %v5259_v54, %v5259_v54  ;;  %v5217_v15 = vpop.f32.mrb[10].mxu0 }
 0x1f4   : > { %v3945_v16 = vadd.f32 %v3944_v58, %v3943_v56  ;;  %v4046_v17 = vadd.f32 %v4045_v11, %v4044_v55  ;;  %v5260_v18 = vadd.f32 %v5217_v15, %v6588_v60  ;;  %v3755_v59 = vpop.f32.mrb[11].mxu0  ;;  %v4049_v25 = vsel %vm3896_vm4, %v4009_v12, 0.0 }
 0x1f5   : > { %v4047_v19 = vsel %vm3896_vm4, %v4008_v13, 0.0  ;;  %v5261_v20 = vadd.f32 %v3755_v59, %v6590_v62 }
 0x1f6   : > { %v4048_v22 = vadd.f32 %v4047_v19, %v4046_v17  ;;  %3908 = vst.msk [vmem:[%s6605_s28 + $0x58] sm:$0xff] %vm3896_vm4, %v5260_v18  ;;  %v3947_v5 = vadd.f32 %v3946_v10, %v3945_v16  ;;  %v4011_v26 = vmul.f32 %v5260_v18, %v5260_v18  ;;  %v3950_v2 = vsel %vm3896_vm4, %v5260_v18, 0.0 }
 0x1f7   : > { %3907 = vst.msk [vmem:[%s6605_s28 + $0x50] sm:$0xff] %vm3896_vm4, %v5261_v20  ;;  %v3948_v60 = vsel %vm3896_vm4, %v5261_v20, 0.0  ;;  %v4010_v27 = vmul.f32 %v5261_v20, %v5261_v20  ;;  %v5220_v28 = vpop.f32.mrb[12].mxu0 }
 0x1f8   : > { %v3949_v3 = vadd.f32 %v3948_v60, %v3947_v5  ;;  %v4050_v9 = vadd.f32 %v4049_v25, %v4048_v22  ;;  %v5262_v43 = vadd.f32 %v5220_v28, %v6592_v63  ;;  %v3765_v62 = vpop.f32.mrb[13].mxu0  ;;  %v4053_v39 = vsel %vm3896_vm4, %v4011_v26, 0.0 }
 0x1f9   : > { %v4051_v37 = vsel %vm3896_vm4, %v4010_v27, 0.0  ;;  %v5263_v24 = vadd.f32 %v3765_v62, %v6594_v0 }
 0x1fa   : > { %v4052_v34 = vadd.f32 %v4051_v37, %v4050_v9  ;;  %3910 = vst.msk [vmem:[%s6605_s28 + $0x68] sm:$0xff] %vm3896_vm4, %v5262_v43  ;;  %v3951_v57 = vadd.f32 %v3950_v2, %v3949_v3  ;;  %v4013_v40 = vmul.f32 %v5262_v43, %v5262_v43  ;;  %v3954_v32 = vsel %vm3896_vm4, %v5262_v43, 0.0 }
 0x1fb   : > { %3909 = vst.msk [vmem:[%s6605_s28 + $0x60] sm:$0xff] %vm3896_vm4, %v5263_v24  ;;  %v3952_v61 = vsel %vm3896_vm4, %v5263_v24, 0.0  ;;  %v4012_v63 = vmul.f32 %v5263_v24, %v5263_v24  ;;  %v5026_v7 = vpop.f32.mrb[16].mxu1  ;;  %v5223_v21 = vpop.f32.mrb[14].mxu0 }
 0x1fc   : > { %v3953_v23 = vadd.f32 %v3952_v61, %v3951_v57  ;;  %v4054_v29 = vadd.f32 %v4053_v39, %v4052_v34  ;;  %v5264_v0 = vadd.f32 %v5223_v21, %v6596_v1  ;;  %v2232_v6 = vpop.f32.mrb[17].mxu1  ;;  %v3775_v31 = vpop.f32.mrb[15].mxu0  ;;  %v4057_v49 = vsel %vm3896_vm4, %v4013_v40, 0.0 }
 0x1fd   : > { %v4055_v33 = vsel %vm3896_vm4, %v4012_v63, 0.0  ;;  %v5265_v44 = vadd.f32 %v3775_v31, %v6598_v8 }
 0x1fe   : > { %v4056_v14 = vadd.f32 %v4055_v33, %v4054_v29  ;;  %3912 = vst.msk [vmem:[%s6605_s28 + $0x78] sm:$0xff] %vm3896_vm4, %v5264_v0  ;;  %v3955_v4 = vadd.f32 %v3954_v32, %v3953_v23  ;;  %v4015_v46 = vmul.f32 %v5264_v0, %v5264_v0  ;;  %v3958_v30 = vsel %vm3896_vm4, %v5264_v0, 0.0 }
 0x1ff   : > { %3911 = vst.msk [vmem:[%s6605_s28 + $0x70] sm:$0xff] %vm3896_vm4, %v5265_v44  ;;  %v3956_v1 = vsel %vm3896_vm4, %v5265_v44, 0.0  ;;  %v4014_v35 = vmul.f32 %v5265_v44, %v5265_v44  ;;  %v5029_v36 = vpop.f32.mrb[18].mxu1  ;;  %v5226_v38 = vpop.f32.mrb[16].mxu0 }
 0x200   : > { %v3957_v41 = vadd.f32 %v3956_v1, %v3955_v4  ;;  %v4058_v42 = vadd.f32 %v4057_v49, %v4056_v14  ;;  %v5266_v45 = vadd.f32 %v5226_v38, %v5026_v7  ;;  %v2242_v8 = vpop.f32.mrb[19].mxu1  ;;  %v3785_v47 = vpop.f32.mrb[17].mxu0  ;;  %v4061_v53 = vsel %vm3896_vm4, %v4015_v46, 0.0 }
 0x201   : > { %v4059_v48 = vsel %vm3896_vm4, %v4014_v35, 0.0  ;;  %v5267_v50 = vadd.f32 %v3785_v47, %v2232_v6 }
 0x202   : > { %v4060_v51 = vadd.f32 %v4059_v48, %v4058_v42  ;;  %3914 = vst.msk [vmem:[%s6605_s28 + $0x88] sm:$0xff] %vm3896_vm4, %v5266_v45  ;;  %v3959_v52 = vadd.f32 %v3958_v30, %v3957_v41  ;;  %v4017_v54 = vmul.f32 %v5266_v45, %v5266_v45  ;;  %v3962_v18 = vsel %vm3896_vm4, %v5266_v45, 0.0 }
 0x203   : > { %3913 = vst.msk [vmem:[%s6605_s28 + $0x80] sm:$0xff] %vm3896_vm4, %v5267_v50  ;;  %v3960_v55 = vsel %vm3896_vm4, %v5267_v50, 0.0  ;;  %v4016_v56 = vmul.f32 %v5267_v50, %v5267_v50  ;;  %v5032_v11 = vpop.f32.mrb[20].mxu1  ;;  %v5229_v12 = vpop.f32.mrb[18].mxu0 }
 0x204   : > { %v3961_v58 = vadd.f32 %v3960_v55, %v3959_v52  ;;  %v4062_v13 = vadd.f32 %v4061_v53, %v4060_v51  ;;  %v5268_v15 = vadd.f32 %v5229_v12, %v5029_v36  ;;  %v2252_v16 = vpop.f32.mrb[21].mxu1  ;;  %v3795_v17 = vpop.f32.mrb[19].mxu0  ;;  %v4065_v22 = vsel %vm3896_vm4, %v4017_v54, 0.0 }
 0x205   : > { %v4063_v59 = vsel %vm3896_vm4, %v4016_v56, 0.0  ;;  %v5269_v10 = vadd.f32 %v3795_v17, %v2242_v8 }
 0x206   : > { %v4064_v19 = vadd.f32 %v4063_v59, %v4062_v13  ;;  %3916 = vst.msk [vmem:[%s6605_s28 + $0x98] sm:$0xff] %vm3896_vm4, %v5268_v15  ;;  %v3963_v20 = vadd.f32 %v3962_v18, %v3961_v58  ;;  %v4019_v5 = vmul.f32 %v5268_v15, %v5268_v15  ;;  %v3966_v2 = vsel %vm3896_vm4, %v5268_v15, 0.0 }
 0x207   : > { %3915 = vst.msk [vmem:[%s6605_s28 + $0x90] sm:$0xff] %vm3896_vm4, %v5269_v10  ;;  %v3964_v25 = vsel %vm3896_vm4, %v5269_v10, 0.0  ;;  %v4018_v26 = vmul.f32 %v5269_v10, %v5269_v10  ;;  %v5035_v60 = vpop.f32.mrb[22].mxu1  ;;  %v5232_v27 = vpop.f32.mrb[20].mxu0 }
 0x208   : > { %v3965_v28 = vadd.f32 %v3964_v25, %v3963_v20  ;;  %v4066_v3 = vadd.f32 %v4065_v22, %v4064_v19  ;;  %v5270_v9 = vadd.f32 %v5232_v27, %v5032_v11  ;;  %v2262_v43 = vpop.f32.mrb[23].mxu1  ;;  %v3805_v62 = vpop.f32.mrb[21].mxu0  ;;  %v4069_v39 = vsel %vm3896_vm4, %v4019_v5, 0.0 }
 0x209   : > { %v4067_v37 = vsel %vm3896_vm4, %v4018_v26, 0.0  ;;  %v5271_v24 = vadd.f32 %v3805_v62, %v2252_v16 }
 0x20a   : > { %v4068_v34 = vadd.f32 %v4067_v37, %v4066_v3  ;;  %3918 = vst.msk [vmem:[%s6605_s28 + $0xa8] sm:$0xff] %vm3896_vm4, %v5270_v9  ;;  %v3967_v57 = vadd.f32 %v3966_v2, %v3965_v28  ;;  %v4021_v40 = vmul.f32 %v5270_v9, %v5270_v9  ;;  %v3970_v32 = vsel %vm3896_vm4, %v5270_v9, 0.0 }
 0x20b   : > { %3917 = vst.msk [vmem:[%s6605_s28 + $0xa0] sm:$0xff] %vm3896_vm4, %v5271_v24  ;;  %v3968_v61 = vsel %vm3896_vm4, %v5271_v24, 0.0  ;;  %v4020_v63 = vmul.f32 %v5271_v24, %v5271_v24  ;;  %v5038_v7 = vpop.f32.mrb[24].mxu1  ;;  %v5235_v21 = vpop.f32.mrb[22].mxu0 }
 0x20c   : > { %v3969_v23 = vadd.f32 %v3968_v61, %v3967_v57  ;;  %v4070_v29 = vadd.f32 %v4069_v39, %v4068_v34  ;;  %v5272_v0 = vadd.f32 %v5235_v21, %v5035_v60  ;;  %v2272_v6 = vpop.f32.mrb[25].mxu1  ;;  %v3815_v31 = vpop.f32.mrb[23].mxu0  ;;  %v4073_v49 = vsel %vm3896_vm4, %v4021_v40, 0.0 }
 0x20d   : > { %v4071_v33 = vsel %vm3896_vm4, %v4020_v63, 0.0  ;;  %v5273_v44 = vadd.f32 %v3815_v31, %v2262_v43 }
 0x20e   : > { %v4072_v14 = vadd.f32 %v4071_v33, %v4070_v29  ;;  %3920 = vst.msk [vmem:[%s6605_s28 + $0xb8] sm:$0xff] %vm3896_vm4, %v5272_v0  ;;  %v3971_v4 = vadd.f32 %v3970_v32, %v3969_v23  ;;  %v4023_v46 = vmul.f32 %v5272_v0, %v5272_v0  ;;  %v3974_v30 = vsel %vm3896_vm4, %v5272_v0, 0.0 }
 0x20f   : > { %3919 = vst.msk [vmem:[%s6605_s28 + $0xb0] sm:$0xff] %vm3896_vm4, %v5273_v44  ;;  %v3972_v1 = vsel %vm3896_vm4, %v5273_v44, 0.0  ;;  %v4022_v35 = vmul.f32 %v5273_v44, %v5273_v44  ;;  %v5041_v36 = vpop.f32.mrb[26].mxu1  ;;  %v5238_v38 = vpop.f32.mrb[24].mxu0 }
 0x210   : > { %v3973_v41 = vadd.f32 %v3972_v1, %v3971_v4  ;;  %v4074_v42 = vadd.f32 %v4073_v49, %v4072_v14  ;;  %v5274_v45 = vadd.f32 %v5238_v38, %v5038_v7  ;;  %v2282_v8 = vpop.f32.mrb[27].mxu1  ;;  %v3825_v47 = vpop.f32.mrb[25].mxu0  ;;  %v4077_v53 = vsel %vm3896_vm4, %v4023_v46, 0.0 }
 0x211   : > { %v4075_v48 = vsel %vm3896_vm4, %v4022_v35, 0.0  ;;  %v5275_v50 = vadd.f32 %v3825_v47, %v2272_v6 }
 0x212   : > { %v4076_v51 = vadd.f32 %v4075_v48, %v4074_v42  ;;  %3922 = vst.msk [vmem:[%s6605_s28 + $0xc8] sm:$0xff] %vm3896_vm4, %v5274_v45  ;;  %v3975_v52 = vadd.f32 %v3974_v30, %v3973_v41  ;;  %v4025_v54 = vmul.f32 %v5274_v45, %v5274_v45  ;;  %v3978_v18 = vsel %vm3896_vm4, %v5274_v45, 0.0 }
 0x213   : > { %3921 = vst.msk [vmem:[%s6605_s28 + $0xc0] sm:$0xff] %vm3896_vm4, %v5275_v50  ;;  %v3976_v55 = vsel %vm3896_vm4, %v5275_v50, 0.0  ;;  %v4024_v56 = vmul.f32 %v5275_v50, %v5275_v50  ;;  %v5044_v11 = vpop.f32.mrb[28].mxu1  ;;  %v5241_v12 = vpop.f32.mrb[26].mxu0 }
 0x214   : > { %v3977_v58 = vadd.f32 %v3976_v55, %v3975_v52  ;;  %v4078_v13 = vadd.f32 %v4077_v53, %v4076_v51  ;;  %v5276_v15 = vadd.f32 %v5241_v12, %v5041_v36  ;;  %v2292_v16 = vpop.f32.mrb[29].mxu1  ;;  %v3835_v17 = vpop.f32.mrb[27].mxu0  ;;  %v4081_v22 = vsel %vm3896_vm4, %v4025_v54, 0.0 }
 0x215   : > { %v4079_v59 = vsel %vm3896_vm4, %v4024_v56, 0.0  ;;  %v5277_v10 = vadd.f32 %v3835_v17, %v2282_v8 }
 0x216   : > { %v4080_v19 = vadd.f32 %v4079_v59, %v4078_v13  ;;  %3924 = vst.msk [vmem:[%s6605_s28 + $0xd8] sm:$0xff] %vm3896_vm4, %v5276_v15  ;;  %v3979_v20 = vadd.f32 %v3978_v18, %v3977_v58  ;;  %v4027_v5 = vmul.f32 %v5276_v15, %v5276_v15  ;;  %v3982_v2 = vsel %vm3896_vm4, %v5276_v15, 0.0 }
 0x217   : > { %3923 = vst.msk [vmem:[%s6605_s28 + $0xd0] sm:$0xff] %vm3896_vm4, %v5277_v10  ;;  %v3980_v25 = vsel %vm3896_vm4, %v5277_v10, 0.0  ;;  %v4026_v26 = vmul.f32 %v5277_v10, %v5277_v10  ;;  %v5047_v60 = vpop.f32.mrb[30].mxu1  ;;  %v5244_v27 = vpop.f32.mrb[28].mxu0 }
 0x218   : > { %v3981_v28 = vadd.f32 %v3980_v25, %v3979_v20  ;;  %v4082_v3 = vadd.f32 %v4081_v22, %v4080_v19  ;;  %v5278_v9 = vadd.f32 %v5244_v27, %v5044_v11  ;;  %v2302_v43 = vpop.f32.mrb[31].mxu1  ;;  %v3845_v62 = vpop.f32.mrb[29].mxu0  ;;  %v4085_v39 = vsel %vm3896_vm4, %v4027_v5, 0.0 }
 0x219   : > { %v4083_v37 = vsel %vm3896_vm4, %v4026_v26, 0.0  ;;  %v5279_v24 = vadd.f32 %v3845_v62, %v2292_v16 }
 0x21a   : > { %v4084_v34 = vadd.f32 %v4083_v37, %v4082_v3  ;;  %3926 = vst.msk [vmem:[%s6605_s28 + $0xe8] sm:$0xff] %vm3896_vm4, %v5278_v9  ;;  %v3983_v57 = vadd.f32 %v3982_v2, %v3981_v28  ;;  %v4029_v40 = vmul.f32 %v5278_v9, %v5278_v9  ;;  %v3986_v6 = vsel %vm3896_vm4, %v5278_v9, 0.0 }
 0x21b   : > { %3925 = vst.msk [vmem:[%s6605_s28 + $0xe0] sm:$0xff] %vm3896_vm4, %v5279_v24  ;;  %v3984_v61 = vsel %vm3896_vm4, %v5279_v24, 0.0  ;;  %v4028_v63 = vmul.f32 %v5279_v24, %v5279_v24  ;;  %v5247_v7 = vpop.f32.mrb[30].mxu0 }
 0x21c   : > { %v3985_v21 = vadd.f32 %v3984_v61, %v3983_v57  ;;  %v4086_v23 = vadd.f32 %v4085_v39, %v4084_v34  ;;  %v5280_v29 = vadd.f32 %v5247_v7, %v5047_v60  ;;  %v3855_v0 = vpop.f32.mrb[31].mxu0  ;;  %v4089_v4 = vsel %vm3896_vm4, %v4029_v40, 0.0 }
 0x21d   : > { %v4087_v31 = vsel %vm3896_vm4, %v4028_v63, 0.0  ;;  %v5281_v32 = vadd.f32 %v3855_v0, %v2302_v43 }
 0x21e   : > { %v4088_v33 = vadd.f32 %v4087_v31, %v4086_v23  ;;  %3928 = vst.msk [vmem:[%s6605_s28 + $0xf8] sm:$0xff] %vm3896_vm4, %v5280_v29  ;;  %v4031_v44 = vmul.f32 %v5280_v29, %v5280_v29  ;;  %v3987_v14 = vadd.f32 %v3986_v6, %v3985_v21  ;;  %v3990_v38 = vsel %vm3896_vm4, %v5280_v29, 0.0 }
 0x21f   : > { %3927 = vst.msk [vmem:[%s6605_s28 + $0xf0] sm:$0xff] %vm3896_vm4, %v5281_v32  ;;  %v3988_v49 = vsel %vm3896_vm4, %v5281_v32, 0.0  ;;  %v4030_v46 = vmul.f32 %v5281_v32, %v5281_v32 }
 0x220   : > { %v4093_v1 = vsel %vm3896_vm4, %v4031_v44, 0.0  ;;  %v3989_v35 = vadd.f32 %v3988_v49, %v3987_v14  ;;  %v4090_v36 = vadd.f32 %v4089_v4, %v4088_v33 }
 0x221   : > { %v4091_v41 = vsel %vm3896_vm4, %v4030_v46, 0.0 }
 0x222   : > { %v3991_v42 = vadd.f32 %v3990_v38, %v3989_v35  ;;  %v4092_v45 = vadd.f32 %v4091_v41, %v4090_v36 }
 0x224   : > { %v3992_v8 = vrot.slane %v3991_v42, 4  ;;  %v4094_v47 = vadd.f32 %v4093_v1, %v4092_v45 }
 0x226   : > { %v3993_v30 = vadd.f32 %v3992_v8, %v3991_v42  ;;  %v4095_v48 = vrot.slane %v4094_v47, 4 }
 0x228   : > { %v3994_v50 = vrot.slane %v3993_v30, 2  ;;  %v4096_v51 = vadd.f32 %v4095_v48, %v4094_v47 }
 0x22a   : > { %v3995_v52 = vadd.f32 %v3994_v50, %v3993_v30  ;;  %v4097_v53 = vrot.slane %v4096_v51, 2 }
 0x22c   : > { %v3996_v54 = vrot.slane %v3995_v52, 1  ;;  %v4098_v55 = vadd.f32 %v4097_v53, %v4096_v51 }
 0x22e   : > { %v3997_v56 = vadd.f32 %v3996_v54, %v3995_v52  ;;  %v4099_v11 = vrot.slane %v4098_v55, 1 }
 0x230   : > { %3999 = vst.msk [vmem:[%s235_s7] sm:$0x1] %vm3998_vm5, %v3997_v56  ;;  %v4100_v12 = vadd.f32 %v4099_v11, %v4098_v55 }
 0x232   : > { %4101 = vst.msk [vmem:[%s235_s7 + $0x1] sm:$0x1] %vm3998_vm5, %v4100_v12 }
 0x233 PF: > { %s16_s18 = sadd.s32 1, %s5522_s18  }
 0x234   : > { %p13_p4 = scmp.ge.s32.totalorder %s16_s18, 4  }
 0x236   :  { %15 = sbr.rel (!%p13_p4) target bundleno = 1 (0x1), region = 81 }

// kernel: decoder_forward.5
= control target key start
LH: loop header
LB: loop body
LE: loop exit
PB: predicated region body
PF: predicated region fallthrough
CT: control target
= control target key end

     0   :  { %s10415_s18 = smov 0   ;;  %s12321_s0 = inlined_call_operand.vmem [shape: f32[2,16,16,4], index: 0, kind: input, shape index: {}]   ;;  %s12322_s1 = inlined_call_operand.vmem [shape: f32[2,16,16,4], index: 1, kind: input, shape index: {}]   ;;  %s12323_s2 = inlined_call_operand.vmem [shape: f32[3,3,4,4], index: 2, kind: input, shape index: {}]   ;;  %s12324_s3 = inlined_call_operand.vmem [shape: f32[3,3,4,4], index: 3, kind: input, shape index: {}]   ;;  %s12325_s4 = inlined_call_operand.vmem [shape: f32[2,16,16,4], index: 4, kind: output, shape index: {0}]   ;;  %s12326_s5 = inlined_call_operand.vmem [shape: f32[2,2,4], index: 5, kind: output, shape index: {1}]  }
   0x1 LB: > { %s7718_s19 = sadd.s32 4294967295, %s10382_s18   ;;  %p7722_p0 = scmp.ge.s32.totalorder %s10382_s18, 1  ;;  %s10382_s18 = sphi %s10415_s18, %s16_s18  }
   0x2   : > { %p200_p1 = scmp.lt.s32.totalorder %s10382_s18, 3 }
   0x4   : > { %p201_p2 = pnand %p7722_p0, %p200_p1 }
   0x6   : > { %204 = sbr.rel (%p201_p2) target bundleno = 873 (0x369), region = 36 }
   0xd   : > { %v10426_v0 = vld [vmem:[%s12324_s3] sm:$0xf]  ;;  %vm653_vm0 = vcmask 1043456   ;;  %vm256_vm1 = vcmask 31744   ;;  %vm265_vm2 = vcmask 24576   ;;  %v10384_v1 = vmov 0.0  }
   0xe   : > { %8923 = vmatprep.subr.msk.mxu1 %vm653_vm0, %v10426_v0  ;;  %302 = vst.msk [vmem:[#allocation3] sm:$0xff] %vm256_vm1, %v10384_v1  ;;  %257 = vst.msk [vmem:[#allocation2] sm:$0xff] %vm256_vm1, %v10384_v1  ;;  %v488_v2 = vld [vmem:[%s12324_s3 + $0x10] sm:$0xf]  ;;  %p237_p3 = scmp.lt.s32.totalorder %s7718_s19, 1  ;;  %vm259_vm3 = vcmask 25600  }
   0xf   : > { %258 = vst.msk [vmem:[#allocation2 + $0x8] sm:$0xff] %vm256_vm1, %v10384_v1  ;;  %262 = vst.msk [vmem:[#allocation2 + $0x198] sm:$0xff] %vm256_vm1, %v10384_v1  ;;  %v475_v3 = vld [vmem:[%s12323_s2] sm:$0xf]  ;;  %8924 = vmatpush3.msk.msra.mxu1 %vm653_vm0, %v10426_v0  ;;  %9373 = vmatprep.subr.msk.mxu0 %vm653_vm0, %v488_v2  ;;  %v10596_v4 = vld [vmem:[%s12323_s2 + $0x14] sm:$0xf] }
  0x10   : > { %263 = vst.msk [vmem:[#allocation2 + $0x1a0] sm:$0xff] %vm256_vm1, %v10384_v1  ;;  %303 = vst.msk [vmem:[#allocation3 + $0x8] sm:$0xff] %vm256_vm1, %v10384_v1  ;;  %9374 = vmatpush3.msk.msra.mxu0 %vm653_vm0, %v488_v2  ;;  %s12562_s19 = smov (!%p237_p3, %s7718_s19), 1  ;;  %8973 = vmatprep.subr.msk.mxu1 %vm653_vm0, %v475_v3  ;;  %v10638_v11 = vld [vmem:[%s12323_s2 + $0x4] sm:$0xf] }
  0x11   : > { %267 = vst.msk [vmem:[#allocation2 + $0x18] sm:$0x1] %vm265_vm2, %v10384_v1  ;;  %268 = vst.msk [vmem:[#allocation2 + $0x30] sm:$0x1] %vm265_vm2, %v10384_v1  ;;  %9423 = vmatprep.subr.msk.mxu0 %vm653_vm0, %v10596_v4  ;;  %s10607_s28 = sshll.u32 %s12562_s19, 8 }
  0x12   : > { %269 = vst.msk [vmem:[#allocation2 + $0x48] sm:$0x1] %vm265_vm2, %v10384_v1  ;;  %270 = vst.msk [vmem:[#allocation2 + $0x60] sm:$0x1] %vm265_vm2, %v10384_v1  ;;  %s10617_s6 = scalar_lea.vmem %s12322_s1, %s10607_s28  ;;  %v10681_v30 = vld [vmem:[%s12324_s3 + $0x14] sm:$0xf]  ;;  %s10717_s13 = scalar_lea.vmem %s12321_s0, %s10607_s28 }
  0x13   : > { %271 = vst.msk [vmem:[#allocation2 + $0x78] sm:$0x1] %vm265_vm2, %v10384_v1  ;;  %272 = vst.msk [vmem:[#allocation2 + $0x90] sm:$0x1] %vm265_vm2, %v10384_v1  ;;  %v410_v5 = vld [vmem:[%s10617_s6] sm:$0xff]  ;;  %v411_v6 = vld [vmem:[%s10617_s6 + $0x8] sm:$0xff]  ;;  %s12182_s20 = scalar_lea.vmem %s12325_s4, %s10607_s28 }
  0x14   : > { %273 = vst.msk [vmem:[#allocation2 + $0xa8] sm:$0x1] %vm265_vm2, %v10384_v1  ;;  %274 = vst.msk [vmem:[#allocation2 + $0xc0] sm:$0x1] %vm265_vm2, %v10384_v1  ;;  %v412_v7 = vld [vmem:[%s10617_s6 + $0x10] sm:$0xff]  ;;  %v413_v9 = vld [vmem:[%s10617_s6 + $0x18] sm:$0xff] }
  0x15   : > { %275 = vst.msk [vmem:[#allocation2 + $0xd8] sm:$0x1] %vm265_vm2, %v10384_v1  ;;  %276 = vst.msk [vmem:[#allocation2 + $0xf0] sm:$0x1] %vm265_vm2, %v10384_v1  ;;  %v414_v10 = vld [vmem:[%s10617_s6 + $0x20] sm:$0xff]  ;;  %v415_v13 = vld [vmem:[%s10617_s6 + $0x28] sm:$0xff] }
  0x16   : > { %277 = vst.msk [vmem:[#allocation2 + $0x108] sm:$0x1] %vm265_vm2, %v10384_v1  ;;  %278 = vst.msk [vmem:[#allocation2 + $0x120] sm:$0x1] %vm265_vm2, %v10384_v1  ;;  %v416_v14 = vld [vmem:[%s10617_s6 + $0x30] sm:$0xff]  ;;  %v417_v15 = vld [vmem:[%s10617_s6 + $0x38] sm:$0xff] }
  0x17   : > { %279 = vst.msk [vmem:[#allocation2 + $0x138] sm:$0x1] %vm265_vm2, %v10384_v1  ;;  %280 = vst.msk [vmem:[#allocation2 + $0x150] sm:$0x1] %vm265_vm2, %v10384_v1  ;;  %v526_v8 = vld [vmem:[#allocation3 + $0x8] sm:$0xff]  ;;  %v418_v16 = vld [vmem:[%s10617_s6 + $0x40] sm:$0xff] }
  0x18   : > { %281 = vst.msk [vmem:[#allocation2 + $0x168] sm:$0x1] %vm265_vm2, %v10384_v1  ;;  %282 = vst.msk [vmem:[#allocation2 + $0x180] sm:$0x1] %vm265_vm2, %v10384_v1  ;;  %v419_v17 = vld [vmem:[%s10617_s6 + $0x48] sm:$0xff]  ;;  %v420_v18 = vld [vmem:[%s10617_s6 + $0x50] sm:$0xff] }
  0x19   : > { %285 = vst.msk [vmem:[#allocation2 + $0x29] sm:$0x1] %vm265_vm2, %v10384_v1  ;;  %286 = vst.msk [vmem:[#allocation2 + $0x41] sm:$0x1] %vm265_vm2, %v10384_v1  ;;  %v421_v19 = vld [vmem:[%s10617_s6 + $0x58] sm:$0xff]  ;;  %v422_v20 = vld [vmem:[%s10617_s6 + $0x60] sm:$0xff] }
  0x1a   : > { %287 = vst.msk [vmem:[#allocation2 + $0x59] sm:$0x1] %vm265_vm2, %v10384_v1  ;;  %288 = vst.msk [vmem:[#allocation2 + $0x71] sm:$0x1] %vm265_vm2, %v10384_v1  ;;  %v423_v21 = vld [vmem:[%s10617_s6 + $0x68] sm:$0xff]  ;;  %v424_v22 = vld [vmem:[%s10617_s6 + $0x70] sm:$0xff] }
  0x1b   : > { %289 = vst.msk [vmem:[#allocation2 + $0x89] sm:$0x1] %vm265_vm2, %v10384_v1  ;;  %290 = vst.msk [vmem:[#allocation2 + $0xa1] sm:$0x1] %vm265_vm2, %v10384_v1  ;;  %v425_v23 = vld [vmem:[%s10617_s6 + $0x78] sm:$0xff]  ;;  %v426_v24 = vld [vmem:[%s10617_s6 + $0x80] sm:$0xff] }
  0x1c   : > { %291 = vst.msk [vmem:[#allocation2 + $0xb9] sm:$0x1] %vm265_vm2, %v10384_v1  ;;  %292 = vst.msk [vmem:[#allocation2 + $0xd1] sm:$0x1] %vm265_vm2, %v10384_v1  ;;  %v427_v25 = vld [vmem:[%s10617_s6 + $0x88] sm:$0xff]  ;;  %v428_v26 = vld [vmem:[%s10617_s6 + $0x90] sm:$0xff] }
  0x1d   : > { %293 = vst.msk [vmem:[#allocation2 + $0xe9] sm:$0x1] %vm265_vm2, %v10384_v1  ;;  %294 = vst.msk [vmem:[#allocation2 + $0x101] sm:$0x1] %vm265_vm2, %v10384_v1  ;;  %v429_v27 = vld [vmem:[%s10617_s6 + $0x98] sm:$0xff]  ;;  %v430_v28 = vld [vmem:[%s10617_s6 + $0xa0] sm:$0xff] }
  0x1e   : > { %295 = vst.msk [vmem:[#allocation2 + $0x119] sm:$0x1] %vm265_vm2, %v10384_v1  ;;  %296 = vst.msk [vmem:[#allocation2 + $0x131] sm:$0x1] %vm265_vm2, %v10384_v1  ;;  %v431_v29 = vld [vmem:[%s10617_s6 + $0xa8] sm:$0xff]  ;;  %v432_v53 = vld [vmem:[%s10617_s6 + $0xb0] sm:$0xff] }
  0x1f   : > { %297 = vst.msk [vmem:[#allocation2 + $0x149] sm:$0x1] %vm265_vm2, %v10384_v1  ;;  %298 = vst.msk [vmem:[#allocation2 + $0x161] sm:$0x1] %vm265_vm2, %v10384_v1  ;;  %v433_v54 = vld [vmem:[%s10617_s6 + $0xb8] sm:$0xff]  ;;  %v434_v55 = vld [vmem:[%s10617_s6 + $0xc0] sm:$0xff] }
  0x20   : > { %299 = vst.msk [vmem:[#allocation2 + $0x179] sm:$0x1] %vm265_vm2, %v10384_v1  ;;  %300 = vst.msk [vmem:[#allocation2 + $0x191] sm:$0x1] %vm265_vm2, %v10384_v1  ;;  %v435_v56 = vld [vmem:[%s10617_s6 + $0xc8] sm:$0xff]  ;;  %v436_v57 = vld [vmem:[%s10617_s6 + $0xd0] sm:$0xff] }
  0x21   : > { %306 = vst.msk [vmem:[#allocation3 + $0x198] sm:$0xff] %vm256_vm1, %v10384_v1  ;;  %307 = vst.msk [vmem:[#allocation3 + $0x1a0] sm:$0xff] %vm256_vm1, %v10384_v1  ;;  %v437_v58 = vld [vmem:[%s10617_s6 + $0xd8] sm:$0xff]  ;;  %v438_v59 = vld [vmem:[%s10617_s6 + $0xe0] sm:$0xff]  ;;  %s7729_s28 = sshll.u32 %s12562_s19, 1 }
  0x22   : > { %310 = vst.msk [vmem:[#allocation3 + $0x18] sm:$0x1] %vm265_vm2, %v10384_v1  ;;  %311 = vst.msk [vmem:[#allocation3 + $0x30] sm:$0x1] %vm265_vm2, %v10384_v1  ;;  %v439_v62 = vld [vmem:[%s10617_s6 + $0xe8] sm:$0xff]  ;;  %v440_v63 = vld [vmem:[%s10617_s6 + $0xf0] sm:$0xff]  ;;  %s255_s23 = scalar_lea.vmem %s12326_s5, %s7729_s28 }
  0x23   : > { %312 = vst.msk [vmem:[#allocation3 + $0x48] sm:$0x1] %vm265_vm2, %v10384_v1  ;;  %313 = vst.msk [vmem:[#allocation3 + $0x60] sm:$0x1] %vm265_vm2, %v10384_v1  ;;  %v441_v2 = vld [vmem:[%s10617_s6 + $0xf8] sm:$0xff] }
  0x24   : > { %314 = vst.msk [vmem:[#allocation3 + $0x78] sm:$0x1] %vm265_vm2, %v10384_v1  ;;  %315 = vst.msk [vmem:[#allocation3 + $0x90] sm:$0x1] %vm265_vm2, %v10384_v1 }
  0x25   : > { %316 = vst.msk [vmem:[#allocation3 + $0xa8] sm:$0x1] %vm265_vm2, %v10384_v1  ;;  %317 = vst.msk [vmem:[#allocation3 + $0xc0] sm:$0x1] %vm265_vm2, %v10384_v1 }
  0x26   : > { %318 = vst.msk [vmem:[#allocation3 + $0xd8] sm:$0x1] %vm265_vm2, %v10384_v1  ;;  %319 = vst.msk [vmem:[#allocation3 + $0xf0] sm:$0x1] %vm265_vm2, %v10384_v1 }
  0x27   : > { %320 = vst.msk [vmem:[#allocation3 + $0x108] sm:$0x1] %vm265_vm2, %v10384_v1  ;;  %321 = vst.msk [vmem:[#allocation3 + $0x120] sm:$0x1] %vm265_vm2, %v10384_v1 }
  0x28   : > { %322 = vst.msk [vmem:[#allocation3 + $0x138] sm:$0x1] %vm265_vm2, %v10384_v1  ;;  %323 = vst.msk [vmem:[#allocation3 + $0x150] sm:$0x1] %vm265_vm2, %v10384_v1 }
  0x29   : > { %324 = vst.msk [vmem:[#allocation3 + $0x168] sm:$0x1] %vm265_vm2, %v10384_v1  ;;  %325 = vst.msk [vmem:[#allocation3 + $0x180] sm:$0x1] %vm265_vm2, %v10384_v1 }
  0x2a   : > { %328 = vst.msk [vmem:[#allocation3 + $0x29] sm:$0x1] %vm265_vm2, %v10384_v1  ;;  %329 = vst.msk [vmem:[#allocation3 + $0x41] sm:$0x1] %vm265_vm2, %v10384_v1 }
  0x2b   : > { %330 = vst.msk [vmem:[#allocation3 + $0x59] sm:$0x1] %vm265_vm2, %v10384_v1  ;;  %331 = vst.msk [vmem:[#allocation3 + $0x71] sm:$0x1] %vm265_vm2, %v10384_v1 }
  0x2c   : > { %332 = vst.msk [vmem:[#allocation3 + $0x89] sm:$0x1] %vm265_vm2, %v10384_v1  ;;  %333 = vst.msk [vmem:[#allocation3 + $0xa1] sm:$0x1] %vm265_vm2, %v10384_v1 }
  0x2d   : > { %334 = vst.msk [vmem:[#allocation3 + $0xb9] sm:$0x1] %vm265_vm2, %v10384_v1  ;;  %335 = vst.msk [vmem:[#allocation3 + $0xd1] sm:$0x1] %vm265_vm2, %v10384_v1 }
  0x2e   : > { %336 = vst.msk [vmem:[#allocation3 + $0xe9] sm:$0x1] %vm265_vm2, %v10384_v1  ;;  %337 = vst.msk [vmem:[#allocation3 + $0x101] sm:$0x1] %vm265_vm2, %v10384_v1 }
  0x2f   : > { %338 = vst.msk [vmem:[#allocation3 + $0x119] sm:$0x1] %vm265_vm2, %v10384_v1  ;;  %339 = vst.msk [vmem:[#allocation3 + $0x131] sm:$0x1] %vm265_vm2, %v10384_v1 }
  0x30   : > { %340 = vst.msk [vmem:[#allocation3 + $0x149] sm:$0x1] %vm265_vm2, %v10384_v1  ;;  %341 = vst.msk [vmem:[#allocation3 + $0x161] sm:$0x1] %vm265_vm2, %v10384_v1 }
  0x31   : > { %342 = vst.msk [vmem:[#allocation3 + $0x179] sm:$0x1] %vm265_vm2, %v10384_v1  ;;  %343 = vst.msk [vmem:[#allocation3 + $0x191] sm:$0x1] %vm265_vm2, %v10384_v1 }
  0x32   : > { %309 = vst.msk [vmem:[#allocation3] sm:$0x1] %vm265_vm2, %v10384_v1  ;;  %266 = vst.msk [vmem:[#allocation2] sm:$0x1] %vm265_vm2, %v10384_v1 }
  0x33   : > { %283 = vst.msk [vmem:[#allocation2 + $0x198] sm:$0x1] %vm265_vm2, %v10384_v1  ;;  %326 = vst.msk [vmem:[#allocation3 + $0x198] sm:$0x1] %vm265_vm2, %v10384_v1 }
  0x34   : > { %260 = vst.msk [vmem:[#allocation2 + $0x10] sm:$0x3] %vm259_vm3, %v10384_v1  ;;  %264 = vst.msk [vmem:[#allocation2 + $0x1a8] sm:$0x3] %vm259_vm3, %v10384_v1 }
  0x35   : > { %304 = vst.msk [vmem:[#allocation3 + $0x10] sm:$0x3] %vm259_vm3, %v10384_v1  ;;  %308 = vst.msk [vmem:[#allocation3 + $0x1a8] sm:$0x3] %vm259_vm3, %v10384_v1 }
  0x36   : > { %284 = vst.msk [vmem:[#allocation2 + $0x11] sm:$0x1] %vm265_vm2, %v10384_v1  ;;  %301 = vst.msk [vmem:[#allocation2 + $0x1a9] sm:$0x1] %vm265_vm2, %v10384_v1 }
  0x37   : > { %327 = vst.msk [vmem:[#allocation3 + $0x11] sm:$0x1] %vm265_vm2, %v10384_v1  ;;  %344 = vst.msk [vmem:[#allocation3 + $0x1a9] sm:$0x1] %vm265_vm2, %v10384_v1 }
  0x38   : > { %443 = vst.msk [vmem:[#allocation3 + $0x19] sm:$0xff] %vm256_vm1, %v410_v5  ;;  %444 = vst.msk [vmem:[#allocation3 + $0x21] sm:$0xff] %vm256_vm1, %v411_v6  ;;  %v347_v5 = vld [vmem:[%s10717_s13 + $0x10] sm:$0xff]  ;;  %v348_v6 = vld [vmem:[%s10717_s13 + $0x18] sm:$0xff] }
  0x39   : > { %445 = vst.msk [vmem:[#allocation3 + $0x31] sm:$0xff] %vm256_vm1, %v412_v7  ;;  %v525_v12 = vld [vmem:[#allocation3] sm:$0xff]  ;;  %446 = vst.msk [vmem:[#allocation3 + $0x39] sm:$0xff] %vm256_vm1, %v413_v9  ;;  %v349_v7 = vld [vmem:[%s10717_s13 + $0x20] sm:$0xff] }
  0x3a   : > { %447 = vst.msk [vmem:[#allocation3 + $0x49] sm:$0xff] %vm256_vm1, %v414_v10  ;;  %8925 = vmatprep.mubr.msk.f32.mxu1 %vm256_vm1, %v525_v12  ;;  %448 = vst.msk [vmem:[#allocation3 + $0x51] sm:$0xff] %vm256_vm1, %v415_v13  ;;  %v351_v9 = vld [vmem:[%s10717_s13 + $0x30] sm:$0xff]  ;;  %v352_v10 = vld [vmem:[%s10717_s13 + $0x38] sm:$0xff] }
  0x3b   : > { %449 = vst.msk [vmem:[#allocation3 + $0x61] sm:$0xff] %vm256_vm1, %v416_v14  ;;  %8926 = vmatmul.mubr.msk.f32.vlgmr.msra.gmra.mrb[0].mxu1 %vm256_vm1, %v526_v8  ;;  %450 = vst.msk [vmem:[#allocation3 + $0x69] sm:$0xff] %vm256_vm1, %v417_v15  ;;  %v350_v8 = vld [vmem:[%s10717_s13 + $0x28] sm:$0xff]  ;;  %v353_v12 = vld [vmem:[%s10717_s13 + $0x40] sm:$0xff] }
  0x3c   : > { %451 = vst.msk [vmem:[#allocation3 + $0x79] sm:$0xff] %vm256_vm1, %v418_v16  ;;  %452 = vst.msk [vmem:[#allocation3 + $0x81] sm:$0xff] %vm256_vm1, %v419_v17  ;;  %8974 = vmatpush3.msk.msra.mxu1 %vm653_vm0, %v475_v3  ;;  %v345_v3 = vld [vmem:[%s10717_s13] sm:$0xff]  ;;  %v354_v13 = vld [vmem:[%s10717_s13 + $0x48] sm:$0xff] }
  0x3d   : > { %453 = vst.msk [vmem:[#allocation3 + $0x91] sm:$0xff] %vm256_vm1, %v420_v18  ;;  %454 = vst.msk [vmem:[#allocation3 + $0x99] sm:$0xff] %vm256_vm1, %v421_v19  ;;  %9023 = vmatprep.subr.msk.mxu1 %vm653_vm0, %v10638_v11  ;;  %v355_v14 = vld [vmem:[%s10717_s13 + $0x50] sm:$0xff] }
  0x3e   : > { %455 = vst.msk [vmem:[#allocation3 + $0xa9] sm:$0xff] %vm256_vm1, %v422_v20  ;;  %456 = vst.msk [vmem:[#allocation3 + $0xb1] sm:$0xff] %vm256_vm1, %v423_v21 }
  0x3f   : > { %457 = vst.msk [vmem:[#allocation3 + $0xc1] sm:$0xff] %vm256_vm1, %v424_v22  ;;  %458 = vst.msk [vmem:[#allocation3 + $0xc9] sm:$0xff] %vm256_vm1, %v425_v23  ;;  %v527_v31 = vld [vmem:[#allocation3 + $0x18] sm:$0xff]  ;;  %v528_v33 = vld [vmem:[#allocation3 + $0x20] sm:$0xff] }
  0x40   : > { %459 = vst.msk [vmem:[#allocation3 + $0xd9] sm:$0xff] %vm256_vm1, %v426_v24  ;;  %460 = vst.msk [vmem:[#allocation3 + $0xe1] sm:$0xff] %vm256_vm1, %v427_v25  ;;  %v3566_v32 = vld [vmem:[#allocation3 + $0x19] sm:$0xff]  ;;  %8928 = vmatprep.mubr.msk.f32.mxu1 %vm256_vm1, %v527_v31  ;;  %v3567_v34 = vld [vmem:[#allocation3 + $0x21] sm:$0xff] }
  0x41   : > { %461 = vst.msk [vmem:[#allocation3 + $0xf1] sm:$0xff] %vm256_vm1, %v428_v26  ;;  %462 = vst.msk [vmem:[#allocation3 + $0xf9] sm:$0xff] %vm256_vm1, %v429_v27  ;;  %9375 = vmatprep.mubr.msk.f32.mxu0 %vm256_vm1, %v3566_v32  ;;  %v529_v35 = vld [vmem:[#allocation3 + $0x30] sm:$0xff]  ;;  %8929 = vmatmul.mubr.msk.f32.gmra.mrb[2].mxu1 %vm256_vm1, %v528_v33  ;;  %v530_v37 = vld [vmem:[#allocation3 + $0x38] sm:$0xff] }
  0x42   : > { %463 = vst.msk [vmem:[#allocation3 + $0x109] sm:$0xff] %vm256_vm1, %v430_v28  ;;  %464 = vst.msk [vmem:[#allocation3 + $0x111] sm:$0xff] %vm256_vm1, %v431_v29  ;;  %v3568_v36 = vld [vmem:[#allocation3 + $0x31] sm:$0xff]  ;;  %9376 = vmatmul.mubr.msk.f32.vlgmr.msra.gmra.mrb[0].mxu0 %vm256_vm1, %v3567_v34  ;;  %8931 = vmatprep.mubr.msk.f32.mxu1 %vm256_vm1, %v529_v35  ;;  %v3569_v38 = vld [vmem:[#allocation3 + $0x39] sm:$0xff] }
  0x43   : > { %9424 = vmatpush3.msk.msra.mxu0 %vm653_vm0, %v10596_v4  ;;  %9378 = vmatprep.mubr.msk.f32.mxu0 %vm256_vm1, %v3568_v36  ;;  %v531_v39 = vld [vmem:[#allocation3 + $0x48] sm:$0xff]  ;;  %v532_v41 = vld [vmem:[#allocation3 + $0x50] sm:$0xff]  ;;  %v533_v43 = vld [vmem:[#allocation3 + $0x60] sm:$0xff]  ;;  %465 = vst.msk [vmem:[#allocation3 + $0x121] sm:$0xff] %vm256_vm1, %v432_v53 }
  0x44   : > { %v3570_v40 = vld [vmem:[#allocation3 + $0x49] sm:$0xff]  ;;  %9473 = vmatprep.subr.msk.mxu0 %vm653_vm0, %v10681_v30  ;;  %v3571_v42 = vld [vmem:[#allocation3 + $0x51] sm:$0xff]  ;;  %v3572_v44 = vld [vmem:[#allocation3 + $0x61] sm:$0xff]  ;;  %466 = vst.msk [vmem:[#allocation3 + $0x129] sm:$0xff] %vm256_vm1, %v433_v54 }
  0x45   : > { %8932 = vmatmul.mubr.msk.f32.gmra.mrb[4].mxu1 %vm256_vm1, %v530_v37  ;;  %v534_v45 = vld [vmem:[#allocation3 + $0x68] sm:$0xff]  ;;  %v535_v47 = vld [vmem:[#allocation3 + $0x78] sm:$0xff]  ;;  %v536_v49 = vld [vmem:[#allocation3 + $0x80] sm:$0xff]  ;;  %467 = vst.msk [vmem:[#allocation3 + $0x139] sm:$0xff] %vm256_vm1, %v434_v55 }
  0x46   : > { %9379 = vmatmul.mubr.msk.f32.gmra.mrb[2].mxu0 %vm256_vm1, %v3569_v38  ;;  %8934 = vmatprep.mubr.msk.f32.mxu1 %vm256_vm1, %v531_v39  ;;  %v3573_v46 = vld [vmem:[#allocation3 + $0x69] sm:$0xff]  ;;  %v3574_v48 = vld [vmem:[#allocation3 + $0x79] sm:$0xff]  ;;  %v3575_v50 = vld [vmem:[#allocation3 + $0x81] sm:$0xff]  ;;  %468 = vst.msk [vmem:[#allocation3 + $0x141] sm:$0xff] %vm256_vm1, %v435_v56 }
  0x47   : > { %9381 = vmatprep.mubr.msk.f32.mxu0 %vm256_vm1, %v3570_v40  ;;  %v537_v51 = vld [vmem:[#allocation3 + $0x90] sm:$0xff]  ;;  %v538_v60 = vld [vmem:[#allocation3 + $0x98] sm:$0xff]  ;;  %469 = vst.msk [vmem:[#allocation3 + $0x151] sm:$0xff] %vm256_vm1, %v436_v57  ;;  %470 = vst.msk [vmem:[#allocation3 + $0x159] sm:$0xff] %vm256_vm1, %v437_v58 }
  0x48   : > { %v3576_v52 = vld [vmem:[#allocation3 + $0x91] sm:$0xff]  ;;  %v3577_v61 = vld [vmem:[#allocation3 + $0x99] sm:$0xff]  ;;  %471 = vst.msk [vmem:[#allocation3 + $0x169] sm:$0xff] %vm256_vm1, %v438_v59  ;;  %v539_v0 = vld [vmem:[#allocation3 + $0xa8] sm:$0xff] }
  0x49   : > { %8935 = vmatmul.mubr.msk.f32.gmra.mrb[6].mxu1 %vm256_vm1, %v532_v41  ;;  %v10732_v1 = vld [vmem:[#allocation3 + $0xa9] sm:$0xff]  ;;  %472 = vst.msk [vmem:[#allocation3 + $0x171] sm:$0xff] %vm256_vm1, %v439_v62  ;;  %473 = vst.msk [vmem:[#allocation3 + $0x181] sm:$0xff] %vm256_vm1, %v440_v63  ;;  %v346_v4 = vld [vmem:[%s10717_s13 + $0x8] sm:$0xff] }
  0x4a   : > { %9382 = vmatmul.mubr.msk.f32.gmra.mrb[4].mxu0 %vm256_vm1, %v3571_v42  ;;  %8937 = vmatprep.mubr.msk.f32.mxu1 %vm256_vm1, %v533_v43  ;;  %474 = vst.msk [vmem:[#allocation3 + $0x189] sm:$0xff] %vm256_vm1, %v441_v2  ;;  %378 = vst.msk [vmem:[#allocation2 + $0x19] sm:$0xff] %vm256_vm1, %v345_v3  ;;  %v540_v15 = vld [vmem:[#allocation3 + $0xb0] sm:$0xff]  ;;  %v541_v17 = vld [vmem:[#allocation3 + $0xc0] sm:$0xff] }
  0x4b   : > { %9384 = vmatprep.mubr.msk.f32.mxu0 %vm256_vm1, %v3572_v44  ;;  %379 = vst.msk [vmem:[#allocation2 + $0x21] sm:$0xff] %vm256_vm1, %v346_v4  ;;  %380 = vst.msk [vmem:[#allocation2 + $0x31] sm:$0xff] %vm256_vm1, %v347_v5  ;;  %v10766_v16 = vld [vmem:[#allocation3 + $0xb1] sm:$0xff]  ;;  %v10769_v18 = vld [vmem:[#allocation3 + $0xc1] sm:$0xff] }
  0x4c   : > { %381 = vst.msk [vmem:[#allocation2 + $0x39] sm:$0xff] %vm256_vm1, %v348_v6  ;;  %382 = vst.msk [vmem:[#allocation2 + $0x49] sm:$0xff] %vm256_vm1, %v349_v7  ;;  %v542_v19 = vld [vmem:[#allocation3 + $0xc8] sm:$0xff]  ;;  %v543_v21 = vld [vmem:[#allocation3 + $0xd8] sm:$0xff] }
  0x4d   : > { %8938 = vmatmul.mubr.msk.f32.gmra.mrb[8].mxu1 %vm256_vm1, %v534_v45  ;;  %383 = vst.msk [vmem:[#allocation2 + $0x51] sm:$0xff] %vm256_vm1, %v350_v8  ;;  %384 = vst.msk [vmem:[#allocation2 + $0x61] sm:$0xff] %vm256_vm1, %v351_v9  ;;  %v10777_v20 = vld [vmem:[#allocation3 + $0xc9] sm:$0xff]  ;;  %v10779_v22 = vld [vmem:[#allocation3 + $0xd9] sm:$0xff] }
  0x4e   : > { %9385 = vmatmul.mubr.msk.f32.gmra.mrb[6].mxu0 %vm256_vm1, %v3573_v46  ;;  %8940 = vmatprep.mubr.msk.f32.mxu1 %vm256_vm1, %v535_v47  ;;  %385 = vst.msk [vmem:[#allocation2 + $0x69] sm:$0xff] %vm256_vm1, %v352_v10  ;;  %386 = vst.msk [vmem:[#allocation2 + $0x79] sm:$0xff] %vm256_vm1, %v353_v12  ;;  %v544_v23 = vld [vmem:[#allocation3 + $0xe0] sm:$0xff]  ;;  %v545_v25 = vld [vmem:[#allocation3 + $0xf0] sm:$0xff] }
  0x4f   : > { %9387 = vmatprep.mubr.msk.f32.mxu0 %vm256_vm1, %v3574_v48  ;;  %387 = vst.msk [vmem:[#allocation2 + $0x81] sm:$0xff] %vm256_vm1, %v354_v13  ;;  %388 = vst.msk [vmem:[#allocation2 + $0x91] sm:$0xff] %vm256_vm1, %v355_v14  ;;  %v10787_v24 = vld [vmem:[#allocation3 + $0xe1] sm:$0xff]  ;;  %v10789_v26 = vld [vmem:[#allocation3 + $0xf1] sm:$0xff] }
  0x50   : > { %v546_v27 = vld [vmem:[#allocation3 + $0xf8] sm:$0xff]  ;;  %v547_v29 = vld [vmem:[#allocation3 + $0x108] sm:$0xff]  ;;  %v357_v33 = vld [vmem:[%s10717_s13 + $0x60] sm:$0xff] }
  0x51   : > { %8941 = vmatmul.mubr.msk.f32.gmra.mrb[10].mxu1 %vm256_vm1, %v536_v49  ;;  %v10794_v28 = vld [vmem:[#allocation3 + $0xf9] sm:$0xff]  ;;  %v10799_v31 = vld [vmem:[#allocation3 + $0x109] sm:$0xff]  ;;  %390 = vst.msk [vmem:[#allocation2 + $0xa9] sm:$0xff] %vm256_vm1, %v357_v33  ;;  %v10808_v38 = vld [vmem:[#allocation3 + $0x111] sm:$0xff] }
  0x52   : > { %9388 = vmatmul.mubr.msk.f32.gmra.mrb[8].mxu0 %vm256_vm1, %v3575_v50  ;;  %8943 = vmatprep.mubr.msk.f32.mxu1 %vm256_vm1, %v537_v51  ;;  %v356_v32 = vld [vmem:[%s10717_s13 + $0x58] sm:$0xff]  ;;  %v358_v34 = vld [vmem:[%s10717_s13 + $0x68] sm:$0xff]  ;;  %v359_v35 = vld [vmem:[%s10717_s13 + $0x70] sm:$0xff] }
  0x53   : > { %9390 = vmatprep.mubr.msk.f32.mxu0 %vm256_vm1, %v3576_v52  ;;  %389 = vst.msk [vmem:[#allocation2 + $0x99] sm:$0xff] %vm256_vm1, %v356_v32  ;;  %v360_v36 = vld [vmem:[%s10717_s13 + $0x78] sm:$0xff]  ;;  %v548_v37 = vld [vmem:[#allocation3 + $0x110] sm:$0xff]  ;;  %391 = vst.msk [vmem:[#allocation2 + $0xb1] sm:$0xff] %vm256_vm1, %v358_v34 }
  0x54   : > { %392 = vst.msk [vmem:[#allocation2 + $0xc1] sm:$0xff] %vm256_vm1, %v359_v35  ;;  %393 = vst.msk [vmem:[#allocation2 + $0xc9] sm:$0xff] %vm256_vm1, %v360_v36  ;;  %v361_v39 = vld [vmem:[%s10717_s13 + $0x80] sm:$0xff]  ;;  %v362_v40 = vld [vmem:[%s10717_s13 + $0x88] sm:$0xff] }
  0x55   : > { %8944 = vmatmul.mubr.msk.f32.gmra.mrb[12].mxu1 %vm256_vm1, %v538_v60  ;;  %v363_v41 = vld [vmem:[%s10717_s13 + $0x90] sm:$0xff]  ;;  %394 = vst.msk [vmem:[#allocation2 + $0xd9] sm:$0xff] %vm256_vm1, %v361_v39  ;;  %395 = vst.msk [vmem:[#allocation2 + $0xe1] sm:$0xff] %vm256_vm1, %v362_v40  ;;  %v364_v44 = vld [vmem:[%s10717_s13 + $0x98] sm:$0xff] }
  0x56   : > { %9391 = vmatmul.mubr.msk.f32.gmra.mrb[10].mxu0 %vm256_vm1, %v3577_v61  ;;  %8946 = vmatprep.mubr.msk.f32.mxu1 %vm256_vm1, %v539_v0  ;;  %v549_v42 = vld [vmem:[#allocation3 + $0x120] sm:$0xff]  ;;  %396 = vst.msk [vmem:[#allocation2 + $0xf1] sm:$0xff] %vm256_vm1, %v363_v41  ;;  %v365_v45 = vld [vmem:[%s10717_s13 + $0xa0] sm:$0xff]  ;;  %v366_v46 = vld [vmem:[%s10717_s13 + $0xa8] sm:$0xff] }
  0x57   : > { %9393 = vmatprep.mubr.msk.f32.mxu0 %vm256_vm1, %v10732_v1  ;;  %v10819_v43 = vld [vmem:[#allocation3 + $0x121] sm:$0xff]  ;;  %397 = vst.msk [vmem:[#allocation2 + $0xf9] sm:$0xff] %vm256_vm1, %v364_v44  ;;  %398 = vst.msk [vmem:[#allocation2 + $0x109] sm:$0xff] %vm256_vm1, %v365_v45  ;;  %v369_v49 = vld [vmem:[%s10717_s13 + $0xc0] sm:$0xff] }
  0x58   : > { %399 = vst.msk [vmem:[#allocation2 + $0x111] sm:$0xff] %vm256_vm1, %v366_v46  ;;  %v367_v47 = vld [vmem:[%s10717_s13 + $0xb0] sm:$0xff]  ;;  %v368_v48 = vld [vmem:[%s10717_s13 + $0xb8] sm:$0xff]  ;;  %402 = vst.msk [vmem:[#allocation2 + $0x139] sm:$0xff] %vm256_vm1, %v369_v49 }
  0x59   : > { %8947 = vmatmul.mubr.msk.f32.gmra.mrb[14].mxu1 %vm256_vm1, %v540_v15  ;;  %400 = vst.msk [vmem:[#allocation2 + $0x121] sm:$0xff] %vm256_vm1, %v367_v47  ;;  %401 = vst.msk [vmem:[#allocation2 + $0x129] sm:$0xff] %vm256_vm1, %v368_v48  ;;  %v370_v50 = vld [vmem:[%s10717_s13 + $0xc8] sm:$0xff]  ;;  %v371_v51 = vld [vmem:[%s10717_s13 + $0xd0] sm:$0xff] }
  0x5a   : > { %9394 = vmatmul.mubr.msk.f32.gmra.mrb[12].mxu0 %vm256_vm1, %v10766_v16  ;;  %8949 = vmatprep.mubr.msk.f32.mxu1 %vm256_vm1, %v541_v17  ;;  %v372_v52 = vld [vmem:[%s10717_s13 + $0xd8] sm:$0xff]  ;;  %403 = vst.msk [vmem:[#allocation2 + $0x141] sm:$0xff] %vm256_vm1, %v370_v50  ;;  %404 = vst.msk [vmem:[#allocation2 + $0x151] sm:$0xff] %vm256_vm1, %v371_v51  ;;  %v373_v53 = vld [vmem:[%s10717_s13 + $0xe0] sm:$0xff] }
  0x5b   : > { %9396 = vmatprep.mubr.msk.f32.mxu0 %vm256_vm1, %v10769_v18  ;;  %405 = vst.msk [vmem:[#allocation2 + $0x159] sm:$0xff] %vm256_vm1, %v372_v52  ;;  %v374_v54 = vld [vmem:[%s10717_s13 + $0xe8] sm:$0xff]  ;;  %406 = vst.msk [vmem:[#allocation2 + $0x169] sm:$0xff] %vm256_vm1, %v373_v53  ;;  %v375_v55 = vld [vmem:[%s10717_s13 + $0xf0] sm:$0xff] }
  0x5c   : > { %407 = vst.msk [vmem:[#allocation2 + $0x171] sm:$0xff] %vm256_vm1, %v374_v54  ;;  %v376_v56 = vld [vmem:[%s10717_s13 + $0xf8] sm:$0xff]  ;;  %408 = vst.msk [vmem:[#allocation2 + $0x181] sm:$0xff] %vm256_vm1, %v375_v55  ;;  %v551_v59 = vld [vmem:[#allocation3 + $0x138] sm:$0xff] }
  0x5d   : > { %8950 = vmatmul.mubr.msk.f32.gmra.mrb[16].mxu1 %vm256_vm1, %v542_v19  ;;  %v550_v57 = vld [vmem:[#allocation3 + $0x128] sm:$0xff]  ;;  %409 = vst.msk [vmem:[#allocation2 + $0x189] sm:$0xff] %vm256_vm1, %v376_v56  ;;  %v10861_v60 = vld [vmem:[#allocation3 + $0x139] sm:$0xff]  ;;  %v553_v63 = vld [vmem:[#allocation3 + $0x150] sm:$0xff] }
  0x5e   : > { %9397 = vmatmul.mubr.msk.f32.gmra.mrb[14].mxu0 %vm256_vm1, %v10777_v20  ;;  %8952 = vmatprep.mubr.msk.f32.mxu1 %vm256_vm1, %v543_v21  ;;  %v10857_v58 = vld [vmem:[#allocation3 + $0x129] sm:$0xff]  ;;  %v552_v61 = vld [vmem:[#allocation3 + $0x140] sm:$0xff]  ;;  %v10871_v0 = vld [vmem:[#allocation3 + $0x151] sm:$0xff] }
  0x5f   : > { %9399 = vmatprep.mubr.msk.f32.mxu0 %vm256_vm1, %v10779_v22  ;;  %v10869_v62 = vld [vmem:[#allocation3 + $0x141] sm:$0xff]  ;;  %v554_v2 = vld [vmem:[#allocation3 + $0x158] sm:$0xff]  ;;  %v10881_v5 = vld [vmem:[#allocation3 + $0x169] sm:$0xff] }
  0x60   : > { %v10879_v3 = vld [vmem:[#allocation3 + $0x159] sm:$0xff]  ;;  %v555_v4 = vld [vmem:[#allocation3 + $0x168] sm:$0xff]  ;;  %v556_v6 = vld [vmem:[#allocation3 + $0x170] sm:$0xff] }
  0x61   : > { %8953 = vmatmul.mubr.msk.f32.gmra.mrb[18].mxu1 %vm256_vm1, %v544_v23  ;;  %v10889_v7 = vld [vmem:[#allocation3 + $0x171] sm:$0xff]  ;;  %v3596_v9 = vld [vmem:[#allocation3 + $0x181] sm:$0xff]  ;;  %v3597_v12 = vld [vmem:[#allocation3 + $0x189] sm:$0xff] }
  0x62   : > { %9400 = vmatmul.mubr.msk.f32.gmra.mrb[16].mxu0 %vm256_vm1, %v10787_v24  ;;  %8955 = vmatprep.mubr.msk.f32.mxu1 %vm256_vm1, %v545_v25  ;;  %v493_v8 = vld [vmem:[#allocation2] sm:$0xff]  ;;  %v494_v10 = vld [vmem:[#allocation2 + $0x8] sm:$0xff]  ;;  %v495_v13 = vld [vmem:[#allocation2 + $0x18] sm:$0xff] }
  0x63   : > { %9402 = vmatprep.mubr.msk.f32.mxu0 %vm256_vm1, %v10789_v26  ;;  %v10896_v14 = vld [vmem:[#allocation2 + $0x1a] sm:$0xff]  ;;  %v10903_v15 = vld [vmem:[%s12324_s3 + $0x4] sm:$0xf]  ;;  %v10912_v21 = vld [vmem:[#allocation2 + $0x30] sm:$0xff] }
  0x64   : > { %v496_v17 = vld [vmem:[#allocation2 + $0x20] sm:$0xff]  ;;  %v10914_v23 = vld [vmem:[#allocation2 + $0x32] sm:$0xff]  ;;  %v10938_v32 = vld [vmem:[#allocation2 + $0x4a] sm:$0xff] }
  0x65   : > { %8956 = vmatmul.mubr.msk.f32.gmra.mrb[20].mxu1 %vm256_vm1, %v546_v27  ;;  %v10908_v19 = vld [vmem:[#allocation2 + $0x22] sm:$0xff]  ;;  %v10921_v25 = vld [vmem:[%s12323_s2 + $0x18] sm:$0xf]  ;;  %v10986_v44 = vld [vmem:[#allocation2 + $0x90] sm:$0xff] }
  0x66   : > { %9403 = vmatmul.mubr.msk.f32.gmra.mrb[18].mxu0 %vm256_vm1, %v10794_v28  ;;  %8958 = vmatprep.mubr.msk.f32.mxu1 %vm256_vm1, %v547_v29  ;;  %v10932_v27 = vld [vmem:[#allocation2 + $0x3a] sm:$0xff]  ;;  %v10936_v29 = vld [vmem:[#allocation2 + $0x48] sm:$0xff]  ;;  %v10952_v33 = vld [vmem:[#allocation2 + $0x52] sm:$0xff] }
  0x67   : > { %9405 = vmatprep.mubr.msk.f32.mxu0 %vm256_vm1, %v10799_v31  ;;  %v10954_v34 = vld [vmem:[#allocation2 + $0x60] sm:$0xff]  ;;  %v10966_v36 = vld [vmem:[#allocation2 + $0x68] sm:$0xff]  ;;  %v10970_v39 = vld [vmem:[#allocation2 + $0x78] sm:$0xff] }
  0x68   : > { %v10956_v35 = vld [vmem:[#allocation2 + $0x62] sm:$0xff]  ;;  %v10972_v40 = vld [vmem:[#allocation2 + $0x7a] sm:$0xff]  ;;  %v10988_v45 = vld [vmem:[#allocation2 + $0x92] sm:$0xff] }
  0x69   : > { %8959 = vmatmul.mubr.msk.f32.gmra.mrb[22].mxu1 %vm256_vm1, %v548_v37  ;;  %v10968_v37 = vld [vmem:[#allocation2 + $0x6a] sm:$0xff]  ;;  %12406 = vst [vmem:[#allocation5_spill] sm:$0xff] %v10972_v40  ;;  %v10982_v41 = vld [vmem:[#allocation2 + $0x80] sm:$0xff]  ;;  %12408 = vst [vmem:[#allocation7_spill] sm:$0xff] %v10988_v45 }
  0x6a   : > { %9406 = vmatmul.mubr.msk.f32.gmra.mrb[20].mxu0 %vm256_vm1, %v10808_v38  ;;  %8961 = vmatprep.mubr.msk.f32.mxu1 %vm256_vm1, %v549_v42  ;;  %12405 = vst [vmem:[#allocation4_spill] sm:$0xff] %v10968_v37  ;;  %v10984_v42 = vld [vmem:[#allocation2 + $0x82] sm:$0xff]  ;;  %v10998_v46 = vld [vmem:[#allocation2 + $0x98] sm:$0xff]  ;;  %v11004_v49 = vld [vmem:[#allocation2 + $0xaa] sm:$0xff] }
  0x6b   : > { %9408 = vmatprep.mubr.msk.f32.mxu0 %vm256_vm1, %v10819_v43  ;;  %12407 = vst [vmem:[#allocation6_spill] sm:$0xff] %v10984_v42  ;;  %v11000_v47 = vld [vmem:[#allocation2 + $0x9a] sm:$0xff]  ;;  %v11002_v48 = vld [vmem:[#allocation2 + $0xa8] sm:$0xff]  ;;  %12410 = vst [vmem:[#allocation9_spill] sm:$0xff] %v11004_v49 }
  0x6c   : > { %12409 = vst [vmem:[#allocation8_spill] sm:$0xff] %v11000_v47  ;;  %v11014_v50 = vld [vmem:[#allocation2 + $0xb0] sm:$0xff]  ;;  %v11018_v52 = vld [vmem:[#allocation2 + $0xc0] sm:$0xff]  ;;  %v11030_v54 = vld [vmem:[#allocation2 + $0xc8] sm:$0xff] }
  0x6d   : > { %8962 = vmatmul.mubr.msk.f32.gmra.mrb[24].mxu1 %vm256_vm1, %v550_v57  ;;  %v11016_v51 = vld [vmem:[#allocation2 + $0xb2] sm:$0xff]  ;;  %v11020_v53 = vld [vmem:[#allocation2 + $0xc2] sm:$0xff]  ;;  %v11032_v55 = vld [vmem:[#allocation2 + $0xca] sm:$0xff] }
  0x6e   : > { %9409 = vmatmul.mubr.msk.f32.gmra.mrb[22].mxu0 %vm256_vm1, %v10857_v58  ;;  %8964 = vmatprep.mubr.msk.f32.mxu1 %vm256_vm1, %v551_v59  ;;  %12411 = vst [vmem:[#allocation10_spill] sm:$0xff] %v11016_v51  ;;  %12412 = vst [vmem:[#allocation11_spill] sm:$0xff] %v11020_v53  ;;  %v11034_v56 = vld [vmem:[#allocation2 + $0xd8] sm:$0xff]  ;;  %v11046_v59 = vld [vmem:[#allocation2 + $0xe0] sm:$0xff] }
  0x6f   : > { %9411 = vmatprep.mubr.msk.f32.mxu0 %vm256_vm1, %v10861_v60  ;;  %12413 = vst [vmem:[#allocation12_spill] sm:$0xff] %v11032_v55  ;;  %v11036_v57 = vld [vmem:[#allocation2 + $0xda] sm:$0xff] }
  0x70   : > { %12414 = vst [vmem:[#allocation13_spill] sm:$0xff] %v11036_v57 }
  0x71   : > { %8965 = vmatmul.mubr.msk.f32.gmra.mrb[26].mxu1 %vm256_vm1, %v552_v61  ;;  %v11048_v61 = vld [vmem:[#allocation2 + $0xe2] sm:$0xff] }
  0x72   : > { %9412 = vmatmul.mubr.msk.f32.gmra.mrb[24].mxu0 %vm256_vm1, %v10869_v62  ;;  %8967 = vmatprep.mubr.msk.f32.mxu1 %vm256_vm1, %v553_v63  ;;  %12415 = vst [vmem:[#allocation14_spill] sm:$0xff] %v11048_v61  ;;  %v11050_v63 = vld [vmem:[#allocation2 + $0xf0] sm:$0xff] }
  0x73   : > { %9414 = vmatprep.mubr.msk.f32.mxu0 %vm256_vm1, %v10871_v0 }
  0x75   : > { %8968 = vmatmul.mubr.msk.f32.gmra.mrb[28].mxu1 %vm256_vm1, %v554_v2  ;;  %v11052_v2 = vld [vmem:[#allocation2 + $0xf2] sm:$0xff] }
  0x76   : > { %9415 = vmatmul.mubr.msk.f32.gmra.mrb[26].mxu0 %vm256_vm1, %v10879_v3  ;;  %8970 = vmatprep.mubr.msk.f32.mxu1 %vm256_vm1, %v555_v4  ;;  %12416 = vst [vmem:[#allocation15_spill] sm:$0xff] %v11052_v2  ;;  %v11062_v4 = vld [vmem:[#allocation2 + $0xf8] sm:$0xff] }
  0x77   : > { %9417 = vmatprep.mubr.msk.f32.mxu0 %vm256_vm1, %v10881_v5 }
  0x79   : > { %8971 = vmatmul.mubr.msk.f32.gmra.mrb[30].mxu1 %vm256_vm1, %v556_v6  ;;  %v11064_v6 = vld [vmem:[#allocation2 + $0xfa] sm:$0xff] }
  0x7a   : > { %9418 = vmatmul.mubr.msk.f32.gmra.mrb[28].mxu0 %vm256_vm1, %v10889_v7  ;;  %8975 = vmatprep.mubr.msk.f32.mxu1 %vm256_vm1, %v493_v8  ;;  %12417 = vst [vmem:[#allocation16_spill] sm:$0xff] %v11064_v6  ;;  %v11066_v8 = vld [vmem:[#allocation2 + $0x108] sm:$0xff] }
  0x7b   : > { %9420 = vmatprep.mubr.msk.f32.mxu0 %vm256_vm1, %v3596_v9  ;;  %v11068_v9 = vld [vmem:[#allocation2 + $0x10a] sm:$0xff] }
  0x7c   : > { %12418 = vst [vmem:[#allocation17_spill] sm:$0xff] %v11068_v9 }
  0x7d   : > { %8976 = vmatmul.mubr.msk.f32.vlgmr.msra.gmra.mrb[0].mxu1 %vm256_vm1, %v494_v10  ;;  %v11078_v10 = vld [vmem:[#allocation2 + $0x110] sm:$0xff] }
  0x7e   : > { %9421 = vmatmul.mubr.msk.f32.gmra.mrb[30].mxu0 %vm256_vm1, %v3597_v12  ;;  %8978 = vmatprep.mubr.msk.f32.mxu1 %vm256_vm1, %v495_v13  ;;  %v11080_v12 = vld [vmem:[#allocation2 + $0x112] sm:$0xff]  ;;  %v11082_v13 = vld [vmem:[#allocation2 + $0x120] sm:$0xff] }
  0x7f   : > { %9425 = vmatprep.mubr.msk.f32.mxu0 %vm256_vm1, %v10896_v14  ;;  %9024 = vmatpush3.msk.msra.mxu1 %vm653_vm0, %v10638_v11  ;;  %v10930_v11 = vld [vmem:[#allocation2 + $0x38] sm:$0xff]  ;;  %12419 = vst [vmem:[#allocation18_spill] sm:$0xff] %v11080_v12 }
  0x80   : > { %9073 = vmatprep.subr.msk.mxu1 %vm653_vm0, %v10903_v15 }
  0x81   : > { %8979 = vmatmul.mubr.msk.f32.gmra.mrb[2].mxu1 %vm256_vm1, %v496_v17  ;;  %v11084_v17 = vld [vmem:[#allocation2 + $0x122] sm:$0xff] }
  0x82   : > { %9426 = vmatmul.mubr.msk.f32.vlgmr.msra.gmra.mrb[0].mxu0 %vm256_vm1, %v10908_v19  ;;  %8981 = vmatprep.mubr.msk.f32.mxu1 %vm256_vm1, %v10912_v21  ;;  %12420 = vst [vmem:[#allocation19_spill] sm:$0xff] %v11084_v17 }
  0x83   : > { %9474 = vmatpush3.msk.msra.mxu0 %vm653_vm0, %v10681_v30  ;;  %9428 = vmatprep.mubr.msk.f32.mxu0 %vm256_vm1, %v10914_v23  ;;  %v10950_v30 = vld [vmem:[#allocation2 + $0x50] sm:$0xff] }
  0x84   : > { %9523 = vmatprep.subr.msk.mxu0 %vm653_vm0, %v10921_v25 }
  0x85   : > { %8982 = vmatmul.mubr.msk.f32.gmra.mrb[4].mxu1 %vm256_vm1, %v10930_v11 }
  0x86   : > { %9429 = vmatmul.mubr.msk.f32.gmra.mrb[2].mxu0 %vm256_vm1, %v10932_v27  ;;  %8984 = vmatprep.mubr.msk.f32.mxu1 %vm256_vm1, %v10936_v29 }
  0x87   : > { %9431 = vmatprep.mubr.msk.f32.mxu0 %vm256_vm1, %v10938_v32 }
  0x89   : > { %8985 = vmatmul.mubr.msk.f32.gmra.mrb[6].mxu1 %vm256_vm1, %v10950_v30 }
  0x8a   : > { %9432 = vmatmul.mubr.msk.f32.gmra.mrb[4].mxu0 %vm256_vm1, %v10952_v33  ;;  %8987 = vmatprep.mubr.msk.f32.mxu1 %vm256_vm1, %v10954_v34 }
  0x8b   : > { %9434 = vmatprep.mubr.msk.f32.mxu0 %vm256_vm1, %v10956_v35 }
  0x8d   : > { %8988 = vmatmul.mubr.msk.f32.gmra.mrb[8].mxu1 %vm256_vm1, %v10966_v36 }
  0x8e   : > { %9435 = vmatmul.mubr.msk.f32.gmra.mrb[6].mxu0 %vm256_vm1, %v10968_v37  ;;  %8990 = vmatprep.mubr.msk.f32.mxu1 %vm256_vm1, %v10970_v39  ;;  %v11194_v37 = vld [vmem:[#allocation3 + $0x4a] sm:$0xff] }
  0x8f   : > { %9437 = vmatprep.mubr.msk.f32.mxu0 %vm256_vm1, %v10972_v40  ;;  %v11159_v40 = vld [vmem:[%s12323_s2 + $0x8] sm:$0xf]  ;;  %12434 = vst [vmem:[#allocation33_spill] sm:$0xff] %v11194_v37 }
  0x91   : > { %8991 = vmatmul.mubr.msk.f32.gmra.mrb[10].mxu1 %vm256_vm1, %v10982_v41 }
  0x92   : > { %9438 = vmatmul.mubr.msk.f32.gmra.mrb[8].mxu0 %vm256_vm1, %v10984_v42  ;;  %8993 = vmatprep.mubr.msk.f32.mxu1 %vm256_vm1, %v10986_v44  ;;  %v1208_v42 = vld [vmem:[#allocation2 + $0x19] sm:$0xff] }
  0x93   : > { %9440 = vmatprep.mubr.msk.f32.mxu0 %vm256_vm1, %v10988_v45  ;;  %v4341_v45 = vld [vmem:[#allocation2 + $0x18a] sm:$0xff] }
  0x95   : > { %8994 = vmatmul.mubr.msk.f32.gmra.mrb[12].mxu1 %vm256_vm1, %v10998_v46 }
  0x96   : > { %9441 = vmatmul.mubr.msk.f32.gmra.mrb[10].mxu0 %vm256_vm1, %v11000_v47  ;;  %8996 = vmatprep.mubr.msk.f32.mxu1 %vm256_vm1, %v11002_v48  ;;  %v4340_v47 = vld [vmem:[#allocation2 + $0x182] sm:$0xff] }
  0x97   : > { %9443 = vmatprep.mubr.msk.f32.mxu0 %vm256_vm1, %v11004_v49  ;;  %v1206_v49 = vld [vmem:[#allocation2 + $0x1] sm:$0xff] }
  0x99   : > { %8997 = vmatmul.mubr.msk.f32.gmra.mrb[14].mxu1 %vm256_vm1, %v11014_v50 }
  0x9a   : > { %9444 = vmatmul.mubr.msk.f32.gmra.mrb[12].mxu0 %vm256_vm1, %v11016_v51  ;;  %8999 = vmatprep.mubr.msk.f32.mxu1 %vm256_vm1, %v11018_v52  ;;  %v11132_v51 = vld [vmem:[#allocation2 + $0x16a] sm:$0xff] }
  0x9b   : > { %9446 = vmatprep.mubr.msk.f32.mxu0 %vm256_vm1, %v11020_v53  ;;  %v11130_v53 = vld [vmem:[#allocation2 + $0x168] sm:$0xff]  ;;  %12426 = vst [vmem:[#allocation25_spill] sm:$0xff] %v11132_v51 }
  0x9d   : > { %9000 = vmatmul.mubr.msk.f32.gmra.mrb[16].mxu1 %vm256_vm1, %v11030_v54 }
  0x9e   : > { %9447 = vmatmul.mubr.msk.f32.gmra.mrb[14].mxu0 %vm256_vm1, %v11032_v55  ;;  %9002 = vmatprep.mubr.msk.f32.mxu1 %vm256_vm1, %v11034_v56  ;;  %v11116_v55 = vld [vmem:[#allocation2 + $0x152] sm:$0xff] }
  0x9f   : > { %9449 = vmatprep.mubr.msk.f32.mxu0 %vm256_vm1, %v11036_v57  ;;  %v11114_v57 = vld [vmem:[#allocation2 + $0x150] sm:$0xff]  ;;  %12424 = vst [vmem:[#allocation23_spill] sm:$0xff] %v11116_v55 }
  0xa1   : > { %9003 = vmatmul.mubr.msk.f32.gmra.mrb[18].mxu1 %vm256_vm1, %v11046_v59 }
  0xa2   : > { %9450 = vmatmul.mubr.msk.f32.gmra.mrb[16].mxu0 %vm256_vm1, %v11048_v61  ;;  %9005 = vmatprep.mubr.msk.f32.mxu1 %vm256_vm1, %v11050_v63  ;;  %v11100_v61 = vld [vmem:[#allocation2 + $0x13a] sm:$0xff] }
  0xa3   : > { %9452 = vmatprep.mubr.msk.f32.mxu0 %vm256_vm1, %v11052_v2  ;;  %v11098_v2 = vld [vmem:[#allocation2 + $0x138] sm:$0xff]  ;;  %12422 = vst [vmem:[#allocation21_spill] sm:$0xff] %v11100_v61 }
  0xa5   : > { %9006 = vmatmul.mubr.msk.f32.gmra.mrb[20].mxu1 %vm256_vm1, %v11062_v4 }
  0xa6   : > { %9453 = vmatmul.mubr.msk.f32.gmra.mrb[18].mxu0 %vm256_vm1, %v11064_v6  ;;  %9008 = vmatprep.mubr.msk.f32.mxu1 %vm256_vm1, %v11066_v8  ;;  %v11096_v6 = vld [vmem:[#allocation2 + $0x12a] sm:$0xff] }
  0xa7   : > { %9455 = vmatprep.mubr.msk.f32.mxu0 %vm256_vm1, %v11068_v9  ;;  %v11094_v9 = vld [vmem:[#allocation2 + $0x128] sm:$0xff]  ;;  %12421 = vst [vmem:[#allocation20_spill] sm:$0xff] %v11096_v6 }
  0xa9   : > { %9009 = vmatmul.mubr.msk.f32.gmra.mrb[22].mxu1 %vm256_vm1, %v11078_v10 }
  0xaa   : > { %9456 = vmatmul.mubr.msk.f32.gmra.mrb[20].mxu0 %vm256_vm1, %v11080_v12  ;;  %9011 = vmatprep.mubr.msk.f32.mxu1 %vm256_vm1, %v11082_v13  ;;  %v11112_v12 = vld [vmem:[#allocation2 + $0x142] sm:$0xff] }
  0xab   : > { %9458 = vmatprep.mubr.msk.f32.mxu0 %vm256_vm1, %v11084_v17  ;;  %v11110_v17 = vld [vmem:[#allocation2 + $0x140] sm:$0xff]  ;;  %12423 = vst [vmem:[#allocation22_spill] sm:$0xff] %v11112_v12 }
  0xad   : > { %9012 = vmatmul.mubr.msk.f32.gmra.mrb[24].mxu1 %vm256_vm1, %v11094_v9 }
  0xae   : > { %9459 = vmatmul.mubr.msk.f32.gmra.mrb[22].mxu0 %vm256_vm1, %v11096_v6  ;;  %9014 = vmatprep.mubr.msk.f32.mxu1 %vm256_vm1, %v11098_v2  ;;  %v11128_v6 = vld [vmem:[#allocation2 + $0x15a] sm:$0xff] }
  0xaf   : > { %9461 = vmatprep.mubr.msk.f32.mxu0 %vm256_vm1, %v11100_v61  ;;  %v11126_v61 = vld [vmem:[#allocation2 + $0x158] sm:$0xff]  ;;  %12425 = vst [vmem:[#allocation24_spill] sm:$0xff] %v11128_v6 }
  0xb1   : > { %9015 = vmatmul.mubr.msk.f32.gmra.mrb[26].mxu1 %vm256_vm1, %v11110_v17 }
  0xb2   : > { %9462 = vmatmul.mubr.msk.f32.gmra.mrb[24].mxu0 %vm256_vm1, %v11112_v12  ;;  %9017 = vmatprep.mubr.msk.f32.mxu1 %vm256_vm1, %v11114_v57  ;;  %v11144_v12 = vld [vmem:[#allocation2 + $0x172] sm:$0xff] }
  0xb3   : > { %9464 = vmatprep.mubr.msk.f32.mxu0 %vm256_vm1, %v11116_v55  ;;  %v11142_v55 = vld [vmem:[#allocation2 + $0x170] sm:$0xff]  ;;  %12427 = vst [vmem:[#allocation26_spill] sm:$0xff] %v11144_v12 }
  0xb5   : > { %9018 = vmatmul.mubr.msk.f32.gmra.mrb[28].mxu1 %vm256_vm1, %v11126_v61 }
  0xb6   : > { %9465 = vmatmul.mubr.msk.f32.gmra.mrb[26].mxu0 %vm256_vm1, %v11128_v6  ;;  %9020 = vmatprep.mubr.msk.f32.mxu1 %vm256_vm1, %v11130_v53  ;;  %v1207_v6 = vld [vmem:[#allocation2 + $0x9] sm:$0xff] }
  0xb7   : > { %9467 = vmatprep.mubr.msk.f32.mxu0 %vm256_vm1, %v11132_v51  ;;  %v11152_v51 = vld [vmem:[#allocation3 + $0x1a] sm:$0xff] }
  0xb8   : > { %12428 = vst [vmem:[#allocation27_spill] sm:$0xff] %v11152_v51 }
  0xb9   : > { %9021 = vmatmul.mubr.msk.f32.gmra.mrb[30].mxu1 %vm256_vm1, %v11142_v55 }
  0xba   : > { %9468 = vmatmul.mubr.msk.f32.gmra.mrb[28].mxu0 %vm256_vm1, %v11144_v12  ;;  %9025 = vmatprep.mubr.msk.f32.mxu1 %vm256_vm1, %v1206_v49  ;;  %v11164_v49 = vld [vmem:[#allocation3 + $0x22] sm:$0xff] }
  0xbb   : > { %9470 = vmatprep.mubr.msk.f32.mxu0 %vm256_vm1, %v4340_v47  ;;  %v1209_v47 = vld [vmem:[#allocation2 + $0x21] sm:$0xff]  ;;  %12429 = vst [vmem:[#allocation28_spill] sm:$0xff] %v11164_v49  ;;  %v11168_v12 = vld [vmem:[#allocation2 + $0x31] sm:$0xff] }
  0xbd   : > { %9026 = vmatmul.mubr.msk.f32.vlgmr.msra.gmra.mrb[0].mxu1 %vm256_vm1, %v1207_v6  ;;  %v11170_v6 = vld [vmem:[#allocation3 + $0x32] sm:$0xff] }
  0xbe   : > { %9471 = vmatmul.mubr.msk.f32.gmra.mrb[30].mxu0 %vm256_vm1, %v4341_v45  ;;  %9028 = vmatprep.mubr.msk.f32.mxu1 %vm256_vm1, %v1208_v42  ;;  %12430 = vst [vmem:[#allocation29_spill] sm:$0xff] %v11170_v6  ;;  %v11177_v42 = vld [vmem:[%s12324_s3 + $0x18] sm:$0xf]  ;;  %v11188_v45 = vld [vmem:[#allocation3 + $0x3a] sm:$0xff] }
  0xbf   : > { %9475 = vmatprep.mubr.msk.f32.mxu0 %vm256_vm1, %v11152_v51  ;;  %9074 = vmatpush3.msk.msra.mxu1 %vm653_vm0, %v10903_v15  ;;  %v11186_v15 = vld [vmem:[#allocation2 + $0x39] sm:$0xff]  ;;  %12432 = vst [vmem:[#allocation31_spill] sm:$0xff] %v11188_v45  ;;  %v11192_v51 = vld [vmem:[#allocation2 + $0x49] sm:$0xff] }
  0xc0   : > { %9123 = vmatprep.subr.msk.mxu1 %vm653_vm0, %v11159_v40  ;;  %12431 = vst [vmem:[#allocation30_spill] sm:$0xff] %v11186_v15  ;;  %12433 = vst [vmem:[#allocation32_spill] sm:$0xff] %v11192_v51 }
  0xc1   : > { %9029 = vmatmul.mubr.msk.f32.gmra.mrb[2].mxu1 %vm256_vm1, %v1209_v47  ;;  %v11208_v47 = vld [vmem:[#allocation3 + $0x52] sm:$0xff] }
  0xc2   : > { %9476 = vmatmul.mubr.msk.f32.vlgmr.msra.gmra.mrb[0].mxu0 %vm256_vm1, %v11164_v49  ;;  %9031 = vmatprep.mubr.msk.f32.mxu1 %vm256_vm1, %v11168_v12  ;;  %12436 = vst [vmem:[#allocation35_spill] sm:$0xff] %v11208_v47  ;;  %v11212_v49 = vld [vmem:[#allocation3 + $0x62] sm:$0xff] }
  0xc3   : > { %9524 = vmatpush3.msk.msra.mxu0 %vm653_vm0, %v10921_v25  ;;  %9478 = vmatprep.mubr.msk.f32.mxu0 %vm256_vm1, %v11170_v6  ;;  %v11206_v25 = vld [vmem:[#allocation2 + $0x51] sm:$0xff]  ;;  %v11210_v6 = vld [vmem:[#allocation2 + $0x61] sm:$0xff]  ;;  %12438 = vst [vmem:[#allocation37_spill] sm:$0xff] %v11212_v49 }
  0xc4   : > { %9573 = vmatprep.subr.msk.mxu0 %vm653_vm0, %v11177_v42  ;;  %12435 = vst [vmem:[#allocation34_spill] sm:$0xff] %v11206_v25  ;;  %12437 = vst [vmem:[#allocation36_spill] sm:$0xff] %v11210_v6 }
  0xc5   : > { %9032 = vmatmul.mubr.msk.f32.gmra.mrb[4].mxu1 %vm256_vm1, %v11186_v15  ;;  %v11228_v15 = vld [vmem:[#allocation3 + $0x7a] sm:$0xff] }
  0xc6   : > { %9479 = vmatmul.mubr.msk.f32.gmra.mrb[2].mxu0 %vm256_vm1, %v11188_v45  ;;  %9034 = vmatprep.mubr.msk.f32.mxu1 %vm256_vm1, %v11192_v51  ;;  %v11224_v45 = vld [vmem:[#allocation3 + $0x6a] sm:$0xff]  ;;  %12442 = vst [vmem:[#allocation41_spill] sm:$0xff] %v11228_v15 }
  0xc7   : > { %9481 = vmatprep.mubr.msk.f32.mxu0 %vm256_vm1, %v11194_v37  ;;  %v11222_v37 = vld [vmem:[#allocation2 + $0x69] sm:$0xff]  ;;  %12440 = vst [vmem:[#allocation39_spill] sm:$0xff] %v11224_v45  ;;  %v11226_v51 = vld [vmem:[#allocation2 + $0x79] sm:$0xff] }
  0xc8   : > { %12439 = vst [vmem:[#allocation38_spill] sm:$0xff] %v11222_v37  ;;  %12441 = vst [vmem:[#allocation40_spill] sm:$0xff] %v11226_v51 }
  0xc9   : > { %9035 = vmatmul.mubr.msk.f32.gmra.mrb[6].mxu1 %vm256_vm1, %v11206_v25  ;;  %v11244_v25 = vld [vmem:[#allocation3 + $0x92] sm:$0xff] }
  0xca   : > { %9482 = vmatmul.mubr.msk.f32.gmra.mrb[4].mxu0 %vm256_vm1, %v11208_v47  ;;  %9037 = vmatprep.mubr.msk.f32.mxu1 %vm256_vm1, %v11210_v6  ;;  %v11240_v47 = vld [vmem:[#allocation3 + $0x82] sm:$0xff]  ;;  %12446 = vst [vmem:[#allocation45_spill] sm:$0xff] %v11244_v25 }
  0xcb   : > { %9484 = vmatprep.mubr.msk.f32.mxu0 %vm256_vm1, %v11212_v49  ;;  %v11238_v49 = vld [vmem:[#allocation2 + $0x81] sm:$0xff]  ;;  %12444 = vst [vmem:[#allocation43_spill] sm:$0xff] %v11240_v47  ;;  %v11242_v6 = vld [vmem:[#allocation2 + $0x91] sm:$0xff] }
  0xcc   : > { %12443 = vst [vmem:[#allocation42_spill] sm:$0xff] %v11238_v49  ;;  %12445 = vst [vmem:[#allocation44_spill] sm:$0xff] %v11242_v6 }
  0xcd   : > { %9038 = vmatmul.mubr.msk.f32.gmra.mrb[8].mxu1 %vm256_vm1, %v11222_v37  ;;  %v11260_v37 = vld [vmem:[#allocation3 + $0xaa] sm:$0xff] }
  0xce   : > { %9485 = vmatmul.mubr.msk.f32.gmra.mrb[6].mxu0 %vm256_vm1, %v11224_v45  ;;  %9040 = vmatprep.mubr.msk.f32.mxu1 %vm256_vm1, %v11226_v51  ;;  %v11256_v45 = vld [vmem:[#allocation3 + $0x9a] sm:$0xff]  ;;  %12450 = vst [vmem:[#allocation49_spill] sm:$0xff] %v11260_v37 }
  0xcf   : > { %9487 = vmatprep.mubr.msk.f32.mxu0 %vm256_vm1, %v11228_v15  ;;  %v11254_v15 = vld [vmem:[#allocation2 + $0x99] sm:$0xff]  ;;  %12448 = vst [vmem:[#allocation47_spill] sm:$0xff] %v11256_v45  ;;  %v11258_v51 = vld [vmem:[#allocation2 + $0xa9] sm:$0xff] }
  0xd0   : > { %12447 = vst [vmem:[#allocation46_spill] sm:$0xff] %v11254_v15  ;;  %12449 = vst [vmem:[#allocation48_spill] sm:$0xff] %v11258_v51 }
  0xd1   : > { %9041 = vmatmul.mubr.msk.f32.gmra.mrb[10].mxu1 %vm256_vm1, %v11238_v49  ;;  %v11276_v49 = vld [vmem:[#allocation3 + $0xc2] sm:$0xff] }
  0xd2   : > { %9488 = vmatmul.mubr.msk.f32.gmra.mrb[8].mxu0 %vm256_vm1, %v11240_v47  ;;  %9043 = vmatprep.mubr.msk.f32.mxu1 %vm256_vm1, %v11242_v6  ;;  %v11272_v47 = vld [vmem:[#allocation3 + $0xb2] sm:$0xff]  ;;  %12454 = vst [vmem:[#allocation53_spill] sm:$0xff] %v11276_v49 }
  0xd3   : > { %9490 = vmatprep.mubr.msk.f32.mxu0 %vm256_vm1, %v11244_v25  ;;  %v11270_v25 = vld [vmem:[#allocation2 + $0xb1] sm:$0xff]  ;;  %12452 = vst [vmem:[#allocation51_spill] sm:$0xff] %v11272_v47  ;;  %v11274_v6 = vld [vmem:[#allocation2 + $0xc1] sm:$0xff] }
  0xd4   : > { %12451 = vst [vmem:[#allocation50_spill] sm:$0xff] %v11270_v25  ;;  %12453 = vst [vmem:[#allocation52_spill] sm:$0xff] %v11274_v6 }
  0xd5   : > { %9044 = vmatmul.mubr.msk.f32.gmra.mrb[12].mxu1 %vm256_vm1, %v11254_v15  ;;  %v11292_v15 = vld [vmem:[#allocation3 + $0xda] sm:$0xff] }
  0xd6   : > { %9491 = vmatmul.mubr.msk.f32.gmra.mrb[10].mxu0 %vm256_vm1, %v11256_v45  ;;  %9046 = vmatprep.mubr.msk.f32.mxu1 %vm256_vm1, %v11258_v51  ;;  %v11288_v45 = vld [vmem:[#allocation3 + $0xca] sm:$0xff]  ;;  %12458 = vst [vmem:[#allocation57_spill] sm:$0xff] %v11292_v15 }
  0xd7   : > { %9493 = vmatprep.mubr.msk.f32.mxu0 %vm256_vm1, %v11260_v37  ;;  %v11286_v37 = vld [vmem:[#allocation2 + $0xc9] sm:$0xff]  ;;  %12456 = vst [vmem:[#allocation55_spill] sm:$0xff] %v11288_v45  ;;  %v11290_v51 = vld [vmem:[#allocation2 + $0xd9] sm:$0xff] }
  0xd8   : > { %12455 = vst [vmem:[#allocation54_spill] sm:$0xff] %v11286_v37  ;;  %12457 = vst [vmem:[#allocation56_spill] sm:$0xff] %v11290_v51 }
  0xd9   : > { %9047 = vmatmul.mubr.msk.f32.gmra.mrb[14].mxu1 %vm256_vm1, %v11270_v25  ;;  %v11308_v25 = vld [vmem:[#allocation3 + $0xf2] sm:$0xff] }
  0xda   : > { %9494 = vmatmul.mubr.msk.f32.gmra.mrb[12].mxu0 %vm256_vm1, %v11272_v47  ;;  %9049 = vmatprep.mubr.msk.f32.mxu1 %vm256_vm1, %v11274_v6  ;;  %v11304_v47 = vld [vmem:[#allocation3 + $0xe2] sm:$0xff]  ;;  %12462 = vst [vmem:[#allocation61_spill] sm:$0xff] %v11308_v25 }
  0xdb   : > { %9496 = vmatprep.mubr.msk.f32.mxu0 %vm256_vm1, %v11276_v49  ;;  %v11302_v49 = vld [vmem:[#allocation2 + $0xe1] sm:$0xff]  ;;  %12460 = vst [vmem:[#allocation59_spill] sm:$0xff] %v11304_v47  ;;  %v11306_v6 = vld [vmem:[#allocation2 + $0xf1] sm:$0xff] }
  0xdc   : > { %12459 = vst [vmem:[#allocation58_spill] sm:$0xff] %v11302_v49  ;;  %12461 = vst [vmem:[#allocation60_spill] sm:$0xff] %v11306_v6 }
  0xdd   : > { %9050 = vmatmul.mubr.msk.f32.gmra.mrb[16].mxu1 %vm256_vm1, %v11286_v37  ;;  %v11324_v37 = vld [vmem:[#allocation3 + $0x10a] sm:$0xff] }
  0xde   : > { %9497 = vmatmul.mubr.msk.f32.gmra.mrb[14].mxu0 %vm256_vm1, %v11288_v45  ;;  %9052 = vmatprep.mubr.msk.f32.mxu1 %vm256_vm1, %v11290_v51  ;;  %v11320_v45 = vld [vmem:[#allocation3 + $0xfa] sm:$0xff]  ;;  %12466 = vst [vmem:[#allocation65_spill] sm:$0xff] %v11324_v37 }
  0xdf   : > { %9499 = vmatprep.mubr.msk.f32.mxu0 %vm256_vm1, %v11292_v15  ;;  %v11318_v15 = vld [vmem:[#allocation2 + $0xf9] sm:$0xff]  ;;  %12464 = vst [vmem:[#allocation63_spill] sm:$0xff] %v11320_v45  ;;  %v11322_v51 = vld [vmem:[#allocation2 + $0x109] sm:$0xff] }
  0xe0   : > { %12463 = vst [vmem:[#allocation62_spill] sm:$0xff] %v11318_v15  ;;  %12465 = vst [vmem:[#allocation64_spill] sm:$0xff] %v11322_v51 }
  0xe1   : > { %9053 = vmatmul.mubr.msk.f32.gmra.mrb[18].mxu1 %vm256_vm1, %v11302_v49  ;;  %v11340_v49 = vld [vmem:[#allocation3 + $0x122] sm:$0xff] }
  0xe2   : > { %9500 = vmatmul.mubr.msk.f32.gmra.mrb[16].mxu0 %vm256_vm1, %v11304_v47  ;;  %9055 = vmatprep.mubr.msk.f32.mxu1 %vm256_vm1, %v11306_v6  ;;  %v11336_v47 = vld [vmem:[#allocation3 + $0x112] sm:$0xff]  ;;  %12470 = vst [vmem:[#allocation69_spill] sm:$0xff] %v11340_v49 }
  0xe3   : > { %9502 = vmatprep.mubr.msk.f32.mxu0 %vm256_vm1, %v11308_v25  ;;  %v11334_v25 = vld [vmem:[#allocation2 + $0x111] sm:$0xff]  ;;  %12468 = vst [vmem:[#allocation67_spill] sm:$0xff] %v11336_v47  ;;  %v11338_v6 = vld [vmem:[#allocation2 + $0x121] sm:$0xff] }
  0xe4   : > { %12467 = vst [vmem:[#allocation66_spill] sm:$0xff] %v11334_v25  ;;  %12469 = vst [vmem:[#allocation68_spill] sm:$0xff] %v11338_v6 }
  0xe5   : > { %9056 = vmatmul.mubr.msk.f32.gmra.mrb[20].mxu1 %vm256_vm1, %v11318_v15  ;;  %v11356_v15 = vld [vmem:[#allocation3 + $0x13a] sm:$0xff] }
  0xe6   : > { %9503 = vmatmul.mubr.msk.f32.gmra.mrb[18].mxu0 %vm256_vm1, %v11320_v45  ;;  %9058 = vmatprep.mubr.msk.f32.mxu1 %vm256_vm1, %v11322_v51  ;;  %v11352_v45 = vld [vmem:[#allocation3 + $0x12a] sm:$0xff]  ;;  %12474 = vst [vmem:[#allocation73_spill] sm:$0xff] %v11356_v15 }
  0xe7   : > { %9505 = vmatprep.mubr.msk.f32.mxu0 %vm256_vm1, %v11324_v37  ;;  %v11350_v37 = vld [vmem:[#allocation2 + $0x129] sm:$0xff]  ;;  %12472 = vst [vmem:[#allocation71_spill] sm:$0xff] %v11352_v45  ;;  %v11354_v51 = vld [vmem:[#allocation2 + $0x139] sm:$0xff] }
  0xe8   : > { %12471 = vst [vmem:[#allocation70_spill] sm:$0xff] %v11350_v37  ;;  %12473 = vst [vmem:[#allocation72_spill] sm:$0xff] %v11354_v51 }
  0xe9   : > { %9059 = vmatmul.mubr.msk.f32.gmra.mrb[22].mxu1 %vm256_vm1, %v11334_v25  ;;  %v11372_v25 = vld [vmem:[#allocation3 + $0x152] sm:$0xff] }
  0xea   : > { %9506 = vmatmul.mubr.msk.f32.gmra.mrb[20].mxu0 %vm256_vm1, %v11336_v47  ;;  %9061 = vmatprep.mubr.msk.f32.mxu1 %vm256_vm1, %v11338_v6  ;;  %v11368_v47 = vld [vmem:[#allocation3 + $0x142] sm:$0xff]  ;;  %12478 = vst [vmem:[#allocation77_spill] sm:$0xff] %v11372_v25 }
  0xeb   : > { %9508 = vmatprep.mubr.msk.f32.mxu0 %vm256_vm1, %v11340_v49  ;;  %v11366_v49 = vld [vmem:[#allocation2 + $0x141] sm:$0xff]  ;;  %12476 = vst [vmem:[#allocation75_spill] sm:$0xff] %v11368_v47  ;;  %v11370_v6 = vld [vmem:[#allocation2 + $0x151] sm:$0xff] }
  0xec   : > { %12475 = vst [vmem:[#allocation74_spill] sm:$0xff] %v11366_v49  ;;  %12477 = vst [vmem:[#allocation76_spill] sm:$0xff] %v11370_v6 }
  0xed   : > { %9062 = vmatmul.mubr.msk.f32.gmra.mrb[24].mxu1 %vm256_vm1, %v11350_v37  ;;  %v11388_v37 = vld [vmem:[#allocation3 + $0x16a] sm:$0xff] }
  0xee   : > { %9509 = vmatmul.mubr.msk.f32.gmra.mrb[22].mxu0 %vm256_vm1, %v11352_v45  ;;  %9064 = vmatprep.mubr.msk.f32.mxu1 %vm256_vm1, %v11354_v51  ;;  %v11384_v45 = vld [vmem:[#allocation3 + $0x15a] sm:$0xff]  ;;  %12482 = vst [vmem:[#allocation81_spill] sm:$0xff] %v11388_v37 }
  0xef   : > { %9511 = vmatprep.mubr.msk.f32.mxu0 %vm256_vm1, %v11356_v15  ;;  %v11382_v15 = vld [vmem:[#allocation2 + $0x159] sm:$0xff]  ;;  %12480 = vst [vmem:[#allocation79_spill] sm:$0xff] %v11384_v45  ;;  %v11386_v51 = vld [vmem:[#allocation2 + $0x169] sm:$0xff] }
  0xf0   : > { %12479 = vst [vmem:[#allocation78_spill] sm:$0xff] %v11382_v15  ;;  %12481 = vst [vmem:[#allocation80_spill] sm:$0xff] %v11386_v51 }
  0xf1   : > { %9065 = vmatmul.mubr.msk.f32.gmra.mrb[26].mxu1 %vm256_vm1, %v11366_v49  ;;  %v4372_v49 = vld [vmem:[#allocation3 + $0x182] sm:$0xff] }
  0xf2   : > { %9512 = vmatmul.mubr.msk.f32.gmra.mrb[24].mxu0 %vm256_vm1, %v11368_v47  ;;  %9067 = vmatprep.mubr.msk.f32.mxu1 %vm256_vm1, %v11370_v6  ;;  %v11400_v47 = vld [vmem:[#allocation3 + $0x172] sm:$0xff]  ;;  %v1238_v6 = vld [vmem:[#allocation3 + $0x1] sm:$0xff] }
  0xf3   : > { %9514 = vmatprep.mubr.msk.f32.mxu0 %vm256_vm1, %v11372_v25  ;;  %v11398_v25 = vld [vmem:[#allocation2 + $0x171] sm:$0xff] }
  0xf5   : > { %9068 = vmatmul.mubr.msk.f32.gmra.mrb[28].mxu1 %vm256_vm1, %v11382_v15  ;;  %v1240_v15 = vld [vmem:[#allocation3 + $0x19] sm:$0xff] }
  0xf6   : > { %9515 = vmatmul.mubr.msk.f32.gmra.mrb[26].mxu0 %vm256_vm1, %v11384_v45  ;;  %9070 = vmatprep.mubr.msk.f32.mxu1 %vm256_vm1, %v11386_v51  ;;  %v1239_v45 = vld [vmem:[#allocation3 + $0x9] sm:$0xff] }
  0xf7   : > { %9517 = vmatprep.mubr.msk.f32.mxu0 %vm256_vm1, %v11388_v37  ;;  %v4373_v51 = vld [vmem:[#allocation3 + $0x18a] sm:$0xff]  ;;  %v11413_v37 = vld [vmem:[%s12324_s3 + $0x8] sm:$0xf] }
  0xf9   : > { %9071 = vmatmul.mubr.msk.f32.gmra.mrb[30].mxu1 %vm256_vm1, %v11398_v25 }
  0xfa   : > { %9518 = vmatmul.mubr.msk.f32.gmra.mrb[28].mxu0 %vm256_vm1, %v11400_v47  ;;  %9075 = vmatprep.mubr.msk.f32.mxu1 %vm256_vm1, %v1238_v6  ;;  %v1241_v6 = vld [vmem:[#allocation3 + $0x21] sm:$0xff] }
  0xfb   : > { %9520 = vmatprep.mubr.msk.f32.mxu0 %vm256_vm1, %v4372_v49  ;;  %v11420_v49 = vld [vmem:[#allocation3 + $0x31] sm:$0xff] }
  0xfd   : > { %9076 = vmatmul.mubr.msk.f32.vlgmr.msra.gmra.mrb[0].mxu1 %vm256_vm1, %v1239_v45  ;;  %v11732_v45 = vld [vmem:[#allocation3 + $0x150] sm:$0xff] }
  0xfe   : > { %9521 = vmatmul.mubr.msk.f32.gmra.mrb[30].mxu0 %vm256_vm1, %v4373_v51  ;;  %9078 = vmatprep.mubr.msk.f32.mxu1 %vm256_vm1, %v1240_v15  ;;  %v11427_v51 = vld [vmem:[%s12323_s2 + $0x1c] sm:$0xf]  ;;  %v11730_v15 = vld [vmem:[#allocation3 + $0x140] sm:$0xff] }
  0xff   : > { %9525 = vmatprep.mubr.msk.f32.mxu0 %vm256_vm1, %v10912_v21  ;;  %9124 = vmatpush3.msk.msra.mxu1 %vm653_vm0, %v11159_v40  ;;  %v11436_v21 = vld [vmem:[#allocation3 + $0x39] sm:$0xff]  ;;  %v11440_v40 = vld [vmem:[#allocation3 + $0x49] sm:$0xff] }
 0x100   : > { %9173 = vmatprep.subr.msk.mxu1 %vm653_vm0, %v11413_v37 }
 0x101   : > { %9079 = vmatmul.mubr.msk.f32.gmra.mrb[2].mxu1 %vm256_vm1, %v1241_v6  ;;  %v12499_v6 = vld [vmem:[#allocation20_spill] sm:$0xff] }
 0x102   : > { %9526 = vmatmul.mubr.msk.f32.vlgmr.msra.gmra.mrb[0].mxu0 %vm256_vm1, %v10930_v11  ;;  %9081 = vmatprep.mubr.msk.f32.mxu1 %vm256_vm1, %v11420_v49  ;;  %v11452_v11 = vld [vmem:[#allocation3 + $0x51] sm:$0xff] }
 0x103   : > { %9574 = vmatpush3.msk.msra.mxu0 %vm653_vm0, %v11177_v42  ;;  %9528 = vmatprep.mubr.msk.f32.mxu0 %vm256_vm1, %v10936_v29  ;;  %v11454_v29 = vld [vmem:[#allocation3 + $0x61] sm:$0xff]  ;;  %v11466_v42 = vld [vmem:[#allocation3 + $0x79] sm:$0xff] }
 0x104   : > { %9623 = vmatprep.subr.msk.mxu0 %vm653_vm0, %v11427_v51 }
 0x105   : > { %9082 = vmatmul.mubr.msk.f32.gmra.mrb[4].mxu1 %vm256_vm1, %v11436_v21 }
 0x106   : > { %9529 = vmatmul.mubr.msk.f32.gmra.mrb[2].mxu0 %vm256_vm1, %v10950_v30  ;;  %9084 = vmatprep.mubr.msk.f32.mxu1 %vm256_vm1, %v11440_v40  ;;  %v11464_v30 = vld [vmem:[#allocation3 + $0x69] sm:$0xff] }
 0x107   : > { %9531 = vmatprep.mubr.msk.f32.mxu0 %vm256_vm1, %v10954_v34  ;;  %v11476_v34 = vld [vmem:[#allocation3 + $0x81] sm:$0xff] }
 0x109   : > { %9085 = vmatmul.mubr.msk.f32.gmra.mrb[6].mxu1 %vm256_vm1, %v11452_v11 }
 0x10a   : > { %9532 = vmatmul.mubr.msk.f32.gmra.mrb[4].mxu0 %vm256_vm1, %v10966_v36  ;;  %9087 = vmatprep.mubr.msk.f32.mxu1 %vm256_vm1, %v11454_v29  ;;  %v11478_v36 = vld [vmem:[#allocation3 + $0x91] sm:$0xff] }
 0x10b   : > { %9534 = vmatprep.mubr.msk.f32.mxu0 %vm256_vm1, %v10970_v39  ;;  %v11488_v39 = vld [vmem:[#allocation3 + $0x99] sm:$0xff] }
 0x10d   : > { %9088 = vmatmul.mubr.msk.f32.gmra.mrb[8].mxu1 %vm256_vm1, %v11464_v30 }
 0x10e   : > { %9535 = vmatmul.mubr.msk.f32.gmra.mrb[6].mxu0 %vm256_vm1, %v10982_v41  ;;  %9090 = vmatprep.mubr.msk.f32.mxu1 %vm256_vm1, %v11466_v42  ;;  %v12488_v41 = vld [vmem:[#allocation9_spill] sm:$0xff] }
 0x10f   : > { %9537 = vmatprep.mubr.msk.f32.mxu0 %vm256_vm1, %v10986_v44  ;;  %v11670_v44 = vld [vmem:[#allocation3 + $0xc8] sm:$0xff] }
 0x111   : > { %9091 = vmatmul.mubr.msk.f32.gmra.mrb[10].mxu1 %vm256_vm1, %v11476_v34 }
 0x112   : > { %9538 = vmatmul.mubr.msk.f32.gmra.mrb[8].mxu0 %vm256_vm1, %v10998_v46  ;;  %9093 = vmatprep.mubr.msk.f32.mxu1 %vm256_vm1, %v11478_v36  ;;  %v11672_v46 = vld [vmem:[#allocation3 + $0xd8] sm:$0xff] }
 0x113   : > { %9540 = vmatprep.mubr.msk.f32.mxu0 %vm256_vm1, %v11002_v48  ;;  %v12489_v48 = vld [vmem:[#allocation10_spill] sm:$0xff] }
 0x115   : > { %9094 = vmatmul.mubr.msk.f32.gmra.mrb[12].mxu1 %vm256_vm1, %v11488_v39 }
 0x116   : > { %9541 = vmatmul.mubr.msk.f32.gmra.mrb[10].mxu0 %vm256_vm1, %v11014_v50  ;;  %9096 = vmatprep.mubr.msk.f32.mxu1 %vm256_vm1, %v10732_v1  ;;  %v11554_v1 = vld [vmem:[#allocation2 + $0x180] sm:$0xff]  ;;  %v12490_v50 = vld [vmem:[#allocation11_spill] sm:$0xff] }
 0x117   : > { %9543 = vmatprep.mubr.msk.f32.mxu0 %vm256_vm1, %v11018_v52  ;;  %v11682_v52 = vld [vmem:[#allocation3 + $0xe0] sm:$0xff] }
 0x119   : > { %9097 = vmatmul.mubr.msk.f32.gmra.mrb[14].mxu1 %vm256_vm1, %v10766_v16  ;;  %v11564_v16 = vld [vmem:[#allocation2 + $0x188] sm:$0xff] }
 0x11a   : > { %9544 = vmatmul.mubr.msk.f32.gmra.mrb[12].mxu0 %vm256_vm1, %v11030_v54  ;;  %9099 = vmatprep.mubr.msk.f32.mxu1 %vm256_vm1, %v10769_v18  ;;  %v1982_v18 = vld [vmem:[#allocation2 + $0x2] sm:$0xff] }
 0x11b   : > { %9546 = vmatprep.mubr.msk.f32.mxu0 %vm256_vm1, %v11034_v56  ;;  %v12491_v54 = vld [vmem:[#allocation12_spill] sm:$0xff]  ;;  %v11694_v56 = vld [vmem:[#allocation3 + $0xf8] sm:$0xff] }
 0x11d   : > { %9100 = vmatmul.mubr.msk.f32.gmra.mrb[16].mxu1 %vm256_vm1, %v10777_v20  ;;  %v5117_v20 = vld [vmem:[#allocation2 + $0x198] sm:$0xff] }
 0x11e   : > { %9547 = vmatmul.mubr.msk.f32.gmra.mrb[14].mxu0 %vm256_vm1, %v11046_v59  ;;  %9102 = vmatprep.mubr.msk.f32.mxu1 %vm256_vm1, %v10779_v22  ;;  %v1983_v22 = vld [vmem:[#allocation2 + $0xa] sm:$0xff] }
 0x11f   : > { %9549 = vmatprep.mubr.msk.f32.mxu0 %vm256_vm1, %v11050_v63  ;;  %v12493_v59 = vld [vmem:[#allocation14_spill] sm:$0xff]  ;;  %v11706_v63 = vld [vmem:[#allocation3 + $0x110] sm:$0xff] }
 0x121   : > { %9103 = vmatmul.mubr.msk.f32.gmra.mrb[18].mxu1 %vm256_vm1, %v10787_v24  ;;  %v5118_v24 = vld [vmem:[#allocation2 + $0x1a0] sm:$0xff] }
 0x122   : > { %9550 = vmatmul.mubr.msk.f32.gmra.mrb[16].mxu0 %vm256_vm1, %v11062_v4  ;;  %9105 = vmatprep.mubr.msk.f32.mxu1 %vm256_vm1, %v10789_v26  ;;  %v11572_v26 = vld [vmem:[#allocation3 + $0x30] sm:$0xff] }
 0x123   : > { %9552 = vmatprep.mubr.msk.f32.mxu0 %vm256_vm1, %v11066_v8  ;;  %v12495_v4 = vld [vmem:[#allocation16_spill] sm:$0xff]  ;;  %v12496_v8 = vld [vmem:[#allocation17_spill] sm:$0xff] }
 0x125   : > { %9106 = vmatmul.mubr.msk.f32.gmra.mrb[20].mxu1 %vm256_vm1, %v10794_v28  ;;  %v11579_v28 = vld [vmem:[%s12323_s2 + $0xc] sm:$0xf] }
 0x126   : > { %9553 = vmatmul.mubr.msk.f32.gmra.mrb[18].mxu0 %vm256_vm1, %v11078_v10  ;;  %9108 = vmatprep.mubr.msk.f32.mxu1 %vm256_vm1, %v10799_v31  ;;  %v11585_v31 = vld [vmem:[#allocation3 + $0x38] sm:$0xff] }
 0x127   : > { %9555 = vmatprep.mubr.msk.f32.mxu0 %vm256_vm1, %v11082_v13  ;;  %v11720_v10 = vld [vmem:[#allocation3 + $0x138] sm:$0xff]  ;;  %v12497_v13 = vld [vmem:[#allocation18_spill] sm:$0xff] }
 0x129   : > { %9109 = vmatmul.mubr.msk.f32.gmra.mrb[22].mxu1 %vm256_vm1, %v10808_v38  ;;  %v11589_v38 = vld [vmem:[#allocation3 + $0x48] sm:$0xff] }
 0x12a   : > { %9556 = vmatmul.mubr.msk.f32.gmra.mrb[20].mxu0 %vm256_vm1, %v11094_v9  ;;  %9111 = vmatprep.mubr.msk.f32.mxu1 %vm256_vm1, %v10819_v43  ;;  %v11596_v43 = vld [vmem:[%s12324_s3 + $0x1c] sm:$0xf] }
 0x12b   : > { %9558 = vmatprep.mubr.msk.f32.mxu0 %vm256_vm1, %v11098_v2  ;;  %v11708_v2 = vld [vmem:[#allocation3 + $0x120] sm:$0xff]  ;;  %v11718_v9 = vld [vmem:[#allocation3 + $0x128] sm:$0xff] }
 0x12d   : > { %9112 = vmatmul.mubr.msk.f32.gmra.mrb[24].mxu1 %vm256_vm1, %v10857_v58  ;;  %v11606_v58 = vld [vmem:[#allocation3 + $0x50] sm:$0xff] }
 0x12e   : > { %9559 = vmatmul.mubr.msk.f32.gmra.mrb[22].mxu0 %vm256_vm1, %v11110_v17  ;;  %9114 = vmatprep.mubr.msk.f32.mxu1 %vm256_vm1, %v10861_v60  ;;  %v11610_v60 = vld [vmem:[#allocation3 + $0x60] sm:$0xff]  ;;  %v12498_v17 = vld [vmem:[#allocation19_spill] sm:$0xff] }
 0x12f   : > { %9561 = vmatprep.mubr.msk.f32.mxu0 %vm256_vm1, %v11114_v57  ;;  %v11696_v57 = vld [vmem:[#allocation3 + $0x108] sm:$0xff] }
 0x131   : > { %9115 = vmatmul.mubr.msk.f32.gmra.mrb[26].mxu1 %vm256_vm1, %v10869_v62  ;;  %v11622_v62 = vld [vmem:[#allocation3 + $0x68] sm:$0xff] }
 0x132   : > { %9562 = vmatmul.mubr.msk.f32.gmra.mrb[24].mxu0 %vm256_vm1, %v11126_v61  ;;  %9117 = vmatprep.mubr.msk.f32.mxu1 %vm256_vm1, %v10871_v0  ;;  %v11624_v0 = vld [vmem:[#allocation3 + $0x78] sm:$0xff]  ;;  %v12494_v61 = vld [vmem:[#allocation15_spill] sm:$0xff] }
 0x133   : > { %9564 = vmatprep.mubr.msk.f32.mxu0 %vm256_vm1, %v11130_v53  ;;  %v11684_v53 = vld [vmem:[#allocation3 + $0xf0] sm:$0xff] }
 0x135   : > { %9118 = vmatmul.mubr.msk.f32.gmra.mrb[28].mxu1 %vm256_vm1, %v10879_v3  ;;  %v11634_v3 = vld [vmem:[#allocation3 + $0x80] sm:$0xff] }
 0x136   : > { %9565 = vmatmul.mubr.msk.f32.gmra.mrb[26].mxu0 %vm256_vm1, %v11142_v55  ;;  %9120 = vmatprep.mubr.msk.f32.mxu1 %vm256_vm1, %v10881_v5  ;;  %v11636_v5 = vld [vmem:[#allocation3 + $0x90] sm:$0xff]  ;;  %v12492_v55 = vld [vmem:[#allocation13_spill] sm:$0xff] }
 0x137   : > { %9567 = vmatprep.mubr.msk.f32.mxu0 %vm256_vm1, %v11554_v1 }
 0x139   : > { %9121 = vmatmul.mubr.msk.f32.gmra.mrb[30].mxu1 %vm256_vm1, %v10889_v7  ;;  %v12483_v7 = vld [vmem:[#allocation4_spill] sm:$0xff] }
 0x13a   : > { %9568 = vmatmul.mubr.msk.f32.gmra.mrb[28].mxu0 %vm256_vm1, %v11564_v16  ;;  %9125 = vmatprep.mubr.msk.f32.mxu1 %vm256_vm1, %v1982_v18  ;;  %v11742_v18 = vld [vmem:[#allocation3 + $0x158] sm:$0xff] }
 0x13b   : > { %9570 = vmatprep.mubr.msk.f32.mxu0 %vm256_vm1, %v5117_v20  ;;  %v11744_v20 = vld [vmem:[#allocation3 + $0x168] sm:$0xff] }
 0x13d   : > { %9126 = vmatmul.mubr.msk.f32.vlgmr.msra.gmra.mrb[0].mxu1 %vm256_vm1, %v1983_v22  ;;  %v12501_v22 = vld [vmem:[#allocation22_spill] sm:$0xff] }
 0x13e   : > { %9571 = vmatmul.mubr.msk.f32.gmra.mrb[30].mxu0 %vm256_vm1, %v5118_v24  ;;  %9128 = vmatprep.mubr.msk.f32.mxu1 %vm256_vm1, %v10896_v14  ;;  %v12484_v14 = vld [vmem:[#allocation5_spill] sm:$0xff]  ;;  %v12502_v24 = vld [vmem:[#allocation23_spill] sm:$0xff] }
 0x13f   : > { %9575 = vmatprep.mubr.msk.f32.mxu0 %vm256_vm1, %v11572_v26  ;;  %9174 = vmatpush3.msk.msra.mxu1 %vm653_vm0, %v11413_v37  ;;  %v12487_v37 = vld [vmem:[#allocation8_spill] sm:$0xff] }
 0x140   : > { %9223 = vmatprep.subr.msk.mxu1 %vm653_vm0, %v11579_v28 }
 0x141   : > { %9129 = vmatmul.mubr.msk.f32.gmra.mrb[2].mxu1 %vm256_vm1, %v10908_v19  ;;  %v11646_v19 = vld [vmem:[#allocation3 + $0x98] sm:$0xff] }
 0x142   : > { %9576 = vmatmul.mubr.msk.f32.vlgmr.msra.gmra.mrb[0].mxu0 %vm256_vm1, %v11585_v31  ;;  %9131 = vmatprep.mubr.msk.f32.mxu1 %vm256_vm1, %v10914_v23  ;;  %v11648_v23 = vld [vmem:[#allocation3 + $0xa8] sm:$0xff] }
 0x143   : > { %9624 = vmatpush3.msk.msra.mxu0 %vm653_vm0, %v11427_v51  ;;  %9578 = vmatprep.mubr.msk.f32.mxu0 %vm256_vm1, %v11589_v38  ;;  %v12500_v51 = vld [vmem:[#allocation21_spill] sm:$0xff] }
 0x144   : > { %9673 = vmatprep.subr.msk.mxu0 %vm653_vm0, %v11596_v43 }
 0x145   : > { %9132 = vmatmul.mubr.msk.f32.gmra.mrb[4].mxu1 %vm256_vm1, %v10932_v27  ;;  %v12485_v27 = vld [vmem:[#allocation6_spill] sm:$0xff] }
 0x146   : > { %9579 = vmatmul.mubr.msk.f32.gmra.mrb[2].mxu0 %vm256_vm1, %v11606_v58  ;;  %9134 = vmatprep.mubr.msk.f32.mxu1 %vm256_vm1, %v10938_v32  ;;  %v12486_v32 = vld [vmem:[#allocation7_spill] sm:$0xff] }
 0x147   : > { %9581 = vmatprep.mubr.msk.f32.mxu0 %vm256_vm1, %v11610_v60 }
 0x149   : > { %9135 = vmatmul.mubr.msk.f32.gmra.mrb[6].mxu1 %vm256_vm1, %v10952_v33  ;;  %v11658_v33 = vld [vmem:[#allocation3 + $0xb0] sm:$0xff] }
 0x14a   : > { %9582 = vmatmul.mubr.msk.f32.gmra.mrb[4].mxu0 %vm256_vm1, %v11622_v62  ;;  %9137 = vmatprep.mubr.msk.f32.mxu1 %vm256_vm1, %v10956_v35  ;;  %v11660_v35 = vld [vmem:[#allocation3 + $0xc0] sm:$0xff] }
 0x14b   : > { %9584 = vmatprep.mubr.msk.f32.mxu0 %vm256_vm1, %v11624_v0 }
 0x14d   : > { %9138 = vmatmul.mubr.msk.f32.gmra.mrb[8].mxu1 %vm256_vm1, %v12483_v7  ;;  %v11754_v7 = vld [vmem:[#allocation3 + $0x170] sm:$0xff] }
 0x14e   : > { %9585 = vmatmul.mubr.msk.f32.gmra.mrb[6].mxu0 %vm256_vm1, %v11634_v3  ;;  %9140 = vmatprep.mubr.msk.f32.mxu1 %vm256_vm1, %v12484_v14  ;;  %v11756_v14 = vld [vmem:[#allocation3 + $0x180] sm:$0xff] }
 0x14f   : > { %9587 = vmatprep.mubr.msk.f32.mxu0 %vm256_vm1, %v11636_v5 }
 0x151   : > { %9141 = vmatmul.mubr.msk.f32.gmra.mrb[10].mxu1 %vm256_vm1, %v12485_v27  ;;  %v12503_v27 = vld [vmem:[#allocation24_spill] sm:$0xff] }
 0x152   : > { %9588 = vmatmul.mubr.msk.f32.gmra.mrb[8].mxu0 %vm256_vm1, %v11646_v19  ;;  %9143 = vmatprep.mubr.msk.f32.mxu1 %vm256_vm1, %v12486_v32  ;;  %v12504_v32 = vld [vmem:[#allocation25_spill] sm:$0xff] }
 0x153   : > { %9590 = vmatprep.mubr.msk.f32.mxu0 %vm256_vm1, %v11648_v23 }
 0x155   : > { %9144 = vmatmul.mubr.msk.f32.gmra.mrb[12].mxu1 %vm256_vm1, %v12487_v37  ;;  %v11766_v37 = vld [vmem:[#allocation3 + $0x188] sm:$0xff] }
 0x156   : > { %9591 = vmatmul.mubr.msk.f32.gmra.mrb[10].mxu0 %vm256_vm1, %v11658_v33  ;;  %9146 = vmatprep.mubr.msk.f32.mxu1 %vm256_vm1, %v12488_v41  ;;  %v2014_v41 = vld [vmem:[#allocation3 + $0x2] sm:$0xff] }
 0x157   : > { %9593 = vmatprep.mubr.msk.f32.mxu0 %vm256_vm1, %v11660_v35 }
 0x159   : > { %9147 = vmatmul.mubr.msk.f32.gmra.mrb[14].mxu1 %vm256_vm1, %v12489_v48  ;;  %v5150_v48 = vld [vmem:[#allocation3 + $0x198] sm:$0xff] }
 0x15a   : > { %9594 = vmatmul.mubr.msk.f32.gmra.mrb[12].mxu0 %vm256_vm1, %v11670_v44  ;;  %9149 = vmatprep.mubr.msk.f32.mxu1 %vm256_vm1, %v12490_v50  ;;  %v12505_v50 = vld [vmem:[#allocation26_spill] sm:$0xff] }
 0x15b   : > { %9596 = vmatprep.mubr.msk.f32.mxu0 %vm256_vm1, %v11672_v46 }
 0x15d   : > { %9150 = vmatmul.mubr.msk.f32.gmra.mrb[16].mxu1 %vm256_vm1, %v12491_v54  ;;  %v2015_v54 = vld [vmem:[#allocation3 + $0xa] sm:$0xff] }
 0x15e   : > { %9597 = vmatmul.mubr.msk.f32.gmra.mrb[14].mxu0 %vm256_vm1, %v11682_v52  ;;  %9152 = vmatprep.mubr.msk.f32.mxu1 %vm256_vm1, %v12492_v55  ;;  %v5151_v55 = vld [vmem:[#allocation3 + $0x1a0] sm:$0xff] }
 0x15f   : > { %9599 = vmatprep.mubr.msk.f32.mxu0 %vm256_vm1, %v11684_v53 }
 0x161   : > { %9153 = vmatmul.mubr.msk.f32.gmra.mrb[18].mxu1 %vm256_vm1, %v12493_v59  ;;  %v11779_v59 = vld [vmem:[%s12324_s3 + $0xc] sm:$0xf] }
 0x162   : > { %9600 = vmatmul.mubr.msk.f32.gmra.mrb[16].mxu0 %vm256_vm1, %v11694_v56  ;;  %9155 = vmatprep.mubr.msk.f32.mxu1 %vm256_vm1, %v12494_v61  ;;  %v12506_v61 = vld [vmem:[#allocation27_spill] sm:$0xff] }
 0x163   : > { %9602 = vmatprep.mubr.msk.f32.mxu0 %vm256_vm1, %v11696_v57 }
 0x165   : > { %9156 = vmatmul.mubr.msk.f32.gmra.mrb[20].mxu1 %vm256_vm1, %v12495_v4  ;;  %v11792_v4 = vld [vmem:[%s12323_s2 + $0x20] sm:$0xf] }
 0x166   : > { %9603 = vmatmul.mubr.msk.f32.gmra.mrb[18].mxu0 %vm256_vm1, %v11706_v63  ;;  %9158 = vmatprep.mubr.msk.f32.mxu1 %vm256_vm1, %v12496_v8  ;;  %v12507_v8 = vld [vmem:[#allocation28_spill] sm:$0xff] }
 0x167   : > { %9605 = vmatprep.mubr.msk.f32.mxu0 %vm256_vm1, %v11708_v2 }
 0x169   : > { %9159 = vmatmul.mubr.msk.f32.gmra.mrb[22].mxu1 %vm256_vm1, %v12497_v13  ;;  %v12508_v13 = vld [vmem:[#allocation30_spill] sm:$0xff] }
 0x16a   : > { %9606 = vmatmul.mubr.msk.f32.gmra.mrb[20].mxu0 %vm256_vm1, %v11718_v9  ;;  %9161 = vmatprep.mubr.msk.f32.mxu1 %vm256_vm1, %v12498_v17  ;;  %v12511_v17 = vld [vmem:[#allocation31_spill] sm:$0xff] }
 0x16b   : > { %9608 = vmatprep.mubr.msk.f32.mxu0 %vm256_vm1, %v11720_v10 }
 0x16d   : > { %9162 = vmatmul.mubr.msk.f32.gmra.mrb[24].mxu1 %vm256_vm1, %v12499_v6  ;;  %v12512_v6 = vld [vmem:[#allocation34_spill] sm:$0xff] }
 0x16e   : > { %9609 = vmatmul.mubr.msk.f32.gmra.mrb[22].mxu0 %vm256_vm1, %v11730_v15  ;;  %9164 = vmatprep.mubr.msk.f32.mxu1 %vm256_vm1, %v12500_v51  ;;  %v12513_v51 = vld [vmem:[#allocation33_spill] sm:$0xff] }
 0x16f   : > { %9611 = vmatprep.mubr.msk.f32.mxu0 %vm256_vm1, %v11732_v45 }
 0x171   : > { %9165 = vmatmul.mubr.msk.f32.gmra.mrb[26].mxu1 %vm256_vm1, %v12501_v22  ;;  %v12514_v22 = vld [vmem:[#allocation36_spill] sm:$0xff] }
 0x172   : > { %9612 = vmatmul.mubr.msk.f32.gmra.mrb[24].mxu0 %vm256_vm1, %v11742_v18  ;;  %9167 = vmatprep.mubr.msk.f32.mxu1 %vm256_vm1, %v12502_v24  ;;  %v12516_v24 = vld [vmem:[#allocation38_spill] sm:$0xff] }
 0x173   : > { %9614 = vmatprep.mubr.msk.f32.mxu0 %vm256_vm1, %v11744_v20 }
 0x175   : > { %9168 = vmatmul.mubr.msk.f32.gmra.mrb[28].mxu1 %vm256_vm1, %v12503_v27  ;;  %v12517_v27 = vld [vmem:[#allocation37_spill] sm:$0xff] }
 0x176   : > { %9615 = vmatmul.mubr.msk.f32.gmra.mrb[26].mxu0 %vm256_vm1, %v11754_v7  ;;  %9170 = vmatprep.mubr.msk.f32.mxu1 %vm256_vm1, %v12504_v32  ;;  %v12518_v32 = vld [vmem:[#allocation40_spill] sm:$0xff] }
 0x177   : > { %9617 = vmatprep.mubr.msk.f32.mxu0 %vm256_vm1, %v11756_v14 }
 0x179   : > { %9171 = vmatmul.mubr.msk.f32.gmra.mrb[30].mxu1 %vm256_vm1, %v12505_v50  ;;  %v12521_v50 = vld [vmem:[#allocation41_spill] sm:$0xff] }
 0x17a   : > { %9618 = vmatmul.mubr.msk.f32.gmra.mrb[28].mxu0 %vm256_vm1, %v11766_v37  ;;  %9175 = vmatprep.mubr.msk.f32.mxu1 %vm256_vm1, %v2014_v41  ;;  %v12519_v41 = vld [vmem:[#allocation39_spill] sm:$0xff] }
 0x17b   : > { %9620 = vmatprep.mubr.msk.f32.mxu0 %vm256_vm1, %v5150_v48  ;;  %v12520_v48 = vld [vmem:[#allocation42_spill] sm:$0xff] }
 0x17d   : > { %9176 = vmatmul.mubr.msk.f32.vlgmr.msra.gmra.mrb[0].mxu1 %vm256_vm1, %v2015_v54  ;;  %v12522_v54 = vld [vmem:[#allocation44_spill] sm:$0xff] }
 0x17e   : > { %9621 = vmatmul.mubr.msk.f32.gmra.mrb[30].mxu0 %vm256_vm1, %v5151_v55  ;;  %9178 = vmatprep.mubr.msk.f32.mxu1 %vm256_vm1, %v12506_v61  ;;  %v12523_v55 = vld [vmem:[#allocation43_spill] sm:$0xff]  ;;  %v12524_v61 = vld [vmem:[#allocation46_spill] sm:$0xff] }
 0x17f   : > { %9625 = vmatprep.mubr.msk.f32.mxu0 %vm256_vm1, %v11168_v12  ;;  %9224 = vmatpush3.msk.msra.mxu1 %vm653_vm0, %v11579_v28  ;;  %v12509_v12 = vld [vmem:[#allocation29_spill] sm:$0xff]  ;;  %v12510_v28 = vld [vmem:[#allocation32_spill] sm:$0xff] }
 0x180   : > { %9273 = vmatprep.subr.msk.mxu1 %vm653_vm0, %v11779_v59 }
 0x181   : > { %9179 = vmatmul.mubr.msk.f32.gmra.mrb[2].mxu1 %vm256_vm1, %v12507_v8  ;;  %v12525_v8 = vld [vmem:[#allocation45_spill] sm:$0xff] }
 0x182   : > { %9626 = vmatmul.mubr.msk.f32.vlgmr.msra.gmra.mrb[0].mxu0 %vm256_vm1, %v12508_v13  ;;  %9181 = vmatprep.mubr.msk.f32.mxu1 %vm256_vm1, %v12509_v12  ;;  %v12526_v13 = vld [vmem:[#allocation48_spill] sm:$0xff]  ;;  %v12527_v12 = vld [vmem:[#allocation47_spill] sm:$0xff] }
 0x183   : > { %9674 = vmatpush3.msk.msra.mxu0 %vm653_vm0, %v11596_v43  ;;  %9628 = vmatprep.mubr.msk.f32.mxu0 %vm256_vm1, %v12510_v28  ;;  %v12515_v43 = vld [vmem:[#allocation35_spill] sm:$0xff]  ;;  %v12528_v28 = vld [vmem:[#allocation50_spill] sm:$0xff] }
 0x184   : > { %9723 = vmatprep.subr.msk.mxu0 %vm653_vm0, %v11792_v4 }
 0x185   : > { %9182 = vmatmul.mubr.msk.f32.gmra.mrb[4].mxu1 %vm256_vm1, %v12511_v17  ;;  %v12529_v17 = vld [vmem:[#allocation49_spill] sm:$0xff] }
 0x186   : > { %9629 = vmatmul.mubr.msk.f32.gmra.mrb[2].mxu0 %vm256_vm1, %v12512_v6  ;;  %9184 = vmatprep.mubr.msk.f32.mxu1 %vm256_vm1, %v12513_v51  ;;  %v12530_v6 = vld [vmem:[#allocation52_spill] sm:$0xff]  ;;  %v12531_v51 = vld [vmem:[#allocation51_spill] sm:$0xff] }
 0x187   : > { %9631 = vmatprep.mubr.msk.f32.mxu0 %vm256_vm1, %v12514_v22  ;;  %v12532_v22 = vld [vmem:[#allocation54_spill] sm:$0xff] }
 0x189   : > { %9185 = vmatmul.mubr.msk.f32.gmra.mrb[6].mxu1 %vm256_vm1, %v12515_v43  ;;  %v12533_v43 = vld [vmem:[#allocation53_spill] sm:$0xff] }
 0x18a   : > { %9632 = vmatmul.mubr.msk.f32.gmra.mrb[4].mxu0 %vm256_vm1, %v12516_v24  ;;  %9187 = vmatprep.mubr.msk.f32.mxu1 %vm256_vm1, %v12517_v27  ;;  %v12534_v24 = vld [vmem:[#allocation56_spill] sm:$0xff]  ;;  %v12535_v27 = vld [vmem:[#allocation55_spill] sm:$0xff] }
 0x18b   : > { %9634 = vmatprep.mubr.msk.f32.mxu0 %vm256_vm1, %v12518_v32  ;;  %v12536_v32 = vld [vmem:[#allocation58_spill] sm:$0xff] }
 0x18d   : > { %9188 = vmatmul.mubr.msk.f32.gmra.mrb[8].mxu1 %vm256_vm1, %v12519_v41  ;;  %v12537_v41 = vld [vmem:[#allocation57_spill] sm:$0xff] }
 0x18e   : > { %9635 = vmatmul.mubr.msk.f32.gmra.mrb[6].mxu0 %vm256_vm1, %v12520_v48  ;;  %9190 = vmatprep.mubr.msk.f32.mxu1 %vm256_vm1, %v12521_v50  ;;  %v12538_v48 = vld [vmem:[#allocation60_spill] sm:$0xff]  ;;  %v12539_v50 = vld [vmem:[#allocation59_spill] sm:$0xff] }
 0x18f   : > { %9637 = vmatprep.mubr.msk.f32.mxu0 %vm256_vm1, %v12522_v54  ;;  %v12540_v54 = vld [vmem:[#allocation62_spill] sm:$0xff] }
 0x191   : > { %9191 = vmatmul.mubr.msk.f32.gmra.mrb[10].mxu1 %vm256_vm1, %v12523_v55  ;;  %v12541_v55 = vld [vmem:[#allocation61_spill] sm:$0xff] }
 0x192   : > { %9638 = vmatmul.mubr.msk.f32.gmra.mrb[8].mxu0 %vm256_vm1, %v12524_v61  ;;  %9193 = vmatprep.mubr.msk.f32.mxu1 %vm256_vm1, %v12525_v8  ;;  %v12542_v61 = vld [vmem:[#allocation64_spill] sm:$0xff]  ;;  %v12543_v8 = vld [vmem:[#allocation63_spill] sm:$0xff] }
 0x193   : > { %9640 = vmatprep.mubr.msk.f32.mxu0 %vm256_vm1, %v12526_v13  ;;  %v12544_v13 = vld [vmem:[#allocation66_spill] sm:$0xff] }
 0x195   : > { %9194 = vmatmul.mubr.msk.f32.gmra.mrb[12].mxu1 %vm256_vm1, %v12527_v12  ;;  %v12545_v12 = vld [vmem:[#allocation65_spill] sm:$0xff] }
 0x196   : > { %9641 = vmatmul.mubr.msk.f32.gmra.mrb[10].mxu0 %vm256_vm1, %v12528_v28  ;;  %9196 = vmatprep.mubr.msk.f32.mxu1 %vm256_vm1, %v12529_v17  ;;  %v12546_v28 = vld [vmem:[#allocation68_spill] sm:$0xff]  ;;  %v12547_v17 = vld [vmem:[#allocation67_spill] sm:$0xff] }
 0x197   : > { %9643 = vmatprep.mubr.msk.f32.mxu0 %vm256_vm1, %v12530_v6  ;;  %v12548_v6 = vld [vmem:[#allocation70_spill] sm:$0xff] }
 0x199   : > { %9197 = vmatmul.mubr.msk.f32.gmra.mrb[14].mxu1 %vm256_vm1, %v12531_v51  ;;  %v12549_v51 = vld [vmem:[#allocation69_spill] sm:$0xff] }
 0x19a   : > { %9644 = vmatmul.mubr.msk.f32.gmra.mrb[12].mxu0 %vm256_vm1, %v12532_v22  ;;  %9199 = vmatprep.mubr.msk.f32.mxu1 %vm256_vm1, %v12533_v43  ;;  %v12550_v22 = vld [vmem:[#allocation72_spill] sm:$0xff]  ;;  %v12551_v43 = vld [vmem:[#allocation71_spill] sm:$0xff] }
 0x19b   : > { %9646 = vmatprep.mubr.msk.f32.mxu0 %vm256_vm1, %v12534_v24  ;;  %v12552_v24 = vld [vmem:[#allocation74_spill] sm:$0xff] }
 0x19d   : > { %9200 = vmatmul.mubr.msk.f32.gmra.mrb[16].mxu1 %vm256_vm1, %v12535_v27  ;;  %v12553_v27 = vld [vmem:[#allocation73_spill] sm:$0xff] }
 0x19e   : > { %9647 = vmatmul.mubr.msk.f32.gmra.mrb[14].mxu0 %vm256_vm1, %v12536_v32  ;;  %9202 = vmatprep.mubr.msk.f32.mxu1 %vm256_vm1, %v12537_v41  ;;  %v12554_v32 = vld [vmem:[#allocation76_spill] sm:$0xff]  ;;  %v12555_v41 = vld [vmem:[#allocation75_spill] sm:$0xff] }
 0x19f   : > { %9649 = vmatprep.mubr.msk.f32.mxu0 %vm256_vm1, %v12538_v48  ;;  %v12556_v48 = vld [vmem:[#allocation78_spill] sm:$0xff] }
 0x1a1   : > { %9203 = vmatmul.mubr.msk.f32.gmra.mrb[18].mxu1 %vm256_vm1, %v12539_v50  ;;  %v12557_v50 = vld [vmem:[#allocation77_spill] sm:$0xff] }
 0x1a2   : > { %9650 = vmatmul.mubr.msk.f32.gmra.mrb[16].mxu0 %vm256_vm1, %v12540_v54  ;;  %9205 = vmatprep.mubr.msk.f32.mxu1 %vm256_vm1, %v12541_v55  ;;  %v12558_v54 = vld [vmem:[#allocation80_spill] sm:$0xff] }
 0x1a3   : > { %9652 = vmatprep.mubr.msk.f32.mxu0 %vm256_vm1, %v12542_v61  ;;  %v11902_v55 = vld [vmem:[#allocation2 + $0x181] sm:$0xff]  ;;  %v12559_v61 = vld [vmem:[#allocation79_spill] sm:$0xff] }
 0x1a5   : > { %9206 = vmatmul.mubr.msk.f32.gmra.mrb[20].mxu1 %vm256_vm1, %v12543_v8  ;;  %v12560_v8 = vld [vmem:[#allocation81_spill] sm:$0xff] }
 0x1a6   : > { %9653 = vmatmul.mubr.msk.f32.gmra.mrb[18].mxu0 %vm256_vm1, %v12544_v13  ;;  %9208 = vmatprep.mubr.msk.f32.mxu1 %vm256_vm1, %v12545_v12  ;;  %v11912_v13 = vld [vmem:[#allocation2 + $0x189] sm:$0xff]  ;;  %v2758_v12 = vld [vmem:[#allocation2 + $0x18] sm:$0xff] }
 0x1a7   : > { %9655 = vmatprep.mubr.msk.f32.mxu0 %vm256_vm1, %v12546_v28  ;;  %v5894_v28 = vld [vmem:[#allocation2 + $0x199] sm:$0xff] }
 0x1a9   : > { %9209 = vmatmul.mubr.msk.f32.gmra.mrb[22].mxu1 %vm256_vm1, %v12547_v17  ;;  %v5895_v17 = vld [vmem:[#allocation2 + $0x1a1] sm:$0xff] }
 0x1aa   : > { %9656 = vmatmul.mubr.msk.f32.gmra.mrb[20].mxu0 %vm256_vm1, %v12548_v6  ;;  %9211 = vmatprep.mubr.msk.f32.mxu1 %vm256_vm1, %v12549_v51  ;;  %v2760_v6 = vld [vmem:[#allocation2 + $0x30] sm:$0xff] }
 0x1ab   : > { %9658 = vmatprep.mubr.msk.f32.mxu0 %vm256_vm1, %v12550_v22  ;;  %v11925_v51 = vld [vmem:[%s12323_s2 + $0x10] sm:$0xf]  ;;  %v2762_v22 = vld [vmem:[#allocation2 + $0x48] sm:$0xff] }
 0x1ad   : > { %9212 = vmatmul.mubr.msk.f32.gmra.mrb[24].mxu1 %vm256_vm1, %v12551_v43  ;;  %v11937_v43 = vld [vmem:[%s12324_s3 + $0x20] sm:$0xf] }
 0x1ae   : > { %9659 = vmatmul.mubr.msk.f32.gmra.mrb[22].mxu0 %vm256_vm1, %v12552_v24  ;;  %9214 = vmatprep.mubr.msk.f32.mxu1 %vm256_vm1, %v12553_v27  ;;  %v2768_v24 = vld [vmem:[#allocation2 + $0x90] sm:$0xff]  ;;  %v5907_v27 = vld [vmem:[#allocation3 + $0xb1] sm:$0xff] }
 0x1af   : > { %9661 = vmatprep.mubr.msk.f32.mxu0 %vm256_vm1, %v12554_v32  ;;  %v5908_v32 = vld [vmem:[#allocation3 + $0xc1] sm:$0xff] }
 0x1b1   : > { %9215 = vmatmul.mubr.msk.f32.gmra.mrb[26].mxu1 %vm256_vm1, %v12555_v41  ;;  %v5909_v41 = vld [vmem:[#allocation3 + $0xc9] sm:$0xff] }
 0x1b2   : > { %9662 = vmatmul.mubr.msk.f32.gmra.mrb[24].mxu0 %vm256_vm1, %v12556_v48  ;;  %9217 = vmatprep.mubr.msk.f32.mxu1 %vm256_vm1, %v12557_v50  ;;  %v2774_v48 = vld [vmem:[#allocation2 + $0xd8] sm:$0xff]  ;;  %v2775_v50 = vld [vmem:[#allocation2 + $0xe0] sm:$0xff] }
 0x1b3   : > { %9664 = vmatprep.mubr.msk.f32.mxu0 %vm256_vm1, %v12558_v54  ;;  %v5911_v54 = vld [vmem:[#allocation3 + $0xe1] sm:$0xff] }
 0x1b5   : > { %9218 = vmatmul.mubr.msk.f32.gmra.mrb[28].mxu1 %vm256_vm1, %v12559_v61  ;;  %v2776_v61 = vld [vmem:[#allocation2 + $0xf0] sm:$0xff] }
 0x1b6   : > { %9665 = vmatmul.mubr.msk.f32.gmra.mrb[26].mxu0 %vm256_vm1, %v11398_v25  ;;  %9220 = vmatprep.mubr.msk.f32.mxu1 %vm256_vm1, %v12560_v8  ;;  %v2759_v25 = vld [vmem:[#allocation2 + $0x20] sm:$0xff] }
 0x1b7   : > { %9667 = vmatprep.mubr.msk.f32.mxu0 %vm256_vm1, %v11902_v55  ;;  %v5912_v8 = vld [vmem:[#allocation3 + $0xf1] sm:$0xff] }
 0x1b9   : > { %9221 = vmatmul.mubr.msk.f32.gmra.mrb[30].mxu1 %vm256_vm1, %v11400_v47  ;;  %v2761_v47 = vld [vmem:[#allocation2 + $0x38] sm:$0xff] }
 0x1ba   : > { %9668 = vmatmul.mubr.msk.f32.gmra.mrb[28].mxu0 %vm256_vm1, %v11912_v13  ;;  %9225 = vmatprep.mubr.msk.f32.mxu1 %vm256_vm1, %v2758_v12  ;;  %v2777_v12 = vld [vmem:[#allocation2 + $0xf8] sm:$0xff] }
 0x1bb   : > { %9670 = vmatprep.mubr.msk.f32.mxu0 %vm256_vm1, %v5894_v28  ;;  %v5913_v28 = vld [vmem:[#allocation3 + $0xf9] sm:$0xff] }
 0x1bd   : > { %9226 = vmatmul.mubr.msk.f32.vlgmr.msra.gmra.mrb[0].mxu1 %vm256_vm1, %v2759_v25  ;;  %v2778_v25 = vld [vmem:[#allocation2 + $0x108] sm:$0xff] }
 0x1be   : > { %9671 = vmatmul.mubr.msk.f32.gmra.mrb[30].mxu0 %vm256_vm1, %v5895_v17  ;;  %9228 = vmatprep.mubr.msk.f32.mxu1 %vm256_vm1, %v2760_v6  ;;  %v5914_v17 = vld [vmem:[#allocation3 + $0x109] sm:$0xff]  ;;  %v2779_v6 = vld [vmem:[#allocation2 + $0x110] sm:$0xff] }
 0x1bf   : > { %9675 = vmatprep.mubr.msk.f32.mxu0 %vm256_vm1, %v11420_v49  ;;  %9274 = vmatpush3.msk.msra.mxu1 %vm653_vm0, %v11779_v59  ;;  %v2763_v49 = vld [vmem:[#allocation2 + $0x50] sm:$0xff]  ;;  %v2764_v59 = vld [vmem:[#allocation2 + $0x60] sm:$0xff] }
 0x1c0   : > { %9323 = vmatprep.subr.msk.mxu1 %vm653_vm0, %v11925_v51 }
 0x1c1   : > { %9229 = vmatmul.mubr.msk.f32.gmra.mrb[2].mxu1 %vm256_vm1, %v2761_v47  ;;  %v5915_v47 = vld [vmem:[#allocation3 + $0x111] sm:$0xff] }
 0x1c2   : > { %9676 = vmatmul.mubr.msk.f32.vlgmr.msra.gmra.mrb[0].mxu0 %vm256_vm1, %v11436_v21  ;;  %9231 = vmatprep.mubr.msk.f32.mxu1 %vm256_vm1, %v2762_v22  ;;  %v2765_v21 = vld [vmem:[#allocation2 + $0x68] sm:$0xff]  ;;  %v2780_v22 = vld [vmem:[#allocation2 + $0x120] sm:$0xff] }
 0x1c3   : > { %9724 = vmatpush3.msk.msra.mxu0 %vm653_vm0, %v11792_v4  ;;  %9678 = vmatprep.mubr.msk.f32.mxu0 %vm256_vm1, %v11440_v40  ;;  %v2766_v4 = vld [vmem:[#allocation2 + $0x78] sm:$0xff]  ;;  %v2767_v40 = vld [vmem:[#allocation2 + $0x80] sm:$0xff] }
 0x1c4   : > { %9773 = vmatprep.subr.msk.mxu0 %vm653_vm0, %v11937_v43 }
 0x1c5   : > { %9232 = vmatmul.mubr.msk.f32.gmra.mrb[4].mxu1 %vm256_vm1, %v2763_v49  ;;  %v5916_v49 = vld [vmem:[#allocation3 + $0x121] sm:$0xff] }
 0x1c6   : > { %9679 = vmatmul.mubr.msk.f32.gmra.mrb[2].mxu0 %vm256_vm1, %v11452_v11  ;;  %9234 = vmatprep.mubr.msk.f32.mxu1 %vm256_vm1, %v2764_v59  ;;  %v2769_v11 = vld [vmem:[#allocation2 + $0x98] sm:$0xff]  ;;  %v2781_v59 = vld [vmem:[#allocation2 + $0x128] sm:$0xff] }
 0x1c7   : > { %9681 = vmatprep.mubr.msk.f32.mxu0 %vm256_vm1, %v11454_v29  ;;  %v2770_v29 = vld [vmem:[#allocation2 + $0xa8] sm:$0xff] }
 0x1c9   : > { %9235 = vmatmul.mubr.msk.f32.gmra.mrb[6].mxu1 %vm256_vm1, %v2765_v21  ;;  %v5917_v21 = vld [vmem:[#allocation3 + $0x129] sm:$0xff] }
 0x1ca   : > { %9682 = vmatmul.mubr.msk.f32.gmra.mrb[4].mxu0 %vm256_vm1, %v11464_v30  ;;  %9237 = vmatprep.mubr.msk.f32.mxu1 %vm256_vm1, %v2766_v4  ;;  %v5906_v30 = vld [vmem:[#allocation3 + $0xa9] sm:$0xff] }
 0x1cb   : > { %9684 = vmatprep.mubr.msk.f32.mxu0 %vm256_vm1, %v11466_v42  ;;  %v2771_v42 = vld [vmem:[#allocation2 + $0xb0] sm:$0xff]  ;;  %v2782_v4 = vld [vmem:[#allocation2 + $0x138] sm:$0xff] }
 0x1cd   : > { %9238 = vmatmul.mubr.msk.f32.gmra.mrb[8].mxu1 %vm256_vm1, %v2767_v40  ;;  %v5918_v40 = vld [vmem:[#allocation3 + $0x139] sm:$0xff] }
 0x1ce   : > { %9685 = vmatmul.mubr.msk.f32.gmra.mrb[6].mxu0 %vm256_vm1, %v11476_v34  ;;  %9240 = vmatprep.mubr.msk.f32.mxu1 %vm256_vm1, %v2768_v24  ;;  %v2772_v34 = vld [vmem:[#allocation2 + $0xc0] sm:$0xff] }
 0x1cf   : > { %9687 = vmatprep.mubr.msk.f32.mxu0 %vm256_vm1, %v11478_v36  ;;  %v2773_v36 = vld [vmem:[#allocation2 + $0xc8] sm:$0xff]  ;;  %v2783_v24 = vld [vmem:[#allocation2 + $0x140] sm:$0xff] }
 0x1d1   : > { %9241 = vmatmul.mubr.msk.f32.gmra.mrb[10].mxu1 %vm256_vm1, %v2769_v11  ;;  %v5919_v11 = vld [vmem:[#allocation3 + $0x141] sm:$0xff] }
 0x1d2   : > { %9688 = vmatmul.mubr.msk.f32.gmra.mrb[8].mxu0 %vm256_vm1, %v11488_v39  ;;  %9243 = vmatprep.mubr.msk.f32.mxu1 %vm256_vm1, %v2770_v29  ;;  %v5910_v39 = vld [vmem:[#allocation3 + $0xd9] sm:$0xff] }
 0x1d3   : > { %9690 = vmatprep.mubr.msk.f32.mxu0 %vm256_vm1, %v5906_v30  ;;  %v2784_v29 = vld [vmem:[#allocation2 + $0x150] sm:$0xff]  ;;  %v5920_v30 = vld [vmem:[#allocation3 + $0x151] sm:$0xff] }
 0x1d5   : > { %9244 = vmatmul.mubr.msk.f32.gmra.mrb[12].mxu1 %vm256_vm1, %v2771_v42  ;;  %v2785_v42 = vld [vmem:[#allocation2 + $0x158] sm:$0xff] }
 0x1d6   : > { %9691 = vmatmul.mubr.msk.f32.gmra.mrb[10].mxu0 %vm256_vm1, %v5907_v27  ;;  %9246 = vmatprep.mubr.msk.f32.mxu1 %vm256_vm1, %v2772_v34  ;;  %v5921_v27 = vld [vmem:[#allocation3 + $0x159] sm:$0xff] }
 0x1d7   : > { %9693 = vmatprep.mubr.msk.f32.mxu0 %vm256_vm1, %v5908_v32  ;;  %v2786_v34 = vld [vmem:[#allocation2 + $0x168] sm:$0xff]  ;;  %v5922_v32 = vld [vmem:[#allocation3 + $0x169] sm:$0xff] }
 0x1d9   : > { %9247 = vmatmul.mubr.msk.f32.gmra.mrb[14].mxu1 %vm256_vm1, %v2773_v36  ;;  %v2787_v36 = vld [vmem:[#allocation2 + $0x170] sm:$0xff] }
 0x1da   : > { %9694 = vmatmul.mubr.msk.f32.gmra.mrb[12].mxu0 %vm256_vm1, %v5909_v41  ;;  %9249 = vmatprep.mubr.msk.f32.mxu1 %vm256_vm1, %v2774_v48  ;;  %v5923_v41 = vld [vmem:[#allocation3 + $0x171] sm:$0xff]  ;;  %v5924_v48 = vld [vmem:[#allocation3 + $0x181] sm:$0xff] }
 0x1db   : > { %9696 = vmatprep.mubr.msk.f32.mxu0 %vm256_vm1, %v5910_v39  ;;  %v5925_v39 = vld [vmem:[#allocation3 + $0x189] sm:$0xff] }
 0x1dd   : > { %9250 = vmatmul.mubr.msk.f32.gmra.mrb[16].mxu1 %vm256_vm1, %v2775_v50  ;;  %v2790_v50 = vld [vmem:[#allocation3 + $0x18] sm:$0xff] }
 0x1de   : > { %9697 = vmatmul.mubr.msk.f32.gmra.mrb[14].mxu0 %vm256_vm1, %v5911_v54  ;;  %9252 = vmatprep.mubr.msk.f32.mxu1 %vm256_vm1, %v2776_v61  ;;  %v5926_v54 = vld [vmem:[#allocation3 + $0x199] sm:$0xff] }
 0x1df   : > { %9699 = vmatprep.mubr.msk.f32.mxu0 %vm256_vm1, %v5912_v8  ;;  %v2791_v61 = vld [vmem:[#allocation3 + $0x20] sm:$0xff] }
 0x1e0   : > { %v5927_v8 = vld [vmem:[#allocation3 + $0x1a1] sm:$0xff] }
 0x1e1   : > { %9253 = vmatmul.mubr.msk.f32.gmra.mrb[18].mxu1 %vm256_vm1, %v2777_v12  ;;  %v6640_v12 = vld [vmem:[#allocation2 + $0x32] sm:$0xff] }
 0x1e2   : > { %9700 = vmatmul.mubr.msk.f32.gmra.mrb[16].mxu0 %vm256_vm1, %v5913_v28  ;;  %9255 = vmatprep.mubr.msk.f32.mxu1 %vm256_vm1, %v2778_v25  ;;  %v6643_v28 = vld [vmem:[#allocation2 + $0x52] sm:$0xff] }
 0x1e3   : > { %9702 = vmatprep.mubr.msk.f32.mxu0 %vm256_vm1, %v5914_v17  ;;  %v3536_v25 = vld [vmem:[#allocation2 + $0x31] sm:$0xff]  ;;  %v6672_v17 = vld [vmem:[#allocation3 + $0x32] sm:$0xff] }
 0x1e5   : > { %9256 = vmatmul.mubr.msk.f32.gmra.mrb[20].mxu1 %vm256_vm1, %v2779_v6  ;;  %v3538_v6 = vld [vmem:[#allocation2 + $0x49] sm:$0xff] }
 0x1e6   : > { %9703 = vmatmul.mubr.msk.f32.gmra.mrb[18].mxu0 %vm256_vm1, %v5915_v47  ;;  %9258 = vmatprep.mubr.msk.f32.mxu1 %vm256_vm1, %v2780_v22  ;;  %v6674_v47 = vld [vmem:[#allocation3 + $0x4a] sm:$0xff]  ;;  %v3539_v22 = vld [vmem:[#allocation2 + $0x51] sm:$0xff] }
 0x1e7   : > { %9705 = vmatprep.mubr.msk.f32.mxu0 %vm256_vm1, %v5916_v49  ;;  %v6675_v49 = vld [vmem:[#allocation3 + $0x52] sm:$0xff] }
 0x1e9   : > { %9259 = vmatmul.mubr.msk.f32.gmra.mrb[22].mxu1 %vm256_vm1, %v2781_v59  ;;  %v3540_v59 = vld [vmem:[#allocation2 + $0x61] sm:$0xff] }
 0x1ea   : > { %9706 = vmatmul.mubr.msk.f32.gmra.mrb[20].mxu0 %vm256_vm1, %v5917_v21  ;;  %9261 = vmatprep.mubr.msk.f32.mxu1 %vm256_vm1, %v2782_v4  ;;  %v6676_v21 = vld [vmem:[#allocation3 + $0x62] sm:$0xff]  ;;  %v3541_v4 = vld [vmem:[#allocation2 + $0x69] sm:$0xff] }
 0x1eb   : > { %9708 = vmatprep.mubr.msk.f32.mxu0 %vm256_vm1, %v5918_v40  ;;  %v6677_v40 = vld [vmem:[#allocation3 + $0x6a] sm:$0xff] }
 0x1ed   : > { %9262 = vmatmul.mubr.msk.f32.gmra.mrb[24].mxu1 %vm256_vm1, %v2783_v24  ;;  %v3542_v24 = vld [vmem:[#allocation2 + $0x79] sm:$0xff] }
 0x1ee   : > { %9709 = vmatmul.mubr.msk.f32.gmra.mrb[22].mxu0 %vm256_vm1, %v5919_v11  ;;  %9264 = vmatprep.mubr.msk.f32.mxu1 %vm256_vm1, %v2784_v29  ;;  %v6678_v11 = vld [vmem:[#allocation3 + $0x7a] sm:$0xff]  ;;  %v3543_v29 = vld [vmem:[#allocation2 + $0x81] sm:$0xff] }
 0x1ef   : > { %9711 = vmatprep.mubr.msk.f32.mxu0 %vm256_vm1, %v5920_v30  ;;  %v6679_v30 = vld [vmem:[#allocation3 + $0x82] sm:$0xff] }
 0x1f1   : > { %9265 = vmatmul.mubr.msk.f32.gmra.mrb[26].mxu1 %vm256_vm1, %v2785_v42  ;;  %v3544_v42 = vld [vmem:[#allocation2 + $0x91] sm:$0xff] }
 0x1f2   : > { %9712 = vmatmul.mubr.msk.f32.gmra.mrb[24].mxu0 %vm256_vm1, %v5921_v27  ;;  %9267 = vmatprep.mubr.msk.f32.mxu1 %vm256_vm1, %v2786_v34  ;;  %v6680_v27 = vld [vmem:[#allocation3 + $0x92] sm:$0xff]  ;;  %v3545_v34 = vld [vmem:[#allocation2 + $0x99] sm:$0xff] }
 0x1f3   : > { %9714 = vmatprep.mubr.msk.f32.mxu0 %vm256_vm1, %v5922_v32  ;;  %v6681_v32 = vld [vmem:[#allocation3 + $0x9a] sm:$0xff] }
 0x1f5   : > { %9268 = vmatmul.mubr.msk.f32.gmra.mrb[28].mxu1 %vm256_vm1, %v2787_v36  ;;  %v3546_v36 = vld [vmem:[#allocation2 + $0xa9] sm:$0xff] }
 0x1f6   : > { %9715 = vmatmul.mubr.msk.f32.gmra.mrb[26].mxu0 %vm256_vm1, %v5923_v41  ;;  %9270 = vmatprep.mubr.msk.f32.mxu1 %vm256_vm1, %v11554_v1  ;;  %v6641_v1 = vld [vmem:[#allocation2 + $0x3a] sm:$0xff] }
 0x1f7   : > { %9717 = vmatprep.mubr.msk.f32.mxu0 %vm256_vm1, %v5924_v48  ;;  %v6682_v41 = vld [vmem:[#allocation3 + $0xaa] sm:$0xff]  ;;  %v3547_v48 = vld [vmem:[#allocation2 + $0xb1] sm:$0xff] }
 0x1f9   : > { %9271 = vmatmul.mubr.msk.f32.gmra.mrb[30].mxu1 %vm256_vm1, %v11564_v16  ;;  %v6642_v16 = vld [vmem:[#allocation2 + $0x4a] sm:$0xff] }
 0x1fa   : > { %9718 = vmatmul.mubr.msk.f32.gmra.mrb[28].mxu0 %vm256_vm1, %v5925_v39  ;;  %9275 = vmatprep.mubr.msk.f32.mxu1 %vm256_vm1, %v2790_v50  ;;  %v6683_v39 = vld [vmem:[#allocation3 + $0xb2] sm:$0xff] }
 0x1fb   : > { %9720 = vmatprep.mubr.msk.f32.mxu0 %vm256_vm1, %v5926_v54  ;;  %v3548_v50 = vld [vmem:[#allocation2 + $0xc1] sm:$0xff]  ;;  %v6684_v54 = vld [vmem:[#allocation3 + $0xc2] sm:$0xff] }
 0x1fd   : > { %9276 = vmatmul.mubr.msk.f32.vlgmr.msra.gmra.mrb[0].mxu1 %vm256_vm1, %v2791_v61  ;;  %v3549_v61 = vld [vmem:[#allocation2 + $0xc9] sm:$0xff] }
 0x1fe   : > { %9721 = vmatmul.mubr.msk.f32.gmra.mrb[30].mxu0 %vm256_vm1, %v5927_v8  ;;  %9278 = vmatprep.mubr.msk.f32.mxu1 %vm256_vm1, %v11572_v26  ;;  %v6644_v26 = vld [vmem:[#allocation2 + $0x62] sm:$0xff]  ;;  %v6685_v8 = vld [vmem:[#allocation3 + $0xca] sm:$0xff] }
 0x1ff   : > { %9725 = vmatprep.mubr.msk.f32.mxu0 %vm256_vm1, %v6640_v12  ;;  %9324 = vmatpush3.msk.msra.mxu1 %vm653_vm0, %v11925_v51  ;;  %v6646_v51 = vld [vmem:[#allocation2 + $0x7a] sm:$0xff] }
 0x200   : > { %v3550_v12 = vld [vmem:[#allocation2 + $0xd9] sm:$0xff] }
 0x201   : > { %9279 = vmatmul.mubr.msk.f32.gmra.mrb[2].mxu1 %vm256_vm1, %v11585_v31  ;;  %v6645_v31 = vld [vmem:[#allocation2 + $0x6a] sm:$0xff] }
 0x202   : > { %9726 = vmatmul.mubr.msk.f32.vlgmr.msra.gmra.mrb[0].mxu0 %vm256_vm1, %v6641_v1  ;;  %9281 = vmatprep.mubr.msk.f32.mxu1 %vm256_vm1, %v11589_v38  ;;  %v6647_v38 = vld [vmem:[#allocation2 + $0x82] sm:$0xff]  ;;  %v6686_v1 = vld [vmem:[#allocation3 + $0xda] sm:$0xff] }
 0x203   : > { %9774 = vmatpush3.msk.msra.mxu0 %vm653_vm0, %v11937_v43  ;;  %9728 = vmatprep.mubr.msk.f32.mxu0 %vm256_vm1, %v6642_v16  ;;  %v6670_v43 = vld [vmem:[#allocation2 + $0x19a] sm:$0xff] }
 0x204   : > { %v3551_v16 = vld [vmem:[#allocation2 + $0xe1] sm:$0xff] }
 0x205   : > { %9282 = vmatmul.mubr.msk.f32.gmra.mrb[4].mxu1 %vm256_vm1, %v11606_v58  ;;  %v6648_v58 = vld [vmem:[#allocation2 + $0x92] sm:$0xff] }
 0x206   : > { %9729 = vmatmul.mubr.msk.f32.gmra.mrb[2].mxu0 %vm256_vm1, %v6643_v28  ;;  %9284 = vmatprep.mubr.msk.f32.mxu1 %vm256_vm1, %v11610_v60  ;;  %v6649_v60 = vld [vmem:[#allocation2 + $0x9a] sm:$0xff]  ;;  %v6687_v28 = vld [vmem:[#allocation3 + $0xe2] sm:$0xff] }
 0x207   : > { %9731 = vmatprep.mubr.msk.f32.mxu0 %vm256_vm1, %v6644_v26  ;;  %v3552_v26 = vld [vmem:[#allocation2 + $0xf1] sm:$0xff] }
 0x209   : > { %9285 = vmatmul.mubr.msk.f32.gmra.mrb[6].mxu1 %vm256_vm1, %v11622_v62  ;;  %v6650_v62 = vld [vmem:[#allocation2 + $0xaa] sm:$0xff] }
 0x20a   : > { %9732 = vmatmul.mubr.msk.f32.gmra.mrb[4].mxu0 %vm256_vm1, %v6645_v31  ;;  %9287 = vmatprep.mubr.msk.f32.mxu1 %vm256_vm1, %v11624_v0  ;;  %v6651_v0 = vld [vmem:[#allocation2 + $0xb2] sm:$0xff]  ;;  %v6688_v31 = vld [vmem:[#allocation3 + $0xf2] sm:$0xff] }
 0x20b   : > { %9734 = vmatprep.mubr.msk.f32.mxu0 %vm256_vm1, %v6646_v51  ;;  %v3553_v51 = vld [vmem:[#allocation2 + $0xf9] sm:$0xff] }
 0x20d   : > { %9288 = vmatmul.mubr.msk.f32.gmra.mrb[8].mxu1 %vm256_vm1, %v11634_v3  ;;  %v6652_v3 = vld [vmem:[#allocation2 + $0xc2] sm:$0xff] }
 0x20e   : > { %9735 = vmatmul.mubr.msk.f32.gmra.mrb[6].mxu0 %vm256_vm1, %v6647_v38  ;;  %9290 = vmatprep.mubr.msk.f32.mxu1 %vm256_vm1, %v11636_v5  ;;  %v6653_v5 = vld [vmem:[#allocation2 + $0xca] sm:$0xff] }
 0x20f   : > { %9737 = vmatprep.mubr.msk.f32.mxu0 %vm256_vm1, %v6648_v58  ;;  %v6689_v38 = vld [vmem:[#allocation3 + $0xfa] sm:$0xff] }
 0x210   : > { %v3554_v58 = vld [vmem:[#allocation2 + $0x109] sm:$0xff] }
 0x211   : > { %9291 = vmatmul.mubr.msk.f32.gmra.mrb[10].mxu1 %vm256_vm1, %v11646_v19  ;;  %v6654_v19 = vld [vmem:[#allocation2 + $0xda] sm:$0xff] }
 0x212   : > { %9738 = vmatmul.mubr.msk.f32.gmra.mrb[8].mxu0 %vm256_vm1, %v6649_v60  ;;  %9293 = vmatprep.mubr.msk.f32.mxu1 %vm256_vm1, %v11648_v23  ;;  %v6655_v23 = vld [vmem:[#allocation2 + $0xe2] sm:$0xff]  ;;  %v6690_v60 = vld [vmem:[#allocation3 + $0x10a] sm:$0xff] }
 0x213   : > { %9740 = vmatprep.mubr.msk.f32.mxu0 %vm256_vm1, %v6650_v62  ;;  %v3555_v62 = vld [vmem:[#allocation2 + $0x111] sm:$0xff] }
 0x215   : > { %9294 = vmatmul.mubr.msk.f32.gmra.mrb[12].mxu1 %vm256_vm1, %v11658_v33  ;;  %v6656_v33 = vld [vmem:[#allocation2 + $0xf2] sm:$0xff] }
 0x216   : > { %9741 = vmatmul.mubr.msk.f32.gmra.mrb[10].mxu0 %vm256_vm1, %v6651_v0  ;;  %9296 = vmatprep.mubr.msk.f32.mxu1 %vm256_vm1, %v11660_v35  ;;  %v6657_v35 = vld [vmem:[#allocation2 + $0xfa] sm:$0xff]  ;;  %v6691_v0 = vld [vmem:[#allocation3 + $0x112] sm:$0xff] }
 0x217   : > { %9743 = vmatprep.mubr.msk.f32.mxu0 %vm256_vm1, %v6652_v3  ;;  %v3556_v3 = vld [vmem:[#allocation2 + $0x121] sm:$0xff] }
 0x219   : > { %9297 = vmatmul.mubr.msk.f32.gmra.mrb[14].mxu1 %vm256_vm1, %v11670_v44  ;;  %v6658_v44 = vld [vmem:[#allocation2 + $0x10a] sm:$0xff] }
 0x21a   : > { %9744 = vmatmul.mubr.msk.f32.gmra.mrb[12].mxu0 %vm256_vm1, %v6653_v5  ;;  %9299 = vmatprep.mubr.msk.f32.mxu1 %vm256_vm1, %v11672_v46  ;;  %v6659_v46 = vld [vmem:[#allocation2 + $0x112] sm:$0xff] }
 0x21b   : > { %9746 = vmatprep.mubr.msk.f32.mxu0 %vm256_vm1, %v6654_v19  ;;  %v6692_v5 = vld [vmem:[#allocation3 + $0x122] sm:$0xff]  ;;  %v3557_v19 = vld [vmem:[#allocation2 + $0x129] sm:$0xff] }
 0x21d   : > { %9300 = vmatmul.mubr.msk.f32.gmra.mrb[16].mxu1 %vm256_vm1, %v11682_v52  ;;  %v6660_v52 = vld [vmem:[#allocation2 + $0x122] sm:$0xff] }
 0x21e   : > { %9747 = vmatmul.mubr.msk.f32.gmra.mrb[14].mxu0 %vm256_vm1, %v6655_v23  ;;  %9302 = vmatprep.mubr.msk.f32.mxu1 %vm256_vm1, %v11684_v53  ;;  %v6661_v53 = vld [vmem:[#allocation2 + $0x12a] sm:$0xff]  ;;  %v6693_v23 = vld [vmem:[#allocation3 + $0x12a] sm:$0xff] }
 0x21f   : > { %9749 = vmatprep.mubr.msk.f32.mxu0 %vm256_vm1, %v6656_v33  ;;  %v3558_v33 = vld [vmem:[#allocation2 + $0x139] sm:$0xff] }
 0x221   : > { %9303 = vmatmul.mubr.msk.f32.gmra.mrb[18].mxu1 %vm256_vm1, %v11694_v56  ;;  %v6662_v56 = vld [vmem:[#allocation2 + $0x13a] sm:$0xff] }
 0x222   : > { %9750 = vmatmul.mubr.msk.f32.gmra.mrb[16].mxu0 %vm256_vm1, %v6657_v35  ;;  %9305 = vmatprep.mubr.msk.f32.mxu1 %vm256_vm1, %v11696_v57  ;;  %v6663_v57 = vld [vmem:[#allocation2 + $0x142] sm:$0xff]  ;;  %v6694_v35 = vld [vmem:[#allocation3 + $0x13a] sm:$0xff] }
 0x223   : > { %9752 = vmatprep.mubr.msk.f32.mxu0 %vm256_vm1, %v6658_v44  ;;  %v3559_v44 = vld [vmem:[#allocation2 + $0x141] sm:$0xff] }
 0x225   : > { %9306 = vmatmul.mubr.msk.f32.gmra.mrb[20].mxu1 %vm256_vm1, %v11706_v63  ;;  %v6664_v63 = vld [vmem:[#allocation2 + $0x152] sm:$0xff] }
 0x226   : > { %9753 = vmatmul.mubr.msk.f32.gmra.mrb[18].mxu0 %vm256_vm1, %v6659_v46  ;;  %9308 = vmatprep.mubr.msk.f32.mxu1 %vm256_vm1, %v11708_v2  ;;  %v6665_v2 = vld [vmem:[#allocation2 + $0x15a] sm:$0xff]  ;;  %v6695_v46 = vld [vmem:[#allocation3 + $0x142] sm:$0xff] }
 0x227   : > { %9755 = vmatprep.mubr.msk.f32.mxu0 %vm256_vm1, %v6660_v52  ;;  %v3560_v52 = vld [vmem:[#allocation2 + $0x151] sm:$0xff] }
 0x229   : > { %9309 = vmatmul.mubr.msk.f32.gmra.mrb[22].mxu1 %vm256_vm1, %v11718_v9  ;;  %v6666_v9 = vld [vmem:[#allocation2 + $0x16a] sm:$0xff] }
 0x22a   : > { %9756 = vmatmul.mubr.msk.f32.gmra.mrb[20].mxu0 %vm256_vm1, %v6661_v53  ;;  %9311 = vmatprep.mubr.msk.f32.mxu1 %vm256_vm1, %v11720_v10  ;;  %v6667_v10 = vld [vmem:[#allocation2 + $0x172] sm:$0xff]  ;;  %v6696_v53 = vld [vmem:[#allocation3 + $0x152] sm:$0xff] }
 0x22b   : > { %9758 = vmatprep.mubr.msk.f32.mxu0 %vm256_vm1, %v6662_v56  ;;  %v3561_v56 = vld [vmem:[#allocation2 + $0x159] sm:$0xff] }
 0x22d   : > { %9312 = vmatmul.mubr.msk.f32.gmra.mrb[24].mxu1 %vm256_vm1, %v11730_v15  ;;  %v6668_v15 = vld [vmem:[#allocation2 + $0x182] sm:$0xff] }
 0x22e   : > { %9759 = vmatmul.mubr.msk.f32.gmra.mrb[22].mxu0 %vm256_vm1, %v6663_v57  ;;  %9314 = vmatprep.mubr.msk.f32.mxu1 %vm256_vm1, %v11732_v45  ;;  %v6669_v45 = vld [vmem:[#allocation2 + $0x18a] sm:$0xff] }
 0x22f   : > { %9761 = vmatprep.mubr.msk.f32.mxu0 %vm256_vm1, %v6664_v63  ;;  %v6697_v57 = vld [vmem:[#allocation3 + $0x15a] sm:$0xff] }
 0x230   : > { %v3562_v63 = vld [vmem:[#allocation2 + $0x169] sm:$0xff] }
 0x231   : > { %9315 = vmatmul.mubr.msk.f32.gmra.mrb[26].mxu1 %vm256_vm1, %v11742_v18  ;;  %v3534_v18 = vld [vmem:[#allocation2 + $0x19] sm:$0xff] }
 0x232   : > { %9762 = vmatmul.mubr.msk.f32.gmra.mrb[24].mxu0 %vm256_vm1, %v6665_v2  ;;  %9317 = vmatprep.mubr.msk.f32.mxu1 %vm256_vm1, %v11744_v20  ;;  %v3535_v20 = vld [vmem:[#allocation2 + $0x21] sm:$0xff] }
 0x233   : > { %9764 = vmatprep.mubr.msk.f32.mxu0 %vm256_vm1, %v6666_v9  ;;  %v6698_v2 = vld [vmem:[#allocation3 + $0x16a] sm:$0xff]  ;;  %v3563_v9 = vld [vmem:[#allocation2 + $0x171] sm:$0xff] }
 0x235   : > { %9318 = vmatmul.mubr.msk.f32.gmra.mrb[28].mxu1 %vm256_vm1, %v11754_v7  ;;  %v6671_v7 = vld [vmem:[#allocation2 + $0x1a2] sm:$0xff] }
 0x236   : > { %9765 = vmatmul.mubr.msk.f32.gmra.mrb[26].mxu0 %vm256_vm1, %v6667_v10  ;;  %9320 = vmatprep.mubr.msk.f32.mxu1 %vm256_vm1, %v11756_v14  ;;  %v3537_v14 = vld [vmem:[#allocation2 + $0x39] sm:$0xff]  ;;  %v6699_v10 = vld [vmem:[#allocation3 + $0x172] sm:$0xff] }
 0x237   : > { %9767 = vmatprep.mubr.msk.f32.mxu0 %vm256_vm1, %v6668_v15  ;;  %v6700_v15 = vld [vmem:[#allocation3 + $0x182] sm:$0xff] }
 0x239   : > { %9321 = vmatmul.mubr.msk.f32.gmra.mrb[30].mxu1 %vm256_vm1, %v11766_v37  ;;  %v6673_v37 = vld [vmem:[#allocation3 + $0x3a] sm:$0xff] }
 0x23a   : > { %9768 = vmatmul.mubr.msk.f32.gmra.mrb[28].mxu0 %vm256_vm1, %v6669_v45  ;;  %9325 = vmatprep.mubr.msk.f32.mxu1 %vm256_vm1, %v3534_v18  ;;  %v6701_v45 = vld [vmem:[#allocation3 + $0x18a] sm:$0xff]  ;;  %v6702_v18 = vld [vmem:[#allocation3 + $0x19a] sm:$0xff] }
 0x23b   : > { %9770 = vmatprep.mubr.msk.f32.mxu0 %vm256_vm1, %v6670_v43  ;;  %v6703_v43 = vld [vmem:[#allocation3 + $0x1a2] sm:$0xff] }
 0x23d   : > { %9326 = vmatmul.mubr.msk.f32.vlgmr.msra.gmra.mrb[0].mxu1 %vm256_vm1, %v3535_v20 }
 0x23e   : > { %9771 = vmatmul.mubr.msk.f32.gmra.mrb[30].mxu0 %vm256_vm1, %v6671_v7  ;;  %9328 = vmatprep.mubr.msk.f32.mxu1 %vm256_vm1, %v3536_v25 }
 0x23f   : > { %9775 = vmatprep.mubr.msk.f32.mxu0 %vm256_vm1, %v6672_v17 }
 0x241   : > { %9329 = vmatmul.mubr.msk.f32.gmra.mrb[2].mxu1 %vm256_vm1, %v3537_v14 }
 0x242   : > { %9776 = vmatmul.mubr.msk.f32.vlgmr.msra.gmra.mrb[0].mxu0 %vm256_vm1, %v6673_v37  ;;  %9331 = vmatprep.mubr.msk.f32.mxu1 %vm256_vm1, %v3538_v6 }
 0x243   : > { %9778 = vmatprep.mubr.msk.f32.mxu0 %vm256_vm1, %v6674_v47 }
 0x245   : > { %9332 = vmatmul.mubr.msk.f32.gmra.mrb[4].mxu1 %vm256_vm1, %v3539_v22 }
 0x246   : > { %9779 = vmatmul.mubr.msk.f32.gmra.mrb[2].mxu0 %vm256_vm1, %v6675_v49  ;;  %9334 = vmatprep.mubr.msk.f32.mxu1 %vm256_vm1, %v3540_v59 }
 0x247   : > { %9781 = vmatprep.mubr.msk.f32.mxu0 %vm256_vm1, %v6676_v21 }
 0x249   : > { %9335 = vmatmul.mubr.msk.f32.gmra.mrb[6].mxu1 %vm256_vm1, %v3541_v4 }
 0x24a   : > { %9782 = vmatmul.mubr.msk.f32.gmra.mrb[4].mxu0 %vm256_vm1, %v6677_v40  ;;  %9337 = vmatprep.mubr.msk.f32.mxu1 %vm256_vm1, %v3542_v24 }
 0x24b   : > { %9784 = vmatprep.mubr.msk.f32.mxu0 %vm256_vm1, %v6678_v11 }
 0x24d   : > { %9338 = vmatmul.mubr.msk.f32.gmra.mrb[8].mxu1 %vm256_vm1, %v3543_v29 }
 0x24e   : > { %9785 = vmatmul.mubr.msk.f32.gmra.mrb[6].mxu0 %vm256_vm1, %v6679_v30  ;;  %9340 = vmatprep.mubr.msk.f32.mxu1 %vm256_vm1, %v3544_v42 }
 0x24f   : > { %9787 = vmatprep.mubr.msk.f32.mxu0 %vm256_vm1, %v6680_v27 }
 0x251   : > { %9341 = vmatmul.mubr.msk.f32.gmra.mrb[10].mxu1 %vm256_vm1, %v3545_v34 }
 0x252   : > { %9788 = vmatmul.mubr.msk.f32.gmra.mrb[8].mxu0 %vm256_vm1, %v6681_v32  ;;  %9343 = vmatprep.mubr.msk.f32.mxu1 %vm256_vm1, %v3546_v36 }
 0x253   : > { %9790 = vmatprep.mubr.msk.f32.mxu0 %vm256_vm1, %v6682_v41 }
 0x255   : > { %9344 = vmatmul.mubr.msk.f32.gmra.mrb[12].mxu1 %vm256_vm1, %v3547_v48 }
 0x256   : > { %9791 = vmatmul.mubr.msk.f32.gmra.mrb[10].mxu0 %vm256_vm1, %v6683_v39  ;;  %9346 = vmatprep.mubr.msk.f32.mxu1 %vm256_vm1, %v3548_v50 }
 0x257   : > { %9793 = vmatprep.mubr.msk.f32.mxu0 %vm256_vm1, %v6684_v54 }
 0x259   : > { %9347 = vmatmul.mubr.msk.f32.gmra.mrb[14].mxu1 %vm256_vm1, %v3549_v61 }
 0x25a   : > { %9794 = vmatmul.mubr.msk.f32.gmra.mrb[12].mxu0 %vm256_vm1, %v6685_v8  ;;  %9349 = vmatprep.mubr.msk.f32.mxu1 %vm256_vm1, %v3550_v12 }
 0x25b   : > { %9796 = vmatprep.mubr.msk.f32.mxu0 %vm256_vm1, %v6686_v1 }
 0x25d   : > { %9350 = vmatmul.mubr.msk.f32.gmra.mrb[16].mxu1 %vm256_vm1, %v3551_v16 }
 0x25e   : > { %9797 = vmatmul.mubr.msk.f32.gmra.mrb[14].mxu0 %vm256_vm1, %v6687_v28  ;;  %9352 = vmatprep.mubr.msk.f32.mxu1 %vm256_vm1, %v3552_v26 }
 0x25f   : > { %9799 = vmatprep.mubr.msk.f32.mxu0 %vm256_vm1, %v6688_v31 }
 0x261   : > { %9353 = vmatmul.mubr.msk.f32.gmra.mrb[18].mxu1 %vm256_vm1, %v3553_v51 }
 0x262   : > { %9800 = vmatmul.mubr.msk.f32.gmra.mrb[16].mxu0 %vm256_vm1, %v6689_v38  ;;  %9355 = vmatprep.mubr.msk.f32.mxu1 %vm256_vm1, %v3554_v58 }
 0x263   : > { %9802 = vmatprep.mubr.msk.f32.mxu0 %vm256_vm1, %v6690_v60 }
 0x265   : > { %9356 = vmatmul.mubr.msk.f32.gmra.mrb[20].mxu1 %vm256_vm1, %v3555_v62 }
 0x266   : > { %9803 = vmatmul.mubr.msk.f32.gmra.mrb[18].mxu0 %vm256_vm1, %v6691_v0  ;;  %9358 = vmatprep.mubr.msk.f32.mxu1 %vm256_vm1, %v3556_v3 }
 0x267   : > { %9805 = vmatprep.mubr.msk.f32.mxu0 %vm256_vm1, %v6692_v5 }
 0x269   : > { %9359 = vmatmul.mubr.msk.f32.gmra.mrb[22].mxu1 %vm256_vm1, %v3557_v19 }
 0x26a   : > { %9806 = vmatmul.mubr.msk.f32.gmra.mrb[20].mxu0 %vm256_vm1, %v6693_v23  ;;  %9361 = vmatprep.mubr.msk.f32.mxu1 %vm256_vm1, %v3558_v33 }
 0x26b   : > { %9808 = vmatprep.mubr.msk.f32.mxu0 %vm256_vm1, %v6694_v35 }
 0x26d   : > { %9362 = vmatmul.mubr.msk.f32.gmra.mrb[24].mxu1 %vm256_vm1, %v3559_v44 }
 0x26e   : > { %9809 = vmatmul.mubr.msk.f32.gmra.mrb[22].mxu0 %vm256_vm1, %v6695_v46  ;;  %9364 = vmatprep.mubr.msk.f32.mxu1 %vm256_vm1, %v3560_v52 }
 0x26f   : > { %9811 = vmatprep.mubr.msk.f32.mxu0 %vm256_vm1, %v6696_v53 }
 0x271   : > { %9365 = vmatmul.mubr.msk.f32.gmra.mrb[26].mxu1 %vm256_vm1, %v3561_v56 }
 0x272   : > { %9812 = vmatmul.mubr.msk.f32.gmra.mrb[24].mxu0 %vm256_vm1, %v6697_v57  ;;  %9367 = vmatprep.mubr.msk.f32.mxu1 %vm256_vm1, %v3562_v63 }
 0x273   : > { %9814 = vmatprep.mubr.msk.f32.mxu0 %vm256_vm1, %v6698_v2 }
 0x275   : > { %9368 = vmatmul.mubr.msk.f32.gmra.mrb[28].mxu1 %vm256_vm1, %v3563_v9 }
 0x276   : > { %9815 = vmatmul.mubr.msk.f32.gmra.mrb[26].mxu0 %vm256_vm1, %v6699_v10  ;;  %9370 = vmatprep.mubr.msk.f32.mxu1 %vm256_vm1, %v11902_v55 }
 0x277   : > { %9817 = vmatprep.mubr.msk.f32.mxu0 %vm256_vm1, %v6700_v15 }
 0x279   : > { %9371 = vmatmul.mubr.msk.f32.gmra.mrb[30].mxu1 %vm256_vm1, %v11912_v13 }
 0x27a   : > { %9818 = vmatmul.mubr.msk.f32.gmra.mrb[28].mxu0 %vm256_vm1, %v6701_v45 }
 0x27b   : > { %9820 = vmatprep.mubr.msk.f32.mxu0 %vm256_vm1, %v6702_v18 }
 0x27e   : > { %9821 = vmatmul.mubr.msk.f32.gmra.mrb[30].mxu0 %vm256_vm1, %v6703_v43 }
 0x310   : > { %v9327_v20 = vpop.f32.mrb[0].mxu1 }
 0x311   : > { %v3763_v7 = vpop.f32.mrb[1].mxu1 }
 0x314   : > { %v9330_v25 = vpop.f32.mrb[2].mxu1 }
 0x315   : > { %v9777_v55 = vpop.f32.mrb[0].mxu0  ;;  %v3773_v13 = vpop.f32.mrb[3].mxu1 }
 0x316   : > { %v9823_v17 = vadd.f32 %v9777_v55, %v9327_v20  ;;  %v7225_v14 = vpop.f32.mrb[1].mxu0 }
 0x317   : > { %v9824_v37 = vadd.f32 %v7225_v14, %v3763_v7 }
 0x318   : > { %7417 = vst.msk [vmem:[%s12182_s20 + $0x8] sm:$0xff] %vm256_vm1, %v9823_v17  ;;  %v7449_v6 = vsel %vm256_vm1, %v9823_v17, 0.0  ;;  %v7519_v47 = vmul.f32 %v9823_v17, %v9823_v17  ;;  %v9333_v59 = vpop.f32.mrb[4].mxu1 }
 0x319   : > { %7416 = vst.msk [vmem:[%s12182_s20] sm:$0xff] %vm256_vm1, %v9824_v37  ;;  %v7448_v22 = vsel %vm256_vm1, %v9824_v37, 0.0  ;;  %v7518_v49 = vmul.f32 %v9824_v37, %v9824_v37  ;;  %v9780_v21 = vpop.f32.mrb[2].mxu0  ;;  %v3783_v11 = vpop.f32.mrb[5].mxu1 }
 0x31a   : > { %v7551_v4 = vsel %vm256_vm1, %v7519_v47, 0.0  ;;  %v7450_v40 = vadd.f32 %v7449_v6, %v7448_v22  ;;  %v9825_v24 = vadd.f32 %v9780_v21, %v9330_v25  ;;  %v7235_v29 = vpop.f32.mrb[3].mxu0 }
 0x31b   : > { %v7550_v30 = vsel %vm256_vm1, %v7518_v49, 0.0  ;;  %v9826_v42 = vadd.f32 %v7235_v29, %v3773_v13 }
 0x31c   : > { %v7552_v27 = vadd.f32 %v7551_v4, %v7550_v30  ;;  %7419 = vst.msk [vmem:[%s12182_s20 + $0x18] sm:$0xff] %vm256_vm1, %v9825_v24  ;;  %v7521_v34 = vmul.f32 %v9825_v24, %v9825_v24  ;;  %v9336_v41 = vpop.f32.mrb[6].mxu1  ;;  %v7453_v8 = vsel %vm256_vm1, %v9825_v24, 0.0 }
 0x31d   : > { %7418 = vst.msk [vmem:[%s12182_s20 + $0x10] sm:$0xff] %vm256_vm1, %v9826_v42  ;;  %v7451_v32 = vsel %vm256_vm1, %v9826_v42, 0.0  ;;  %v7520_v36 = vmul.f32 %v9826_v42, %v9826_v42  ;;  %v9783_v48 = vpop.f32.mrb[4].mxu0  ;;  %v3793_v54 = vpop.f32.mrb[7].mxu1 }
 0x31e   : > { %v7452_v39 = vadd.f32 %v7451_v32, %v7450_v40  ;;  %v9827_v50 = vadd.f32 %v9783_v48, %v9333_v59  ;;  %v7245_v61 = vpop.f32.mrb[5].mxu0  ;;  %v7555_v26 = vsel %vm256_vm1, %v7521_v34, 0.0 }
 0x31f   : > { %v7553_v12 = vsel %vm256_vm1, %v7520_v36, 0.0  ;;  %v9828_v1 = vadd.f32 %v7245_v61, %v3783_v11 }
 0x320   : > { %v7554_v16 = vadd.f32 %v7553_v12, %v7552_v27  ;;  %7421 = vst.msk [vmem:[%s12182_s20 + $0x28] sm:$0xff] %vm256_vm1, %v9827_v50  ;;  %v7454_v28 = vadd.f32 %v7453_v8, %v7452_v39  ;;  %v7523_v31 = vmul.f32 %v9827_v50, %v9827_v50  ;;  %v9339_v58 = vpop.f32.mrb[8].mxu1  ;;  %v7457_v23 = vsel %vm256_vm1, %v9827_v50, 0.0 }
 0x321   : > { %7420 = vst.msk [vmem:[%s12182_s20 + $0x20] sm:$0xff] %vm256_vm1, %v9828_v1  ;;  %v7455_v51 = vsel %vm256_vm1, %v9828_v1, 0.0  ;;  %v7522_v38 = vmul.f32 %v9828_v1, %v9828_v1  ;;  %v9786_v60 = vpop.f32.mrb[6].mxu0  ;;  %v3803_v5 = vpop.f32.mrb[9].mxu1 }
 0x322   : > { %v7456_v62 = vadd.f32 %v7455_v51, %v7454_v28  ;;  %v7556_v0 = vadd.f32 %v7555_v26, %v7554_v16  ;;  %v9829_v3 = vadd.f32 %v9786_v60, %v9336_v41  ;;  %v7255_v19 = vpop.f32.mrb[7].mxu0  ;;  %v7559_v52 = vsel %vm256_vm1, %v7523_v31, 0.0 }
 0x323   : > { %v7557_v33 = vsel %vm256_vm1, %v7522_v38, 0.0  ;;  %v9830_v35 = vadd.f32 %v7255_v19, %v3793_v54 }
 0x324   : > { %v7558_v44 = vadd.f32 %v7557_v33, %v7556_v0  ;;  %7423 = vst.msk [vmem:[%s12182_s20 + $0x38] sm:$0xff] %vm256_vm1, %v9829_v3  ;;  %v7458_v46 = vadd.f32 %v7457_v23, %v7456_v62  ;;  %v7525_v53 = vmul.f32 %v9829_v3, %v9829_v3  ;;  %v9342_v63 = vpop.f32.mrb[10].mxu1  ;;  %v7461_v43 = vsel %vm256_vm1, %v9829_v3, 0.0 }
 0x325   : > { %7422 = vst.msk [vmem:[%s12182_s20 + $0x30] sm:$0xff] %vm256_vm1, %v9830_v35  ;;  %v7459_v56 = vsel %vm256_vm1, %v9830_v35, 0.0  ;;  %v7524_v57 = vmul.f32 %v9830_v35, %v9830_v35  ;;  %v9789_v2 = vpop.f32.mrb[8].mxu0  ;;  %v3813_v45 = vpop.f32.mrb[11].mxu1 }
 0x326   : > { %v7460_v9 = vadd.f32 %v7459_v56, %v7458_v46  ;;  %v7560_v10 = vadd.f32 %v7559_v52, %v7558_v44  ;;  %v9831_v15 = vadd.f32 %v9789_v2, %v9339_v58  ;;  %v7265_v18 = vpop.f32.mrb[9].mxu0  ;;  %v7563_v17 = vsel %vm256_vm1, %v7525_v53, 0.0 }
 0x327   : > { %v7561_v20 = vsel %vm256_vm1, %v7524_v57, 0.0  ;;  %v9832_v7 = vadd.f32 %v7265_v18, %v3803_v5 }
 0x328   : > { %v7562_v25 = vadd.f32 %v7561_v20, %v7560_v10  ;;  %7425 = vst.msk [vmem:[%s12182_s20 + $0x48] sm:$0xff] %vm256_vm1, %v9831_v15  ;;  %v7462_v55 = vadd.f32 %v7461_v43, %v7460_v9  ;;  %v7527_v13 = vmul.f32 %v9831_v15, %v9831_v15  ;;  %v9345_v6 = vpop.f32.mrb[12].mxu1  ;;  %v7465_v40 = vsel %vm256_vm1, %v9831_v15, 0.0 }
 0x329   : > { %7424 = vst.msk [vmem:[%s12182_s20 + $0x40] sm:$0xff] %vm256_vm1, %v9832_v7  ;;  %v7463_v14 = vsel %vm256_vm1, %v9832_v7, 0.0  ;;  %v7526_v37 = vmul.f32 %v9832_v7, %v9832_v7  ;;  %v9792_v47 = vpop.f32.mrb[10].mxu0  ;;  %v3823_v21 = vpop.f32.mrb[13].mxu1 }
 0x32a   : > { %v7464_v22 = vadd.f32 %v7463_v14, %v7462_v55  ;;  %v7564_v49 = vadd.f32 %v7563_v17, %v7562_v25  ;;  %v9833_v59 = vadd.f32 %v9792_v47, %v9342_v63  ;;  %v7275_v4 = vpop.f32.mrb[11].mxu0  ;;  %v7567_v42 = vsel %vm256_vm1, %v7527_v13, 0.0 }
 0x32b   : > { %v7565_v24 = vsel %vm256_vm1, %v7526_v37, 0.0  ;;  %v9834_v11 = vadd.f32 %v7275_v4, %v3813_v45 }
 0x32c   : > { %v7566_v29 = vadd.f32 %v7565_v24, %v7564_v49  ;;  %7427 = vst.msk [vmem:[%s12182_s20 + $0x58] sm:$0xff] %vm256_vm1, %v9833_v59  ;;  %v7466_v30 = vadd.f32 %v7465_v40, %v7464_v22  ;;  %v7529_v27 = vmul.f32 %v9833_v59, %v9833_v59  ;;  %v9348_v36 = vpop.f32.mrb[14].mxu1  ;;  %v7469_v8 = vsel %vm256_vm1, %v9833_v59, 0.0 }
 0x32d   : > { %7426 = vst.msk [vmem:[%s12182_s20 + $0x50] sm:$0xff] %vm256_vm1, %v9834_v11  ;;  %v7467_v34 = vsel %vm256_vm1, %v9834_v11, 0.0  ;;  %v7528_v32 = vmul.f32 %v9834_v11, %v9834_v11  ;;  %v9795_v41 = vpop.f32.mrb[12].mxu0  ;;  %v3833_v54 = vpop.f32.mrb[15].mxu1 }
 0x32e   : > { %v7468_v48 = vadd.f32 %v7467_v34, %v7466_v30  ;;  %v7568_v39 = vadd.f32 %v7567_v42, %v7566_v29  ;;  %v9835_v50 = vadd.f32 %v9795_v41, %v9345_v6  ;;  %v7285_v61 = vpop.f32.mrb[13].mxu0  ;;  %v7571_v26 = vsel %vm256_vm1, %v7529_v27, 0.0 }
 0x32f   : > { %v7569_v12 = vsel %vm256_vm1, %v7528_v32, 0.0  ;;  %v9836_v1 = vadd.f32 %v7285_v61, %v3823_v21 }
 0x330   : > { %v7570_v16 = vadd.f32 %v7569_v12, %v7568_v39  ;;  %7429 = vst.msk [vmem:[%s12182_s20 + $0x68] sm:$0xff] %vm256_vm1, %v9835_v50  ;;  %v7470_v28 = vadd.f32 %v7469_v8, %v7468_v48  ;;  %v7531_v31 = vmul.f32 %v9835_v50, %v9835_v50  ;;  %v9351_v58 = vpop.f32.mrb[16].mxu1  ;;  %v7473_v23 = vsel %vm256_vm1, %v9835_v50, 0.0 }
 0x331   : > { %7428 = vst.msk [vmem:[%s12182_s20 + $0x60] sm:$0xff] %vm256_vm1, %v9836_v1  ;;  %v7471_v51 = vsel %vm256_vm1, %v9836_v1, 0.0  ;;  %v7530_v38 = vmul.f32 %v9836_v1, %v9836_v1  ;;  %v9798_v60 = vpop.f32.mrb[14].mxu0  ;;  %v3843_v5 = vpop.f32.mrb[17].mxu1 }
 0x332   : > { %v7472_v62 = vadd.f32 %v7471_v51, %v7470_v28  ;;  %v7572_v0 = vadd.f32 %v7571_v26, %v7570_v16  ;;  %v9837_v3 = vadd.f32 %v9798_v60, %v9348_v36  ;;  %v7295_v19 = vpop.f32.mrb[15].mxu0  ;;  %v7575_v52 = vsel %vm256_vm1, %v7531_v31, 0.0 }
 0x333   : > { %v7573_v33 = vsel %vm256_vm1, %v7530_v38, 0.0  ;;  %v9838_v35 = vadd.f32 %v7295_v19, %v3833_v54 }
 0x334   : > { %v7574_v44 = vadd.f32 %v7573_v33, %v7572_v0  ;;  %7431 = vst.msk [vmem:[%s12182_s20 + $0x78] sm:$0xff] %vm256_vm1, %v9837_v3  ;;  %v7474_v46 = vadd.f32 %v7473_v23, %v7472_v62  ;;  %v7533_v53 = vmul.f32 %v9837_v3, %v9837_v3  ;;  %v9354_v63 = vpop.f32.mrb[18].mxu1  ;;  %v7477_v43 = vsel %vm256_vm1, %v9837_v3, 0.0 }
 0x335   : > { %7430 = vst.msk [vmem:[%s12182_s20 + $0x70] sm:$0xff] %vm256_vm1, %v9838_v35  ;;  %v7475_v56 = vsel %vm256_vm1, %v9838_v35, 0.0  ;;  %v7532_v57 = vmul.f32 %v9838_v35, %v9838_v35  ;;  %v9801_v2 = vpop.f32.mrb[16].mxu0  ;;  %v3853_v45 = vpop.f32.mrb[19].mxu1 }
 0x336   : > { %v7476_v9 = vadd.f32 %v7475_v56, %v7474_v46  ;;  %v7576_v10 = vadd.f32 %v7575_v52, %v7574_v44  ;;  %v9839_v15 = vadd.f32 %v9801_v2, %v9351_v58  ;;  %v7305_v18 = vpop.f32.mrb[17].mxu0  ;;  %v7579_v17 = vsel %vm256_vm1, %v7533_v53, 0.0 }
 0x337   : > { %v7577_v20 = vsel %vm256_vm1, %v7532_v57, 0.0  ;;  %v9840_v7 = vadd.f32 %v7305_v18, %v3843_v5 }
 0x338   : > { %v7578_v25 = vadd.f32 %v7577_v20, %v7576_v10  ;;  %7433 = vst.msk [vmem:[%s12182_s20 + $0x88] sm:$0xff] %vm256_vm1, %v9839_v15  ;;  %v7478_v55 = vadd.f32 %v7477_v43, %v7476_v9  ;;  %v7535_v13 = vmul.f32 %v9839_v15, %v9839_v15  ;;  %v9357_v6 = vpop.f32.mrb[20].mxu1  ;;  %v7481_v40 = vsel %vm256_vm1, %v9839_v15, 0.0 }
 0x339   : > { %7432 = vst.msk [vmem:[%s12182_s20 + $0x80] sm:$0xff] %vm256_vm1, %v9840_v7  ;;  %v7479_v14 = vsel %vm256_vm1, %v9840_v7, 0.0  ;;  %v7534_v37 = vmul.f32 %v9840_v7, %v9840_v7  ;;  %v9804_v47 = vpop.f32.mrb[18].mxu0  ;;  %v3863_v21 = vpop.f32.mrb[21].mxu1 }
 0x33a   : > { %v7480_v22 = vadd.f32 %v7479_v14, %v7478_v55  ;;  %v7580_v49 = vadd.f32 %v7579_v17, %v7578_v25  ;;  %v9841_v59 = vadd.f32 %v9804_v47, %v9354_v63  ;;  %v7315_v4 = vpop.f32.mrb[19].mxu0  ;;  %v7583_v42 = vsel %vm256_vm1, %v7535_v13, 0.0 }
 0x33b   : > { %v7581_v24 = vsel %vm256_vm1, %v7534_v37, 0.0  ;;  %v9842_v11 = vadd.f32 %v7315_v4, %v3853_v45 }
 0x33c   : > { %v7582_v29 = vadd.f32 %v7581_v24, %v7580_v49  ;;  %7435 = vst.msk [vmem:[%s12182_s20 + $0x98] sm:$0xff] %vm256_vm1, %v9841_v59  ;;  %v7482_v30 = vadd.f32 %v7481_v40, %v7480_v22  ;;  %v7537_v27 = vmul.f32 %v9841_v59, %v9841_v59  ;;  %v9360_v36 = vpop.f32.mrb[22].mxu1  ;;  %v7485_v8 = vsel %vm256_vm1, %v9841_v59, 0.0 }
 0x33d   : > { %7434 = vst.msk [vmem:[%s12182_s20 + $0x90] sm:$0xff] %vm256_vm1, %v9842_v11  ;;  %v7483_v34 = vsel %vm256_vm1, %v9842_v11, 0.0  ;;  %v7536_v32 = vmul.f32 %v9842_v11, %v9842_v11  ;;  %v9807_v41 = vpop.f32.mrb[20].mxu0  ;;  %v3873_v54 = vpop.f32.mrb[23].mxu1 }
 0x33e   : > { %v7484_v48 = vadd.f32 %v7483_v34, %v7482_v30  ;;  %v7584_v39 = vadd.f32 %v7583_v42, %v7582_v29  ;;  %v9843_v50 = vadd.f32 %v9807_v41, %v9357_v6  ;;  %v7325_v61 = vpop.f32.mrb[21].mxu0  ;;  %v7587_v26 = vsel %vm256_vm1, %v7537_v27, 0.0 }
 0x33f   : > { %v7585_v12 = vsel %vm256_vm1, %v7536_v32, 0.0  ;;  %v9844_v1 = vadd.f32 %v7325_v61, %v3863_v21 }
 0x340   : > { %v7586_v16 = vadd.f32 %v7585_v12, %v7584_v39  ;;  %7437 = vst.msk [vmem:[%s12182_s20 + $0xa8] sm:$0xff] %vm256_vm1, %v9843_v50  ;;  %v7486_v28 = vadd.f32 %v7485_v8, %v7484_v48  ;;  %v7539_v31 = vmul.f32 %v9843_v50, %v9843_v50  ;;  %v9363_v58 = vpop.f32.mrb[24].mxu1  ;;  %v7489_v23 = vsel %vm256_vm1, %v9843_v50, 0.0 }
 0x341   : > { %7436 = vst.msk [vmem:[%s12182_s20 + $0xa0] sm:$0xff] %vm256_vm1, %v9844_v1  ;;  %v7487_v51 = vsel %vm256_vm1, %v9844_v1, 0.0  ;;  %v7538_v38 = vmul.f32 %v9844_v1, %v9844_v1  ;;  %v9810_v60 = vpop.f32.mrb[22].mxu0  ;;  %v3883_v5 = vpop.f32.mrb[25].mxu1 }
 0x342   : > { %v7488_v62 = vadd.f32 %v7487_v51, %v7486_v28  ;;  %v7588_v0 = vadd.f32 %v7587_v26, %v7586_v16  ;;  %v9845_v3 = vadd.f32 %v9810_v60, %v9360_v36  ;;  %v7335_v19 = vpop.f32.mrb[23].mxu0  ;;  %v7591_v52 = vsel %vm256_vm1, %v7539_v31, 0.0 }
 0x343   : > { %v7589_v33 = vsel %vm256_vm1, %v7538_v38, 0.0  ;;  %v9846_v35 = vadd.f32 %v7335_v19, %v3873_v54 }
 0x344   : > { %v7590_v44 = vadd.f32 %v7589_v33, %v7588_v0  ;;  %7439 = vst.msk [vmem:[%s12182_s20 + $0xb8] sm:$0xff] %vm256_vm1, %v9845_v3  ;;  %v7490_v46 = vadd.f32 %v7489_v23, %v7488_v62  ;;  %v7541_v53 = vmul.f32 %v9845_v3, %v9845_v3  ;;  %v9366_v63 = vpop.f32.mrb[26].mxu1  ;;  %v7493_v43 = vsel %vm256_vm1, %v9845_v3, 0.0 }
 0x345   : > { %7438 = vst.msk [vmem:[%s12182_s20 + $0xb0] sm:$0xff] %vm256_vm1, %v9846_v35  ;;  %v7491_v56 = vsel %vm256_vm1, %v9846_v35, 0.0  ;;  %v7540_v57 = vmul.f32 %v9846_v35, %v9846_v35  ;;  %v9813_v2 = vpop.f32.mrb[24].mxu0  ;;  %v3893_v45 = vpop.f32.mrb[27].mxu1 }
 0x346   : > { %v7492_v9 = vadd.f32 %v7491_v56, %v7490_v46  ;;  %v7592_v10 = vadd.f32 %v7591_v52, %v7590_v44  ;;  %v9847_v15 = vadd.f32 %v9813_v2, %v9363_v58  ;;  %v7345_v18 = vpop.f32.mrb[25].mxu0  ;;  %v7595_v17 = vsel %vm256_vm1, %v7541_v53, 0.0 }
 0x347   : > { %v7593_v20 = vsel %vm256_vm1, %v7540_v57, 0.0  ;;  %v9848_v7 = vadd.f32 %v7345_v18, %v3883_v5 }
 0x348   : > { %v7594_v25 = vadd.f32 %v7593_v20, %v7592_v10  ;;  %7441 = vst.msk [vmem:[%s12182_s20 + $0xc8] sm:$0xff] %vm256_vm1, %v9847_v15  ;;  %v7494_v55 = vadd.f32 %v7493_v43, %v7492_v9  ;;  %v7543_v13 = vmul.f32 %v9847_v15, %v9847_v15  ;;  %v9369_v6 = vpop.f32.mrb[28].mxu1  ;;  %v7497_v40 = vsel %vm256_vm1, %v9847_v15, 0.0 }
 0x349   : > { %7440 = vst.msk [vmem:[%s12182_s20 + $0xc0] sm:$0xff] %vm256_vm1, %v9848_v7  ;;  %v7495_v14 = vsel %vm256_vm1, %v9848_v7, 0.0  ;;  %v7542_v37 = vmul.f32 %v9848_v7, %v9848_v7  ;;  %v9816_v47 = vpop.f32.mrb[26].mxu0  ;;  %v3903_v21 = vpop.f32.mrb[29].mxu1 }
 0x34a   : > { %v7496_v22 = vadd.f32 %v7495_v14, %v7494_v55  ;;  %v7596_v49 = vadd.f32 %v7595_v17, %v7594_v25  ;;  %v9849_v59 = vadd.f32 %v9816_v47, %v9366_v63  ;;  %v7355_v4 = vpop.f32.mrb[27].mxu0  ;;  %v7599_v42 = vsel %vm256_vm1, %v7543_v13, 0.0 }
 0x34b   : > { %v7597_v24 = vsel %vm256_vm1, %v7542_v37, 0.0  ;;  %v9850_v11 = vadd.f32 %v7355_v4, %v3893_v45 }
 0x34c   : > { %v7598_v29 = vadd.f32 %v7597_v24, %v7596_v49  ;;  %7443 = vst.msk [vmem:[%s12182_s20 + $0xd8] sm:$0xff] %vm256_vm1, %v9849_v59  ;;  %v7498_v30 = vadd.f32 %v7497_v40, %v7496_v22  ;;  %v7545_v27 = vmul.f32 %v9849_v59, %v9849_v59  ;;  %v9372_v36 = vpop.f32.mrb[30].mxu1  ;;  %v7501_v8 = vsel %vm256_vm1, %v9849_v59, 0.0 }
 0x34d   : > { %7442 = vst.msk [vmem:[%s12182_s20 + $0xd0] sm:$0xff] %vm256_vm1, %v9850_v11  ;;  %v7499_v34 = vsel %vm256_vm1, %v9850_v11, 0.0  ;;  %v7544_v32 = vmul.f32 %v9850_v11, %v9850_v11  ;;  %v9819_v41 = vpop.f32.mrb[28].mxu0  ;;  %v3913_v54 = vpop.f32.mrb[31].mxu1 }
 0x34e   : > { %v7500_v48 = vadd.f32 %v7499_v34, %v7498_v30  ;;  %v7600_v39 = vadd.f32 %v7599_v42, %v7598_v29  ;;  %v9851_v50 = vadd.f32 %v9819_v41, %v9369_v6  ;;  %v7365_v61 = vpop.f32.mrb[29].mxu0  ;;  %v7603_v26 = vsel %vm256_vm1, %v7545_v27, 0.0 }
 0x34f   : > { %v7601_v12 = vsel %vm256_vm1, %v7544_v32, 0.0  ;;  %v9852_v1 = vadd.f32 %v7365_v61, %v3903_v21 }
 0x350   : > { %v7602_v16 = vadd.f32 %v7601_v12, %v7600_v39  ;;  %7445 = vst.msk [vmem:[%s12182_s20 + $0xe8] sm:$0xff] %vm256_vm1, %v9851_v50  ;;  %v7502_v28 = vadd.f32 %v7501_v8, %v7500_v48  ;;  %v7547_v31 = vmul.f32 %v9851_v50, %v9851_v50  ;;  %v7505_v5 = vsel %vm256_vm1, %v9851_v50, 0.0 }
 0x351   : > { %7444 = vst.msk [vmem:[%s12182_s20 + $0xe0] sm:$0xff] %vm256_vm1, %v9852_v1  ;;  %v7503_v51 = vsel %vm256_vm1, %v9852_v1, 0.0  ;;  %v7546_v38 = vmul.f32 %v9852_v1, %v9852_v1  ;;  %v9822_v58 = vpop.f32.mrb[30].mxu0 }
 0x352   : > { %v7504_v60 = vadd.f32 %v7503_v51, %v7502_v28  ;;  %v7604_v62 = vadd.f32 %v7603_v26, %v7602_v16  ;;  %v9853_v0 = vadd.f32 %v9822_v58, %v9372_v36  ;;  %v7375_v3 = vpop.f32.mrb[31].mxu0  ;;  %v7607_v44 = vsel %vm256_vm1, %v7547_v31, 0.0 }
 0x353   : > { %v7605_v19 = vsel %vm256_vm1, %v7546_v38, 0.0  ;;  %v9854_v23 = vadd.f32 %v7375_v3, %v3913_v54 }
 0x354   : > { %v7606_v33 = vadd.f32 %v7605_v19, %v7604_v62  ;;  %7447 = vst.msk [vmem:[%s12182_s20 + $0xf8] sm:$0xff] %vm256_vm1, %v9853_v0  ;;  %v7506_v35 = vadd.f32 %v7505_v5, %v7504_v60  ;;  %v7549_v46 = vmul.f32 %v9853_v0, %v9853_v0  ;;  %v7509_v63 = vsel %vm256_vm1, %v9853_v0, 0.0 }
 0x355   : > { %7446 = vst.msk [vmem:[%s12182_s20 + $0xf0] sm:$0xff] %vm256_vm1, %v9854_v23  ;;  %v7507_v52 = vsel %vm256_vm1, %v9854_v23, 0.0  ;;  %v7548_v53 = vmul.f32 %v9854_v23, %v9854_v23 }
 0x356   : > { %v7508_v56 = vadd.f32 %v7507_v52, %v7506_v35  ;;  %v7608_v57 = vadd.f32 %v7607_v44, %v7606_v33  ;;  %v7611_v15 = vsel %vm256_vm1, %v7549_v46, 0.0 }
 0x357   : > { %v7609_v2 = vsel %vm256_vm1, %v7548_v53, 0.0 }
 0x358   : > { %v7510_v9 = vadd.f32 %v7509_v63, %v7508_v56  ;;  %v7610_v10 = vadd.f32 %v7609_v2, %v7608_v57 }
 0x35a   : > { %v7511_v45 = vrot.slane %v7510_v9, 4  ;;  %v7612_v18 = vadd.f32 %v7611_v15, %v7610_v10 }
 0x35c   : > { %v7512_v43 = vadd.f32 %v7511_v45, %v7510_v9  ;;  %v7613_v20 = vrot.slane %v7612_v18, 4 }
 0x35e   : > { %v7513_v7 = vrot.slane %v7512_v43, 2  ;;  %v7614_v25 = vadd.f32 %v7613_v20, %v7612_v18 }
 0x360   : > { %v7514_v55 = vadd.f32 %v7513_v7, %v7512_v43  ;;  %v7615_v17 = vrot.slane %v7614_v25, 2 }
 0x362   : > { %v7515_v13 = vrot.slane %v7514_v55, 1  ;;  %v7616_v14 = vadd.f32 %v7615_v17, %v7614_v25 }
 0x364   : > { %v7516_v37 = vadd.f32 %v7515_v13, %v7514_v55  ;;  %v7617_v6 = vrot.slane %v7616_v14, 1 }
 0x366   : > { %7517 = vst.msk [vmem:[%s255_s23] sm:$0x1] %vm265_vm2, %v7516_v37  ;;  %v7618_v47 = vadd.f32 %v7617_v6, %v7616_v14 }
 0x368   : > { %7619 = vst.msk [vmem:[%s255_s23 + $0x1] sm:$0x1] %vm265_vm2, %v7618_v47 }
 0x369 PF: > { %s16_s18 = sadd.s32 1, %s10382_s18  }
 0x36a   : > { %p13_p4 = scmp.ge.s32.totalorder %s16_s18, 4  }
 0x36c   :  { %15 = sbr.rel (!%p13_p4) target bundleno = 1 (0x1), region = 87 }

</bundles_post_ra>
